<compile_context>
chip_gen: v7x
topology: tpu7x:2x2x1
jax: 0.10.0
libtpu: 0.0.40
codegen_flags: <defaults>
</compile_context>

<pallas_src>
import time as _time

import numpy as np
import jax
import jax.numpy as jnp
from jax.experimental import pallas as pl
from jax.experimental.pallas import tpu as pltpu


# ----------------------------------------------------------------------------
# Pallas kernel: fused multi-hot x block-diagonal-table matmul
# ----------------------------------------------------------------------------
def _make_multihot_kernel(n_fields):
    """kernel(idx_ref (TILE_N, NF) i32, tab_ref (V_pad, H_pad) f32,
              out_ref (TILE_N, H_pad) f32)."""

    def kernel(idx_ref, tab_ref, out_ref):
        ids = idx_ref[...]                      # (TILE_N, NF) globalized indices
        tile_n = ids.shape[0]
        v_pad = tab_ref.shape[0]
        # One shared iota reused for every field compare (JAX doesn't CSE these).
        iota = jax.lax.broadcasted_iota(jnp.int32, (tile_n, v_pad), 1)
        # Vocab ranges are disjoint -> OR the boolean masks, cast to f32 ONCE
        # (saves 4 int->float converts vs. summing per-field floats).
        eq = ids[:, 0:1] == iota
        for f in range(1, n_fields):
            eq = eq | (ids[:, f:f + 1] == iota)
        mh = eq.astype(jnp.float32)             # (TILE_N, V_pad) multi-hot
        # Single MXU matmul; the block-diagonal table routes each field into its
        # own channel slice, so one dense 128-lane-multiple store covers the
        # whole (padded) hidden dim.
        out_ref[...] = jnp.dot(mh, tab_ref[...],
                               preferred_element_type=jnp.float32)

    return kernel


def embed_multihot(idx_global, big_table, hidden, *, tile_n=512):
    """idx_global: (N, NF) int32 host array (globalized indices, -1 = pad row);
    big_table: (V_pad, H_pad) f32 device array  ->  (N, hidden) f32."""
    idx_global = np.asarray(idx_global, dtype=np.int32)
    n_rows, n_fields = idx_global.shape
    n_pad = ((n_rows + tile_n - 1) // tile_n) * tile_n
    if n_pad != n_rows:
        pad = np.full((n_pad - n_rows, n_fields), -1, dtype=np.int32)
        idx_global = np.concatenate([idx_global, pad], axis=0)
    idx_dev = jnp.asarray(idx_global)

    v_pad = int(big_table.shape[0])
    h_pad = int(big_table.shape[1])
    kernel = _make_multihot_kernel(n_fields)

    out = pl.pallas_call(
        kernel,
        out_shape=jax.ShapeDtypeStruct((n_pad, h_pad), jnp.float32),
        grid=(n_pad // tile_n,),
        in_specs=[
            pl.BlockSpec((tile_n, n_fields), lambda i: (i, 0)),   # row-tiled idx
            pl.BlockSpec((v_pad, h_pad), lambda i: (0, 0)),       # resident table
        ],
        out_specs=pl.BlockSpec((tile_n, h_pad), lambda i: (i, 0)),
        compiler_params=pltpu.CompilerParams(
            dimension_semantics=("parallel",)),                   # 2x on v7x dual TC
    )(idx_dev, big_table)
    # Strip row padding and the lane padding of the hidden dim (fused by XLA
    # with the following reshape in the wrapper).
    return out[:n_rows, :hidden]


# ----------------------------------------------------------------------------
# Host-side glue: timestamp -> calendar indices (matches the PyTorch reference,
# including local-timezone semantics of time.ctime; vectorized via np.unique).
# ----------------------------------------------------------------------------
def convert_timestamps(history_time, candidate_time):
    """history_time: (B, L) int, candidate_time: (B,) int -> five (B, L+1) int32."""
    batch_time = np.concatenate(
        [np.asarray(history_time, np.int64),
         np.asarray(candidate_time, np.int64)[:, None]], axis=1)
    flat = batch_time.reshape(-1)
    uniq, inv = np.unique(flat, return_inverse=True)
    fields = np.empty((uniq.shape[0], 5), dtype=np.int32)
    for i, ts in enumerate(uniq.tolist()):
        st = _time.localtime(ts)        # same local-TZ calendar as time.ctime
        fields[i, 0] = st.tm_mon - 1    # months dict: Jan=0..Dec=11
        fields[i, 1] = st.tm_mday - 1   # days dict:   1->0 .. 31->30
        fields[i, 2] = st.tm_wday       # weeks dict:  Mon=0..Sun=6
        fields[i, 3] = st.tm_hour
        fields[i, 4] = st.tm_min
    per = fields[np.asarray(inv).reshape(-1)].reshape(batch_time.shape + (5,))
    return per[..., 0], per[..., 1], per[..., 2], per[..., 3], per[..., 4]


# ----------------------------------------------------------------------------
# Module wrapper
# ----------------------------------------------------------------------------
class TimeEmbeddingMonthPallas:
    _ABS_VOCABS = (12, 31, 7, 24, 60)
    _INT_LOCAL_OFFSETS = (12, 31, 7, 24, 60)

    def __init__(self, hidden_size, key):
        self.hidden_size = hidden_size
        t = hidden_size // 5
        mi_dim = hidden_size - t * 4
        self.dims = [t, t, t, t, mi_dim]
        self.ch_off = np.concatenate([[0], np.cumsum(self.dims)[:-1]]).astype(np.int64)

        keys = jax.random.split(key, 10)
        mk = lambda k, v, d: jax.random.normal(k, (v, d), dtype=jnp.float32) * 0.02
        self.abs_tables = [mk(keys[f], v, self.dims[f])
                           for f, v in enumerate(self._ABS_VOCABS)]
        self.int_tables = [mk(keys[5 + f], v * 2, self.dims[f])
                           for f, v in enumerate(self._ABS_VOCABS)]

        # ---- build the combined block-diagonal table (abs + interval fused) ----
        voc_sizes = list(self._ABS_VOCABS) + [v * 2 for v in self._ABS_VOCABS]
        voc_off = np.concatenate([[0], np.cumsum(voc_sizes)[:-1]]).astype(np.int64)
        v_total = int(sum(voc_sizes))                         # 402
        v_pad = ((v_total + 127) // 128) * 128                # 512 (lane aligned)
        h_pad = ((hidden_size + 127) // 128) * 128            # lane-dense output stores
        big = np.zeros((v_pad, h_pad), dtype=np.float32)
        all_tables = self.abs_tables + self.int_tables
        for f, tab in enumerate(all_tables):
            r0 = int(voc_off[f])
            c0 = int(self.ch_off[f % 5])
            V, D = tab.shape
            big[r0:r0 + V, c0:c0 + D] = np.asarray(tab)
        self.big_table = jnp.asarray(big)                     # ~256 KiB, VMEM-resident
        self.abs_voc_off = voc_off[:5].astype(np.int32)
        self.int_voc_off = voc_off[5:].astype(np.int32)

    def __call__(self, history_time, candidate_time):
        # TODO(synk): timestamp->calendar conversion (time.ctime) has no Pallas
        # equivalent; it stays on host, vectorized over unique timestamps.
        bm, bd, bw, bh, bmi = convert_timestamps(history_time, candidate_time)
        B, S = bm.shape  # S = L + 1
        fields = np.stack([bm, bd, bw, bh, bmi], axis=-1).astype(np.int32)  # (B,S,5)

        # absolute rows: globalized indices
        abs_idx = fields.reshape(B * S, 5) + self.abs_voc_off[None, :]

        # interval rows: (last - rest + local_offset), then global vocab offset
        local = np.asarray(self._INT_LOCAL_OFFSETS, np.int32)
        int_fields = fields[:, -1:, :] - fields[:, :-1, :] + local[None, None, :]
        int_idx = int_fields.reshape(B * (S - 1), 5) + self.int_voc_off[None, :]

        # ONE pallas_call serves both embedding sets
        idx_all = np.concatenate([abs_idx, int_idx], axis=0).astype(np.int32)
        out = embed_multihot(idx_all, self.big_table, self.hidden_size)

        abs_embedding = out[:B * S].reshape(B, S, self.hidden_size)
        interval_embedding = out[B * S:B * S + B * (S - 1)].reshape(
            B, S - 1, self.hidden_size)
        return abs_embedding, interval_embedding


# ----------------------------------------------------------------------------
# Pure-JAX reference (for correctness check)
# ----------------------------------------------------------------------------
def _ref_embed_concat(idx, tables):
    outs = [jnp.take(tab, idx[:, f], axis=0) for f, tab in enumerate(tables)]
    return jnp.concatenate(outs, axis=-1)


if __name__ == "__main__":
    key = jax.random.PRNGKey(0)
    B, L, HIDDEN = 2, 8, 40  # hidden_size=40 -> t=8, minute dim = 8

    k_param, k_hist, k_cand = jax.random.split(key, 3)
    module = TimeEmbeddingMonthPallas(HIDDEN, k_param)

    base = 1_600_000_000
    history_time = np.asarray(
        base + jax.random.randint(k_hist, (B, L), 0, 10_000_000), dtype=np.int64)
    candidate_time = np.asarray(
        base + jax.random.randint(k_cand, (B,), 0, 10_000_000), dtype=np.int64)

    abs_emb, int_emb = module(history_time, candidate_time)
    abs_emb = jax.block_until_ready(abs_emb)
    int_emb = jax.block_until_ready(int_emb)

    assert abs_emb.shape == (B, L + 1, HIDDEN)
    assert int_emb.shape == (B, L, HIDDEN)

    # correctness check vs pure-JAX gather reference
    bm, bd, bw, bh, bmi = convert_timestamps(history_time, candidate_time)
    abs_idx = np.stack([bm, bd, bw, bh, bmi], axis=-1).reshape(B * (L + 1), 5)
    ref_abs = _ref_embed_concat(jnp.asarray(abs_idx, jnp.int32),
                                module.abs_tables).reshape(B, L + 1, HIDDEN)
    offs = [12, 31, 7, 24, 60]
    ints = [a[:, -1:].astype(np.int32) - a[:, :-1].astype(np.int32) + o
            for a, o in zip([bm, bd, bw, bh, bmi], offs)]
    int_idx = np.stack(ints, axis=-1).reshape(B * L, 5)
    ref_int = _ref_embed_concat(jnp.asarray(int_idx, jnp.int32),
                                module.int_tables).reshape(B, L, HIDDEN)

    np.testing.assert_allclose(np.asarray(abs_emb), np.asarray(ref_abs), atol=1e-5)
    np.testing.assert_allclose(np.asarray(int_emb), np.asarray(ref_int), atol=1e-5)

    print("KERNEL_OK")
</pallas_src>

<mosaic_0001>
module attributes {stable_mosaic.version = 11 : i64} {
  func.func @kernel(%arg0: i32, %arg1: memref<512x5xi32, #tpu.memory_space<vmem>>, %arg2: memref<512x128xf32, #tpu.memory_space<vmem>>, %arg3: memref<512x128xf32, #tpu.memory_space<vmem>>) attributes {dimension_semantics = [#tpu.dimension_semantics<parallel>], iteration_bounds = array<i64: 1>, scalar_prefetch = 0 : i64, scratch_operands = 0 : i64, tpu.core_type = #tpu.core_type<tc>, window_params = [{transform_indices = @transform_0, window_bounds = array<i64: 512, 5>}, {pipeline_mode = #tpu.pipeline_mode<synchronous>, transform_indices = @transform_1, window_bounds = array<i64: 512, 128>}, {transform_indices = @transform_2, window_bounds = array<i64: 512, 128>}]} {
    %c0 = arith.constant 0 : index
    %c0_0 = arith.constant 0 : index
    %0 = vector.load %arg1[%c0, %c0_0] : memref<512x5xi32, #tpu.memory_space<vmem>>, vector<512x5xi32>
    %1 = tpu.iota {dimensions = array<i32: 1>} : vector<512x512xi32>
    %2 = vector.extract_strided_slice %0 {offsets = [0, 0], sizes = [512, 1], strides = [1, 1]} : vector<512x5xi32> to vector<512x1xi32>
    %3 = vector.broadcast %2 : vector<512x1xi32> to vector<512x512xi32>
    %4 = arith.cmpi eq, %3, %1 : vector<512x512xi32>
    %5 = vector.extract_strided_slice %0 {offsets = [0, 1], sizes = [512, 1], strides = [1, 1]} : vector<512x5xi32> to vector<512x1xi32>
    %6 = vector.broadcast %5 : vector<512x1xi32> to vector<512x512xi32>
    %7 = arith.cmpi eq, %6, %1 : vector<512x512xi32>
    %8 = arith.ori %4, %7 : vector<512x512xi1>
    %9 = vector.extract_strided_slice %0 {offsets = [0, 2], sizes = [512, 1], strides = [1, 1]} : vector<512x5xi32> to vector<512x1xi32>
    %10 = vector.broadcast %9 : vector<512x1xi32> to vector<512x512xi32>
    %11 = arith.cmpi eq, %10, %1 : vector<512x512xi32>
    %12 = arith.ori %8, %11 : vector<512x512xi1>
    %13 = vector.extract_strided_slice %0 {offsets = [0, 3], sizes = [512, 1], strides = [1, 1]} : vector<512x5xi32> to vector<512x1xi32>
    %14 = vector.broadcast %13 : vector<512x1xi32> to vector<512x512xi32>
    %15 = arith.cmpi eq, %14, %1 : vector<512x512xi32>
    %16 = arith.ori %12, %15 : vector<512x512xi1>
    %17 = vector.extract_strided_slice %0 {offsets = [0, 4], sizes = [512, 1], strides = [1, 1]} : vector<512x5xi32> to vector<512x1xi32>
    %18 = vector.broadcast %17 : vector<512x1xi32> to vector<512x512xi32>
    %19 = arith.cmpi eq, %18, %1 : vector<512x512xi32>
    %20 = arith.ori %16, %19 : vector<512x512xi1>
    %21 = arith.extui %20 : vector<512x512xi1> to vector<512x512xi32>
    %22 = arith.sitofp %21 : vector<512x512xi32> to vector<512x512xf32>
    %c0_1 = arith.constant 0 : index
    %c0_2 = arith.constant 0 : index
    %23 = vector.load %arg2[%c0_1, %c0_2] : memref<512x128xf32, #tpu.memory_space<vmem>>, vector<512x128xf32>
    %cst = arith.constant dense<0.000000e+00> : vector<512x128xf32>
    %24 = tpu.matmul %22, %23, %cst {dimension_numbers = #tpu.dot_dimension_numbers<[1], [0], [0], [1], [0, 0, 1, 1], [], []>} : vector<512x512xf32>, vector<512x128xf32>, vector<512x128xf32> -> vector<512x128xf32>
    %c0_3 = arith.constant 0 : index
    %c0_4 = arith.constant 0 : index
    %25 = vector.load %arg3[%c0_3, %c0_4] : memref<512x128xf32, #tpu.memory_space<vmem>>, vector<512x128xf32>
    tpu.vector_store %arg3[%c0_3, %c0_4], %24 {strides = array<i32>} : memref<512x128xf32, #tpu.memory_space<vmem>>, vector<512x128xf32>,
    return
  }
  func.func @transform_0(%arg0: i32) -> (i32, i32) {
    %c0_i32 = arith.constant 0 : i32
    %c0_i32_0 = arith.constant 0 : i32
    return %arg0, %c0_i32 : i32, i32
  }
  func.func @transform_1(%arg0: i32) -> (i32, i32) {
    %c0_i32 = arith.constant 0 : i32
    %c0_i32_0 = arith.constant 0 : i32
    %c0_i32_1 = arith.constant 0 : i32
    return %c0_i32, %c0_i32_0 : i32, i32
  }
  func.func @transform_2(%arg0: i32) -> (i32, i32) {
    %c0_i32 = arith.constant 0 : i32
    %c0_i32_0 = arith.constant 0 : i32
    return %arg0, %c0_i32 : i32, i32
  }
}

</mosaic_0001>

<bundles_post_ra>
// kernel: tpu_custom_call.1
= control target key start
LH: loop header
LB: loop body
LE: loop exit
PB: predicated region body
PF: predicated region fallthrough
CT: control target
= control target key end

     0   :  { %v5386_v2 = vmov 0   ;;  %s12599_s0 = inlined_call_operand.vmem [shape: s32[512,5], index: 0, kind: input, shape index: {}]   ;;  %s12600_s1 = inlined_call_operand.vmem [shape: f32[512,128], index: 1, kind: input, shape index: {}]   ;;  %s12601_s2 = inlined_call_operand.hbm [shape: f32[512,128], index: 2, kind: output, shape index: {}]  }
   0x1   :  { %v5414_v0 = vld [vmem:[%s12599_s0 + $0x10] sm:$0xff]  ;;  %v5419_v1 = vld [vmem:[%s12599_s0] sm:$0xff]  ;;  %5198 = vset.pattern.permute.xlu1 %v5386_v2  ;;  %5197 = vset.pattern.permute.xlu0 %v5386_v2  ;;  %v5426_v3 = vld [vmem:[%s12599_s0 + $0x18] sm:$0xff] }
   0x2   :  { %88 = vperm.xlu1 %5198, %v5414_v0   ;;  %82 = vperm.xlu0 %5197, %v5419_v1   ;;  %v5431_v4 = vld [vmem:[%s12599_s0 + $0x8] sm:$0xff]  ;;  %v5443_v6 = vld [vmem:[%s12599_s0 + $0x20] sm:$0xff]  ;;  %v5450_v7 = vld [vmem:[%s12599_s0 + $0x38] sm:$0xff] }
   0x3   :  { %v5438_v5 = vld [vmem:[%s12599_s0 + $0x28] sm:$0xff]  ;;  %v5455_v8 = vld [vmem:[%s12599_s0 + $0x30] sm:$0xff]  ;;  %v5467_v10 = vld [vmem:[%s12599_s0 + $0x40] sm:$0xff] }
   0x4   :  { %v5462_v9 = vld [vmem:[%s12599_s0 + $0x48] sm:$0xff]  ;;  %v5474_v11 = vld [vmem:[%s12599_s0 + $0x58] sm:$0xff]  ;;  %v5479_v12 = vld [vmem:[%s12599_s0 + $0x50] sm:$0xff] }
   0x6   :  { %91 = vperm.xlu1 %5198, %v5426_v3   ;;  %85 = vperm.xlu0 %5197, %v5431_v4  }
   0xa   :  { %97 = vperm.xlu1 %5198, %v5438_v5   ;;  %94 = vperm.xlu0 %5197, %v5443_v6  }
   0xe   :  { %103 = vperm.xlu1 %5198, %v5450_v7   ;;  %100 = vperm.xlu0 %5197, %v5455_v8  }
  0x12   :  { %109 = vperm.xlu1 %5198, %v5462_v9   ;;  %106 = vperm.xlu0 %5197, %v5467_v10  }
  0x13   :  { %7 = vsyncpa [#allocation3], 0  ;;  %v5486_v13 = vld [vmem:[%s12599_s0 + $0x68] sm:$0xff]  ;;  %v5491_v14 = vld [vmem:[%s12599_s0 + $0x60] sm:$0xff] }
  0x14   :  { %v5498_v15 = vld [vmem:[%s12599_s0 + $0x78] sm:$0xff]  ;;  %v5503_v16 = vld [vmem:[%s12599_s0 + $0x70] sm:$0xff]  ;;  %v5510_v17 = vld [vmem:[%s12599_s0 + $0x88] sm:$0xff] }
  0x15   :  { %v5515_v18 = vld [vmem:[%s12599_s0 + $0x80] sm:$0xff]  ;;  %v5522_v19 = vld [vmem:[%s12599_s0 + $0x98] sm:$0xff]  ;;  %v5527_v20 = vld [vmem:[%s12599_s0 + $0x90] sm:$0xff] }
  0x16   :  { %115 = vperm.xlu1 %5198, %v5474_v11   ;;  %112 = vperm.xlu0 %5197, %v5479_v12   ;;  %v5534_v21 = vld [vmem:[%s12599_s0 + $0xa8] sm:$0xff]  ;;  %v5539_v22 = vld [vmem:[%s12599_s0 + $0xa0] sm:$0xff]  ;;  %v5546_v23 = vld [vmem:[%s12599_s0 + $0xb8] sm:$0xff] }
  0x17   :  { %v5551_v24 = vld [vmem:[%s12599_s0 + $0xb0] sm:$0xff]  ;;  %v5558_v25 = vld [vmem:[%s12599_s0 + $0xc8] sm:$0xff]  ;;  %v5563_v26 = vld [vmem:[%s12599_s0 + $0xc0] sm:$0xff] }
  0x18   :  { %v5570_v27 = vld [vmem:[%s12599_s0 + $0xd8] sm:$0xff]  ;;  %v5575_v28 = vld [vmem:[%s12599_s0 + $0xd0] sm:$0xff]  ;;  %v5582_v29 = vld [vmem:[%s12599_s0 + $0xe8] sm:$0xff] }
  0x19   :  { %v5587_v30 = vld [vmem:[%s12599_s0 + $0xe0] sm:$0xff]  ;;  %v5594_v31 = vld [vmem:[%s12599_s0 + $0xf8] sm:$0xff]  ;;  %v5599_v32 = vld [vmem:[%s12599_s0 + $0xf0] sm:$0xff] }
  0x1a   :  { %121 = vperm.xlu1 %5198, %v5486_v13   ;;  %118 = vperm.xlu0 %5197, %v5491_v14   ;;  %v5606_v33 = vld [vmem:[%s12599_s0 + $0x108] sm:$0xff]  ;;  %v5611_v34 = vld [vmem:[%s12599_s0 + $0x100] sm:$0xff]  ;;  %v5618_v35 = vld [vmem:[%s12599_s0 + $0x118] sm:$0xff] }
  0x1b   :  { %v5623_v36 = vld [vmem:[%s12599_s0 + $0x110] sm:$0xff]  ;;  %v5630_v37 = vld [vmem:[%s12599_s0 + $0x128] sm:$0xff]  ;;  %v5635_v38 = vld [vmem:[%s12599_s0 + $0x120] sm:$0xff] }
  0x1c   :  { %v5642_v39 = vld [vmem:[%s12599_s0 + $0x138] sm:$0xff]  ;;  %v5647_v40 = vld [vmem:[%s12599_s0 + $0x130] sm:$0xff]  ;;  %v5654_v41 = vld [vmem:[%s12599_s0 + $0x148] sm:$0xff] }
  0x1d   :  { %v5659_v42 = vld [vmem:[%s12599_s0 + $0x140] sm:$0xff]  ;;  %v5666_v43 = vld [vmem:[%s12599_s0 + $0x158] sm:$0xff]  ;;  %v5671_v44 = vld [vmem:[%s12599_s0 + $0x150] sm:$0xff] }
  0x1e   :  { %127 = vperm.xlu1 %5198, %v5498_v15   ;;  %124 = vperm.xlu0 %5197, %v5503_v16   ;;  %v5678_v45 = vld [vmem:[%s12599_s0 + $0x168] sm:$0xff]  ;;  %v5683_v46 = vld [vmem:[%s12599_s0 + $0x160] sm:$0xff]  ;;  %v5690_v47 = vld [vmem:[%s12599_s0 + $0x178] sm:$0xff] }
  0x1f   :  { %v5695_v48 = vld [vmem:[%s12599_s0 + $0x170] sm:$0xff]  ;;  %v5702_v49 = vld [vmem:[%s12599_s0 + $0x188] sm:$0xff]  ;;  %v5707_v50 = vld [vmem:[%s12599_s0 + $0x180] sm:$0xff] }
  0x20   :  { %v5714_v51 = vld [vmem:[%s12599_s0 + $0x198] sm:$0xff]  ;;  %v5719_v52 = vld [vmem:[%s12599_s0 + $0x190] sm:$0xff]  ;;  %v5726_v53 = vld [vmem:[%s12599_s0 + $0x1a8] sm:$0xff] }
  0x21   :  { %12769 = vst [vmem:[#allocation5_spill] sm:$0xff] %v5714_v51  ;;  %12770 = vst [vmem:[#allocation6_spill] sm:$0xff] %v5726_v53  ;;  %v5731_v54 = vld [vmem:[%s12599_s0 + $0x1a0] sm:$0xff]  ;;  %v5738_v55 = vld [vmem:[%s12599_s0 + $0x1b8] sm:$0xff] }
  0x22   :  { %133 = vperm.xlu1 %5198, %v5510_v17   ;;  %130 = vperm.xlu0 %5197, %v5515_v18   ;;  %12771 = vst [vmem:[#allocation7_spill] sm:$0xff] %v5738_v55  ;;  %v5743_v56 = vld [vmem:[%s12599_s0 + $0x1b0] sm:$0xff]  ;;  %v5750_v57 = vld [vmem:[%s12599_s0 + $0x1c8] sm:$0xff]  ;;  %v5755_v58 = vld [vmem:[%s12599_s0 + $0x1c0] sm:$0xff] }
  0x23   :  { %12772 = vst [vmem:[#allocation8_spill] sm:$0xff] %v5743_v56  ;;  %12773 = vst [vmem:[#allocation9_spill] sm:$0xff] %v5750_v57  ;;  %v5762_v59 = vld [vmem:[%s12599_s0 + $0x1d8] sm:$0xff]  ;;  %v5767_v60 = vld [vmem:[%s12599_s0 + $0x1d0] sm:$0xff] }
  0x24   :  { %12774 = vst [vmem:[#allocation10_spill] sm:$0xff] %v5762_v59  ;;  %12775 = vst [vmem:[#allocation11_spill] sm:$0xff] %v5767_v60  ;;  %v5774_v61 = vld [vmem:[%s12599_s0 + $0x1e8] sm:$0xff]  ;;  %v5779_v62 = vld [vmem:[%s12599_s0 + $0x1e0] sm:$0xff] }
  0x25   :  { %12776 = vst [vmem:[#allocation12_spill] sm:$0xff] %v5774_v61  ;;  %12777 = vst [vmem:[#allocation13_spill] sm:$0xff] %v5779_v62  ;;  %v5786_v63 = vld [vmem:[%s12599_s0 + $0x1f8] sm:$0xff]  ;;  %v5791_v2 = vld [vmem:[%s12599_s0 + $0x1f0] sm:$0xff] }
  0x26   :  { %139 = vperm.xlu1 %5198, %v5522_v19   ;;  %136 = vperm.xlu0 %5197, %v5527_v20   ;;  %12778 = vst [vmem:[#allocation14_spill] sm:$0xff] %v5786_v63 }
  0x2a   :  { %145 = vperm.xlu1 %5198, %v5534_v21   ;;  %142 = vperm.xlu0 %5197, %v5539_v22  }
  0x2e   :  { %151 = vperm.xlu1 %5198, %v5546_v23   ;;  %148 = vperm.xlu0 %5197, %v5551_v24  }
  0x32   :  { %157 = vperm.xlu1 %5198, %v5558_v25   ;;  %154 = vperm.xlu0 %5197, %v5563_v26  }
  0x36   :  { %163 = vperm.xlu1 %5198, %v5570_v27   ;;  %160 = vperm.xlu0 %5197, %v5575_v28  }
  0x3a   :  { %169 = vperm.xlu1 %5198, %v5582_v29   ;;  %166 = vperm.xlu0 %5197, %v5587_v30  }
  0x3e   :  { %175 = vperm.xlu1 %5198, %v5594_v31   ;;  %172 = vperm.xlu0 %5197, %v5599_v32  }
  0x42   :  { %181 = vperm.xlu1 %5198, %v5606_v33   ;;  %178 = vperm.xlu0 %5197, %v5611_v34  }
  0x46   :  { %187 = vperm.xlu1 %5198, %v5618_v35   ;;  %184 = vperm.xlu0 %5197, %v5623_v36  }
  0x4a   :  { %193 = vperm.xlu1 %5198, %v5630_v37   ;;  %190 = vperm.xlu0 %5197, %v5635_v38  }
  0x4e   :  { %199 = vperm.xlu1 %5198, %v5642_v39   ;;  %196 = vperm.xlu0 %5197, %v5647_v40  }
  0x52   :  { %205 = vperm.xlu1 %5198, %v5654_v41   ;;  %202 = vperm.xlu0 %5197, %v5659_v42  }
  0x56   :  { %211 = vperm.xlu1 %5198, %v5666_v43   ;;  %208 = vperm.xlu0 %5197, %v5671_v44  }
  0x5a   :  { %217 = vperm.xlu1 %5198, %v5678_v45   ;;  %214 = vperm.xlu0 %5197, %v5683_v46  }
  0x5e   :  { %223 = vperm.xlu1 %5198, %v5690_v47   ;;  %220 = vperm.xlu0 %5197, %v5695_v48  }
  0x62   :  { %229 = vperm.xlu1 %5198, %v5702_v49   ;;  %226 = vperm.xlu0 %5197, %v5707_v50  }
  0x66   :  { %235 = vperm.xlu1 %5198, %v5714_v51   ;;  %232 = vperm.xlu0 %5197, %v5719_v52  }
  0x6a   :  { %241 = vperm.xlu1 %5198, %v5726_v53   ;;  %238 = vperm.xlu0 %5197, %v5731_v54  }
  0x6e   :  { %247 = vperm.xlu1 %5198, %v5738_v55   ;;  %244 = vperm.xlu0 %5197, %v5743_v56  }
  0x72   :  { %253 = vperm.xlu1 %5198, %v5750_v57   ;;  %250 = vperm.xlu0 %5197, %v5755_v58  }
  0x76   :  { %259 = vperm.xlu1 %5198, %v5762_v59   ;;  %256 = vperm.xlu0 %5197, %v5767_v60  }
  0x7a   :  { %265 = vperm.xlu1 %5198, %v5774_v61   ;;  %262 = vperm.xlu0 %5197, %v5779_v62   ;;  %v5387_v61 = vmov 1  }
  0x7e   :  { %271 = vperm.xlu1 %5198, %v5786_v63   ;;  %268 = vperm.xlu0 %5197, %v5791_v2  }
  0x81   :  { %v5795_v59 = vpop.permute.xlu1 %88  ;;  %v5797_v60 = vpop.permute.xlu0 %82 }
  0x82   :  { %12779 = vst [vmem:[#allocation15_spill] sm:$0xff] %v5795_v59  ;;  %12780 = vst [vmem:[#allocation16_spill] sm:$0xff] %v5797_v60  ;;  %5200 = vset.pattern.permute.xlu1 %v5387_v61  ;;  %5199 = vset.pattern.permute.xlu0 %v5387_v61 }
  0x83   :  { %533 = vperm.xlu1 %5200, %v5431_v4   ;;  %530 = vperm.xlu0 %5199, %v5419_v1  }
  0x85   :  { %v5801_v62 = vpop.permute.xlu1 %91  ;;  %v5803_v57 = vpop.permute.xlu0 %85 }
  0x86   :  { %12781 = vst [vmem:[#allocation17_spill] sm:$0xff] %v5801_v62  ;;  %12782 = vst [vmem:[#allocation18_spill] sm:$0xff] %v5803_v57 }
  0x87   :  { %536 = vperm.xlu1 %5200, %v5414_v0   ;;  %539 = vperm.xlu0 %5199, %v5426_v3  }
  0x89   :  { %v5807_v63 = vpop.permute.xlu1 %97  ;;  %v5809_v59 = vpop.permute.xlu0 %94 }
  0x8a   :  { %12783 = vst [vmem:[#allocation19_spill] sm:$0xff] %v5807_v63  ;;  %12784 = vst [vmem:[#allocation20_spill] sm:$0xff] %v5809_v59 }
  0x8b   :  { %542 = vperm.xlu1 %5200, %v5443_v6   ;;  %545 = vperm.xlu0 %5199, %v5438_v5  }
  0x8d   :  { %v5813_v61 = vpop.permute.xlu1 %103  ;;  %v5815_v60 = vpop.permute.xlu0 %100 }
  0x8e   :  { %12785 = vst [vmem:[#allocation21_spill] sm:$0xff] %v5813_v61  ;;  %12786 = vst [vmem:[#allocation22_spill] sm:$0xff] %v5815_v60 }
  0x8f   :  { %548 = vperm.xlu1 %5200, %v5455_v8   ;;  %551 = vperm.xlu0 %5199, %v5450_v7  }
  0x91   :  { %v5819_v62 = vpop.permute.xlu1 %109  ;;  %v5821_v57 = vpop.permute.xlu0 %106 }
  0x92   :  { %12787 = vst [vmem:[#allocation23_spill] sm:$0xff] %v5819_v62  ;;  %12788 = vst [vmem:[#allocation24_spill] sm:$0xff] %v5821_v57 }
  0x93   :  { %554 = vperm.xlu1 %5200, %v5467_v10   ;;  %557 = vperm.xlu0 %5199, %v5462_v9  }
  0x95   :  { %v5825_v63 = vpop.permute.xlu1 %115  ;;  %v5827_v59 = vpop.permute.xlu0 %112 }
  0x96   :  { %12789 = vst [vmem:[#allocation25_spill] sm:$0xff] %v5825_v63  ;;  %12790 = vst [vmem:[#allocation26_spill] sm:$0xff] %v5827_v59 }
  0x97   :  { %560 = vperm.xlu1 %5200, %v5479_v12   ;;  %563 = vperm.xlu0 %5199, %v5474_v11  }
  0x99   :  { %v5831_v61 = vpop.permute.xlu1 %121  ;;  %v5833_v60 = vpop.permute.xlu0 %118 }
  0x9a   :  { %12791 = vst [vmem:[#allocation27_spill] sm:$0xff] %v5831_v61  ;;  %12792 = vst [vmem:[#allocation28_spill] sm:$0xff] %v5833_v60 }
  0x9b   :  { %566 = vperm.xlu1 %5200, %v5491_v14   ;;  %569 = vperm.xlu0 %5199, %v5486_v13  }
  0x9d   :  { %v5837_v62 = vpop.permute.xlu1 %127  ;;  %v5839_v57 = vpop.permute.xlu0 %124 }
  0x9e   :  { %12793 = vst [vmem:[#allocation29_spill] sm:$0xff] %v5837_v62  ;;  %12794 = vst [vmem:[#allocation30_spill] sm:$0xff] %v5839_v57 }
  0x9f   :  { %572 = vperm.xlu1 %5200, %v5503_v16   ;;  %575 = vperm.xlu0 %5199, %v5498_v15  }
  0xa1   :  { %v5843_v63 = vpop.permute.xlu1 %133  ;;  %v5845_v59 = vpop.permute.xlu0 %130 }
  0xa2   :  { %12795 = vst [vmem:[#allocation31_spill] sm:$0xff] %v5843_v63  ;;  %12796 = vst [vmem:[#allocation32_spill] sm:$0xff] %v5845_v59 }
  0xa3   :  { %578 = vperm.xlu1 %5200, %v5515_v18   ;;  %581 = vperm.xlu0 %5199, %v5510_v17  }
  0xa5   :  { %v5849_v61 = vpop.permute.xlu1 %139  ;;  %v5851_v60 = vpop.permute.xlu0 %136 }
  0xa6   :  { %12797 = vst [vmem:[#allocation33_spill] sm:$0xff] %v5849_v61  ;;  %12798 = vst [vmem:[#allocation34_spill] sm:$0xff] %v5851_v60 }
  0xa7   :  { %584 = vperm.xlu1 %5200, %v5527_v20   ;;  %587 = vperm.xlu0 %5199, %v5522_v19  }
  0xa9   :  { %v5855_v62 = vpop.permute.xlu1 %145  ;;  %v5857_v57 = vpop.permute.xlu0 %142 }
  0xaa   :  { %12799 = vst [vmem:[#allocation35_spill] sm:$0xff] %v5855_v62  ;;  %12800 = vst [vmem:[#allocation36_spill] sm:$0xff] %v5857_v57 }
  0xab   :  { %590 = vperm.xlu1 %5200, %v5539_v22   ;;  %593 = vperm.xlu0 %5199, %v5534_v21  }
  0xad   :  { %v5861_v63 = vpop.permute.xlu1 %151  ;;  %v5863_v59 = vpop.permute.xlu0 %148 }
  0xae   :  { %12801 = vst [vmem:[#allocation37_spill] sm:$0xff] %v5861_v63  ;;  %12802 = vst [vmem:[#allocation38_spill] sm:$0xff] %v5863_v59 }
  0xaf   :  { %596 = vperm.xlu1 %5200, %v5551_v24   ;;  %599 = vperm.xlu0 %5199, %v5546_v23  }
  0xb1   :  { %v5867_v61 = vpop.permute.xlu1 %157  ;;  %v5869_v60 = vpop.permute.xlu0 %154 }
  0xb2   :  { %12803 = vst [vmem:[#allocation39_spill] sm:$0xff] %v5867_v61  ;;  %12804 = vst [vmem:[#allocation40_spill] sm:$0xff] %v5869_v60 }
  0xb3   :  { %602 = vperm.xlu1 %5200, %v5563_v26   ;;  %605 = vperm.xlu0 %5199, %v5558_v25  }
  0xb5   :  { %v5873_v62 = vpop.permute.xlu1 %163  ;;  %v5875_v57 = vpop.permute.xlu0 %160 }
  0xb6   :  { %12805 = vst [vmem:[#allocation41_spill] sm:$0xff] %v5873_v62  ;;  %12806 = vst [vmem:[#allocation42_spill] sm:$0xff] %v5875_v57 }
  0xb7   :  { %608 = vperm.xlu1 %5200, %v5575_v28   ;;  %611 = vperm.xlu0 %5199, %v5570_v27  }
  0xb9   :  { %v5879_v63 = vpop.permute.xlu1 %169  ;;  %v5881_v59 = vpop.permute.xlu0 %166 }
  0xba   :  { %12807 = vst [vmem:[#allocation43_spill] sm:$0xff] %v5879_v63  ;;  %12808 = vst [vmem:[#allocation44_spill] sm:$0xff] %v5881_v59 }
  0xbb   :  { %614 = vperm.xlu1 %5200, %v5587_v30   ;;  %617 = vperm.xlu0 %5199, %v5582_v29  }
  0xbd   :  { %v5885_v61 = vpop.permute.xlu1 %175  ;;  %v5887_v60 = vpop.permute.xlu0 %172 }
  0xbe   :  { %12809 = vst [vmem:[#allocation45_spill] sm:$0xff] %v5885_v61  ;;  %12810 = vst [vmem:[#allocation46_spill] sm:$0xff] %v5887_v60 }
  0xbf   :  { %620 = vperm.xlu1 %5200, %v5599_v32   ;;  %623 = vperm.xlu0 %5199, %v5594_v31  }
  0xc1   :  { %v5891_v62 = vpop.permute.xlu1 %181  ;;  %v5893_v57 = vpop.permute.xlu0 %178 }
  0xc2   :  { %12811 = vst [vmem:[#allocation47_spill] sm:$0xff] %v5891_v62  ;;  %12812 = vst [vmem:[#allocation48_spill] sm:$0xff] %v5893_v57 }
  0xc3   :  { %626 = vperm.xlu1 %5200, %v5611_v34   ;;  %629 = vperm.xlu0 %5199, %v5606_v33  }
  0xc5   :  { %v5897_v63 = vpop.permute.xlu1 %187  ;;  %v5899_v59 = vpop.permute.xlu0 %184 }
  0xc6   :  { %12813 = vst [vmem:[#allocation49_spill] sm:$0xff] %v5897_v63  ;;  %12814 = vst [vmem:[#allocation50_spill] sm:$0xff] %v5899_v59 }
  0xc7   :  { %632 = vperm.xlu1 %5200, %v5623_v36   ;;  %635 = vperm.xlu0 %5199, %v5618_v35  }
  0xc9   :  { %v5903_v61 = vpop.permute.xlu1 %193  ;;  %v5905_v60 = vpop.permute.xlu0 %190 }
  0xca   :  { %12815 = vst [vmem:[#allocation51_spill] sm:$0xff] %v5903_v61  ;;  %12816 = vst [vmem:[#allocation52_spill] sm:$0xff] %v5905_v60 }
  0xcb   :  { %638 = vperm.xlu1 %5200, %v5635_v38   ;;  %641 = vperm.xlu0 %5199, %v5630_v37  }
  0xcd   :  { %v5909_v62 = vpop.permute.xlu1 %199  ;;  %v5911_v57 = vpop.permute.xlu0 %196 }
  0xce   :  { %12817 = vst [vmem:[#allocation53_spill] sm:$0xff] %v5909_v62  ;;  %12818 = vst [vmem:[#allocation54_spill] sm:$0xff] %v5911_v57 }
  0xcf   :  { %644 = vperm.xlu1 %5200, %v5647_v40   ;;  %647 = vperm.xlu0 %5199, %v5642_v39  }
  0xd1   :  { %v5915_v63 = vpop.permute.xlu1 %205  ;;  %v5917_v59 = vpop.permute.xlu0 %202 }
  0xd2   :  { %12819 = vst [vmem:[#allocation55_spill] sm:$0xff] %v5915_v63  ;;  %12820 = vst [vmem:[#allocation56_spill] sm:$0xff] %v5917_v59 }
  0xd3   :  { %650 = vperm.xlu1 %5200, %v5659_v42   ;;  %653 = vperm.xlu0 %5199, %v5654_v41  }
  0xd5   :  { %v5921_v61 = vpop.permute.xlu1 %211  ;;  %v5923_v60 = vpop.permute.xlu0 %208 }
  0xd6   :  { %12821 = vst [vmem:[#allocation57_spill] sm:$0xff] %v5921_v61  ;;  %12822 = vst [vmem:[#allocation58_spill] sm:$0xff] %v5923_v60 }
  0xd7   :  { %656 = vperm.xlu1 %5200, %v5671_v44   ;;  %659 = vperm.xlu0 %5199, %v5666_v43  }
  0xd9   :  { %v5927_v62 = vpop.permute.xlu1 %217  ;;  %v5929_v57 = vpop.permute.xlu0 %214 }
  0xda   :  { %12823 = vst [vmem:[#allocation59_spill] sm:$0xff] %v5927_v62  ;;  %12824 = vst [vmem:[#allocation60_spill] sm:$0xff] %v5929_v57 }
  0xdb   :  { %662 = vperm.xlu1 %5200, %v5683_v46   ;;  %665 = vperm.xlu0 %5199, %v5678_v45  }
  0xdd   :  { %v5933_v63 = vpop.permute.xlu1 %223  ;;  %v5935_v59 = vpop.permute.xlu0 %220 }
  0xde   :  { %12825 = vst [vmem:[#allocation61_spill] sm:$0xff] %v5933_v63  ;;  %12826 = vst [vmem:[#allocation62_spill] sm:$0xff] %v5935_v59 }
  0xdf   :  { %668 = vperm.xlu1 %5200, %v5695_v48   ;;  %671 = vperm.xlu0 %5199, %v5690_v47  }
  0xe1   :  { %v5939_v61 = vpop.permute.xlu1 %229  ;;  %v5941_v60 = vpop.permute.xlu0 %226 }
  0xe2   :  { %12827 = vst [vmem:[#allocation63_spill] sm:$0xff] %v5939_v61  ;;  %12828 = vst [vmem:[#allocation64_spill] sm:$0xff] %v5941_v60 }
  0xe3   :  { %674 = vperm.xlu1 %5200, %v5707_v50   ;;  %677 = vperm.xlu0 %5199, %v5702_v49  }
  0xe5   :  { %v5945_v62 = vpop.permute.xlu1 %235  ;;  %v5947_v57 = vpop.permute.xlu0 %232 }
  0xe6   :  { %12829 = vst [vmem:[#allocation65_spill] sm:$0xff] %v5945_v62  ;;  %12830 = vst [vmem:[#allocation66_spill] sm:$0xff] %v5947_v57 }
  0xe7   :  { %680 = vperm.xlu1 %5200, %v5719_v52   ;;  %683 = vperm.xlu0 %5199, %v5714_v51  }
  0xe9   :  { %v5951_v63 = vpop.permute.xlu1 %241  ;;  %v5953_v59 = vpop.permute.xlu0 %238 }
  0xea   :  { %12831 = vst [vmem:[#allocation67_spill] sm:$0xff] %v5951_v63  ;;  %12832 = vst [vmem:[#allocation68_spill] sm:$0xff] %v5953_v59  ;;  %v12837_v63 = vld [vmem:[#allocation9_spill] sm:$0xff] }
  0xeb   :  { %686 = vperm.xlu1 %5200, %v5731_v54   ;;  %689 = vperm.xlu0 %5199, %v5726_v53   ;;  %v12840_v53 = vld [vmem:[#allocation11_spill] sm:$0xff] }
  0xed   :  { %v5957_v61 = vpop.permute.xlu1 %247  ;;  %v5959_v60 = vpop.permute.xlu0 %244 }
  0xee   :  { %12833 = vst [vmem:[#allocation69_spill] sm:$0xff] %v5957_v61  ;;  %12834 = vst [vmem:[#allocation70_spill] sm:$0xff] %v5959_v60  ;;  %v12841_v61 = vld [vmem:[#allocation10_spill] sm:$0xff] }
  0xef   :  { %692 = vperm.xlu1 %5200, %v5743_v56   ;;  %695 = vperm.xlu0 %5199, %v5738_v55   ;;  %v12844_v55 = vld [vmem:[#allocation13_spill] sm:$0xff] }
  0xf1   :  { %v5963_v62 = vpop.permute.xlu1 %253  ;;  %v5965_v57 = vpop.permute.xlu0 %250 }
  0xf2   :  { %12835 = vst [vmem:[#allocation71_spill] sm:$0xff] %v5963_v62  ;;  %12836 = vst [vmem:[#allocation72_spill] sm:$0xff] %v5965_v57  ;;  %v12845_v62 = vld [vmem:[#allocation12_spill] sm:$0xff] }
  0xf3   :  { %698 = vperm.xlu1 %5200, %v5755_v58   ;;  %701 = vperm.xlu0 %5199, %v12837_v63  }
  0xf5   :  { %v5969_v59 = vpop.permute.xlu1 %259  ;;  %v5971_v51 = vpop.permute.xlu0 %256 }
  0xf6   :  { %12838 = vst [vmem:[#allocation9_spill] sm:$0xff] %v5969_v59  ;;  %12839 = vst [vmem:[#allocation73_spill] sm:$0xff] %v5971_v51  ;;  %v12848_v59 = vld [vmem:[#allocation14_spill] sm:$0xff] }
  0xf7   :  { %704 = vperm.xlu1 %5200, %v12840_v53   ;;  %707 = vperm.xlu0 %5199, %v12841_v61   ;;  %v12673_v61 = vmov 2  }
  0xf9   :  { %v5975_v60 = vpop.permute.xlu1 %265  ;;  %v5977_v56 = vpop.permute.xlu0 %262 }
  0xfa   :  { %12842 = vst [vmem:[#allocation11_spill] sm:$0xff] %v5975_v60  ;;  %12843 = vst [vmem:[#allocation10_spill] sm:$0xff] %v5977_v56 }
  0xfb   :  { %710 = vperm.xlu1 %5200, %v12844_v55   ;;  %713 = vperm.xlu0 %5199, %v12845_v62  }
  0xfd   :  { %v5981_v57 = vpop.permute.xlu1 %271  ;;  %v5983_v58 = vpop.permute.xlu0 %268 }
  0xfe   :  { %12846 = vst [vmem:[#allocation13_spill] sm:$0xff] %v5981_v57  ;;  %12847 = vst [vmem:[#allocation12_spill] sm:$0xff] %v5983_v58  ;;  %v5389_v58 = vmov 0.0|0.0  }
  0xff   :  { %716 = vperm.xlu1 %5200, %v5791_v2   ;;  %719 = vperm.xlu0 %5199, %v12848_v59  }
 0x100   :  { %5027 = vmatprep.subr.bf16.mxu1 %v5389_v58  ;;  %5075 = vmatprep.subr.bf16.mxu0 %v5389_v58 }
 0x102   :  { %v5987_v51 = vpop.permute.xlu1 %533  ;;  %v5989_v53 = vpop.permute.xlu0 %530 }
 0x103   :  { %5201 = vset.pattern.permute.xlu1 %v12673_v61  ;;  %5202 = vset.pattern.permute.xlu0 %v12673_v61 }
 0x104   :  { %1234 = vperm.xlu1 %5201, %v5419_v1   ;;  %1237 = vperm.xlu0 %5202, %v5431_v4  }
 0x106   :  { %v5995_v55 = vpop.permute.xlu1 %536  ;;  %v5997_v62 = vpop.permute.xlu0 %539 }
 0x108   :  { %1240 = vperm.xlu1 %5201, %v5414_v0   ;;  %1246 = vperm.xlu0 %5202, %v5443_v6  }
 0x10a   :  { %v6001_v59 = vpop.permute.xlu1 %542  ;;  %v6003_v2 = vpop.permute.xlu0 %545 }
 0x10c   :  { %1243 = vperm.xlu1 %5201, %v5426_v3   ;;  %1252 = vperm.xlu0 %5202, %v5455_v8  }
 0x10e   :  { %v6007_v61 = vpop.permute.xlu1 %548  ;;  %v6009_v57 = vpop.permute.xlu0 %551 }
 0x110   :  { %1249 = vperm.xlu1 %5201, %v5438_v5   ;;  %1258 = vperm.xlu0 %5202, %v5467_v10  }
 0x112   :  { %v6013_v4 = vpop.permute.xlu1 %554  ;;  %v6015_v0 = vpop.permute.xlu0 %557 }
 0x114   :  { %1255 = vperm.xlu1 %5201, %v5450_v7   ;;  %1264 = vperm.xlu0 %5202, %v5479_v12  }
 0x116   :  { %v6019_v6 = vpop.permute.xlu1 %560  ;;  %v6021_v3 = vpop.permute.xlu0 %563 }
 0x118   :  { %1261 = vperm.xlu1 %5201, %v5462_v9   ;;  %1270 = vperm.xlu0 %5202, %v5491_v14  }
 0x11a   :  { %v6025_v8 = vpop.permute.xlu1 %566  ;;  %v6027_v5 = vpop.permute.xlu0 %569 }
 0x11c   :  { %1267 = vperm.xlu1 %5201, %v5474_v11   ;;  %1276 = vperm.xlu0 %5202, %v5503_v16  }
 0x11e   :  { %v6031_v10 = vpop.permute.xlu1 %572  ;;  %v6033_v7 = vpop.permute.xlu0 %575 }
 0x120   :  { %1273 = vperm.xlu1 %5201, %v5486_v13   ;;  %1282 = vperm.xlu0 %5202, %v5515_v18  }
 0x122   :  { %v6037_v12 = vpop.permute.xlu1 %578  ;;  %v6039_v9 = vpop.permute.xlu0 %581 }
 0x124   :  { %1279 = vperm.xlu1 %5201, %v5498_v15   ;;  %1288 = vperm.xlu0 %5202, %v5527_v20  }
 0x126   :  { %v6043_v14 = vpop.permute.xlu1 %584  ;;  %v6045_v11 = vpop.permute.xlu0 %587 }
 0x127   :  { %12849 = vst [vmem:[#allocation14_spill] sm:$0xff] %v6043_v14  ;;  %12850 = vst [vmem:[#allocation74_spill] sm:$0xff] %v6045_v11  ;;  %v12980_v11 = vmov 0 }
 0x128   :  { %1285 = vperm.xlu1 %5201, %v5510_v17   ;;  %1294 = vperm.xlu0 %5202, %v5539_v22  }
 0x12a   :  { %v6049_v16 = vpop.permute.xlu1 %590  ;;  %v6051_v13 = vpop.permute.xlu0 %593 }
 0x12b   :  { %12851 = vst [vmem:[#allocation75_spill] sm:$0xff] %v6049_v16  ;;  %12852 = vst [vmem:[#allocation76_spill] sm:$0xff] %v6051_v13 }
 0x12c   :  { %1291 = vperm.xlu1 %5201, %v5522_v19   ;;  %1300 = vperm.xlu0 %5202, %v5551_v24  }
 0x12e   :  { %v6055_v18 = vpop.permute.xlu1 %596  ;;  %v6057_v15 = vpop.permute.xlu0 %599 }
 0x12f   :  { %12853 = vst [vmem:[#allocation77_spill] sm:$0xff] %v6055_v18  ;;  %12854 = vst [vmem:[#allocation78_spill] sm:$0xff] %v6057_v15  ;;  %v5310_v18 = vld [vmem:[%s12599_s0 + $0x150] sm:$0xff] }
 0x130   :  { %1297 = vperm.xlu1 %5201, %v5534_v21   ;;  %1306 = vperm.xlu0 %5202, %v5563_v26  }
 0x132   :  { %v6061_v20 = vpop.permute.xlu1 %602  ;;  %v6063_v17 = vpop.permute.xlu0 %605 }
 0x133   :  { %12855 = vst [vmem:[#allocation79_spill] sm:$0xff] %v6061_v20  ;;  %12856 = vst [vmem:[#allocation80_spill] sm:$0xff] %v6063_v17  ;;  %v5294_v20 = vld [vmem:[%s12599_s0 + $0x58] sm:$0xff] }
 0x134   :  { %1303 = vperm.xlu1 %5201, %v5546_v23   ;;  %1312 = vperm.xlu0 %5202, %v5575_v28   ;;  %v3857_v28 = vld [vmem:[%s12600_s1] sm:$0xff] }
 0x136   :  { %v6067_v22 = vpop.permute.xlu1 %608  ;;  %v6069_v19 = vpop.permute.xlu0 %611 }
 0x137   :  { %12857 = vst [vmem:[#allocation81_spill] sm:$0xff] %v6067_v22  ;;  %12858 = vst [vmem:[#allocation82_spill] sm:$0xff] %v6069_v19 }
 0x138   :  { %1309 = vperm.xlu1 %5201, %v5558_v25   ;;  %1318 = vperm.xlu0 %5202, %v5587_v30   ;;  %v3858_v25 = vld [vmem:[%s12600_s1 + $0x8] sm:$0xff]  ;;  %v3889_v30 = vld [vmem:[%s12600_s1 + $0x100] sm:$0xff] }
 0x13a   :  { %v6073_v24 = vpop.permute.xlu1 %614  ;;  %v6075_v21 = vpop.permute.xlu0 %617 }
 0x13b   :  { %12859 = vst [vmem:[#allocation83_spill] sm:$0xff] %v6073_v24  ;;  %12860 = vst [vmem:[#allocation84_spill] sm:$0xff] %v6075_v21  ;;  %v6534_v24 = vld [vmem:[%s12599_s0 + $0xb0] sm:$0xff] }
 0x13c   :  { %1315 = vperm.xlu1 %5201, %v5570_v27   ;;  %1324 = vperm.xlu0 %5202, %v5599_v32   ;;  %v5028_v27 = vpack.c.bf16 %v3858_v25, %v3857_v28  ;;  %v3890_v32 = vld [vmem:[%s12600_s1 + $0x108] sm:$0xff]  ;;  %v3891_v28 = vld [vmem:[%s12600_s1 + $0x110] sm:$0xff] }
 0x13d   :  { %v5076_v60 = vpack.c.bf16 %v3890_v32, %v3889_v30 }
 0x13e   :  { %v6079_v26 = vpop.permute.xlu1 %620  ;;  %v6081_v23 = vpop.permute.xlu0 %623  ;;  %5029 = vmatpush1.bf16.msra.mxu1 %v5028_v27 }
 0x13f   :  { %12861 = vst [vmem:[#allocation85_spill] sm:$0xff] %v6079_v26  ;;  %12862 = vst [vmem:[#allocation86_spill] sm:$0xff] %v6081_v23  ;;  %5077 = vmatpush1.bf16.msra.mxu0 %v5076_v60  ;;  %5030 = vmatprep.subr.bf16.mxu1 %v5389_v58  ;;  %v3892_v60 = vld [vmem:[%s12600_s1 + $0x118] sm:$0xff] }
 0x140   :  { %1321 = vperm.xlu1 %5201, %v5582_v29   ;;  %1330 = vperm.xlu0 %5202, %v5611_v34   ;;  %v3859_v29 = vld [vmem:[%s12600_s1 + $0x10] sm:$0xff]  ;;  %v3860_v34 = vld [vmem:[%s12600_s1 + $0x18] sm:$0xff]  ;;  %v5079_v30 = vpack.c.bf16 %v3892_v60, %v3891_v28  ;;  %v3894_v28 = vld [vmem:[%s12600_s1 + $0x128] sm:$0xff] }
 0x141   :  { %v5031_v25 = vpack.c.bf16 %v3860_v34, %v3859_v29  ;;  %5078 = vmatprep.subr.bf16.mxu0 %v5389_v58  ;;  %v3893_v29 = vld [vmem:[%s12600_s1 + $0x120] sm:$0xff] }
 0x142   :  { %v6099_v56 = vpop.permute.xlu1 %626  ;;  %v6101_v23 = vpop.permute.xlu0 %629 }
 0x143   :  { %12863 = vst [vmem:[#allocation87_spill] sm:$0xff] %v6099_v56  ;;  %12864 = vst [vmem:[#allocation88_spill] sm:$0xff] %v6101_v23  ;;  %5032 = vmatpush1.bf16.msra.mxu1 %v5031_v25  ;;  %5080 = vmatpush1.bf16.msra.mxu0 %v5079_v30  ;;  %v5082_v25 = vpack.c.bf16 %v3894_v28, %v3893_v29  ;;  %v3896_v29 = vld [vmem:[%s12600_s1 + $0x138] sm:$0xff] }
 0x144   :  { %1327 = vperm.xlu1 %5201, %v5594_v31   ;;  %1336 = vperm.xlu0 %5202, %v5623_v36   ;;  %v3861_v31 = vld [vmem:[%s12600_s1 + $0x20] sm:$0xff]  ;;  %v3862_v36 = vld [vmem:[%s12600_s1 + $0x28] sm:$0xff]  ;;  %v6523_v56 = vld [vmem:[%s12599_s0 + $0x98] sm:$0xff] }
 0x145   :  { %5033 = vmatprep.subr.bf16.mxu1 %v5389_v58  ;;  %v5034_v34 = vpack.c.bf16 %v3862_v36, %v3861_v31  ;;  %5081 = vmatprep.subr.bf16.mxu0 %v5389_v58  ;;  %v3895_v31 = vld [vmem:[%s12600_s1 + $0x130] sm:$0xff] }
 0x146   :  { %v6119_v27 = vpop.permute.xlu1 %632  ;;  %v6121_v32 = vpop.permute.xlu0 %635 }
 0x147   :  { %12865 = vst [vmem:[#allocation89_spill] sm:$0xff] %v6119_v27  ;;  %12866 = vst [vmem:[#allocation90_spill] sm:$0xff] %v6121_v32  ;;  %5035 = vmatpush1.bf16.msra.mxu1 %v5034_v34  ;;  %5083 = vmatpush1.bf16.msra.mxu0 %v5082_v25  ;;  %v5085_v34 = vpack.c.bf16 %v3896_v29, %v3895_v31  ;;  %v3898_v31 = vld [vmem:[%s12600_s1 + $0x148] sm:$0xff]  ;;  %v5289_v27 = vld [vmem:[%s12599_s0 + $0x40] sm:$0xff] }
 0x148   :  { %1333 = vperm.xlu1 %5201, %v5606_v33   ;;  %1342 = vperm.xlu0 %5202, %v5635_v38   ;;  %v3863_v33 = vld [vmem:[%s12600_s1 + $0x30] sm:$0xff]  ;;  %v3864_v38 = vld [vmem:[%s12600_s1 + $0x38] sm:$0xff] }
 0x149   :  { %5036 = vmatprep.subr.bf16.mxu1 %v5389_v58  ;;  %v5037_v36 = vpack.c.bf16 %v3864_v38, %v3863_v33  ;;  %5084 = vmatprep.subr.bf16.mxu0 %v5389_v58  ;;  %v3897_v33 = vld [vmem:[%s12600_s1 + $0x140] sm:$0xff] }
 0x14a   :  { %v6139_v60 = vpop.permute.xlu1 %638  ;;  %v6141_v30 = vpop.permute.xlu0 %641 }
 0x14b   :  { %12867 = vst [vmem:[#allocation91_spill] sm:$0xff] %v6139_v60  ;;  %12868 = vst [vmem:[#allocation92_spill] sm:$0xff] %v6141_v30  ;;  %5038 = vmatpush1.bf16.msra.mxu1 %v5037_v36  ;;  %5086 = vmatpush1.bf16.msra.mxu0 %v5085_v34  ;;  %v5088_v36 = vpack.c.bf16 %v3898_v31, %v3897_v33  ;;  %v3900_v33 = vld [vmem:[%s12600_s1 + $0x158] sm:$0xff] }
 0x14c   :  { %1339 = vperm.xlu1 %5201, %v5618_v35   ;;  %1348 = vperm.xlu0 %5202, %v5647_v40   ;;  %v3865_v35 = vld [vmem:[%s12600_s1 + $0x40] sm:$0xff]  ;;  %v3866_v40 = vld [vmem:[%s12600_s1 + $0x48] sm:$0xff] }
 0x14d   :  { %5039 = vmatprep.subr.bf16.mxu1 %v5389_v58  ;;  %v5040_v38 = vpack.c.bf16 %v3866_v40, %v3865_v35  ;;  %5087 = vmatprep.subr.bf16.mxu0 %v5389_v58  ;;  %v3899_v35 = vld [vmem:[%s12600_s1 + $0x150] sm:$0xff] }
 0x14e   :  { %v6159_v28 = vpop.permute.xlu1 %644  ;;  %v6161_v25 = vpop.permute.xlu0 %647 }
 0x14f   :  { %12869 = vst [vmem:[#allocation93_spill] sm:$0xff] %v6159_v28  ;;  %12870 = vst [vmem:[#allocation94_spill] sm:$0xff] %v6161_v25  ;;  %5041 = vmatpush1.bf16.msra.mxu1 %v5040_v38  ;;  %5089 = vmatpush1.bf16.msra.mxu0 %v5088_v36  ;;  %v5091_v38 = vpack.c.bf16 %v3900_v33, %v3899_v35  ;;  %v3902_v35 = vld [vmem:[%s12600_s1 + $0x168] sm:$0xff] }
 0x150   :  { %1345 = vperm.xlu1 %5201, %v5630_v37   ;;  %1354 = vperm.xlu0 %5202, %v5659_v42   ;;  %v3867_v37 = vld [vmem:[%s12600_s1 + $0x50] sm:$0xff]  ;;  %v3868_v42 = vld [vmem:[%s12600_s1 + $0x58] sm:$0xff] }
 0x151   :  { %5042 = vmatprep.subr.bf16.mxu1 %v5389_v58  ;;  %v5043_v40 = vpack.c.bf16 %v3868_v42, %v3867_v37  ;;  %5090 = vmatprep.subr.bf16.mxu0 %v5389_v58  ;;  %v3901_v37 = vld [vmem:[%s12600_s1 + $0x160] sm:$0xff] }
 0x152   :  { %v6179_v29 = vpop.permute.xlu1 %650  ;;  %v6181_v34 = vpop.permute.xlu0 %653 }
 0x153   :  { %12871 = vst [vmem:[#allocation95_spill] sm:$0xff] %v6179_v29  ;;  %12872 = vst [vmem:[#allocation96_spill] sm:$0xff] %v6181_v34  ;;  %5044 = vmatpush1.bf16.msra.mxu1 %v5043_v40  ;;  %5092 = vmatpush1.bf16.msra.mxu0 %v5091_v38  ;;  %v5094_v40 = vpack.c.bf16 %v3902_v35, %v3901_v37  ;;  %v3904_v37 = vld [vmem:[%s12600_s1 + $0x178] sm:$0xff]  ;;  %v6483_v34 = vld [vmem:[%s12599_s0 + $0x80] sm:$0xff] }
 0x154   :  { %1351 = vperm.xlu1 %5201, %v5642_v39   ;;  %1360 = vperm.xlu0 %5202, %v5671_v44   ;;  %v3869_v39 = vld [vmem:[%s12600_s1 + $0x60] sm:$0xff]  ;;  %v3870_v44 = vld [vmem:[%s12600_s1 + $0x68] sm:$0xff] }
 0x155   :  { %5045 = vmatprep.subr.bf16.mxu1 %v5389_v58  ;;  %v5046_v42 = vpack.c.bf16 %v3870_v44, %v3869_v39  ;;  %5093 = vmatprep.subr.bf16.mxu0 %v5389_v58  ;;  %v3903_v39 = vld [vmem:[%s12600_s1 + $0x170] sm:$0xff] }
 0x156   :  { %v6199_v31 = vpop.permute.xlu1 %656  ;;  %v6201_v36 = vpop.permute.xlu0 %659 }
 0x157   :  { %12873 = vst [vmem:[#allocation97_spill] sm:$0xff] %v6199_v31  ;;  %12874 = vst [vmem:[#allocation98_spill] sm:$0xff] %v6201_v36  ;;  %5047 = vmatpush1.bf16.msra.mxu1 %v5046_v42  ;;  %5095 = vmatpush1.bf16.msra.mxu0 %v5094_v40  ;;  %v5097_v42 = vpack.c.bf16 %v3904_v37, %v3903_v39  ;;  %v3906_v39 = vld [vmem:[%s12600_s1 + $0x188] sm:$0xff] }
 0x158   :  { %1357 = vperm.xlu1 %5201, %v5654_v41   ;;  %1366 = vperm.xlu0 %5202, %v5683_v46   ;;  %v3871_v41 = vld [vmem:[%s12600_s1 + $0x70] sm:$0xff]  ;;  %v3872_v46 = vld [vmem:[%s12600_s1 + $0x78] sm:$0xff] }
 0x159   :  { %5048 = vmatprep.subr.bf16.mxu1 %v5389_v58  ;;  %v5049_v44 = vpack.c.bf16 %v3872_v46, %v3871_v41  ;;  %5096 = vmatprep.subr.bf16.mxu0 %v5389_v58  ;;  %v3905_v41 = vld [vmem:[%s12600_s1 + $0x180] sm:$0xff] }
 0x15a   :  { %v6219_v33 = vpop.permute.xlu1 %662  ;;  %v6221_v38 = vpop.permute.xlu0 %665 }
 0x15b   :  { %12875 = vst [vmem:[#allocation99_spill] sm:$0xff] %v6219_v33  ;;  %12876 = vst [vmem:[#allocation100_spill] sm:$0xff] %v6221_v38  ;;  %5050 = vmatpush1.bf16.msra.mxu1 %v5049_v44  ;;  %5098 = vmatpush1.bf16.msra.mxu0 %v5097_v42  ;;  %v5100_v44 = vpack.c.bf16 %v3906_v39, %v3905_v41  ;;  %v3908_v41 = vld [vmem:[%s12600_s1 + $0x198] sm:$0xff]  ;;  %v5284_v33 = vld [vmem:[%s12599_s0 + $0x28] sm:$0xff] }
 0x15c   :  { %1363 = vperm.xlu1 %5201, %v5666_v43   ;;  %1372 = vperm.xlu0 %5202, %v5695_v48   ;;  %v3873_v43 = vld [vmem:[%s12600_s1 + $0x80] sm:$0xff]  ;;  %v3874_v48 = vld [vmem:[%s12600_s1 + $0x88] sm:$0xff] }
 0x15d   :  { %5051 = vmatprep.subr.bf16.mxu1 %v5389_v58  ;;  %v5052_v46 = vpack.c.bf16 %v3874_v48, %v3873_v43  ;;  %5099 = vmatprep.subr.bf16.mxu0 %v5389_v58  ;;  %v3907_v43 = vld [vmem:[%s12600_s1 + $0x190] sm:$0xff] }
 0x15e   :  { %v6239_v35 = vpop.permute.xlu1 %668  ;;  %v6241_v40 = vpop.permute.xlu0 %671 }
 0x15f   :  { %12877 = vst [vmem:[#allocation101_spill] sm:$0xff] %v6239_v35  ;;  %12878 = vst [vmem:[#allocation102_spill] sm:$0xff] %v6241_v40  ;;  %5053 = vmatpush1.bf16.msra.mxu1 %v5052_v46  ;;  %5101 = vmatpush1.bf16.msra.mxu0 %v5100_v44  ;;  %v5103_v46 = vpack.c.bf16 %v3908_v41, %v3907_v43  ;;  %v3910_v43 = vld [vmem:[%s12600_s1 + $0x1a8] sm:$0xff] }
 0x160   :  { %1369 = vperm.xlu1 %5201, %v5678_v45   ;;  %1378 = vperm.xlu0 %5202, %v5707_v50   ;;  %v3875_v45 = vld [vmem:[%s12600_s1 + $0x90] sm:$0xff]  ;;  %v3876_v50 = vld [vmem:[%s12600_s1 + $0x98] sm:$0xff] }
 0x161   :  { %5054 = vmatprep.subr.bf16.mxu1 %v5389_v58  ;;  %v5055_v48 = vpack.c.bf16 %v3876_v50, %v3875_v45  ;;  %5102 = vmatprep.subr.bf16.mxu0 %v5389_v58  ;;  %v3909_v45 = vld [vmem:[%s12600_s1 + $0x1a0] sm:$0xff] }
 0x162   :  { %v6259_v37 = vpop.permute.xlu1 %674  ;;  %v6261_v42 = vpop.permute.xlu0 %677 }
 0x163   :  { %12879 = vst [vmem:[#allocation103_spill] sm:$0xff] %v6259_v37  ;;  %12880 = vst [vmem:[#allocation104_spill] sm:$0xff] %v6261_v42  ;;  %5056 = vmatpush1.bf16.msra.mxu1 %v5055_v48  ;;  %5104 = vmatpush1.bf16.msra.mxu0 %v5103_v46  ;;  %v5106_v48 = vpack.c.bf16 %v3910_v43, %v3909_v45  ;;  %v12886_v45 = vld [vmem:[#allocation8_spill] sm:$0xff] }
 0x164   :  { %1375 = vperm.xlu1 %5201, %v5690_v47   ;;  %1384 = vperm.xlu0 %5202, %v5719_v52   ;;  %v3877_v47 = vld [vmem:[%s12600_s1 + $0xa0] sm:$0xff]  ;;  %v3878_v52 = vld [vmem:[%s12600_s1 + $0xa8] sm:$0xff]  ;;  %v3912_v43 = vld [vmem:[%s12600_s1 + $0x1b8] sm:$0xff] }
 0x165   :  { %5057 = vmatprep.subr.bf16.mxu1 %v5389_v58  ;;  %v5058_v50 = vpack.c.bf16 %v3878_v52, %v3877_v47  ;;  %5105 = vmatprep.subr.bf16.mxu0 %v5389_v58  ;;  %v3911_v47 = vld [vmem:[%s12600_s1 + $0x1b0] sm:$0xff]  ;;  %v12885_v52 = vld [vmem:[#allocation5_spill] sm:$0xff] }
 0x166   :  { %v6279_v39 = vpop.permute.xlu1 %680  ;;  %v6281_v44 = vpop.permute.xlu0 %683 }
 0x167   :  { %12881 = vst [vmem:[#allocation105_spill] sm:$0xff] %v6279_v39  ;;  %12882 = vst [vmem:[#allocation106_spill] sm:$0xff] %v6281_v44  ;;  %5059 = vmatpush1.bf16.msra.mxu1 %v5058_v50  ;;  %5107 = vmatpush1.bf16.msra.mxu0 %v5106_v48  ;;  %v5109_v48 = vpack.c.bf16 %v3912_v43, %v3911_v47  ;;  %v12889_v47 = vld [vmem:[#allocation6_spill] sm:$0xff] }
 0x168   :  { %1381 = vperm.xlu1 %5201, %v5702_v49   ;;  %1390 = vperm.xlu0 %5202, %v5731_v54   ;;  %v3879_v49 = vld [vmem:[%s12600_s1 + $0xb0] sm:$0xff]  ;;  %v3880_v54 = vld [vmem:[%s12600_s1 + $0xb8] sm:$0xff]  ;;  %v3914_v43 = vld [vmem:[%s12600_s1 + $0x1c8] sm:$0xff] }
 0x169   :  { %5060 = vmatprep.subr.bf16.mxu1 %v5389_v58  ;;  %v5061_v50 = vpack.c.bf16 %v3880_v54, %v3879_v49  ;;  %5108 = vmatprep.subr.bf16.mxu0 %v5389_v58  ;;  %v3882_v49 = vld [vmem:[%s12600_s1 + $0xc8] sm:$0xff]  ;;  %v3913_v54 = vld [vmem:[%s12600_s1 + $0x1c0] sm:$0xff] }
 0x16a   :  { %v6299_v41 = vpop.permute.xlu1 %686  ;;  %v6301_v46 = vpop.permute.xlu0 %689 }
 0x16b   :  { %12883 = vst [vmem:[#allocation107_spill] sm:$0xff] %v6299_v41  ;;  %12884 = vst [vmem:[#allocation108_spill] sm:$0xff] %v6301_v46  ;;  %5062 = vmatpush1.bf16.msra.mxu1 %v5061_v50  ;;  %5110 = vmatpush1.bf16.msra.mxu0 %v5109_v48  ;;  %v5112_v48 = vpack.c.bf16 %v3914_v43, %v3913_v54  ;;  %v12892_v54 = vld [vmem:[#allocation7_spill] sm:$0xff]  ;;  %v12688_v43 = vmov 4  }
 0x16c   :  { %1387 = vperm.xlu1 %5201, %v12885_v52   ;;  %1396 = vperm.xlu0 %5202, %v12886_v45   ;;  %v3881_v52 = vld [vmem:[%s12600_s1 + $0xc0] sm:$0xff]  ;;  %v12684_v45 = vmov 3  }
 0x16d   :  { %5063 = vmatprep.subr.bf16.mxu1 %v5389_v58  ;;  %v5064_v50 = vpack.c.bf16 %v3882_v49, %v3881_v52  ;;  %5111 = vmatprep.subr.bf16.mxu0 %v5389_v58  ;;  %v3883_v52 = vld [vmem:[%s12600_s1 + $0xd0] sm:$0xff]  ;;  %v3884_v49 = vld [vmem:[%s12600_s1 + $0xd8] sm:$0xff] }
 0x16e   :  { %v6319_v46 = vpop.permute.xlu1 %692  ;;  %v6321_v41 = vpop.permute.xlu0 %695 }
 0x16f   :  { %12887 = vst [vmem:[#allocation5_spill] sm:$0xff] %v6319_v46  ;;  %12888 = vst [vmem:[#allocation8_spill] sm:$0xff] %v6321_v41  ;;  %5065 = vmatpush1.bf16.msra.mxu1 %v5064_v50  ;;  %5113 = vmatpush1.bf16.msra.mxu0 %v5112_v48  ;;  %v3916_v50 = vld [vmem:[%s12600_s1 + $0x1d8] sm:$0xff] }
 0x170   :  { %1393 = vperm.xlu1 %5201, %v12889_v47   ;;  %5203 = vset.pattern.permute.xlu0 %v12684_v45  ;;  %v5067_v47 = vpack.c.bf16 %v3884_v49, %v3883_v52  ;;  %v3885_v52 = vld [vmem:[%s12600_s1 + $0xe0] sm:$0xff]  ;;  %v3886_v49 = vld [vmem:[%s12600_s1 + $0xe8] sm:$0xff] }
 0x171   :  { %1938 = vperm.xlu0 %5203, %v5419_v1   ;;  %5066 = vmatprep.subr.bf16.mxu1 %v5389_v58  ;;  %v3915_v1 = vld [vmem:[%s12600_s1 + $0x1d0] sm:$0xff] }
 0x172   :  { %v6340_v41 = vpop.permute.xlu1 %698  ;;  %v6342_v46 = vpop.permute.xlu0 %701  ;;  %5114 = vmatprep.subr.bf16.mxu0 %v5389_v58  ;;  %v5115_v48 = vpack.c.bf16 %v3916_v50, %v3915_v1  ;;  %v3917_v1 = vld [vmem:[%s12600_s1 + $0x1e0] sm:$0xff] }
 0x173   :  { %12890 = vst [vmem:[#allocation6_spill] sm:$0xff] %v6340_v41  ;;  %12891 = vst [vmem:[#allocation109_spill] sm:$0xff] %v6342_v46  ;;  %v5274_v46 = vld [vmem:[%s12599_s0 + $0x8] sm:$0xff]  ;;  %5068 = vmatpush1.bf16.msra.mxu1 %v5067_v47 }
 0x174   :  { %1399 = vperm.xlu1 %5201, %v12892_v54   ;;  %5116 = vmatpush1.bf16.msra.mxu0 %v5115_v48  ;;  %v5070_v54 = vpack.c.bf16 %v3886_v49, %v3885_v52  ;;  %v3918_v47 = vld [vmem:[%s12600_s1 + $0x1e8] sm:$0xff]  ;;  %v3888_v52 = vld [vmem:[%s12600_s1 + $0xf8] sm:$0xff]  ;;  %v3919_v49 = vld [vmem:[%s12600_s1 + $0x1f0] sm:$0xff] }
 0x175   :  { %5206 = vset.pattern.permute.xlu0 %v12688_v43  ;;  %5069 = vmatprep.subr.bf16.mxu1 %v5389_v58  ;;  %v5118_v50 = vpack.c.bf16 %v3918_v47, %v3917_v1  ;;  %v5275_v43 = vld [vmem:[%s12599_s0 + $0x20] sm:$0xff]  ;;  %v12897_v1 = vmov 4   ;;  %v3920_v47 = vld [vmem:[%s12600_s1 + $0x1f8] sm:$0xff] }
 0x176   :  { %v6360_v45 = vpop.permute.xlu1 %704  ;;  %2645 = vperm.xlu0 %5206, %v5274_v46   ;;  %v6365_v41 = vpop.permute.xlu0 %707  ;;  %5117 = vmatprep.subr.bf16.mxu0 %v5389_v58 }
 0x177   :  { %12893 = vst [vmem:[#allocation7_spill] sm:$0xff] %v6360_v45  ;;  %12894 = vst [vmem:[#allocation110_spill] sm:$0xff] %v6365_v41  ;;  %5071 = vmatpush1.bf16.msra.mxu1 %v5070_v54  ;;  %v12899_v45 = vmov 3  }
 0x178   :  { %1405 = vperm.xlu1 %5201, %v12837_v63   ;;  %5119 = vmatpush1.bf16.msra.mxu0 %v5118_v50  ;;  %v3887_v63 = vld [vmem:[%s12600_s1 + $0xf0] sm:$0xff]  ;;  %v5276_v50 = vld [vmem:[%s12599_s0] sm:$0xff] }
 0x179   :  { %5072 = vmatprep.subr.bf16.mxu1 %v5389_v58  ;;  %5120 = vmatprep.subr.bf16.mxu0 %v5389_v58  ;;  %v5073_v54 = vpack.c.bf16 %v3888_v52, %v3887_v63  ;;  %v5277_v58 = vld [vmem:[%s12599_s0 + $0x18] sm:$0xff]  ;;  %v5278_v52 = vld [vmem:[%s12599_s0 + $0x30] sm:$0xff] }
 0x17a   :  { %v6382_v48 = vpop.permute.xlu1 %710  ;;  %2654 = vperm.xlu0 %5206, %v5275_v43   ;;  %v6387_v41 = vpop.permute.xlu0 %713 }
 0x17b   :  { %12895 = vst [vmem:[#allocation111_spill] sm:$0xff] %v6382_v48  ;;  %12896 = vst [vmem:[#allocation112_spill] sm:$0xff] %v6387_v41  ;;  %v5121_v41 = vpack.c.bf16 %v3920_v47, %v3919_v49  ;;  %5074 = vmatpush1.bf16.msra.mxu1 %v5073_v54  ;;  %v5279_v54 = vld [vmem:[%s12599_s0 + $0x10] sm:$0xff] }
 0x17c   :  { %5204 = vset.pattern.permute.xlu1 %v12897_v1 }
 0x17d   :  { %2642 = vperm.xlu1 %5204, %v5276_v50   ;;  %5122 = vmatpush1.bf16.msra.mxu0 %v5121_v41 }
 0x17e   :  { %v6407_v48 = vpop.permute.xlu1 %716  ;;  %5209 = vset.pattern.permute.xlu0 %v12899_v45  ;;  %v6410_v44 = vpop.permute.xlu0 %719 }
 0x17f   :  { %12898 = vst [vmem:[#allocation113_spill] sm:$0xff] %v6407_v48  ;;  %12900 = vst [vmem:[#allocation114_spill] sm:$0xff] %v6410_v44  ;;  %1947 = vperm.xlu0 %5209, %v5277_v58   ;;  %v5281_v48 = vld [vmem:[%s12599_s0 + $0x50] sm:$0xff] }
 0x181   :  { %5205 = vset.pattern.permute.xlu1 %v12899_v45 }
 0x182   :  { %1941 = vperm.xlu1 %5205, %v5274_v46   ;;  %v5280_v46 = vld [vmem:[%s12599_s0 + $0x38] sm:$0xff] }
 0x183   :  { %v6416_v63 = vpop.permute.xlu1 %1234  ;;  %1956 = vperm.xlu0 %5209, %v5278_v52   ;;  %v6421_v49 = vpop.permute.xlu0 %1237 }
 0x186   :  { %1944 = vperm.xlu1 %5205, %v5279_v54  }
 0x187   :  { %v6426_v47 = vpop.permute.xlu1 %1240  ;;  %5212 = vset.pattern.permute.xlu0 %v12897_v1  ;;  %v6429_v41 = vpop.permute.xlu0 %1246 }
 0x188   :  { %2663 = vperm.xlu0 %5212, %v5280_v46  }
 0x18a   :  { %5207 = vset.pattern.permute.xlu1 %v12897_v1 }
 0x18b   :  { %2648 = vperm.xlu1 %5207, %v5279_v54   ;;  %v6435_v50 = vpop.permute.xlu1 %1243  ;;  %v6437_v44 = vpop.permute.xlu0 %1252  ;;  %v5282_v54 = vld [vmem:[%s12599_s0 + $0x48] sm:$0xff] }
 0x18c   :  { %2672 = vperm.xlu0 %5212, %v5281_v48  }
 0x18f   :  { %2651 = vperm.xlu1 %5207, %v5277_v58   ;;  %v6442_v39 = vpop.permute.xlu1 %1249  ;;  %v6444_v42 = vpop.permute.xlu0 %1258  ;;  %v6458_v58 = vld [vmem:[%s12599_s0 + $0x60] sm:$0xff] }
 0x190   :  { %5215 = vset.pattern.permute.xlu0 %v12899_v45 }
 0x191   :  { %1965 = vperm.xlu0 %5215, %v5282_v54  }
 0x193   :  { %5208 = vset.pattern.permute.xlu1 %v12899_v45  ;;  %v6451_v37 = vpop.permute.xlu1 %1255  ;;  %v6453_v40 = vpop.permute.xlu0 %1264 }
 0x194   :  { %1950 = vperm.xlu1 %5208, %v5275_v43   ;;  %v6472_v43 = vld [vmem:[%s12599_s0 + $0x68] sm:$0xff] }
 0x195   :  { %1974 = vperm.xlu0 %5215, %v6458_v58  }
 0x197   :  { %v6461_v35 = vpop.permute.xlu1 %1261  ;;  %v6463_v38 = vpop.permute.xlu0 %1270 }
 0x198   :  { %1953 = vperm.xlu1 %5208, %v5284_v33  }
 0x199   :  { %5218 = vset.pattern.permute.xlu0 %v12897_v1 }
 0x19a   :  { %2681 = vperm.xlu0 %5218, %v6472_v43  }
 0x19b   :  { %v6475_v36 = vpop.permute.xlu1 %1267  ;;  %v6477_v31 = vpop.permute.xlu0 %1276 }
 0x19c   :  { %5210 = vset.pattern.permute.xlu1 %v12897_v1 }
 0x19d   :  { %2657 = vperm.xlu1 %5210, %v5284_v33   ;;  %v6496_v33 = vld [vmem:[%s12599_s0 + $0x78] sm:$0xff] }
 0x19e   :  { %2690 = vperm.xlu0 %5218, %v6483_v34  }
 0x19f   :  { %v6486_v29 = vpop.permute.xlu1 %1273  ;;  %v6488_v25 = vpop.permute.xlu0 %1282 }
 0x1a1   :  { %2660 = vperm.xlu1 %5210, %v5278_v52   ;;  %v6507_v52 = vld [vmem:[%s12599_s0 + $0x90] sm:$0xff] }
 0x1a2   :  { %5221 = vset.pattern.permute.xlu0 %v12899_v45 }
 0x1a3   :  { %v6491_v28 = vpop.permute.xlu1 %1279  ;;  %1983 = vperm.xlu0 %5221, %v6496_v33   ;;  %v6499_v30 = vpop.permute.xlu0 %1288 }
 0x1a4   :  { %12901 = vst [vmem:[#allocation115_spill] sm:$0xff] %v6499_v30  ;;  %v5314_v30 = vld [vmem:[%s12599_s0 + $0xb8] sm:$0xff] }
 0x1a5   :  { %5211 = vset.pattern.permute.xlu1 %v12899_v45 }
 0x1a6   :  { %1959 = vperm.xlu1 %5211, %v5280_v46  }
 0x1a7   :  { %v6502_v60 = vpop.permute.xlu1 %1285  ;;  %1992 = vperm.xlu0 %5221, %v6507_v52   ;;  %v6510_v32 = vpop.permute.xlu0 %1294 }
 0x1a8   :  { %12902 = vst [vmem:[#allocation116_spill] sm:$0xff] %v6502_v60  ;;  %12903 = vst [vmem:[#allocation117_spill] sm:$0xff] %v6510_v32 }
 0x1aa   :  { %1962 = vperm.xlu1 %5211, %v5289_v27  }
 0x1ab   :  { %v6515_v23 = vpop.permute.xlu1 %1291  ;;  %5224 = vset.pattern.permute.xlu0 %v12897_v1  ;;  %v6518_v46 = vpop.permute.xlu0 %1300 }
 0x1ac   :  { %12904 = vst [vmem:[#allocation118_spill] sm:$0xff] %v6515_v23  ;;  %12905 = vst [vmem:[#allocation119_spill] sm:$0xff] %v6518_v46  ;;  %2699 = vperm.xlu0 %5224, %v6523_v56   ;;  %v5312_v23 = vld [vmem:[%s12599_s0 + $0x180] sm:$0xff] }
 0x1ae   :  { %5213 = vset.pattern.permute.xlu1 %v12897_v1 }
 0x1af   :  { %2666 = vperm.xlu1 %5213, %v5289_v27   ;;  %v6527_v26 = vpop.permute.xlu1 %1297  ;;  %v6529_v21 = vpop.permute.xlu0 %1306  ;;  %v6545_v27 = vld [vmem:[%s12599_s0 + $0xa8] sm:$0xff] }
 0x1b0   :  { %12906 = vst [vmem:[#allocation120_spill] sm:$0xff] %v6527_v26  ;;  %12907 = vst [vmem:[#allocation121_spill] sm:$0xff] %v6529_v21  ;;  %2708 = vperm.xlu0 %5224, %v6534_v24  }
 0x1b3   :  { %2669 = vperm.xlu1 %5213, %v5282_v54   ;;  %v6537_v19 = vpop.permute.xlu1 %1303  ;;  %v6539_v22 = vpop.permute.xlu0 %1312  ;;  %v6556_v54 = vld [vmem:[%s12599_s0 + $0xc0] sm:$0xff] }
 0x1b4   :  { %12908 = vst [vmem:[#allocation122_spill] sm:$0xff] %v6537_v19  ;;  %12909 = vst [vmem:[#allocation123_spill] sm:$0xff] %v6539_v22  ;;  %5227 = vset.pattern.permute.xlu0 %v12899_v45 }
 0x1b5   :  { %2001 = vperm.xlu0 %5227, %v6545_v27  }
 0x1b7   :  { %5214 = vset.pattern.permute.xlu1 %v12899_v45  ;;  %v6549_v21 = vpop.permute.xlu1 %1309  ;;  %v6551_v17 = vpop.permute.xlu0 %1318 }
 0x1b8   :  { %12910 = vst [vmem:[#allocation124_spill] sm:$0xff] %v6549_v21  ;;  %12911 = vst [vmem:[#allocation125_spill] sm:$0xff] %v6551_v17  ;;  %1968 = vperm.xlu1 %5214, %v5281_v48   ;;  %v6570_v48 = vld [vmem:[%s12599_s0 + $0xc8] sm:$0xff] }
 0x1b9   :  { %2010 = vperm.xlu0 %5227, %v6556_v54  }
 0x1bb   :  { %v6559_v22 = vpop.permute.xlu1 %1315  ;;  %v6561_v19 = vpop.permute.xlu0 %1324 }
 0x1bc   :  { %12912 = vst [vmem:[#allocation126_spill] sm:$0xff] %v6559_v22  ;;  %12913 = vst [vmem:[#allocation127_spill] sm:$0xff] %v6561_v19  ;;  %1971 = vperm.xlu1 %5214, %v5294_v20   ;;  %v6581_v19 = vld [vmem:[%s12599_s0 + $0xe0] sm:$0xff] }
 0x1bd   :  { %5230 = vset.pattern.permute.xlu0 %v12897_v1 }
 0x1be   :  { %2717 = vperm.xlu0 %5230, %v6570_v48  }
 0x1bf   :  { %v6573_v17 = vpop.permute.xlu1 %1321  ;;  %v6575_v21 = vpop.permute.xlu0 %1330 }
 0x1c0   :  { %12914 = vst [vmem:[#allocation128_spill] sm:$0xff] %v6573_v17  ;;  %12915 = vst [vmem:[#allocation129_spill] sm:$0xff] %v6575_v21  ;;  %5216 = vset.pattern.permute.xlu1 %v12897_v1 }
 0x1c1   :  { %2675 = vperm.xlu1 %5216, %v5294_v20   ;;  %v6595_v20 = vld [vmem:[%s12599_s0 + $0xd8] sm:$0xff] }
 0x1c2   :  { %2726 = vperm.xlu0 %5230, %v6581_v19  }
 0x1c3   :  { %v6584_v22 = vpop.permute.xlu1 %1327  ;;  %v6586_v46 = vpop.permute.xlu0 %1336 }
 0x1c4   :  { %12916 = vst [vmem:[#allocation130_spill] sm:$0xff] %v6584_v22  ;;  %12917 = vst [vmem:[#allocation131_spill] sm:$0xff] %v6586_v46  ;;  %v5299_v22 = vld [vmem:[%s12599_s0 + $0x70] sm:$0xff] }
 0x1c5   :  { %2678 = vperm.xlu1 %5216, %v6458_v58   ;;  %v6607_v58 = vld [vmem:[%s12599_s0 + $0xf0] sm:$0xff] }
 0x1c6   :  { %5233 = vset.pattern.permute.xlu0 %v12899_v45 }
 0x1c7   :  { %v6590_v17 = vpop.permute.xlu1 %1333  ;;  %2019 = vperm.xlu0 %5233, %v6595_v20   ;;  %v6598_v21 = vpop.permute.xlu0 %1342 }
 0x1c8   :  { %12918 = vst [vmem:[#allocation132_spill] sm:$0xff] %v6590_v17  ;;  %12919 = vst [vmem:[#allocation133_spill] sm:$0xff] %v6598_v21 }
 0x1c9   :  { %5217 = vset.pattern.permute.xlu1 %v12899_v45 }
 0x1ca   :  { %1977 = vperm.xlu1 %5217, %v6472_v43  }
 0x1cb   :  { %v6602_v46 = vpop.permute.xlu1 %1339  ;;  %2028 = vperm.xlu0 %5233, %v6607_v58   ;;  %v6610_v17 = vpop.permute.xlu0 %1348 }
 0x1cc   :  { %12920 = vst [vmem:[#allocation134_spill] sm:$0xff] %v6602_v46  ;;  %12921 = vst [vmem:[#allocation135_spill] sm:$0xff] %v6610_v17  ;;  %v6623_v46 = vld [vmem:[%s12599_s0 + $0xf8] sm:$0xff] }
 0x1ce   :  { %1980 = vperm.xlu1 %5217, %v5299_v22  }
 0x1cf   :  { %v6615_v21 = vpop.permute.xlu1 %1345  ;;  %5236 = vset.pattern.permute.xlu0 %v12897_v1  ;;  %v6618_v43 = vpop.permute.xlu0 %1354 }
 0x1d0   :  { %12922 = vst [vmem:[#allocation136_spill] sm:$0xff] %v6615_v21  ;;  %12923 = vst [vmem:[#allocation137_spill] sm:$0xff] %v6618_v43  ;;  %2735 = vperm.xlu0 %5236, %v6623_v46   ;;  %v5301_v21 = vld [vmem:[%s12599_s0 + $0x110] sm:$0xff] }
 0x1d2   :  { %5219 = vset.pattern.permute.xlu1 %v12897_v1 }
 0x1d3   :  { %2684 = vperm.xlu1 %5219, %v5299_v22   ;;  %v6627_v17 = vpop.permute.xlu1 %1351  ;;  %v6629_v15 = vpop.permute.xlu0 %1360  ;;  %v5302_v22 = vld [vmem:[%s12599_s0 + $0x108] sm:$0xff] }
 0x1d4   :  { %12924 = vst [vmem:[#allocation138_spill] sm:$0xff] %v6627_v17  ;;  %12925 = vst [vmem:[#allocation139_spill] sm:$0xff] %v6629_v15  ;;  %2744 = vperm.xlu0 %5236, %v5301_v21   ;;  %v5303_v21 = vld [vmem:[%s12599_s0 + $0x120] sm:$0xff] }
 0x1d7   :  { %2687 = vperm.xlu1 %5219, %v6496_v33   ;;  %v6635_v43 = vpop.permute.xlu1 %1357  ;;  %v6637_v26 = vpop.permute.xlu0 %1366 }
 0x1d8   :  { %12926 = vst [vmem:[#allocation140_spill] sm:$0xff] %v6635_v43  ;;  %12927 = vst [vmem:[#allocation141_spill] sm:$0xff] %v6637_v26  ;;  %5239 = vset.pattern.permute.xlu0 %v12899_v45 }
 0x1d9   :  { %2037 = vperm.xlu0 %5239, %v5302_v22   ;;  %v5304_v22 = vld [vmem:[%s12599_s0 + $0x88] sm:$0xff] }
 0x1db   :  { %5220 = vset.pattern.permute.xlu1 %v12899_v45  ;;  %v6644_v15 = vpop.permute.xlu1 %1363  ;;  %v6646_v17 = vpop.permute.xlu0 %1372 }
 0x1dc   :  { %12928 = vst [vmem:[#allocation142_spill] sm:$0xff] %v6644_v15  ;;  %12929 = vst [vmem:[#allocation143_spill] sm:$0xff] %v6646_v17  ;;  %1986 = vperm.xlu1 %5220, %v6483_v34   ;;  %v5305_v17 = vld [vmem:[%s12599_s0 + $0x138] sm:$0xff]  ;;  %v76_v34 = vlaneseq }
 0x1dd   :  { %2046 = vperm.xlu0 %5239, %v5303_v21   ;;  %v5306_v21 = vld [vmem:[%s12599_s0 + $0x128] sm:$0xff] }
 0x1df   :  { %v6652_v33 = vpop.permute.xlu1 %1369  ;;  %v6654_v26 = vpop.permute.xlu0 %1378 }
 0x1e0   :  { %12930 = vst [vmem:[#allocation144_spill] sm:$0xff] %v6652_v33  ;;  %12931 = vst [vmem:[#allocation145_spill] sm:$0xff] %v6654_v26  ;;  %1989 = vperm.xlu1 %5220, %v5304_v22   ;;  %v6671_v26 = vand.u32 127, %v76_v34  ;;  %v12937_v34 = vld [vmem:[#allocation16_spill] sm:$0xff] }
 0x1e1   :  { %2055 = vperm.xlu0 %5239, %v5305_v17  }
 0x1e2   :  { %vm273_vm4 = vcmp.eq.s32.totalorder %v12937_v34, %v6671_v26  ;;  %vm721_vm5 = vcmp.eq.s32.totalorder %v5989_v53, %v6671_v26 }
 0x1e3   :  { %v6662_v15 = vpop.permute.xlu1 %1375  ;;  %v6664_v43 = vpop.permute.xlu0 %1384  ;;  %vm6729_vm12 = vmor %vm273_vm4, %vm721_vm5 }
 0x1e4   :  { %12932 = vst [vmem:[#allocation146_spill] sm:$0xff] %v6662_v15  ;;  %12933 = vst [vmem:[#allocation147_spill] sm:$0xff] %v6664_v43  ;;  %5222 = vset.pattern.permute.xlu1 %v12897_v1  ;;  %v5307_v43 = vld [vmem:[%s12599_s0 + $0x140] sm:$0xff] }
 0x1e5   :  { %2693 = vperm.xlu1 %5222, %v5304_v22   ;;  %5243 = vset.pattern.permute.xlu0 %v12897_v1  ;;  %v6682_v22 = vadd.s32 128, %v6671_v26 }
 0x1e6   :  { %2753 = vperm.xlu0 %5243, %v5306_v21   ;;  %v6687_v21 = vadd.s32 384, %v6671_v26 }
 0x1e7   :  { %v6673_v33 = vpop.permute.xlu1 %1381  ;;  %v6675_v17 = vpop.permute.xlu0 %1390  ;;  %vm274_vm0 = vcmp.eq.s32.totalorder %v12937_v34, %v6682_v22  ;;  %vm722_vm1 = vcmp.eq.s32.totalorder %v5989_v53, %v6682_v22  ;;  %vm726_vm11 = vcmp.eq.s32.totalorder %v5987_v51, %v6682_v22 }
 0x1e8   :  { %12934 = vst [vmem:[#allocation148_spill] sm:$0xff] %v6673_v33  ;;  %12935 = vst [vmem:[#allocation149_spill] sm:$0xff] %v6675_v17  ;;  %vm276_vm2 = vcmp.eq.s32.totalorder %v12937_v34, %v6687_v21  ;;  %vm724_vm3 = vcmp.eq.s32.totalorder %v5989_v53, %v6687_v21  ;;  %v5308_v17 = vld [vmem:[%s12599_s0 + $0x158] sm:$0xff]  ;;  %vm728_vm14 = vcmp.eq.s32.totalorder %v5987_v51, %v6687_v21  ;;  %v5311_v33 = vld [vmem:[%s12599_s0 + $0x168] sm:$0xff] }
 0x1e9   :  { %2696 = vperm.xlu1 %5222, %v6507_v52   ;;  %v6699_v52 = vadd.s32 256, %v6671_v26  ;;  %vm6713_vm6 = vmor %vm274_vm0, %vm722_vm1  ;;  %vm725_vm1 = vcmp.eq.s32.totalorder %v5987_v51, %v6671_v26  ;;  %vm1428_vm4 = vcmp.eq.s32.totalorder %v6416_v63, %v6687_v21 }
 0x1ea   :  { %2762 = vperm.xlu0 %5243, %v5307_v43   ;;  %vm6721_vm9 = vmor %vm276_vm2, %vm724_vm3  ;;  %vm1426_vm2 = vcmp.eq.s32.totalorder %v6416_v63, %v6682_v22 }
 0x1eb   :  { %v6684_v15 = vpop.permute.xlu1 %1387  ;;  %v6701_v43 = vpop.permute.xlu0 %1396  ;;  %vm275_vm7 = vcmp.eq.s32.totalorder %v12937_v34, %v6699_v52  ;;  %vm723_vm8 = vcmp.eq.s32.totalorder %v5989_v53, %v6699_v52  ;;  %v5309_v53 = vld [vmem:[%s12599_s0 + $0xa0] sm:$0xff] }
 0x1ec   :  { %12936 = vst [vmem:[#allocation150_spill] sm:$0xff] %v6684_v15  ;;  %12938 = vst [vmem:[#allocation16_spill] sm:$0xff] %v6701_v43  ;;  %v5392_v43 = vmov 0.0  }
 0x1ed   :  { %5223 = vset.pattern.permute.xlu1 %v12899_v45  ;;  %vm6741_vm15 = vmor %vm275_vm7, %vm723_vm8  ;;  %vm727_vm8 = vcmp.eq.s32.totalorder %v5987_v51, %v6699_v52  ;;  %v12966_v51 = vld [vmem:[#allocation15_spill] sm:$0xff] }
 0x1ee   :  { %1995 = vperm.xlu1 %5223, %v6523_v56   ;;  %2771 = vperm.xlu0 %5243, %v5308_v17   ;;  %v12944_v17 = vld [vmem:[#allocation18_spill] sm:$0xff] }
 0x1ef   :  { %v6711_v15 = vpop.permute.xlu1 %1393  ;;  %vm278_vm10 = vcmp.eq.s32.totalorder %v12944_v17, %v6682_v22  ;;  %vm280_vm13 = vcmp.eq.s32.totalorder %v12944_v17, %v6687_v21  ;;  %vm277_vm0 = vcmp.eq.s32.totalorder %v12944_v17, %v6671_v26 }
 0x1f0   :  { %12939 = vst [vmem:[#allocation151_spill] sm:$0xff] %v6711_v15  ;;  %vm6759_vm3 = vmor %vm278_vm10, %vm726_vm11  ;;  %v1939_v13 = vpop.permute.xlu0 %1938  ;;  %vm1425_vm10 = vcmp.eq.s32.totalorder %v6416_v63, %v6671_v26 }
 0x1f1   :  { %vm6768_vm5 = vmor %vm280_vm13, %vm728_vm14  ;;  %vm1427_vm14 = vcmp.eq.s32.totalorder %v6416_v63, %v6699_v52 }
 0x1f2   :  { %1998 = vperm.xlu1 %5223, %v5309_v53   ;;  %5247 = vset.pattern.permute.xlu0 %v12899_v45  ;;  %vm6778_vm11 = vmor %vm277_vm0, %vm725_vm1  ;;  %vm12961_vm0 = vcmp.eq.s32.totalorder %v12944_v17, %v6699_v52  ;;  %v12967_v17 = vld [vmem:[#allocation17_spill] sm:$0xff] }
 0x1f3   :  { %v6749_v15 = vpop.permute.xlu1 %1399  ;;  %2064 = vperm.xlu0 %5247, %v5310_v18   ;;  %vm6785_vm13 = vmor %vm6713_vm6, %vm1426_vm2  ;;  %vm282_vm2 = vcmp.eq.s32.totalorder %v12966_v51, %v6682_v22 }
 0x1f4   :  { %12949 = vst [vmem:[#allocation18_spill] sm:$0xff] %v6749_v15  ;;  %vm6806_vm1 = vmor %vm6721_vm9, %vm1428_vm4  ;;  %vm12973_vm9 = vcmp.eq.s32.totalorder %v5997_v62, %v6682_v22  ;;  %v13024_v15 = vmov 0 }
 0x1f5   :  { %vm6818_vm7 = vmor %vm12961_vm0, %vm727_vm8  ;;  %vm286_vm0 = vcmp.eq.s32.totalorder %v12967_v17, %v6682_v22  ;;  %vm12970_vm8 = vcmp.eq.s32.totalorder %v5995_v55, %v6682_v22 }
 0x1f6   :  { %5225 = vset.pattern.permute.xlu1 %v12897_v1  ;;  %vm6830_vm4 = vmor %vm6729_vm12, %vm1425_vm10 }
 0x1f7   :  { %2702 = vperm.xlu1 %5225, %v5309_v53   ;;  %v6795_v16 = vpop.permute.xlu1 %1405  ;;  %2073 = vperm.xlu0 %5247, %v5311_v33   ;;  %v12962_v53 = vmov 0  ;;  %v6822_v33 = vpop.permute.xlu0 %2645  ;;  %vm6846_vm12 = vmor %vm6741_vm15, %vm1427_vm14  ;;  %vm12976_vm15 = vcmp.eq.s32.totalorder %v1939_v13, %v6682_v22 }
 0x1f8   :  { %12958 = vst [vmem:[#allocation152_spill] sm:$0xff] %v6795_v16  ;;  %v12963_v53 = vsel %vm6818_vm7, 4294967295, %v12962_v53  ;;  %vm6855_vm6 = vmor %vm282_vm2, %vm12970_vm8  ;;  %vm12979_vm8 = vcmp.eq.s32.totalorder %v6421_v49, %v6682_v22  ;;  %vm12988_vm2 = vcmp.eq.s32.totalorder %v1939_v13, %v6671_v26  ;;  %v13018_v16 = vmov 0 }
 0x1f9   :  { %vm6862_vm7 = vmor %vm286_vm0, %vm12973_vm9  ;;  %vm284_vm9 = vcmp.eq.s32.totalorder %v12966_v51, %v6687_v21  ;;  %vm12982_vm0 = vcmp.eq.s32.totalorder %v1939_v13, %v6687_v21 }
 0x1fa   :  { %vm6870_vm14 = vmor %vm6785_vm13, %vm12976_vm15 }
 0x1fb   :  { %vm6880_vm10 = vmor %vm6759_vm3, %vm12979_vm8  ;;  %2705 = vperm.xlu1 %5225, %v6545_v27   ;;  %2082 = vperm.xlu0 %5247, %v5312_v23   ;;  %vm12985_vm8 = vcmp.eq.s32.totalorder %v5995_v55, %v6687_v21  ;;  %v12986_v27 = vmov 0  ;;  %v12992_v23 = vmov 0  ;;  %v6950_v14 = vpop.permute.xlu0 %2654 }
 0x1fc   :  { %v12981_v11 = vsel %vm6880_vm10, 4294967295, %v12980_v11  ;;  %vm6896_vm3 = vmor %vm6806_vm1, %vm12982_vm0  ;;  %v2643_v60 = vpop.permute.xlu1 %2642  ;;  %vm12991_vm1 = vcmp.eq.s32.totalorder %v6421_v49, %v6687_v21 }
 0x1fd   :  { %vm6905_vm13 = vmor %vm284_vm9, %vm12985_vm8  ;;  %vm281_vm9 = vcmp.eq.s32.totalorder %v12966_v51, %v6671_v26  ;;  %vm12997_vm8 = vcmp.eq.s32.totalorder %v5995_v55, %v6671_v26 }
 0x1fe   :  { %v12987_v27 = vsel %vm6905_vm13, 4294967295, %v12986_v27  ;;  %vm6913_vm10 = vmor %vm6830_vm4, %vm12988_vm2  ;;  %vm2834_vm4 = vcmp.eq.s32.totalorder %v2643_v60, %v6682_v22  ;;  %vm2836_vm2 = vcmp.eq.s32.totalorder %v2643_v60, %v6687_v21  ;;  %vm12994_vm13 = vcmp.eq.s32.totalorder %v1939_v13, %v6699_v52  ;;  %v5316_v13 = vld [vmem:[%s12599_s0 + $0x1a0] sm:$0xff] }
 0x1ff   :  { %vm6922_vm0 = vmor %vm6768_vm5, %vm12991_vm1  ;;  %5226 = vset.pattern.permute.xlu1 %v12899_v45  ;;  %5251 = vset.pattern.permute.xlu0 %v12897_v1  ;;  %v7056_v63 = vpop.permute.xlu0 %1947 }
 0x200   :  { %v12993_v23 = vsel %vm6922_vm0, 4294967295, %v12992_v23  ;;  %vm6937_vm5 = vmor %vm6846_vm12, %vm12994_vm13  ;;  %vm13000_vm13 = vcmp.eq.s32.totalorder %v6421_v49, %v6671_v26  ;;  %2004 = vperm.xlu1 %5226, %v6534_v24  }
 0x201   :  { %vm6946_vm0 = vmor %vm281_vm9, %vm12997_vm8  ;;  %vm283_vm9 = vcmp.eq.s32.totalorder %v12966_v51, %v6699_v52  ;;  %vm1434_vm8 = vcmp.eq.s32.totalorder %v6426_v47, %v6682_v22  ;;  %v5313_v51 = vld [vmem:[%s12599_s0 + $0x170] sm:$0xff]  ;;  %v1942_v24 = vpop.permute.xlu1 %1941 }
 0x202   :  { %vm3090_vm15 = vmor %vm6870_vm14, %vm2834_vm4  ;;  %2780 = vperm.xlu0 %5251, %v5313_v51   ;;  %vm2134_vm12 = vcmp.eq.s32.totalorder %v1942_v24, %v6682_v22 }
 0x203   :  { %vm6960_vm1 = vmor %vm6778_vm11, %vm13000_vm13  ;;  %v4772_v34 = vsel %vm3090_vm15, 1.0, %v5392_v43  ;;  %vm13003_vm11 = vcmp.eq.s32.totalorder %v5995_v55, %v6699_v52  ;;  %vm1438_vm13 = vcmp.eq.s32.totalorder %v6435_v50, %v6682_v22 }
 0x204   :  { %vm3092_vm14 = vmor %vm6896_vm3, %vm2836_vm2  ;;  %vm13006_vm3 = vcmp.eq.s32.totalorder %v2643_v60, %v6671_v26  ;;  %vm13007_vm2 = vcmp.eq.s32.totalorder %v6421_v49, %v6699_v52  ;;  %3985 = vmatprep.mubr.f32.mxu1 %v4772_v34  ;;  %2007 = vperm.xlu1 %5226, %v5314_v30   ;;  %v13027_v34 = vmov 0 }
 0x205   :  { %vm6976_vm4 = vmor %vm283_vm9, %vm13003_vm11  ;;  %v4774_v32 = vsel %vm3092_vm14, 1.0, %v5392_v43  ;;  %vm13008_vm9 = vnez %v12963_v53  ;;  %vm13011_vm14 = vcmp.eq.s32.totalorder %v2643_v60, %v6699_v52  ;;  %v13012_v60 = vmov 0  ;;  %v5320_v53 = vld [vmem:[%s12599_s0 + $0xd0] sm:$0xff] }
 0x206   :  { %vm3089_vm15 = vmor %vm6913_vm10, %vm13006_vm3  ;;  %4370 = vmatprep.mubr.f32.mxu0 %v4774_v32  ;;  %vm13023_vm3 = vnez %v12987_v27  ;;  %v13029_v32 = vld [vmem:[#allocation20_spill] sm:$0xff] }
 0x207   :  { %vm6998_vm11 = vmor %vm13008_vm9, %vm13007_vm2  ;;  %v4771_v51 = vsel %vm3089_vm15, 1.0, %v5392_v43  ;;  %vm13017_vm15 = vcmp.eq.s32.totalorder %v12967_v17, %v6687_v21  ;;  %vm285_vm2 = vcmp.eq.s32.totalorder %v12967_v17, %v6671_v26 }
 0x208   :  { %vm3091_vm10 = vmor %vm6937_vm5, %vm13011_vm14  ;;  %3986 = vmatmul.mubr.f32.vlgmr.msra.gmra.mrb[0].mxu1 %v4771_v51  ;;  %v7088_v51 = vpop.permute.xlu1 %1944  ;;  %5228 = vset.pattern.permute.xlu1 %v12897_v1 }
 0x209   :  { %v4773_v49 = vsel %vm3091_vm10, 1.0, %v5392_v43  ;;  %vm7023_vm5 = vmor %vm6855_vm6, %vm1434_vm8  ;;  %vm13016_vm10 = vcmp.eq.s32.totalorder %v5997_v62, %v6687_v21  ;;  %vm13020_vm6 = vnez %v12981_v11  ;;  %v5315_v11 = vld [vmem:[%s12599_s0 + $0x188] sm:$0xff]  ;;  %2711 = vperm.xlu1 %5228, %v5314_v30  }
 0x20a   :  { %v13013_v60 = vsel %vm7023_vm5, 4294967295, %v13012_v60  ;;  %vm7032_vm14 = vmor %vm6862_vm7, %vm1438_vm13  ;;  %4371 = vmatmul.mubr.f32.vlgmr.msra.gmra.mrb[0].mxu0 %v4773_v49  ;;  %2789 = vperm.xlu0 %5251, %v5315_v11   ;;  %vm13026_vm7 = vcmp.eq.s32.totalorder %v5997_v62, %v6671_v26  ;;  %vm13033_vm5 = vcmp.eq.s32.totalorder %v6426_v47, %v6671_v26  ;;  %v13065_v11 = vmov 0 }
 0x20b   :  { %vm7042_vm9 = vmor %vm13017_vm15, %vm13016_vm10 }
 0x20c   :  { %v13019_v16 = vsel %vm7042_vm9, 4294967295, %v13018_v16  ;;  %vm2390_vm8 = vmor %vm13020_vm6, %vm2134_vm12  ;;  %vm13021_vm12 = vcmp.eq.s32.totalorder %v6822_v33, %v6682_v22  ;;  %vm13022_vm6 = vcmp.eq.s32.totalorder %v6426_v47, %v6687_v21  ;;  %v2649_v18 = vpop.permute.xlu1 %2648 }
 0x20d   :  { %vm3094_vm15 = vmor %vm2390_vm8, %vm13021_vm12  ;;  %vm287_vm8 = vcmp.eq.s32.totalorder %v12967_v17, %v6699_v52  ;;  %vm13032_vm12 = vcmp.eq.s32.totalorder %v6822_v33, %v6687_v21  ;;  %2714 = vperm.xlu1 %5228, %v6556_v54   ;;  %v5322_v17 = vld [vmem:[%s12599_s0 + $0x1d0] sm:$0xff] }
 0x20e   :  { %vm7073_vm13 = vmor %vm13023_vm3, %vm13022_vm6  ;;  %v4776_v27 = vsel %vm3094_vm15, 1.0, %v5392_v43  ;;  %vm13030_vm3 = vcmp.eq.s32.totalorder %v1942_v24, %v6687_v21  ;;  %vm13031_vm6 = vnez %v12993_v23  ;;  %vm2142_vm15 = vcmp.eq.s32.totalorder %v7056_v63, %v6682_v22  ;;  %2798 = vperm.xlu0 %5251, %v5316_v13   ;;  %v13147_v23 = vld [vmem:[#allocation21_spill] sm:$0xff]  ;;  %v5332_v13 = vld [vmem:[%s12599_s0 + $0x110] sm:$0xff] }
 0x20f   :  { %v13025_v15 = vsel %vm7073_vm13, 4294967295, %v13024_v15  ;;  %vm7080_vm9 = vmor %vm285_vm2, %vm13026_vm7  ;;  %vm2837_vm2 = vcmp.eq.s32.totalorder %v6822_v33, %v6671_v26  ;;  %vm1435_vm7 = vcmp.eq.s32.totalorder %v6426_v47, %v6699_v52  ;;  %3990 = vmatprep.mubr.f32.mxu1 %v4776_v27 }
 0x210   :  { %v13028_v34 = vsel %vm7080_vm9, 4294967295, %v13027_v34  ;;  %vm2392_vm10 = vmor %vm13031_vm6, %vm13030_vm3  ;;  %vm13036_vm6 = vcmp.eq.s32.totalorder %v5997_v62, %v6699_v52  ;;  %v7256_v54 = vpop.permute.xlu1 %2651 }
 0x211   :  { %vm3096_vm13 = vmor %vm2392_vm10, %vm13032_vm12  ;;  %vm13039_vm12 = vcmp.eq.s32.totalorder %v1942_v24, %v6671_v26  ;;  %5229 = vset.pattern.permute.xlu1 %v12899_v45 }
 0x212   :  { %vm7110_vm3 = vmor %vm6946_vm0, %vm13033_vm5  ;;  %v4778_v49 = vsel %vm3096_vm13, 1.0, %v5392_v43  ;;  %vm2839_vm5 = vcmp.eq.s32.totalorder %v6822_v33, %v6699_v52  ;;  %vm2138_vm13 = vcmp.eq.s32.totalorder %v7088_v51, %v6682_v22  ;;  %2013 = vperm.xlu1 %5229, %v6570_v48   ;;  %v5319_v33 = vld [vmem:[%s12599_s0 + $0x1b0] sm:$0xff] }
 0x213   :  { %vm7117_vm9 = vmor %vm287_vm8, %vm13036_vm6  ;;  %vm740_vm8 = vcmp.eq.s32.totalorder %v6001_v59, %v6687_v21  ;;  %4375 = vmatprep.mubr.f32.mxu0 %v4778_v49 }
 0x214   :  { %vm2389_vm0 = vmor %vm6960_vm1, %vm13039_vm12  ;;  %vm13057_vm12 = vcmp.eq.s32.totalorder %v6001_v59, %v6671_v26  ;;  %v7353_v62 = vpop.permute.xlu1 %1950 }
 0x215   :  { %vm3093_vm6 = vmor %vm2389_vm0, %vm2837_vm2  ;;  %vm13042_vm2 = vcmp.eq.s32.totalorder %v6001_v59, %v6682_v22  ;;  %vm13043_vm0 = vcmp.eq.s32.totalorder %v13029_v32, %v6682_v22 }
 0x216   :  { %vm7145_vm1 = vmor %vm6976_vm4, %vm1435_vm7  ;;  %v4775_v47 = vsel %vm3093_vm6, 1.0, %v5392_v43  ;;  %vm13046_vm4 = vcmp.eq.s32.totalorder %v1942_v24, %v6699_v52  ;;  %2016 = vperm.xlu1 %5229, %v5320_v53  }
 0x217   :  { %vm7157_vm10 = vmor %vm13043_vm0, %vm13042_vm2  ;;  %3991 = vmatmul.mubr.f32.gmra.mrb[2].mxu1 %v4775_v47  ;;  %v5323_v47 = vld [vmem:[%s12599_s0 + $0x1c0] sm:$0xff] }
 0x218   :  { %vm2391_vm7 = vmor %vm6998_vm11, %vm13046_vm4  ;;  %vm2842_vm4 = vcmp.eq.s32.totalorder %v2649_v18, %v6682_v22 }
 0x219   :  { %vm3095_vm6 = vmor %vm2391_vm7, %vm2839_vm5  ;;  %vm13049_vm5 = vcmp.eq.s32.totalorder %v13029_v32, %v6687_v21 }
 0x21a   :  { %vm7183_vm0 = vmor %vm7032_vm14, %vm2142_vm15  ;;  %v4777_v24 = vsel %vm3095_vm6, 1.0, %v5392_v43  ;;  %vm13052_vm14 = vnez %v13013_v60  ;;  %v13059_v60 = vmov 0  ;;  %5231 = vset.pattern.permute.xlu1 %v12897_v1 }
 0x21b   :  { %vm7195_vm7 = vmor %vm13049_vm5, %vm740_vm8  ;;  %vm13053_vm8 = vcmp.eq.s32.totalorder %v6435_v50, %v6687_v21  ;;  %vm13054_vm5 = vnez %v13019_v16  ;;  %4376 = vmatmul.mubr.f32.gmra.mrb[2].mxu0 %v4777_v24  ;;  %v5317_v16 = vld [vmem:[%s12599_s0 + $0x1b8] sm:$0xff]  ;;  %2720 = vperm.xlu1 %5231, %v5320_v53   ;;  %v13172_v24 = vmov 0 }
 0x21c   :  { %vm2394_vm15 = vmor %vm13052_vm14, %vm2138_vm13  ;;  %2807 = vperm.xlu0 %5251, %v5317_v16   ;;  %vm13064_vm13 = vnez %v13028_v34  ;;  %v13174_v53 = vld [vmem:[#allocation24_spill] sm:$0xff] }
 0x21d   :  { %vm7214_vm2 = vmor %vm13054_vm5, %vm13053_vm8  ;;  %vm13058_vm8 = vcmp.eq.s32.totalorder %v13029_v32, %v6671_v26 }
 0x21e   :  { %vm3098_vm11 = vmor %vm2394_vm15, %vm2842_vm4  ;;  %vm13061_vm4 = vcmp.eq.s32.totalorder %v7088_v51, %v6687_v21  ;;  %vm13062_vm15 = vnez %v13025_v15  ;;  %v5326_v15 = vld [vmem:[%s12599_s0 + $0x1e0] sm:$0xff] }
 0x21f   :  { %vm7230_vm5 = vmor %vm13058_vm8, %vm13057_vm12  ;;  %v4780_v30 = vsel %vm3098_vm11, 1.0, %v5392_v43  ;;  %vm13063_vm8 = vcmp.eq.s32.totalorder %v6435_v50, %v6671_v26  ;;  %2723 = vperm.xlu1 %5231, %v6595_v20  }
 0x220   :  { %v13060_v60 = vsel %vm7230_vm5, 4294967295, %v13059_v60  ;;  %vm2396_vm14 = vmor %vm13062_vm15, %vm13061_vm4  ;;  %3995 = vmatprep.mubr.f32.mxu1 %v4780_v30  ;;  %vm13067_vm5 = vcmp.eq.s32.totalorder %v2649_v18, %v6687_v21  ;;  %vm13073_vm15 = vcmp.eq.s32.totalorder %v6435_v50, %v6699_v52  ;;  %5257 = vset.pattern.permute.xlu0 %v12899_v45  ;;  %v5330_v50 = vld [vmem:[%s12599_s0 + $0x1f8] sm:$0xff] }
 0x221   :  { %vm7250_vm6 = vmor %vm13064_vm13, %vm13063_vm8  ;;  %vm13068_vm13 = vcmp.eq.s32.totalorder %v6001_v59, %v6699_v52  ;;  %vm13069_vm8 = vcmp.eq.s32.totalorder %v13029_v32, %v6699_v52  ;;  %v13076_v32 = vld [vmem:[#allocation19_spill] sm:$0xff] }
 0x222   :  { %v13066_v11 = vsel %vm7250_vm6, 4294967295, %v13065_v11  ;;  %vm3100_vm4 = vmor %vm2396_vm14, %vm13067_vm5  ;;  %vm13072_vm14 = vcmp.eq.s32.totalorder %v7088_v51, %v6671_v26 }
 0x223   :  { %vm7270_vm6 = vmor %vm13069_vm8, %vm13068_vm13  ;;  %v4782_v34 = vsel %vm3100_vm4, 1.0, %v5392_v43  ;;  %vm294_vm4 = vcmp.eq.s32.totalorder %v13076_v32, %v6682_v22  ;;  %vm13081_vm13 = vcmp.eq.s32.totalorder %v7088_v51, %v6699_v52  ;;  %v5318_v51 = vld [vmem:[%s12599_s0 + $0x198] sm:$0xff]  ;;  %5232 = vset.pattern.permute.xlu1 %v12899_v45 }
 0x224   :  { %vm2393_vm5 = vmor %vm7110_vm3, %vm13072_vm14  ;;  %4380 = vmatprep.mubr.f32.mxu0 %v4782_v34  ;;  %vm13077_vm3 = vcmp.eq.s32.totalorder %v2649_v18, %v6671_v26  ;;  %2091 = vperm.xlu0 %5257, %v5318_v51  }
 0x225   :  { %vm7286_vm11 = vmor %vm7117_vm9, %vm13073_vm15  ;;  %vm13078_vm9 = vcmp.eq.s32.totalorder %v6003_v2, %v6682_v22  ;;  %2022 = vperm.xlu1 %5232, %v6581_v19  }
 0x226   :  { %vm3097_vm8 = vmor %vm2393_vm5, %vm13077_vm3  ;;  %vm13086_vm3 = vcmp.eq.s32.totalorder %v6003_v2, %v6687_v21 }
 0x227   :  { %vm7303_vm15 = vmor %vm294_vm4, %vm13078_vm9  ;;  %v4779_v27 = vsel %vm3097_vm8, 1.0, %v5392_v43  ;;  %vm13082_vm4 = vcmp.eq.s32.totalorder %v6429_v41, %v6682_v22  ;;  %vm296_vm8 = vcmp.eq.s32.totalorder %v13076_v32, %v6687_v21 }
 0x228   :  { %vm2395_vm5 = vmor %vm7145_vm1, %vm13081_vm13  ;;  %vm741_vm1 = vcmp.eq.s32.totalorder %v6003_v2, %v6671_v26  ;;  %3996 = vmatmul.mubr.f32.gmra.mrb[4].mxu1 %v4779_v27  ;;  %vm13085_vm13 = vcmp.eq.s32.totalorder %v2649_v18, %v6699_v52  ;;  %v13101_v18 = vld [vmem:[#allocation22_spill] sm:$0xff]  ;;  %2100 = vperm.xlu0 %5257, %v5319_v33  }
 0x229   :  { %vm7322_vm9 = vmor %vm7157_vm10, %vm13082_vm4 }
 0x22a   :  { %vm3099_vm12 = vmor %vm2395_vm5, %vm13085_vm13  ;;  %vm13089_vm5 = vcmp.eq.s32.totalorder %v7256_v54, %v6682_v22 }
 0x22b   :  { %vm7342_vm14 = vmor %vm296_vm8, %vm13086_vm3  ;;  %v4781_v49 = vsel %vm3099_vm12, 1.0, %v5392_v43  ;;  %vm13090_vm3 = vcmp.eq.s32.totalorder %v6429_v41, %v6687_v21  ;;  %vm293_vm12 = vcmp.eq.s32.totalorder %v13076_v32, %v6671_v26 }
 0x22c   :  { %vm3102_vm13 = vmor %vm7183_vm0, %vm13089_vm5  ;;  %4381 = vmatmul.mubr.f32.gmra.mrb[4].mxu0 %v4781_v49  ;;  %vm13093_vm5 = vcmp.eq.s32.totalorder %v7056_v63, %v6687_v21 }
 0x22d   :  { %vm7362_vm8 = vmor %vm7195_vm7, %vm13090_vm3  ;;  %v4784_v48 = vsel %vm3102_vm13, 1.0, %v5392_v43  ;;  %vm13096_vm13 = vcmp.eq.s32.totalorder %v7256_v54, %v6687_v21  ;;  %vm13098_vm3 = vnez %v13060_v60  ;;  %v7433_v60 = vpop.permute.xlu1 %1953 }
 0x22e   :  { %vm2400_vm4 = vmor %vm7214_vm2, %vm13093_vm5  ;;  %4000 = vmatprep.mubr.f32.mxu1 %v4784_v48  ;;  %vm13097_vm5 = vcmp.eq.s32.totalorder %v6429_v41, %v6671_v26  ;;  %vm13103_vm2 = vnez %v13066_v11  ;;  %v5321_v11 = vld [vmem:[%s12599_s0 + $0x1c8] sm:$0xff] }
 0x22f   :  { %vm7383_vm10 = vmor %vm293_vm12, %vm741_vm1  ;;  %vm295_vm1 = vcmp.eq.s32.totalorder %v13076_v32, %v6699_v52  ;;  %vm13111_vm12 = vcmp.eq.s32.totalorder %v7056_v63, %v6699_v52  ;;  %2109 = vperm.xlu0 %5257, %v5321_v11  }
 0x230   :  { %vm3104_vm0 = vmor %vm2400_vm4, %vm13096_vm13  ;;  %vm13102_vm13 = vcmp.eq.s32.totalorder %v7056_v63, %v6671_v26  ;;  %v5325_v63 = vld [vmem:[%s12599_s0 + $0xe8] sm:$0xff] }
 0x231   :  { %vm7397_vm7 = vmor %vm13098_vm3, %vm13097_vm5  ;;  %v4786_v55 = vsel %vm3104_vm0, 1.0, %v5392_v43  ;;  %vm13104_vm0 = vcmp.eq.s32.totalorder %v6003_v2, %v6699_v52  ;;  %v13109_v2 = vmov 0  ;;  %v7555_v32 = vpop.permute.xlu1 %2657  ;;  %2025 = vperm.xlu1 %5232, %v5325_v63  }
 0x232   :  { %vm2397_vm3 = vmor %vm13103_vm2, %vm13102_vm13  ;;  %4385 = vmatprep.mubr.f32.mxu0 %v4786_v55  ;;  %vm13107_vm2 = vcmp.eq.s32.totalorder %v7256_v54, %v6671_v26 }
 0x233   :  { %vm7423_vm4 = vmor %vm295_vm1, %vm13104_vm0  ;;  %vm13108_vm1 = vcmp.eq.s32.totalorder %v6429_v41, %v6699_v52  ;;  %2112 = vperm.xlu0 %5257, %v5322_v17   ;;  %v13215_v17 = vmov 0 }
 0x234   :  { %vm3101_vm13 = vmor %vm2397_vm3, %vm13107_vm2  ;;  %vm13112_vm3 = vcmp.eq.s32.totalorder %v6007_v61, %v6682_v22  ;;  %vm13113_vm2 = vcmp.eq.s32.totalorder %v13101_v18, %v6682_v22 }
 0x235   :  { %vm7442_vm0 = vmor %vm7270_vm6, %vm13108_vm1  ;;  %v4783_v16 = vsel %vm3101_vm13, 1.0, %v5392_v43  ;;  %vm13117_vm1 = vcmp.eq.s32.totalorder %v6442_v39, %v6682_v22  ;;  %v7663_v48 = vpop.permute.xlu1 %2660  ;;  %5234 = vset.pattern.permute.xlu1 %v12897_v1 }
 0x236   :  { %v13110_v2 = vsel %vm7442_vm0, 4294967295, %v13109_v2  ;;  %vm2399_vm5 = vmor %vm7286_vm11, %vm13111_vm12  ;;  %4001 = vmatmul.mubr.f32.gmra.mrb[6].mxu1 %v4783_v16  ;;  %vm13116_vm11 = vcmp.eq.s32.totalorder %v7256_v54, %v6699_v52  ;;  %2729 = vperm.xlu1 %5234, %v5325_v63   ;;  %v13354_v16 = vmov 0 }
 0x237   :  { %vm7466_vm0 = vmor %vm13113_vm2, %vm13112_vm3  ;;  %vm13122_vm3 = vcmp.eq.s32.totalorder %v13101_v18, %v6687_v21 }
 0x238   :  { %vm3103_vm12 = vmor %vm2399_vm5, %vm13116_vm11  ;;  %vm13120_vm5 = vcmp.eq.s32.totalorder %v7353_v62, %v6682_v22 }
 0x239   :  { %vm7480_vm6 = vmor %vm7303_vm15, %vm13117_vm1  ;;  %v4785_v30 = vsel %vm3103_vm12, 1.0, %v5392_v43  ;;  %vm13121_vm12 = vcmp.eq.s32.totalorder %v6007_v61, %v6687_v21  ;;  %vm13126_vm1 = vcmp.eq.s32.totalorder %v6442_v39, %v6687_v21 }
 0x23a   :  { %vm2402_vm11 = vmor %vm7322_vm9, %vm13120_vm5  ;;  %4386 = vmatmul.mubr.f32.gmra.mrb[6].mxu0 %v4785_v30  ;;  %vm13125_vm9 = vcmp.eq.s32.totalorder %v6950_v14, %v6682_v22  ;;  %2732 = vperm.xlu1 %5234, %v6607_v58  }
 0x23b   :  { %vm7507_vm2 = vmor %vm13122_vm3, %vm13121_vm12  ;;  %vm13129_vm12 = vcmp.eq.s32.totalorder %v7353_v62, %v6687_v21  ;;  %vm13130_vm3 = vcmp.eq.s32.totalorder %v6007_v61, %v6671_v26 }
 0x23c   :  { %vm3106_vm5 = vmor %vm2402_vm11, %vm13125_vm9  ;;  %vm13131_vm11 = vcmp.eq.s32.totalorder %v13101_v18, %v6671_v26 }
 0x23d   :  { %vm7522_vm13 = vmor %vm7342_vm14, %vm13126_vm1  ;;  %v4788_v34 = vsel %vm3106_vm5, 1.0, %v5392_v43  ;;  %vm13135_vm1 = vcmp.eq.s32.totalorder %v6442_v39, %v6671_v26 }
 0x23e   :  { %vm2404_vm9 = vmor %vm7362_vm8, %vm13129_vm12  ;;  %4005 = vmatprep.mubr.f32.mxu1 %v4788_v34  ;;  %vm13134_vm8 = vcmp.eq.s32.totalorder %v6950_v14, %v6687_v21  ;;  %5235 = vset.pattern.permute.xlu1 %v12899_v45  ;;  %v13284_v34 = vmov 0 }
 0x23f   :  { %vm7546_vm5 = vmor %vm13131_vm11, %vm13130_vm3  ;;  %vm13138_vm11 = vcmp.eq.s32.totalorder %v7353_v62, %v6671_v26  ;;  %2031 = vperm.xlu1 %5235, %v6623_v46   ;;  %v5333_v46 = vld [vmem:[%s12599_s0 + $0x118] sm:$0xff] }
 0x240   :  { %vm3108_vm12 = vmor %vm2404_vm9, %vm13134_vm8 }
 0x241   :  { %vm7562_vm15 = vmor %vm7383_vm10, %vm13135_vm1  ;;  %v4790_v27 = vsel %vm3108_vm12, 1.0, %v5392_v43  ;;  %vm13139_vm1 = vcmp.eq.s32.totalorder %v6007_v61, %v6699_v52  ;;  %vm13140_vm12 = vcmp.eq.s32.totalorder %v13101_v18, %v6699_v52  ;;  %vm13144_vm10 = vcmp.eq.s32.totalorder %v6442_v39, %v6699_v52  ;;  %v7686_v18 = vpop.permute.xlu0 %1956 }
 0x242   :  { %vm2401_vm9 = vmor %vm7397_vm7, %vm13138_vm11  ;;  %4390 = vmatprep.mubr.f32.mxu0 %v4790_v27  ;;  %vm13143_vm7 = vcmp.eq.s32.totalorder %v6950_v14, %v6671_v26  ;;  %v13145_v61 = vmov 0  ;;  %v13521_v39 = vmov 0 }
 0x243   :  { %vm7587_vm3 = vmor %vm13140_vm12, %vm13139_vm1  ;;  %vm302_vm1 = vcmp.eq.s32.totalorder %v13147_v23, %v6682_v22 }
 0x244   :  { %vm3105_vm11 = vmor %vm2401_vm9, %vm13143_vm7  ;;  %vm13148_vm9 = vcmp.eq.s32.totalorder %v7353_v62, %v6699_v52  ;;  %vm13149_vm7 = vnez %v13110_v2  ;;  %v13158_v62 = vmov 2  }
 0x245   :  { %vm7601_vm14 = vmor %vm7423_vm4, %vm13144_vm10  ;;  %v4787_v49 = vsel %vm3105_vm11, 1.0, %v5392_v43  ;;  %vm13153_vm11 = vcmp.eq.s32.totalorder %v6950_v14, %v6699_v52  ;;  %vm13154_vm4 = vcmp.eq.s32.totalorder %v6437_v44, %v6682_v22  ;;  %5260 = vset.pattern.permute.xlu0 %v13158_v62  ;;  %v7906_v51 = vpop.permute.xlu0 %2663 }
 0x246   :  { %v13146_v61 = vsel %vm7601_vm14, 4294967295, %v13145_v61  ;;  %vm2403_vm8 = vmor %vm13149_vm7, %vm13148_vm9  ;;  %vm13150_vm14 = vcmp.eq.s32.totalorder %v6009_v57, %v6682_v22  ;;  %4006 = vmatmul.mubr.f32.gmra.mrb[8].mxu1 %v4787_v49  ;;  %vm13159_vm7 = vcmp.eq.s32.totalorder %v6009_v57, %v6687_v21  ;;  %1402 = vperm.xlu0 %5260, %v5323_v47  }
 0x247   :  { %vm7623_vm12 = vmor %vm302_vm1, %vm13150_vm14  ;;  %vm304_vm14 = vcmp.eq.s32.totalorder %v13147_v23, %v6687_v21 }
 0x248   :  { %vm3107_vm9 = vmor %vm2403_vm8, %vm13153_vm11  ;;  %vm13157_vm8 = vcmp.eq.s32.totalorder %v7433_v60, %v6682_v22 }
 0x249   :  { %vm7637_vm10 = vmor %vm7466_vm0, %vm13154_vm4  ;;  %v4789_v14 = vsel %vm3107_vm9, 1.0, %v5392_v43 }
 0x24a   :  { %vm2406_vm11 = vmor %vm7480_vm6, %vm13157_vm8  ;;  %4391 = vmatmul.mubr.f32.gmra.mrb[8].mxu0 %v4789_v14  ;;  %vm13162_vm6 = vcmp.eq.s32.totalorder %v7555_v32, %v6682_v22  ;;  %vm13166_vm8 = vcmp.eq.s32.totalorder %v7433_v60, %v6687_v21 }
 0x24b   :  { %vm7659_vm1 = vmor %vm304_vm14, %vm13159_vm7  ;;  %vm13163_vm7 = vcmp.eq.s32.totalorder %v6437_v44, %v6687_v21 }
 0x24c   :  { %vm3110_vm9 = vmor %vm2406_vm11, %vm13162_vm6  ;;  %vm301_vm11 = vcmp.eq.s32.totalorder %v13147_v23, %v6671_v26  ;;  %vm13167_vm6 = vcmp.eq.s32.totalorder %v6009_v57, %v6671_v26 }
 0x24d   :  { %vm7678_vm14 = vmor %vm7507_vm2, %vm13163_vm7  ;;  %v4792_v55 = vsel %vm3110_vm9, 1.0, %v5392_v43  ;;  %vm303_vm9 = vcmp.eq.s32.totalorder %v13147_v23, %v6699_v52  ;;  %vm13171_vm7 = vcmp.eq.s32.totalorder %v6437_v44, %v6671_v26  ;;  %v13221_v23 = vld [vmem:[#allocation23_spill] sm:$0xff] }
 0x24e   :  { %vm2408_vm4 = vmor %vm7522_vm13, %vm13166_vm8  ;;  %4010 = vmatprep.mubr.f32.mxu1 %v4792_v55  ;;  %vm13170_vm13 = vcmp.eq.s32.totalorder %v7555_v32, %v6687_v21  ;;  %v8039_v55 = vpop.permute.xlu0 %2672 }
 0x24f   :  { %vm7702_vm0 = vmor %vm301_vm11, %vm13167_vm6  ;;  %vm13176_vm6 = vcmp.eq.s32.totalorder %v6009_v57, %v6699_v52  ;;  %v5324_v57 = vld [vmem:[%s12599_s0 + $0x1d8] sm:$0xff] }
 0x250   :  { %vm3112_vm8 = vmor %vm2408_vm4, %vm13170_vm13  ;;  %vm13175_vm13 = vcmp.eq.s32.totalorder %v7433_v60, %v6671_v26  ;;  %1411 = vperm.xlu0 %5260, %v5324_v57  }
 0x251   :  { %vm7719_vm11 = vmor %vm7546_vm5, %vm13171_vm7  ;;  %v4794_v2 = vsel %vm3112_vm8, 1.0, %v5392_v43  ;;  %vm13179_vm8 = vcmp.eq.s32.totalorder %v7555_v32, %v6671_v26 }
 0x252   :  { %v13173_v24 = vsel %vm7719_vm11, 4294967295, %v13172_v24  ;;  %vm2405_vm2 = vmor %vm7562_vm15, %vm13175_vm13  ;;  %4395 = vmatprep.mubr.f32.mxu0 %v4794_v2  ;;  %vm13180_vm13 = vcmp.eq.s32.totalorder %v6437_v44, %v6699_v52  ;;  %v5328_v44 = vld [vmem:[%s12599_s0 + $0x100] sm:$0xff] }
 0x253   :  { %vm7740_vm11 = vmor %vm303_vm9, %vm13176_vm6  ;;  %vm13183_vm6 = vcmp.eq.s32.totalorder %v7433_v60, %v6699_v52  ;;  %vm13186_vm9 = vcmp.eq.s32.totalorder %v13174_v53, %v6682_v22  ;;  %v7790_v60 = vpop.permute.xlu1 %1959  ;;  %2034 = vperm.xlu1 %5235, %v5328_v44  }
 0x254   :  { %vm3109_vm4 = vmor %vm2405_vm2, %vm13179_vm8  ;;  %vm13185_vm2 = vcmp.eq.s32.totalorder %v6013_v4, %v6682_v22  ;;  %1414 = vperm.xlu0 %5260, %v5326_v15  }
 0x255   :  { %vm7754_vm7 = vmor %vm7587_vm3, %vm13180_vm13  ;;  %v4791_v41 = vsel %vm3109_vm4, 1.0, %v5392_v43  ;;  %vm13184_vm3 = vnez %v13146_v61  ;;  %vm13189_vm4 = vcmp.eq.s32.totalorder %v7555_v32, %v6699_v52 }
 0x256   :  { %vm2407_vm8 = vmor %vm13184_vm3, %vm13183_vm6  ;;  %4011 = vmatmul.mubr.f32.gmra.mrb[10].mxu1 %v4791_v41  ;;  %vm13193_vm3 = vcmp.eq.s32.totalorder %v7686_v18, %v6682_v22 }
 0x257   :  { %vm7781_vm5 = vmor %vm13186_vm9, %vm13185_vm2  ;;  %vm13190_vm2 = vcmp.eq.s32.totalorder %v6451_v37, %v6682_v22  ;;  %v7911_v61 = vpop.permute.xlu1 %1962  ;;  %5237 = vset.pattern.permute.xlu1 %v12897_v1 }
 0x258   :  { %vm3111_vm6 = vmor %vm2407_vm8, %vm13189_vm4  ;;  %vm13194_vm8 = vcmp.eq.s32.totalorder %v6013_v4, %v6687_v21  ;;  %vm13195_vm4 = vcmp.eq.s32.totalorder %v13174_v53, %v6687_v21  ;;  %5265 = vset.pattern.permute.xlu0 %v12897_v1  ;;  %2738 = vperm.xlu1 %5237, %v5328_v44  }
 0x259   :  { %vm7800_vm9 = vmor %vm7623_vm12, %vm13190_vm2  ;;  %v4793_v11 = vsel %vm3111_vm6, 1.0, %v5392_v43  ;;  %vm13199_vm2 = vcmp.eq.s32.totalorder %v6451_v37, %v6687_v21  ;;  %2822 = vperm.xlu0 %5265, %v5326_v15  }
 0x25a   :  { %vm2410_vm15 = vmor %vm7637_vm10, %vm13193_vm3  ;;  %4396 = vmatmul.mubr.f32.gmra.mrb[10].mxu0 %v4793_v11  ;;  %vm13198_vm10 = vcmp.eq.s32.totalorder %v7663_v48, %v6682_v22  ;;  %v5329_v11 = vld [vmem:[%s12599_s0 + $0x1f0] sm:$0xff] }
 0x25b   :  { %vm7824_vm13 = vmor %vm13195_vm4, %vm13194_vm8  ;;  %vm13204_vm4 = vcmp.eq.s32.totalorder %v13174_v53, %v6671_v26  ;;  %v8022_v47 = vpop.permute.xlu1 %2666 }
 0x25c   :  { %vm3114_vm6 = vmor %vm2410_vm15, %vm13198_vm10  ;;  %vm13202_vm10 = vcmp.eq.s32.totalorder %v7686_v18, %v6687_v21  ;;  %vm13203_vm15 = vcmp.eq.s32.totalorder %v6013_v4, %v6671_v26 }
 0x25d   :  { %vm7841_vm8 = vmor %vm7659_vm1, %vm13199_vm2  ;;  %v4796_v59 = vsel %vm3114_vm6, 1.0, %v5392_v43  ;;  %vm13208_vm2 = vcmp.eq.s32.totalorder %v6451_v37, %v6671_v26 }
 0x25e   :  { %vm2412_vm3 = vmor %vm7678_vm14, %vm13202_vm10  ;;  %4015 = vmatprep.mubr.f32.mxu1 %v4796_v59  ;;  %vm13207_vm14 = vcmp.eq.s32.totalorder %v7663_v48, %v6687_v21  ;;  %vm13218_vm10 = vcmp.eq.s32.totalorder %v6451_v37, %v6699_v52  ;;  %v13290_v59 = vld [vmem:[#allocation25_spill] sm:$0xff]  ;;  %v13519_v37 = vld [vmem:[#allocation116_spill] sm:$0xff] }
 0x25f   :  { %vm7865_vm12 = vmor %vm13204_vm4, %vm13203_vm15  ;;  %vm13212_vm4 = vnez %v13173_v24  ;;  %vm13214_vm15 = vcmp.eq.s32.totalorder %v13174_v53, %v6699_v52  ;;  %v5327_v53 = vld [vmem:[%s12599_s0 + $0x1e8] sm:$0xff]  ;;  %v8140_v57 = vpop.permute.xlu1 %2669 }
 0x260   :  { %vm3116_vm6 = vmor %vm2412_vm3, %vm13207_vm14  ;;  %vm13211_vm3 = vcmp.eq.s32.totalorder %v7686_v18, %v6671_v26  ;;  %2825 = vperm.xlu0 %5265, %v5327_v53  }
 0x261   :  { %vm7879_vm1 = vmor %vm7702_vm0, %vm13208_vm2  ;;  %v4798_v27 = vsel %vm3116_vm6, 1.0, %v5392_v43  ;;  %vm13213_vm2 = vcmp.eq.s32.totalorder %v6013_v4, %v6699_v52  ;;  %v13219_v4 = vmov 0 }
 0x262   :  { %vm2409_vm14 = vmor %vm13212_vm4, %vm13211_vm3  ;;  %4400 = vmatprep.mubr.f32.mxu0 %v4798_v27  ;;  %vm13217_vm3 = vcmp.eq.s32.totalorder %v7663_v48, %v6671_v26 }
 0x263   :  { %vm7902_vm6 = vmor %vm13214_vm15, %vm13213_vm2  ;;  %vm310_vm2 = vcmp.eq.s32.totalorder %v13221_v23, %v6682_v22  ;;  %v8268_v27 = vpop.permute.xlu1 %1968 }
 0x264   :  { %v13216_v17 = vsel %vm7902_vm6, 4294967295, %v13215_v17  ;;  %vm3113_vm4 = vmor %vm2409_vm14, %vm13217_vm3  ;;  %vm760_vm14 = vcmp.eq.s32.totalorder %v6015_v0, %v6687_v21  ;;  %vm13222_vm3 = vcmp.eq.s32.totalorder %v7686_v18, %v6699_v52  ;;  %v13244_v18 = vld [vmem:[#allocation26_spill] sm:$0xff]  ;;  %5269 = vset.pattern.permute.xlu0 %v12899_v45 }
 0x265   :  { %vm7920_vm15 = vmor %vm7740_vm11, %vm13218_vm10  ;;  %v4795_v49 = vsel %vm3113_vm4, 1.0, %v5392_v43  ;;  %vm13226_vm4 = vcmp.eq.s32.totalorder %v7663_v48, %v6699_v52  ;;  %vm13227_vm10 = vcmp.eq.s32.totalorder %v6444_v42, %v6682_v22  ;;  %2124 = vperm.xlu0 %5269, %v5329_v11  }
 0x266   :  { %v13220_v4 = vsel %vm7920_vm15, 4294967295, %v13219_v4  ;;  %vm2411_vm0 = vmor %vm7754_vm7, %vm13222_vm3  ;;  %vm13223_vm15 = vcmp.eq.s32.totalorder %v6015_v0, %v6682_v22  ;;  %4016 = vmatmul.mubr.f32.gmra.mrb[12].mxu1 %v4795_v49  ;;  %vm2160_vm3 = vcmp.eq.s32.totalorder %v7790_v60, %v6687_v21  ;;  %v5331_v49 = vld [vmem:[%s12599_s0 + $0x108] sm:$0xff] }
 0x267   :  { %vm7941_vm6 = vmor %vm310_vm2, %vm13223_vm15  ;;  %vm312_vm15 = vcmp.eq.s32.totalorder %v13221_v23, %v6687_v21  ;;  %2741 = vperm.xlu1 %5237, %v5331_v49  }
 0x268   :  { %vm3115_vm7 = vmor %vm2411_vm0, %vm13226_vm4  ;;  %vm13230_vm0 = vcmp.eq.s32.totalorder %v7790_v60, %v6682_v22 }
 0x269   :  { %vm7956_vm11 = vmor %vm7781_vm5, %vm13227_vm10  ;;  %v4797_v20 = vsel %vm3115_vm7, 1.0, %v5392_v43  ;;  %vm13233_vm7 = vcmp.eq.s32.totalorder %v7906_v51, %v6682_v22  ;;  %vm13234_vm5 = vcmp.eq.s32.totalorder %v6444_v42, %v6687_v21  ;;  %2127 = vperm.xlu0 %5269, %v5330_v50  }
 0x26a   :  { %vm2414_vm4 = vmor %vm7800_vm9, %vm13230_vm0  ;;  %4401 = vmatmul.mubr.f32.gmra.mrb[12].mxu0 %v4797_v20  ;;  %v13314_v20 = vld [vmem:[#allocation28_spill] sm:$0xff] }
 0x26b   :  { %vm7978_vm2 = vmor %vm312_vm15, %vm760_vm14  ;;  %vm309_vm14 = vcmp.eq.s32.totalorder %v13221_v23, %v6671_v26  ;;  %5238 = vset.pattern.permute.xlu1 %v12899_v45 }
 0x26c   :  { %vm3118_vm9 = vmor %vm2414_vm4, %vm13233_vm7  ;;  %vm13237_vm7 = vcmp.eq.s32.totalorder %v6015_v0, %v6671_v26  ;;  %2040 = vperm.xlu1 %5238, %v5332_v13  }
 0x26d   :  { %vm7992_vm10 = vmor %vm7824_vm13, %vm13234_vm5  ;;  %v4800_v56 = vsel %vm3118_vm9, 1.0, %v5392_v43  ;;  %vm2861_vm13 = vcmp.eq.s32.totalorder %v7906_v51, %v6671_v26  ;;  %vm13240_vm9 = vcmp.eq.s32.totalorder %v7906_v51, %v6687_v21  ;;  %5273 = vset.pattern.permute.xlu0 %v12897_v1 }
 0x26e   :  { %vm2416_vm4 = vmor %vm7841_vm8, %vm2160_vm3  ;;  %4020 = vmatprep.mubr.f32.mxu1 %v4800_v56  ;;  %vm13241_vm3 = vcmp.eq.s32.totalorder %v6444_v42, %v6671_v26  ;;  %v8379_v56 = vpop.permute.xlu1 %1971 }
 0x26f   :  { %vm8013_vm0 = vmor %vm309_vm14, %vm13237_vm7  ;;  %vm311_vm14 = vcmp.eq.s32.totalorder %v13221_v23, %v6699_v52  ;;  %vm13246_vm7 = vcmp.eq.s32.totalorder %v6015_v0, %v6699_v52  ;;  %v13251_v0 = vmov 0 }
 0x270   :  { %vm3120_vm15 = vmor %vm2416_vm4, %vm13240_vm9  ;;  %vm13245_vm9 = vcmp.eq.s32.totalorder %v7790_v60, %v6671_v26  ;;  %vm13255_vm4 = vcmp.eq.s32.totalorder %v6019_v6, %v6682_v22  ;;  %2043 = vperm.xlu1 %5238, %v5333_v46  }
 0x271   :  { %vm8029_vm5 = vmor %vm7865_vm12, %vm13241_vm3  ;;  %v4802_v33 = vsel %vm3120_vm15, 1.0, %v5392_v43  ;;  %vm13254_vm15 = vnez %v13220_v4 }
 0x272   :  { %vm2413_vm12 = vmor %vm7879_vm1, %vm13245_vm9  ;;  %4405 = vmatprep.mubr.f32.mxu0 %v4802_v33  ;;  %vm13249_vm9 = vcmp.eq.s32.totalorder %v6444_v42, %v6699_v52  ;;  %v13552_v33 = vld [vmem:[#allocation74_spill] sm:$0xff] }
 0x273   :  { %vm8055_vm8 = vmor %vm311_vm14, %vm13246_vm7  ;;  %vm13250_vm14 = vnez %v13216_v17  ;;  %v5343_v17 = vld [vmem:[%s12599_s0 + $0x168] sm:$0xff] }
 0x274   :  { %vm3117_vm1 = vmor %vm2413_vm12, %vm2861_vm13  ;;  %vm13253_vm12 = vcmp.eq.s32.totalorder %v7790_v60, %v6699_v52  ;;  %vm13256_vm13 = vcmp.eq.s32.totalorder %v13244_v18, %v6682_v22  ;;  %v8163_v60 = vpop.permute.xlu0 %1965  ;;  %5240 = vset.pattern.permute.xlu1 %v12897_v1 }
 0x275   :  { %vm8072_vm7 = vmor %vm13250_vm14, %vm13249_vm9  ;;  %v4799_v2 = vsel %vm3117_vm1, 1.0, %v5392_v43  ;;  %vm13259_vm1 = vcmp.eq.s32.totalorder %v7906_v51, %v6699_v52  ;;  %vm13260_vm14 = vcmp.eq.s32.totalorder %v6461_v35, %v6682_v22  ;;  %2747 = vperm.xlu1 %5240, %v5333_v46  }
 0x276   :  { %v13252_v0 = vsel %vm8072_vm7, 4294967295, %v13251_v0  ;;  %vm2415_vm3 = vmor %vm13254_vm15, %vm13253_vm12  ;;  %4021 = vmatmul.mubr.f32.gmra.mrb[14].mxu1 %v4799_v2  ;;  %v8501_v2 = vpop.permute.xlu1 %2675 }
 0x277   :  { %vm8097_vm7 = vmor %vm13256_vm13, %vm13255_vm4  ;;  %vm13264_vm4 = vcmp.eq.s32.totalorder %v6019_v6, %v6687_v21  ;;  %vm13265_vm13 = vcmp.eq.s32.totalorder %v13244_v18, %v6687_v21 }
 0x278   :  { %vm3119_vm15 = vmor %vm2415_vm3, %vm13259_vm1  ;;  %vm13263_vm3 = vcmp.eq.s32.totalorder %v7911_v61, %v6682_v22  ;;  %v8628_v11 = vpop.permute.xlu0 %1974 }
 0x279   :  { %vm8111_vm9 = vmor %vm7941_vm6, %vm13260_vm14  ;;  %v4801_v19 = vsel %vm3119_vm15, 1.0, %v5392_v43  ;;  %vm13269_vm14 = vcmp.eq.s32.totalorder %v6461_v35, %v6687_v21 }
 0x27a   :  { %vm2418_vm1 = vmor %vm7956_vm11, %vm13263_vm3  ;;  %4406 = vmatmul.mubr.f32.gmra.mrb[14].mxu0 %v4801_v19  ;;  %vm13268_vm11 = vcmp.eq.s32.totalorder %v8022_v47, %v6682_v22  ;;  %vm13278_vm3 = vcmp.eq.s32.totalorder %v6461_v35, %v6671_v26 }
 0x27b   :  { %vm8135_vm12 = vmor %vm13265_vm13, %vm13264_vm4  ;;  %vm13273_vm13 = vcmp.eq.s32.totalorder %v6019_v6, %v6671_v26 }
 0x27c   :  { %vm3122_vm15 = vmor %vm2418_vm1, %vm13268_vm11  ;;  %vm13274_vm1 = vcmp.eq.s32.totalorder %v13244_v18, %v6671_v26  ;;  %v8831_v58 = vpop.permute.xlu0 %2681 }
 0x27d   :  { %vm8152_vm4 = vmor %vm7978_vm2, %vm13269_vm14  ;;  %v4804_v63 = vsel %vm3122_vm15, 1.0, %v5392_v43  ;;  %vm13272_vm2 = vcmp.eq.s32.totalorder %v7911_v61, %v6687_v21 }
 0x27e   :  { %vm2420_vm14 = vmor %vm7992_vm10, %vm13272_vm2  ;;  %4025 = vmatprep.mubr.f32.mxu1 %v4804_v63  ;;  %vm13277_vm10 = vcmp.eq.s32.totalorder %v8022_v47, %v6687_v21  ;;  %v8608_v63 = vpop.permute.xlu1 %2678 }
 0x27f   :  { %vm8181_vm6 = vmor %vm13274_vm1, %vm13273_vm13  ;;  %vm13283_vm1 = vcmp.eq.s32.totalorder %v13244_v18, %v6699_v52 }
 0x280   :  { %vm3124_vm15 = vmor %vm2420_vm14, %vm13277_vm10  ;;  %vm13281_vm14 = vcmp.eq.s32.totalorder %v7911_v61, %v6671_v26  ;;  %v8964_v42 = vpop.permute.xlu0 %2690 }
 0x281   :  { %vm8198_vm13 = vmor %vm8013_vm0, %vm13278_vm3  ;;  %v4806_v15 = vsel %vm3124_vm15, 1.0, %v5392_v43  ;;  %vm13282_vm3 = vcmp.eq.s32.totalorder %v6019_v6, %v6699_v52  ;;  %vm13287_vm0 = vcmp.eq.s32.totalorder %v6461_v35, %v6699_v52  ;;  %v13288_v6 = vmov 0  ;;  %v13393_v35 = vld [vmem:[#allocation30_spill] sm:$0xff] }
 0x282   :  { %vm2417_vm10 = vmor %vm8029_vm5, %vm13281_vm14  ;;  %4410 = vmatprep.mubr.f32.mxu0 %v4806_v15  ;;  %vm13286_vm5 = vcmp.eq.s32.totalorder %v8022_v47, %v6671_v26  ;;  %v5338_v15 = vld [vmem:[%s12599_s0 + $0x140] sm:$0xff] }
 0x283   :  { %vm8220_vm11 = vmor %vm13283_vm1, %vm13282_vm3  ;;  %vm318_vm1 = vcmp.eq.s32.totalorder %v13290_v59, %v6682_v22  ;;  %vm13291_vm3 = vcmp.eq.s32.totalorder %v7911_v61, %v6699_v52  ;;  %v13625_v61 = vld [vmem:[#allocation76_spill] sm:$0xff] }
 0x284   :  { %v13285_v34 = vsel %vm8220_vm11, 4294967295, %v13284_v34  ;;  %vm3121_vm15 = vmor %vm2417_vm10, %vm13286_vm5  ;;  %vm768_vm10 = vcmp.eq.s32.totalorder %v6021_v3, %v6687_v21  ;;  %vm13292_vm5 = vnez %v13252_v0 }
 0x285   :  { %vm8234_vm2 = vmor %vm8055_vm8, %vm13287_vm0  ;;  %v4803_v32 = vsel %vm3121_vm15, 1.0, %v5392_v43  ;;  %vm13296_vm15 = vcmp.eq.s32.totalorder %v8022_v47, %v6699_v52  ;;  %vm320_vm0 = vcmp.eq.s32.totalorder %v13290_v59, %v6687_v21 }
 0x286   :  { %v13289_v6 = vsel %vm8234_vm2, 4294967295, %v13288_v6  ;;  %vm2419_vm14 = vmor %vm13292_vm5, %vm13291_vm3  ;;  %vm13293_vm2 = vcmp.eq.s32.totalorder %v6021_v3, %v6682_v22  ;;  %4026 = vmatmul.mubr.f32.gmra.mrb[16].mxu1 %v4803_v32  ;;  %v5334_v32 = vld [vmem:[%s12599_s0 + $0x120] sm:$0xff] }
 0x287   :  { %vm8256_vm11 = vmor %vm318_vm1, %vm13293_vm2  ;;  %vm13297_vm2 = vcmp.eq.s32.totalorder %v6453_v40, %v6682_v22  ;;  %2750 = vperm.xlu1 %5240, %v5334_v32  }
 0x288   :  { %vm3123_vm3 = vmor %vm2419_vm14, %vm13296_vm15  ;;  %vm13300_vm15 = vcmp.eq.s32.totalorder %v8163_v60, %v6682_v22 }
 0x289   :  { %vm8275_vm1 = vmor %vm8097_vm7, %vm13297_vm2  ;;  %v4805_v51 = vsel %vm3123_vm3, 1.0, %v5392_v43  ;;  %vm2872_vm7 = vcmp.eq.s32.totalorder %v8140_v57, %v6687_v21  ;;  %vm13303_vm3 = vcmp.eq.s32.totalorder %v8140_v57, %v6682_v22 }
 0x28a   :  { %vm2422_vm5 = vmor %vm8111_vm9, %vm13300_vm15  ;;  %4411 = vmatmul.mubr.f32.gmra.mrb[16].mxu0 %v4805_v51  ;;  %vm2165_vm9 = vcmp.eq.s32.totalorder %v8163_v60, %v6671_v26  ;;  %vm13304_vm15 = vcmp.eq.s32.totalorder %v6453_v40, %v6687_v21 }
 0x28b   :  { %vm8296_vm8 = vmor %vm320_vm0, %vm768_vm10  ;;  %vm317_vm10 = vcmp.eq.s32.totalorder %v13290_v59, %v6671_v26  ;;  %5241 = vset.pattern.permute.xlu1 %v12899_v45 }
 0x28c   :  { %vm3126_vm14 = vmor %vm2422_vm5, %vm13303_vm3  ;;  %vm13307_vm5 = vcmp.eq.s32.totalorder %v8163_v60, %v6687_v21 }
 0x28d   :  { %vm8310_vm2 = vmor %vm8135_vm12, %vm13304_vm15  ;;  %v4808_v23 = vsel %vm3126_vm14, 1.0, %v5392_v43  ;;  %vm13308_vm14 = vcmp.eq.s32.totalorder %v6021_v3, %v6671_v26  ;;  %vm13311_vm15 = vcmp.eq.s32.totalorder %v6453_v40, %v6671_v26 }
 0x28e   :  { %vm2424_vm3 = vmor %vm8152_vm4, %vm13307_vm5  ;;  %4030 = vmatprep.mubr.f32.mxu1 %v4808_v23  ;;  %v5335_v23 = vld [vmem:[%s12599_s0 + $0x128] sm:$0xff] }
 0x28f   :  { %vm8334_vm0 = vmor %vm317_vm10, %vm13308_vm14  ;;  %vm319_vm10 = vcmp.eq.s32.totalorder %v13290_v59, %v6699_v52  ;;  %vm13315_vm14 = vcmp.eq.s32.totalorder %v6021_v3, %v6699_v52  ;;  %v13321_v3 = vmov 0  ;;  %v13386_v59 = vmov 0  ;;  %2049 = vperm.xlu1 %5241, %v5335_v23   ;;  %v13517_v23 = vld [vmem:[#allocation14_spill] sm:$0xff] }
 0x290   :  { %vm3128_vm4 = vmor %vm2424_vm3, %vm2872_vm7 }
 0x291   :  { %vm8349_vm12 = vmor %vm8181_vm6, %vm13311_vm15  ;;  %v4810_v14 = vsel %vm3128_vm4, 1.0, %v5392_v43  ;;  %vm13318_vm4 = vcmp.eq.s32.totalorder %v8140_v57, %v6671_v26  ;;  %vm13320_vm15 = vnez %v13285_v34 }
 0x292   :  { %vm2421_vm6 = vmor %vm8198_vm13, %vm2165_vm9  ;;  %4415 = vmatprep.mubr.f32.mxu0 %v4810_v14  ;;  %vm13319_vm9 = vcmp.eq.s32.totalorder %v6453_v40, %v6699_v52  ;;  %v13420_v14 = vmov 0 }
 0x293   :  { %vm8372_vm5 = vmor %vm319_vm10, %vm13315_vm14  ;;  %vm13325_vm10 = vcmp.eq.s32.totalorder %v6025_v8, %v6682_v22 }
 0x294   :  { %vm3125_vm7 = vmor %vm2421_vm6, %vm13318_vm4  ;;  %vm13323_vm6 = vcmp.eq.s32.totalorder %v8163_v60, %v6699_v52  ;;  %vm13324_vm4 = vnez %v13289_v6  ;;  %v5350_v60 = vld [vmem:[%s12599_s0 + $0x1a0] sm:$0xff] }
 0x295   :  { %vm8388_vm3 = vmor %vm13320_vm15, %vm13319_vm9  ;;  %v4807_v48 = vsel %vm3125_vm7, 1.0, %v5392_v43  ;;  %vm13326_vm7 = vcmp.eq.s32.totalorder %v13314_v20, %v6682_v22  ;;  %vm13330_vm15 = vcmp.eq.s32.totalorder %v6475_v36, %v6682_v22 }
 0x296   :  { %v13322_v3 = vsel %vm8388_vm3, 4294967295, %v13321_v3  ;;  %vm2423_vm13 = vmor %vm13324_vm4, %vm13323_vm6  ;;  %4031 = vmatmul.mubr.f32.gmra.mrb[18].mxu1 %v4807_v48  ;;  %vm13329_vm6 = vcmp.eq.s32.totalorder %v8140_v57, %v6699_v52  ;;  %v13360_v57 = vld [vmem:[#allocation27_spill] sm:$0xff] }
 0x297   :  { %vm8413_vm14 = vmor %vm13326_vm7, %vm13325_vm10  ;;  %vm13333_vm7 = vcmp.eq.s32.totalorder %v8268_v27, %v6682_v22  ;;  %vm13335_vm10 = vcmp.eq.s32.totalorder %v13314_v20, %v6687_v21  ;;  %v5336_v48 = vld [vmem:[%s12599_s0 + $0x130] sm:$0xff] }
 0x298   :  { %vm3127_vm4 = vmor %vm2423_vm13, %vm13329_vm6  ;;  %vm13334_vm13 = vcmp.eq.s32.totalorder %v6025_v8, %v6687_v21  ;;  %vm13339_vm6 = vcmp.eq.s32.totalorder %v6475_v36, %v6687_v21  ;;  %2052 = vperm.xlu1 %5241, %v5336_v48  }
 0x299   :  { %vm8427_vm3 = vmor %vm8256_vm11, %vm13330_vm15  ;;  %v4809_v18 = vsel %vm3127_vm4, 1.0, %v5392_v43 }
 0x29a   :  { %vm2426_vm11 = vmor %vm8275_vm1, %vm13333_vm7  ;;  %4416 = vmatmul.mubr.f32.gmra.mrb[18].mxu0 %v4809_v18  ;;  %vm13338_vm1 = vcmp.eq.s32.totalorder %v8039_v55, %v6682_v22  ;;  %v13660_v18 = vld [vmem:[#allocation77_spill] sm:$0xff] }
 0x29b   :  { %vm8454_vm9 = vmor %vm13335_vm10, %vm13334_vm13  ;;  %vm13343_vm13 = vcmp.eq.s32.totalorder %v6025_v8, %v6671_v26  ;;  %vm13344_vm10 = vcmp.eq.s32.totalorder %v13314_v20, %v6671_v26 }
 0x29c   :  { %vm3130_vm4 = vmor %vm2426_vm11, %vm13338_vm1  ;;  %vm13342_vm11 = vcmp.eq.s32.totalorder %v8268_v27, %v6687_v21  ;;  %5242 = vset.pattern.permute.xlu1 %v12897_v1 }
 0x29d   :  { %vm8468_vm15 = vmor %vm8296_vm8, %vm13339_vm6  ;;  %v4812_v53 = vsel %vm3130_vm4, 1.0, %v5392_v43  ;;  %vm13348_vm6 = vcmp.eq.s32.totalorder %v6475_v36, %v6671_v26  ;;  %2756 = vperm.xlu1 %5242, %v5336_v48   ;;  %v5340_v48 = vld [vmem:[%s12599_s0 + $0x150] sm:$0xff] }
 0x29e   :  { %vm2428_vm1 = vmor %vm8310_vm2, %vm13342_vm11  ;;  %4035 = vmatprep.mubr.f32.mxu1 %v4812_v53  ;;  %vm13347_vm2 = vcmp.eq.s32.totalorder %v8039_v55, %v6687_v21  ;;  %v13554_v53 = vld [vmem:[#allocation115_spill] sm:$0xff] }
 0x29f   :  { %vm8492_vm7 = vmor %vm13344_vm10, %vm13343_vm13  ;;  %vm13351_vm10 = vcmp.eq.s32.totalorder %v8268_v27, %v6671_v26  ;;  %vm13353_vm13 = vcmp.eq.s32.totalorder %v13314_v20, %v6699_v52 }
 0x2a0   :  { %vm3132_vm4 = vmor %vm2428_vm1, %vm13347_vm2  ;;  %vm13352_vm2 = vcmp.eq.s32.totalorder %v6025_v8, %v6699_v52  ;;  %v13358_v8 = vmov 0 }
 0x2a1   :  { %vm8508_vm8 = vmor %vm8334_vm0, %vm13348_vm6  ;;  %v4814_v19 = vsel %vm3132_vm4, 1.0, %v5392_v43  ;;  %vm13357_vm6 = vcmp.eq.s32.totalorder %v6475_v36, %v6699_v52 }
 0x2a2   :  { %vm2425_vm1 = vmor %vm8349_vm12, %vm13351_vm10  ;;  %4420 = vmatprep.mubr.f32.mxu0 %v4814_v19  ;;  %vm13356_vm12 = vcmp.eq.s32.totalorder %v8039_v55, %v6671_v26  ;;  %v13454_v19 = vmov 0 }
 0x2a3   :  { %vm8533_vm11 = vmor %vm13353_vm13, %vm13352_vm2  ;;  %vm326_vm13 = vcmp.eq.s32.totalorder %v13360_v57, %v6682_v22 }
 0x2a4   :  { %v13355_v16 = vsel %vm8533_vm11, 4294967295, %v13354_v16  ;;  %vm3129_vm4 = vmor %vm2425_vm1, %vm13356_vm12  ;;  %vm13361_vm1 = vcmp.eq.s32.totalorder %v8268_v27, %v6699_v52  ;;  %vm13362_vm12 = vnez %v13322_v3  ;;  %v8725_v27 = vpop.permute.xlu1 %1977  ;;  %v13427_v3 = vld [vmem:[#allocation29_spill] sm:$0xff] }
 0x2a5   :  { %vm8547_vm0 = vmor %vm8372_vm5, %vm13357_vm6  ;;  %v4811_v41 = vsel %vm3129_vm4, 1.0, %v5392_v43  ;;  %vm2878_vm5 = vcmp.eq.s32.totalorder %v8501_v2, %v6682_v22  ;;  %vm13366_vm4 = vcmp.eq.s32.totalorder %v8039_v55, %v6699_v52 }
 0x2a6   :  { %v13359_v8 = vsel %vm8547_vm0, 4294967295, %v13358_v8  ;;  %vm2427_vm10 = vmor %vm13362_vm12, %vm13361_vm1  ;;  %vm13363_vm0 = vcmp.eq.s32.totalorder %v6027_v5, %v6682_v22  ;;  %4036 = vmatmul.mubr.f32.gmra.mrb[20].mxu1 %v4811_v41  ;;  %vm13367_vm12 = vcmp.eq.s32.totalorder %v6463_v38, %v6682_v22  ;;  %vm13371_vm1 = vcmp.eq.s32.totalorder %v6027_v5, %v6687_v21 }
 0x2a7   :  { %vm8568_vm11 = vmor %vm326_vm13, %vm13363_vm0  ;;  %vm328_vm0 = vcmp.eq.s32.totalorder %v13360_v57, %v6687_v21 }
 0x2a8   :  { %vm3131_vm2 = vmor %vm2427_vm10, %vm13366_vm4  ;;  %vm13370_vm10 = vcmp.eq.s32.totalorder %v8379_v56, %v6682_v22 }
 0x2a9   :  { %vm8582_vm6 = vmor %vm8413_vm14, %vm13367_vm12  ;;  %v4813_v55 = vsel %vm3131_vm2, 1.0, %v5392_v43  ;;  %vm2880_vm14 = vcmp.eq.s32.totalorder %v8501_v2, %v6687_v21  ;;  %vm13378_vm2 = vcmp.eq.s32.totalorder %v6027_v5, %v6671_v26 }
 0x2aa   :  { %vm2430_vm4 = vmor %vm8427_vm3, %vm13370_vm10  ;;  %4421 = vmatmul.mubr.f32.gmra.mrb[20].mxu0 %v4813_v55  ;;  %vm13374_vm10 = vcmp.eq.s32.totalorder %v6463_v38, %v6687_v21 }
 0x2ab   :  { %vm8604_vm13 = vmor %vm328_vm0, %vm13371_vm1  ;;  %vm325_vm0 = vcmp.eq.s32.totalorder %v13360_v57, %v6671_v26 }
 0x2ac   :  { %vm3134_vm3 = vmor %vm2430_vm4, %vm2878_vm5  ;;  %vm13377_vm5 = vcmp.eq.s32.totalorder %v8379_v56, %v6687_v21 }
 0x2ad   :  { %vm8620_vm1 = vmor %vm8454_vm9, %vm13374_vm10  ;;  %v4816_v54 = vsel %vm3134_vm3, 1.0, %v5392_v43 }
 0x2ae   :  { %vm2432_vm4 = vmor %vm8468_vm15, %vm13377_vm5  ;;  %4040 = vmatprep.mubr.f32.mxu1 %v4816_v54  ;;  %vm13381_vm5 = vcmp.eq.s32.totalorder %v6463_v38, %v6671_v26  ;;  %vm13385_vm15 = vcmp.eq.s32.totalorder %v6027_v5, %v6699_v52  ;;  %v13391_v5 = vmov 0  ;;  %v13590_v54 = vld [vmem:[#allocation118_spill] sm:$0xff] }
 0x2af   :  { %vm8643_vm12 = vmor %vm325_vm0, %vm13378_vm2  ;;  %vm327_vm2 = vcmp.eq.s32.totalorder %v13360_v57, %v6699_v52  ;;  %v5337_v57 = vld [vmem:[%s12599_s0 + $0x138] sm:$0xff] }
 0x2b0   :  { %vm3136_vm3 = vmor %vm2432_vm4, %vm2880_vm14  ;;  %vm13384_vm14 = vcmp.eq.s32.totalorder %v8379_v56, %v6671_v26  ;;  %2759 = vperm.xlu1 %5242, %v5337_v57  }
 0x2b1   :  { %vm8657_vm10 = vmor %vm8492_vm7, %vm13381_vm5  ;;  %v4818_v6 = vsel %vm3136_vm3, 1.0, %v5392_v43  ;;  %vm13389_vm5 = vcmp.eq.s32.totalorder %v6463_v38, %v6699_v52  ;;  %vm330_vm7 = vcmp.eq.s32.totalorder %v13393_v35, %v6682_v22 }
 0x2b2   :  { %vm2429_vm4 = vmor %vm8508_vm8, %vm13384_vm14  ;;  %4425 = vmatprep.mubr.f32.mxu0 %v4818_v6  ;;  %vm13388_vm8 = vcmp.eq.s32.totalorder %v8501_v2, %v6671_v26  ;;  %v13485_v6 = vmov 0 }
 0x2b3   :  { %vm8678_vm9 = vmor %vm327_vm2, %vm13385_vm15  ;;  %vm13390_vm15 = vnez %v13355_v16  ;;  %v13458_v16 = vmov 0 }
 0x2b4   :  { %v13387_v59 = vsel %vm8678_vm9, 4294967295, %v13386_v59  ;;  %vm3133_vm3 = vmor %vm2429_vm4, %vm13388_vm8  ;;  %vm13394_vm4 = vcmp.eq.s32.totalorder %v8379_v56, %v6699_v52  ;;  %vm13395_vm8 = vnez %v13359_v8  ;;  %v8836_v56 = vpop.permute.xlu1 %1980  ;;  %5244 = vset.pattern.permute.xlu1 %v12899_v45 }
 0x2b5   :  { %vm8695_vm2 = vmor %vm13390_vm15, %vm13389_vm5  ;;  %v4815_v50 = vsel %vm3133_vm3, 1.0, %v5392_v43  ;;  %vm13399_vm3 = vcmp.eq.s32.totalorder %v8501_v2, %v6699_v52  ;;  %2058 = vperm.xlu1 %5244, %v5338_v15   ;;  %v13561_v2 = vmov 0  ;;  %v13592_v15 = vmov 0 }
 0x2b6   :  { %v13392_v5 = vsel %vm8695_vm2, 4294967295, %v13391_v5  ;;  %vm2431_vm14 = vmor %vm13395_vm8, %vm13394_vm4  ;;  %vm13396_vm2 = vcmp.eq.s32.totalorder %v6031_v10, %v6682_v22  ;;  %4041 = vmatmul.mubr.f32.gmra.mrb[22].mxu1 %v4815_v50  ;;  %vm13400_vm8 = vcmp.eq.s32.totalorder %v6486_v29, %v6682_v22  ;;  %vm13404_vm4 = vcmp.eq.s32.totalorder %v6031_v10, %v6687_v21  ;;  %v5339_v50 = vld [vmem:[%s12599_s0 + $0x148] sm:$0xff] }
 0x2b7   :  { %vm8716_vm9 = vmor %vm330_vm7, %vm13396_vm2  ;;  %vm332_vm7 = vcmp.eq.s32.totalorder %v13393_v35, %v6687_v21  ;;  %vm13403_vm2 = vcmp.eq.s32.totalorder %v8628_v11, %v6682_v22 }
 0x2b8   :  { %vm3135_vm0 = vmor %vm2431_vm14, %vm13399_vm3  ;;  %vm777_vm14 = vcmp.eq.s32.totalorder %v6031_v10, %v6671_v26  ;;  %v8949_v0 = vpop.permute.xlu1 %2684 }
 0x2b9   :  { %vm8732_vm15 = vmor %vm8568_vm11, %vm13400_vm8  ;;  %v4817_v51 = vsel %vm3135_vm0, 1.0, %v5392_v43  ;;  %vm13407_vm0 = vcmp.eq.s32.totalorder %v8608_v63, %v6682_v22  ;;  %vm13408_vm8 = vcmp.eq.s32.totalorder %v6486_v29, %v6687_v21  ;;  %2061 = vperm.xlu1 %5244, %v5339_v50  }
 0x2ba   :  { %vm2434_vm3 = vmor %vm8582_vm6, %vm13403_vm2  ;;  %4426 = vmatmul.mubr.f32.gmra.mrb[22].mxu0 %v4817_v51 }
 0x2bb   :  { %vm8753_vm5 = vmor %vm332_vm7, %vm13404_vm4  ;;  %vm329_vm4 = vcmp.eq.s32.totalorder %v13393_v35, %v6671_v26 }
 0x2bc   :  { %vm3138_vm6 = vmor %vm2434_vm3, %vm13407_vm0  ;;  %vm13411_vm3 = vcmp.eq.s32.totalorder %v8628_v11, %v6687_v21  ;;  %v9056_v55 = vpop.permute.xlu1 %2687 }
 0x2bd   :  { %vm8768_vm11 = vmor %vm8604_vm13, %vm13408_vm8  ;;  %v4820_v49 = vsel %vm3138_vm6, 1.0, %v5392_v43  ;;  %vm13414_vm6 = vcmp.eq.s32.totalorder %v8608_v63, %v6687_v21  ;;  %5245 = vset.pattern.permute.xlu1 %v12897_v1 }
 0x2be   :  { %vm2436_vm13 = vmor %vm8620_vm1, %vm13411_vm3  ;;  %4045 = vmatprep.mubr.f32.mxu1 %v4820_v49  ;;  %vm13415_vm3 = vcmp.eq.s32.totalorder %v6486_v29, %v6671_v26  ;;  %vm13419_vm1 = vcmp.eq.s32.totalorder %v6031_v10, %v6699_v52  ;;  %v13425_v10 = vmov 0  ;;  %2765 = vperm.xlu1 %5245, %v5339_v50  }
 0x2bf   :  { %vm8792_vm7 = vmor %vm329_vm4, %vm777_vm14  ;;  %vm331_vm14 = vcmp.eq.s32.totalorder %v13393_v35, %v6699_v52 }
 0x2c0   :  { %vm3140_vm2 = vmor %vm2436_vm13, %vm13414_vm6  ;;  %vm13418_vm13 = vcmp.eq.s32.totalorder %v8628_v11, %v6671_v26 }
 0x2c1   :  { %vm8806_vm0 = vmor %vm8643_vm12, %vm13415_vm3  ;;  %v4822_v20 = vsel %vm3140_vm2, 1.0, %v5392_v43  ;;  %vm13422_vm2 = vcmp.eq.s32.totalorder %v8608_v63, %v6671_v26  ;;  %vm13423_vm3 = vcmp.eq.s32.totalorder %v6486_v29, %v6699_v52  ;;  %vm334_vm12 = vcmp.eq.s32.totalorder %v13427_v3, %v6682_v22 }
 0x2c2   :  { %vm2433_vm6 = vmor %vm8657_vm10, %vm13418_vm13  ;;  %4430 = vmatprep.mubr.f32.mxu0 %v4822_v20  ;;  %2768 = vperm.xlu1 %5245, %v5340_v48  }
 0x2c3   :  { %vm8827_vm8 = vmor %vm331_vm14, %vm13419_vm1  ;;  %vm13424_vm1 = vnez %v13387_v59  ;;  %v13490_v59 = vmov 0 }
 0x2c4   :  { %v13421_v14 = vsel %vm8827_vm8, 4294967295, %v13420_v14  ;;  %vm3137_vm10 = vmor %vm2433_vm6, %vm13422_vm2  ;;  %vm13428_vm2 = vcmp.eq.s32.totalorder %v8628_v11, %v6699_v52  ;;  %vm13430_vm6 = vcmp.eq.s32.totalorder %v6033_v7, %v6682_v22 }
 0x2c5   :  { %vm8845_vm14 = vmor %vm13424_vm1, %vm13423_vm3  ;;  %v4819_v40 = vsel %vm3137_vm10, 1.0, %v5392_v43  ;;  %vm13429_vm3 = vnez %v13392_v5  ;;  %vm13433_vm10 = vcmp.eq.s32.totalorder %v8608_v63, %v6699_v52  ;;  %v9076_v63 = vpop.permute.xlu0 %1983  ;;  %v9174_v5 = vpop.permute.xlu1 %1986 }
 0x2c6   :  { %v13426_v10 = vsel %vm8845_vm14, 4294967295, %v13425_v10  ;;  %vm2435_vm1 = vmor %vm13429_vm3, %vm13428_vm2  ;;  %4046 = vmatmul.mubr.f32.gmra.mrb[24].mxu1 %v4819_v40  ;;  %vm13434_vm3 = vcmp.eq.s32.totalorder %v6477_v31, %v6682_v22  ;;  %vm13438_vm2 = vcmp.eq.s32.totalorder %v6033_v7, %v6687_v21  ;;  %5246 = vset.pattern.permute.xlu1 %v12899_v45 }
 0x2c7   :  { %vm8869_vm14 = vmor %vm334_vm12, %vm13430_vm6  ;;  %vm336_vm12 = vcmp.eq.s32.totalorder %v13427_v3, %v6687_v21 }
 0x2c8   :  { %vm3139_vm8 = vmor %vm2435_vm1, %vm13433_vm10  ;;  %vm13437_vm1 = vcmp.eq.s32.totalorder %v8725_v27, %v6682_v22 }
 0x2c9   :  { %vm8883_vm4 = vmor %vm8716_vm9, %vm13434_vm3  ;;  %v4821_v13 = vsel %vm3139_vm8, 1.0, %v5392_v43  ;;  %vm2888_vm9 = vcmp.eq.s32.totalorder %v8831_v58, %v6687_v21  ;;  %vm13441_vm8 = vcmp.eq.s32.totalorder %v8831_v58, %v6682_v22  ;;  %v9283_v20 = vpop.permute.xlu1 %1989  ;;  %v9524_v44 = vpop.permute.xlu0 %1992 }
 0x2ca   :  { %vm2438_vm10 = vmor %vm8732_vm15, %vm13437_vm1  ;;  %4431 = vmatmul.mubr.f32.gmra.mrb[24].mxu0 %v4821_v13  ;;  %vm13442_vm1 = vcmp.eq.s32.totalorder %v6477_v31, %v6687_v21  ;;  %vm13446_vm15 = vcmp.eq.s32.totalorder %v6033_v7, %v6671_v26 }
 0x2cb   :  { %vm8904_vm13 = vmor %vm336_vm12, %vm13438_vm2  ;;  %vm333_vm2 = vcmp.eq.s32.totalorder %v13427_v3, %v6671_v26 }
 0x2cc   :  { %vm3142_vm6 = vmor %vm2438_vm10, %vm13441_vm8  ;;  %vm13445_vm10 = vcmp.eq.s32.totalorder %v8725_v27, %v6687_v21 }
 0x2cd   :  { %vm8918_vm3 = vmor %vm8753_vm5, %vm13442_vm1  ;;  %v4824_v24 = vsel %vm3142_vm6, 1.0, %v5392_v43  ;;  %vm2885_vm5 = vcmp.eq.s32.totalorder %v8831_v58, %v6671_v26  ;;  %vm13453_vm1 = vcmp.eq.s32.totalorder %v6033_v7, %v6699_v52  ;;  %v13460_v7 = vld [vmem:[#allocation32_spill] sm:$0xff]  ;;  %v9395_v13 = vpop.permute.xlu1 %2693 }
 0x2ce   :  { %vm2440_vm8 = vmor %vm8768_vm11, %vm13445_vm10  ;;  %4050 = vmatprep.mubr.f32.mxu1 %v4824_v24  ;;  %vm13449_vm10 = vcmp.eq.s32.totalorder %v6477_v31, %v6671_v26 }
 0x2cf   :  { %vm8940_vm12 = vmor %vm333_vm2, %vm13446_vm15  ;;  %vm335_vm2 = vcmp.eq.s32.totalorder %v13427_v3, %v6699_v52 }
 0x2d0   :  { %vm3144_vm6 = vmor %vm2440_vm8, %vm2888_vm9  ;;  %vm13452_vm8 = vcmp.eq.s32.totalorder %v8725_v27, %v6671_v26 }
 0x2d1   :  { %vm8956_vm15 = vmor %vm8792_vm7, %vm13449_vm10  ;;  %v4826_v46 = vsel %vm3144_vm6, 1.0, %v5392_v43  ;;  %vm13457_vm10 = vnez %v13421_v14  ;;  %v13527_v14 = vld [vmem:[#allocation34_spill] sm:$0xff]  ;;  %v9501_v57 = vpop.permute.xlu1 %2696 }
 0x2d2   :  { %vm2437_vm11 = vmor %vm8806_vm0, %vm13452_vm8  ;;  %4435 = vmatprep.mubr.f32.mxu0 %v4826_v46  ;;  %vm13456_vm8 = vcmp.eq.s32.totalorder %v6477_v31, %v6699_v52  ;;  %v13563_v46 = vld [vmem:[#allocation33_spill] sm:$0xff] }
 0x2d3   :  { %vm8979_vm9 = vmor %vm335_vm2, %vm13453_vm1  ;;  %vm338_vm1 = vcmp.eq.s32.totalorder %v13460_v7, %v6682_v22  ;;  %vm788_vm2 = vcmp.eq.s32.totalorder %v6037_v12, %v6687_v21  ;;  %v5354_v31 = vld [vmem:[%s12599_s0 + $0x1c0] sm:$0xff] }
 0x2d4   :  { %v13455_v19 = vsel %vm8979_vm9, 4294967295, %v13454_v19  ;;  %vm3141_vm6 = vmor %vm2437_vm11, %vm2885_vm5  ;;  %vm13461_vm5 = vcmp.eq.s32.totalorder %v8725_v27, %v6699_v52  ;;  %vm13462_vm11 = vnez %v13426_v10 }
 0x2d5   :  { %vm8993_vm7 = vmor %vm13457_vm10, %vm13456_vm8  ;;  %v4823_v8 = vsel %vm3141_vm6, 1.0, %v5392_v43  ;;  %vm13466_vm6 = vcmp.eq.s32.totalorder %v8831_v58, %v6699_v52  ;;  %vm13467_vm8 = vcmp.eq.s32.totalorder %v6491_v28, %v6682_v22  ;;  %vm785_vm10 = vcmp.eq.s32.totalorder %v6037_v12, %v6671_v26 }
 0x2d6   :  { %v13459_v16 = vsel %vm8993_vm7, 4294967295, %v13458_v16  ;;  %vm2439_vm0 = vmor %vm13462_vm11, %vm13461_vm5  ;;  %vm13463_vm7 = vcmp.eq.s32.totalorder %v6037_v12, %v6682_v22  ;;  %4051 = vmatmul.mubr.f32.gmra.mrb[26].mxu1 %v4823_v8 }
 0x2d7   :  { %vm9014_vm9 = vmor %vm338_vm1, %vm13463_vm7  ;;  %vm340_vm1 = vcmp.eq.s32.totalorder %v13460_v7, %v6687_v21 }
 0x2d8   :  { %vm3143_vm5 = vmor %vm2439_vm0, %vm13466_vm6  ;;  %vm13470_vm0 = vcmp.eq.s32.totalorder %v8836_v56, %v6682_v22 }
 0x2d9   :  { %vm9031_vm7 = vmor %vm8869_vm14, %vm13467_vm8  ;;  %v4825_v36 = vsel %vm3143_vm5, 1.0, %v5392_v43  ;;  %vm13473_vm5 = vcmp.eq.s32.totalorder %v8949_v0, %v6682_v22  ;;  %vm13474_vm8 = vcmp.eq.s32.totalorder %v6491_v28, %v6687_v21 }
 0x2da   :  { %vm2442_vm6 = vmor %vm8883_vm4, %vm13470_vm0  ;;  %4436 = vmatmul.mubr.f32.gmra.mrb[26].mxu0 %v4825_v36  ;;  %vm2185_vm0 = vcmp.eq.s32.totalorder %v8836_v56, %v6671_v26  ;;  %v5342_v36 = vld [vmem:[%s12599_s0 + $0x160] sm:$0xff] }
 0x2db   :  { %vm9052_vm11 = vmor %vm340_vm1, %vm788_vm2  ;;  %vm337_vm2 = vcmp.eq.s32.totalorder %v13460_v7, %v6671_v26 }
 0x2dc   :  { %vm3146_vm4 = vmor %vm2442_vm6, %vm13473_vm5  ;;  %vm13477_vm6 = vcmp.eq.s32.totalorder %v8836_v56, %v6687_v21 }
 0x2dd   :  { %vm9068_vm14 = vmor %vm8904_vm13, %vm13474_vm8  ;;  %v4828_v30 = vsel %vm3146_vm4, 1.0, %v5392_v43  ;;  %vm13480_vm4 = vcmp.eq.s32.totalorder %v8949_v0, %v6687_v21  ;;  %vm13481_vm8 = vcmp.eq.s32.totalorder %v6491_v28, %v6671_v26  ;;  %v4372_v35 = vpop.f32.mrb[0].mxu0 }
 0x2de   :  { %vm2444_vm5 = vmor %vm8918_vm3, %vm13477_vm6  ;;  %4055 = vmatprep.mubr.f32.mxu1 %v4828_v30  ;;  %v13588_v30 = vld [vmem:[#allocation75_spill] sm:$0xff] }
 0x2df   :  { %vm9091_vm1 = vmor %vm337_vm2, %vm785_vm10  ;;  %vm339_vm10 = vcmp.eq.s32.totalorder %v13460_v7, %v6699_v52 }
 0x2e0   :  { %vm3148_vm3 = vmor %vm2444_vm5, %vm13480_vm4  ;;  %vm13484_vm4 = vcmp.eq.s32.totalorder %v6037_v12, %v6699_v52  ;;  %v13492_v12 = vld [vmem:[#allocation31_spill] sm:$0xff] }
 0x2e1   :  { %vm9106_vm13 = vmor %vm8940_vm12, %vm13481_vm8  ;;  %v4830_v34 = vsel %vm3148_vm3, 1.0, %v5392_v43  ;;  %vm13487_vm3 = vcmp.eq.s32.totalorder %v8949_v0, %v6671_v26  ;;  %vm13489_vm8 = vnez %v13455_v19  ;;  %v5341_v19 = vld [vmem:[%s12599_s0 + $0x158] sm:$0xff] }
 0x2e2   :  { %vm2441_vm12 = vmor %vm8956_vm15, %vm2185_vm0  ;;  %4440 = vmatprep.mubr.f32.mxu0 %v4830_v34  ;;  %vm13488_vm0 = vcmp.eq.s32.totalorder %v6491_v28, %v6699_v52  ;;  %2067 = vperm.xlu1 %5246, %v5341_v19   ;;  %v13597_v34 = vmov 0  ;;  %v13670_v19 = vld [vmem:[#allocation38_spill] sm:$0xff] }
 0x2e3   :  { %vm9130_vm2 = vmor %vm339_vm10, %vm13484_vm4  ;;  %vm342_vm10 = vcmp.eq.s32.totalorder %v13492_v12, %v6682_v22 }
 0x2e4   :  { %v13486_v6 = vsel %vm9130_vm2, 4294967295, %v13485_v6  ;;  %vm3145_vm6 = vmor %vm2441_vm12, %vm13487_vm3  ;;  %vm13493_vm12 = vcmp.eq.s32.totalorder %v8836_v56, %v6699_v52  ;;  %vm13494_vm3 = vnez %v13459_v16  ;;  %v5344_v56 = vld [vmem:[%s12599_s0 + $0x170] sm:$0xff] }
 0x2e5   :  { %vm9144_vm5 = vmor %vm13489_vm8, %vm13488_vm0  ;;  %v4827_v32 = vsel %vm3145_vm6, 1.0, %v5392_v43  ;;  %vm2894_vm8 = vcmp.eq.s32.totalorder %v9056_v55, %v6682_v22  ;;  %vm13498_vm6 = vcmp.eq.s32.totalorder %v8949_v0, %v6699_v52  ;;  %v13556_v0 = vmov 0 }
 0x2e6   :  { %v13491_v59 = vsel %vm9144_vm5, 4294967295, %v13490_v59  ;;  %vm2443_vm15 = vmor %vm13494_vm3, %vm13493_vm12  ;;  %vm13495_vm5 = vcmp.eq.s32.totalorder %v6039_v9, %v6682_v22  ;;  %4056 = vmatmul.mubr.f32.gmra.mrb[28].mxu1 %v4827_v32  ;;  %vm13499_vm3 = vcmp.eq.s32.totalorder %v6488_v25, %v6682_v22  ;;  %2070 = vperm.xlu1 %5246, %v5342_v36   ;;  %v9619_v32 = vpop.permute.xlu1 %1995 }
 0x2e7   :  { %vm9165_vm2 = vmor %vm342_vm10, %vm13495_vm5  ;;  %vm344_vm5 = vcmp.eq.s32.totalorder %v13492_v12, %v6687_v21  ;;  %vm13502_vm10 = vcmp.eq.s32.totalorder %v9076_v63, %v6682_v22 }
 0x2e8   :  { %vm3147_vm4 = vmor %vm2443_vm15, %vm13498_vm6  ;;  %vm13503_vm15 = vcmp.eq.s32.totalorder %v6039_v9, %v6687_v21 }
 0x2e9   :  { %vm9181_vm0 = vmor %vm9014_vm9, %vm13499_vm3  ;;  %v4829_v38 = vsel %vm3147_vm4, 1.0, %v5392_v43 }
 0x2ea   :  { %vm2446_vm9 = vmor %vm9031_vm7, %vm13502_vm10  ;;  %4441 = vmatmul.mubr.f32.gmra.mrb[28].mxu0 %v4829_v38  ;;  %vm13506_vm10 = vcmp.eq.s32.totalorder %v6488_v25, %v6687_v21  ;;  %vm13510_vm7 = vcmp.eq.s32.totalorder %v6039_v9, %v6671_v26  ;;  %5248 = vset.pattern.permute.xlu1 %v12897_v1 }
 0x2eb   :  { %vm9205_vm12 = vmor %vm344_vm5, %vm13503_vm15  ;;  %vm341_vm5 = vcmp.eq.s32.totalorder %v13492_v12, %v6671_v26  ;;  %2774 = vperm.xlu1 %5248, %v5342_v36  }
 0x2ec   :  { %vm3150_vm4 = vmor %vm2446_vm9, %vm2894_vm8  ;;  %vm13509_vm8 = vcmp.eq.s32.totalorder %v9076_v63, %v6687_v21 }
 0x2ed   :  { %vm9219_vm3 = vmor %vm9052_vm11, %vm13506_vm10  ;;  %v4832_v51 = vsel %vm3150_vm4, 1.0, %v5392_v43  ;;  %vm2893_vm11 = vcmp.eq.s32.totalorder %v9056_v55, %v6671_v26  ;;  %vm13513_vm4 = vcmp.eq.s32.totalorder %v9056_v55, %v6687_v21 }
 0x2ee   :  { %vm2448_vm9 = vmor %vm9068_vm14, %vm13509_vm8  ;;  %4060 = vmatprep.mubr.f32.mxu1 %v4832_v51  ;;  %vm13514_vm8 = vcmp.eq.s32.totalorder %v6488_v25, %v6671_v26  ;;  %vm13520_vm14 = vcmp.eq.s32.totalorder %v6039_v9, %v6699_v52  ;;  %v13525_v9 = vmov 0 }
 0x2ef   :  { %vm9240_vm6 = vmor %vm341_vm5, %vm13510_vm7  ;;  %vm343_vm7 = vcmp.eq.s32.totalorder %v13492_v12, %v6699_v52  ;;  %2777 = vperm.xlu1 %5248, %v5343_v17   ;;  %v13836_v17 = vld [vmem:[#allocation82_spill] sm:$0xff] }
 0x2f0   :  { %vm3152_vm15 = vmor %vm2448_vm9, %vm13513_vm4  ;;  %vm13518_vm9 = vcmp.eq.s32.totalorder %v9076_v63, %v6671_v26  ;;  %v5355_v12 = vld [vmem:[%s12599_s0 + $0x1c8] sm:$0xff] }
 0x2f1   :  { %vm9254_vm10 = vmor %vm9091_vm1, %vm13514_vm8  ;;  %v4834_v49 = vsel %vm3152_vm15, 1.0, %v5392_v43  ;;  %vm13524_vm8 = vnez %v13486_v6  ;;  %v13599_v6 = vld [vmem:[#allocation36_spill] sm:$0xff] }
 0x2f2   :  { %vm2445_vm4 = vmor %vm9106_vm13, %vm13518_vm9  ;;  %4445 = vmatprep.mubr.f32.mxu0 %v4834_v49  ;;  %vm13523_vm9 = vcmp.eq.s32.totalorder %v6488_v25, %v6699_v52  ;;  %vm13529_vm13 = vnez %v13491_v59  ;;  %v13628_v49 = vmov 0 }
 0x2f3   :  { %vm9276_vm5 = vmor %vm343_vm7, %vm13520_vm14  ;;  %vm346_vm7 = vcmp.eq.s32.totalorder %v13527_v14, %v6682_v22  ;;  %5249 = vset.pattern.permute.xlu1 %v12899_v45 }
 0x2f4   :  { %v13522_v39 = vsel %vm9276_vm5, 4294967295, %v13521_v39  ;;  %vm3149_vm15 = vmor %vm2445_vm4, %vm2893_vm11  ;;  %vm13528_vm4 = vcmp.eq.s32.totalorder %v9076_v63, %v6699_v52  ;;  %2076 = vperm.xlu1 %5249, %v5344_v56   ;;  %v13694_v63 = vld [vmem:[#allocation78_spill] sm:$0xff] }
 0x2f5   :  { %vm9292_vm14 = vmor %vm13524_vm8, %vm13523_vm9  ;;  %v4831_v58 = vsel %vm3149_vm15, 1.0, %v5392_v43  ;;  %vm13533_vm15 = vcmp.eq.s32.totalorder %v9056_v55, %v6699_v52 }
 0x2f6   :  { %v13526_v9 = vsel %vm9292_vm14, 4294967295, %v13525_v9  ;;  %vm2447_vm1 = vmor %vm13529_vm13, %vm13528_vm4  ;;  %vm13530_vm14 = vcmp.eq.s32.totalorder %v13517_v23, %v6682_v22  ;;  %4061 = vmatmul.mubr.f32.gmra.mrb[30].mxu1 %v4831_v58  ;;  %vm13534_vm4 = vcmp.eq.s32.totalorder %v13519_v37, %v6682_v22  ;;  %vm13538_vm13 = vcmp.eq.s32.totalorder %v13517_v23, %v6687_v21 }
 0x2f7   :  { %vm9313_vm5 = vmor %vm346_vm7, %vm13530_vm14  ;;  %vm348_vm14 = vcmp.eq.s32.totalorder %v13527_v14, %v6687_v21  ;;  %vm793_vm7 = vcmp.eq.s32.totalorder %v13517_v23, %v6671_v26 }
 0x2f8   :  { %vm3151_vm11 = vmor %vm2447_vm1, %vm13533_vm15  ;;  %vm13537_vm1 = vcmp.eq.s32.totalorder %v9174_v5, %v6682_v22 }
 0x2f9   :  { %vm9327_vm9 = vmor %vm9165_vm2, %vm13534_vm4  ;;  %v4833_v10 = vsel %vm3151_vm11, 1.0, %v5392_v43  ;;  %vm13542_vm4 = vcmp.eq.s32.totalorder %v13519_v37, %v6687_v21 }
 0x2fa   :  { %vm2450_vm15 = vmor %vm9181_vm0, %vm13537_vm1  ;;  %4446 = vmatmul.mubr.f32.gmra.mrb[30].mxu0 %v4833_v10  ;;  %vm13541_vm0 = vcmp.eq.s32.totalorder %v8964_v42, %v6682_v22 }
 0x2fb   :  { %vm9348_vm8 = vmor %vm348_vm14, %vm13538_vm13  ;;  %vm345_vm14 = vcmp.eq.s32.totalorder %v13527_v14, %v6671_v26 }
 0x2fc   :  { %vm3154_vm11 = vmor %vm2450_vm15, %vm13541_vm0  ;;  %vm13545_vm15 = vcmp.eq.s32.totalorder %v9174_v5, %v6687_v21 }
 0x2fd   :  { %vm9365_vm13 = vmor %vm9205_vm12, %vm13542_vm4  ;;  %v4836_v29 = vsel %vm3154_vm11, 1.0, %v5392_v43  ;;  %vm13548_vm11 = vcmp.eq.s32.totalorder %v8964_v42, %v6687_v21 }
 0x2fe   :  { %vm2452_vm0 = vmor %vm9219_vm3, %vm13545_vm15  ;;  %4065 = vmatprep.mubr.f32.mxu1 %v4836_v29  ;;  %vm13549_vm15 = vcmp.eq.s32.totalorder %v13519_v37, %v6671_v26  ;;  %vm13555_vm3 = vcmp.eq.s32.totalorder %v13517_v23, %v6699_v52  ;;  %v13627_v23 = vld [vmem:[#allocation117_spill] sm:$0xff] }
 0x2ff   :  { %vm9386_vm1 = vmor %vm345_vm14, %vm793_vm7  ;;  %vm347_vm7 = vcmp.eq.s32.totalorder %v13527_v14, %v6699_v52 }
 0x300   :  { %vm3156_vm2 = vmor %vm2452_vm0, %vm13548_vm11  ;;  %vm13553_vm0 = vcmp.eq.s32.totalorder %v9174_v5, %v6671_v26 }
 0x301   :  { %vm9402_vm4 = vmor %vm9240_vm6, %vm13549_vm15  ;;  %v4838_v24 = vsel %vm3156_vm2, 1.0, %v5392_v43  ;;  %vm13558_vm2 = vcmp.eq.s32.totalorder %v8964_v42, %v6671_v26  ;;  %vm13559_vm15 = vcmp.eq.s32.totalorder %v13519_v37, %v6699_v52  ;;  %vm13560_vm6 = vnez %v13522_v39  ;;  %v9724_v37 = vpop.permute.xlu0 %2699  ;;  %v9729_v39 = vpop.permute.xlu1 %1998 }
 0x302   :  { %vm2449_vm11 = vmor %vm9254_vm10, %vm13553_vm0  ;;  %4450 = vmatprep.mubr.f32.mxu0 %v4838_v24 }
 0x303   :  { %vm9423_vm12 = vmor %vm347_vm7, %vm13555_vm3  ;;  %vm350_vm3 = vcmp.eq.s32.totalorder %v13563_v46, %v6682_v22  ;;  %vm13566_vm7 = vcmp.eq.s32.totalorder %v13552_v33, %v6682_v22 }
 0x304   :  { %v13557_v0 = vsel %vm9423_vm12, 4294967295, %v13556_v0  ;;  %vm3153_vm10 = vmor %vm2449_vm11, %vm13558_vm2  ;;  %vm13564_vm11 = vcmp.eq.s32.totalorder %v9174_v5, %v6699_v52 }
 0x305   :  { %vm9438_vm14 = vmor %vm13560_vm6, %vm13559_vm15  ;;  %v4835_v16 = vsel %vm3153_vm10, 1.0, %v5392_v43  ;;  %vm13565_vm6 = vnez %v13526_v9  ;;  %vm13569_vm10 = vcmp.eq.s32.totalorder %v8964_v42, %v6699_v52  ;;  %v13635_v9 = vld [vmem:[#allocation35_spill] sm:$0xff]  ;;  %v9842_v47 = vpop.permute.xlu1 %2702  ;;  %v9860_v24 = vpop.permute.xlu0 %2708 }
 0x306   :  { %v13562_v2 = vsel %vm9438_vm14, 4294967295, %v13561_v2  ;;  %vm2451_vm15 = vmor %vm13565_vm6, %vm13564_vm11  ;;  %4066 = vmatmul.mubr.f32.gmra.mrb[32].mxu1 %v4835_v16  ;;  %vm13570_vm6 = vcmp.eq.s32.totalorder %v13554_v53, %v6682_v22  ;;  %vm13574_vm11 = vcmp.eq.s32.totalorder %v13552_v33, %v6687_v21 }
 0x307   :  { %vm9462_vm14 = vmor %vm350_vm3, %vm13566_vm7  ;;  %vm352_vm3 = vcmp.eq.s32.totalorder %v13563_v46, %v6687_v21  ;;  %vm797_vm7 = vcmp.eq.s32.totalorder %v13552_v33, %v6671_v26 }
 0x308   :  { %vm3155_vm12 = vmor %vm2451_vm15, %vm13569_vm10  ;;  %vm13573_vm15 = vcmp.eq.s32.totalorder %v9283_v20, %v6682_v22 }
 0x309   :  { %vm9476_vm0 = vmor %vm9313_vm5, %vm13570_vm6  ;;  %v4837_v42 = vsel %vm3155_vm12, 1.0, %v5392_v43  ;;  %vm13577_vm12 = vcmp.eq.s32.totalorder %v9395_v13, %v6682_v22  ;;  %vm13578_vm6 = vcmp.eq.s32.totalorder %v13554_v53, %v6687_v21  ;;  %v9970_v36 = vpop.permute.xlu0 %2001 }
 0x30a   :  { %vm2454_vm10 = vmor %vm9327_vm9, %vm13573_vm15  ;;  %4451 = vmatmul.mubr.f32.gmra.mrb[32].mxu0 %v4837_v42 }
 0x30b   :  { %vm9497_vm2 = vmor %vm352_vm3, %vm13574_vm11  ;;  %vm349_vm11 = vcmp.eq.s32.totalorder %v13563_v46, %v6671_v26 }
 0x30c   :  { %vm3158_vm9 = vmor %vm2454_vm10, %vm13577_vm12 }
 0x30d   :  { %vm9513_vm5 = vmor %vm9348_vm8, %vm13578_vm6  ;;  %v4840_v55 = vsel %vm3158_vm9, 1.0, %v5392_v43  ;;  %vm13581_vm8 = vcmp.eq.s32.totalorder %v9283_v20, %v6687_v21  ;;  %vm13584_vm9 = vcmp.eq.s32.totalorder %v9395_v13, %v6687_v21 }
 0x30e   :  { %vm2456_vm10 = vmor %vm9365_vm13, %vm13581_vm8  ;;  %4070 = vmatprep.mubr.f32.mxu1 %v4840_v55  ;;  %vm13585_vm8 = vcmp.eq.s32.totalorder %v13554_v53, %v6671_v26  ;;  %vm13591_vm13 = vcmp.eq.s32.totalorder %v13552_v33, %v6699_v52  ;;  %v5345_v33 = vld [vmem:[%s12599_s0 + $0x178] sm:$0xff]  ;;  %v13801_v55 = vld [vmem:[#allocation81_spill] sm:$0xff] }
 0x30f   :  { %vm9539_vm3 = vmor %vm349_vm11, %vm797_vm7  ;;  %vm351_vm7 = vcmp.eq.s32.totalorder %v13563_v46, %v6699_v52  ;;  %2079 = vperm.xlu1 %5249, %v5345_v33   ;;  %v13668_v46 = vmov 0 }
 0x310   :  { %vm3160_vm15 = vmor %vm2456_vm10, %vm13584_vm9  ;;  %vm13589_vm10 = vcmp.eq.s32.totalorder %v9283_v20, %v6671_v26 }
 0x311   :  { %vm9553_vm12 = vmor %vm9386_vm1, %vm13585_vm8  ;;  %v4842_v11 = vsel %vm3160_vm15, 1.0, %v5392_v43  ;;  %vm13594_vm15 = vcmp.eq.s32.totalorder %v9395_v13, %v6671_v26  ;;  %vm13596_vm8 = vnez %v13557_v0  ;;  %v13662_v0 = vld [vmem:[#allocation120_spill] sm:$0xff] }
 0x312   :  { %vm2453_vm9 = vmor %vm9402_vm4, %vm13589_vm10  ;;  %4455 = vmatprep.mubr.f32.mxu0 %v4842_v11  ;;  %vm13595_vm10 = vcmp.eq.s32.totalorder %v13554_v53, %v6699_v52  ;;  %v13696_v11 = vld [vmem:[#allocation119_spill] sm:$0xff] }
 0x313   :  { %vm9574_vm6 = vmor %vm351_vm7, %vm13591_vm13  ;;  %vm354_vm13 = vcmp.eq.s32.totalorder %v13599_v6, %v6682_v22  ;;  %5250 = vset.pattern.permute.xlu1 %v12897_v1 }
 0x314   :  { %v13593_v15 = vsel %vm9574_vm6, 4294967295, %v13592_v15  ;;  %vm3157_vm11 = vmor %vm2453_vm9, %vm13594_vm15  ;;  %vm13600_vm9 = vcmp.eq.s32.totalorder %v9283_v20, %v6699_v52  ;;  %vm13601_vm15 = vnez %v13562_v2  ;;  %v13633_v20 = vmov 0  ;;  %2783 = vperm.xlu1 %5250, %v5345_v33   ;;  %v13768_v33 = vld [vmem:[#allocation121_spill] sm:$0xff] }
 0x315   :  { %vm9588_vm1 = vmor %vm13596_vm8, %vm13595_vm10  ;;  %v4839_v59 = vsel %vm3157_vm11, 1.0, %v5392_v43  ;;  %vm13605_vm11 = vcmp.eq.s32.totalorder %v9395_v13, %v6699_v52  ;;  %vm13610_vm10 = vcmp.eq.s32.totalorder %v13588_v30, %v6687_v21  ;;  %v13664_v2 = vmov 0  ;;  %v13766_v13 = vld [vmem:[#allocation80_spill] sm:$0xff] }
 0x316   :  { %v13598_v34 = vsel %vm9588_vm1, 4294967295, %v13597_v34  ;;  %vm2455_vm4 = vmor %vm13601_vm15, %vm13600_vm9  ;;  %vm13602_vm1 = vcmp.eq.s32.totalorder %v13588_v30, %v6682_v22  ;;  %4071 = vmatmul.mubr.f32.gmra.mrb[34].mxu1 %v4839_v59  ;;  %vm13606_vm15 = vcmp.eq.s32.totalorder %v13590_v54, %v6682_v22 }
 0x317   :  { %vm9610_vm7 = vmor %vm354_vm13, %vm13602_vm1  ;;  %vm356_vm13 = vcmp.eq.s32.totalorder %v13599_v6, %v6687_v21 }
 0x318   :  { %vm3159_vm6 = vmor %vm2455_vm4, %vm13605_vm11  ;;  %vm13609_vm11 = vcmp.eq.s32.totalorder %v9524_v44, %v6682_v22 }
 0x319   :  { %vm9626_vm1 = vmor %vm9462_vm14, %vm13606_vm15  ;;  %v4841_v5 = vsel %vm3159_vm6, 1.0, %v5392_v43  ;;  %vm13613_vm6 = vcmp.eq.s32.totalorder %v9501_v57, %v6682_v22 }
 0x31a   :  { %vm2458_vm9 = vmor %vm9476_vm0, %vm13609_vm11  ;;  %4456 = vmatmul.mubr.f32.gmra.mrb[34].mxu0 %v4841_v5  ;;  %vm13614_vm11 = vcmp.eq.s32.totalorder %v13590_v54, %v6687_v21  ;;  %vm13618_vm0 = vcmp.eq.s32.totalorder %v13588_v30, %v6671_v26 }
 0x31b   :  { %vm9647_vm8 = vmor %vm356_vm13, %vm13610_vm10  ;;  %vm353_vm10 = vcmp.eq.s32.totalorder %v13599_v6, %v6671_v26  ;;  %vm803_vm13 = vcmp.eq.s32.totalorder %v13588_v30, %v6699_v52 }
 0x31c   :  { %vm3162_vm4 = vmor %vm2458_vm9, %vm13613_vm6  ;;  %vm13617_vm9 = vcmp.eq.s32.totalorder %v9524_v44, %v6687_v21 }
 0x31d   :  { %vm9661_vm15 = vmor %vm9497_vm2, %vm13614_vm11  ;;  %v4844_v38 = vsel %vm3162_vm4, 1.0, %v5392_v43  ;;  %vm13622_vm11 = vcmp.eq.s32.totalorder %v13590_v54, %v6671_v26 }
 0x31e   :  { %vm2460_vm6 = vmor %vm9513_vm5, %vm13617_vm9  ;;  %4075 = vmatprep.mubr.f32.mxu1 %v4844_v38  ;;  %vm13621_vm5 = vcmp.eq.s32.totalorder %v9501_v57, %v6687_v21  ;;  %v5347_v38 = vld [vmem:[%s12599_s0 + $0x188] sm:$0xff] }
 0x31f   :  { %vm9682_vm14 = vmor %vm353_vm10, %vm13618_vm0  ;;  %vm355_vm10 = vcmp.eq.s32.totalorder %v13599_v6, %v6699_v52  ;;  %v13705_v6 = vld [vmem:[#allocation37_spill] sm:$0xff] }
 0x320   :  { %vm3164_vm4 = vmor %vm2460_vm6, %vm13621_vm5  ;;  %vm13626_vm6 = vcmp.eq.s32.totalorder %v9524_v44, %v6671_v26 }
 0x321   :  { %vm9699_vm0 = vmor %vm9539_vm3, %vm13622_vm11  ;;  %v4846_v4 = vsel %vm3164_vm4, 1.0, %v5392_v43  ;;  %vm13630_vm4 = vcmp.eq.s32.totalorder %v9501_v57, %v6671_v26  ;;  %vm13631_vm11 = vcmp.eq.s32.totalorder %v13590_v54, %v6699_v52  ;;  %vm358_vm3 = vcmp.eq.s32.totalorder %v13635_v9, %v6682_v22 }
 0x322   :  { %vm2457_vm5 = vmor %vm9553_vm12, %vm13626_vm6  ;;  %4460 = vmatprep.mubr.f32.mxu0 %v4846_v4  ;;  %vm13637_vm6 = vnez %v13598_v34  ;;  %v13698_v54 = vmov 0  ;;  %v13703_v34 = vmov 0 }
 0x323   :  { %vm9720_vm9 = vmor %vm355_vm10, %vm803_vm13  ;;  %vm13632_vm13 = vnez %v13593_v15  ;;  %v5346_v15 = vld [vmem:[%s12599_s0 + $0x180] sm:$0xff] }
 0x324   :  { %v13629_v49 = vsel %vm9720_vm9, 4294967295, %v13628_v49  ;;  %vm3161_vm12 = vmor %vm2457_vm5, %vm13630_vm4  ;;  %vm808_vm5 = vcmp.eq.s32.totalorder %v13625_v61, %v6687_v21  ;;  %vm13636_vm4 = vcmp.eq.s32.totalorder %v9524_v44, %v6699_v52  ;;  %2786 = vperm.xlu1 %5250, %v5346_v15   ;;  %v13811_v15 = vld [vmem:[#allocation42_spill] sm:$0xff] }
 0x325   :  { %vm9738_vm10 = vmor %vm13632_vm13, %vm13631_vm11  ;;  %v4843_v14 = vsel %vm3161_vm12, 1.0, %v5392_v43  ;;  %vm13641_vm12 = vcmp.eq.s32.totalorder %v9501_v57, %v6699_v52  ;;  %vm13642_vm13 = vcmp.eq.s32.totalorder %v13627_v23, %v6682_v22  ;;  %v9950_v57 = vpop.permute.xlu1 %2705 }
 0x326   :  { %v13634_v20 = vsel %vm9738_vm10, 4294967295, %v13633_v20  ;;  %vm2459_vm2 = vmor %vm13637_vm6, %vm13636_vm4  ;;  %vm13638_vm10 = vcmp.eq.s32.totalorder %v13625_v61, %v6682_v22  ;;  %4076 = vmatmul.mubr.f32.gmra.mrb[36].mxu1 %v4843_v14 }
 0x327   :  { %vm9759_vm9 = vmor %vm358_vm3, %vm13638_vm10  ;;  %vm360_vm3 = vcmp.eq.s32.totalorder %v13635_v9, %v6687_v21 }
 0x328   :  { %vm3163_vm6 = vmor %vm2459_vm2, %vm13641_vm12  ;;  %vm13645_vm2 = vcmp.eq.s32.totalorder %v9619_v32, %v6682_v22  ;;  %5252 = vset.pattern.permute.xlu1 %v12899_v45 }
 0x329   :  { %vm9774_vm11 = vmor %vm9610_vm7, %vm13642_vm13  ;;  %v4845_v10 = vsel %vm3163_vm6, 1.0, %v5392_v43  ;;  %vm13648_vm6 = vcmp.eq.s32.totalorder %v9724_v37, %v6682_v22  ;;  %2085 = vperm.xlu1 %5252, %v5347_v38  }
 0x32a   :  { %vm2462_vm7 = vmor %vm9626_vm1, %vm13645_vm2  ;;  %4461 = vmatmul.mubr.f32.gmra.mrb[36].mxu0 %v4845_v10  ;;  %vm13649_vm2 = vcmp.eq.s32.totalorder %v13627_v23, %v6687_v21  ;;  %vm13653_vm1 = vcmp.eq.s32.totalorder %v13625_v61, %v6671_v26 }
 0x32b   :  { %vm9798_vm10 = vmor %vm360_vm3, %vm808_vm5  ;;  %vm357_vm5 = vcmp.eq.s32.totalorder %v13635_v9, %v6671_v26 }
 0x32c   :  { %vm3166_vm4 = vmor %vm2462_vm7, %vm13648_vm6  ;;  %vm13652_vm7 = vcmp.eq.s32.totalorder %v9619_v32, %v6687_v21 }
 0x32d   :  { %vm9812_vm12 = vmor %vm9647_vm8, %vm13649_vm2  ;;  %v4848_v40 = vsel %vm3166_vm4, 1.0, %v5392_v43  ;;  %vm2909_vm8 = vcmp.eq.s32.totalorder %v9724_v37, %v6671_v26  ;;  %vm13656_vm4 = vcmp.eq.s32.totalorder %v9724_v37, %v6687_v21 }
 0x32e   :  { %vm2464_vm6 = vmor %vm9661_vm15, %vm13652_vm7  ;;  %4080 = vmatprep.mubr.f32.mxu1 %v4848_v40  ;;  %vm13657_vm7 = vcmp.eq.s32.totalorder %v13627_v23, %v6671_v26 }
 0x32f   :  { %vm9833_vm13 = vmor %vm357_vm5, %vm13653_vm1  ;;  %vm359_vm1 = vcmp.eq.s32.totalorder %v13635_v9, %v6699_v52  ;;  %vm13663_vm5 = vcmp.eq.s32.totalorder %v13625_v61, %v6699_v52  ;;  %v13730_v61 = vld [vmem:[#allocation79_spill] sm:$0xff] }
 0x330   :  { %vm3168_vm3 = vmor %vm2464_vm6, %vm13656_vm4  ;;  %v5348_v9 = vld [vmem:[%s12599_s0 + $0x190] sm:$0xff] }
 0x331   :  { %vm9849_vm2 = vmor %vm9682_vm14, %vm13657_vm7  ;;  %v4850_v53 = vsel %vm3168_vm3, 1.0, %v5392_v43  ;;  %vm13661_vm14 = vcmp.eq.s32.totalorder %v9619_v32, %v6671_v26  ;;  %vm13667_vm7 = vnez %v13629_v49  ;;  %v13734_v49 = vmov 0  ;;  %2088 = vperm.xlu1 %5252, %v5348_v9  }
 0x332   :  { %vm2461_vm6 = vmor %vm9699_vm0, %vm13661_vm14  ;;  %4465 = vmatprep.mubr.f32.mxu0 %v4850_v53  ;;  %vm13666_vm14 = vcmp.eq.s32.totalorder %v13627_v23, %v6699_v52  ;;  %v13732_v23 = vld [vmem:[#allocation122_spill] sm:$0xff]  ;;  %v13770_v53 = vmov 0 }
 0x333   :  { %vm9875_vm15 = vmor %vm359_vm1, %vm13663_vm5  ;;  %vm362_vm1 = vcmp.eq.s32.totalorder %v13670_v19, %v6682_v22 }
 0x334   :  { %v13665_v2 = vsel %vm9875_vm15, 4294967295, %v13664_v2  ;;  %vm3165_vm3 = vmor %vm2461_vm6, %vm2909_vm8  ;;  %vm13671_vm8 = vcmp.eq.s32.totalorder %v9619_v32, %v6699_v52  ;;  %vm13672_vm6 = vnez %v13634_v20  ;;  %v10067_v32 = vpop.permute.xlu1 %2004  ;;  %v13741_v20 = vld [vmem:[#allocation40_spill] sm:$0xff] }
 0x335   :  { %vm9889_vm4 = vmor %vm13667_vm7, %vm13666_vm14  ;;  %v4847_v16 = vsel %vm3165_vm3, 1.0, %v5392_v43  ;;  %vm2914_vm7 = vcmp.eq.s32.totalorder %v9842_v47, %v6682_v22  ;;  %vm13676_vm3 = vcmp.eq.s32.totalorder %v9724_v37, %v6699_v52  ;;  %5253 = vset.pattern.permute.xlu1 %v12897_v1 }
 0x336   :  { %v13669_v46 = vsel %vm9889_vm4, 4294967295, %v13668_v46  ;;  %vm2463_vm0 = vmor %vm13672_vm6, %vm13671_vm8  ;;  %vm13673_vm4 = vcmp.eq.s32.totalorder %v13660_v18, %v6682_v22  ;;  %4081 = vmatmul.mubr.f32.gmra.mrb[38].mxu1 %v4847_v16  ;;  %vm13677_vm6 = vcmp.eq.s32.totalorder %v13662_v0, %v6682_v22  ;;  %vm13681_vm8 = vcmp.eq.s32.totalorder %v13660_v18, %v6687_v21  ;;  %2792 = vperm.xlu1 %5253, %v5348_v9   ;;  %v5349_v16 = vld [vmem:[%s12599_s0 + $0x198] sm:$0xff] }
 0x337   :  { %vm9910_vm15 = vmor %vm362_vm1, %vm13673_vm4  ;;  %vm364_vm4 = vcmp.eq.s32.totalorder %v13670_v19, %v6687_v21  ;;  %v13922_v9 = vld [vmem:[#allocation128_spill] sm:$0xff] }
 0x338   :  { %vm3167_vm5 = vmor %vm2463_vm0, %vm13676_vm3  ;;  %vm13680_vm0 = vcmp.eq.s32.totalorder %v9729_v39, %v6682_v22  ;;  %v10176_v37 = vpop.permute.xlu1 %2007 }
 0x339   :  { %vm9924_vm14 = vmor %vm9759_vm9, %vm13677_vm6  ;;  %v4849_v42 = vsel %vm3167_vm5, 1.0, %v5392_v43  ;;  %vm2916_vm9 = vcmp.eq.s32.totalorder %v9842_v47, %v6687_v21  ;;  %vm13688_vm5 = vcmp.eq.s32.totalorder %v13660_v18, %v6671_v26 }
 0x33a   :  { %vm2466_vm3 = vmor %vm9774_vm11, %vm13680_vm0  ;;  %4466 = vmatmul.mubr.f32.gmra.mrb[38].mxu0 %v4849_v42  ;;  %vm13684_vm0 = vcmp.eq.s32.totalorder %v13662_v0, %v6687_v21  ;;  %2795 = vperm.xlu1 %5253, %v5349_v16  }
 0x33b   :  { %vm9946_vm1 = vmor %vm364_vm4, %vm13681_vm8  ;;  %vm361_vm4 = vcmp.eq.s32.totalorder %v13670_v19, %v6671_v26 }
 0x33c   :  { %vm3170_vm11 = vmor %vm2466_vm3, %vm2914_vm7  ;;  %vm13687_vm7 = vcmp.eq.s32.totalorder %v9729_v39, %v6687_v21  ;;  %v10289_v29 = vpop.permute.xlu1 %2711 }
 0x33d   :  { %vm9962_vm8 = vmor %vm9798_vm10, %vm13684_vm0  ;;  %v4852_v44 = vsel %vm3170_vm11, 1.0, %v5392_v43 }
 0x33e   :  { %vm2468_vm3 = vmor %vm9812_vm12, %vm13687_vm7  ;;  %4085 = vmatprep.mubr.f32.mxu1 %v4852_v44  ;;  %vm13691_vm7 = vcmp.eq.s32.totalorder %v13662_v0, %v6671_v26  ;;  %vm13697_vm12 = vcmp.eq.s32.totalorder %v13660_v18, %v6699_v52  ;;  %5254 = vset.pattern.permute.xlu1 %v12899_v45 }
 0x33f   :  { %vm9985_vm6 = vmor %vm361_vm4, %vm13688_vm5  ;;  %vm363_vm5 = vcmp.eq.s32.totalorder %v13670_v19, %v6699_v52  ;;  %2094 = vperm.xlu1 %5254, %v5350_v60  }
 0x340   :  { %vm3172_vm11 = vmor %vm2468_vm3, %vm2916_vm9  ;;  %vm13695_vm9 = vcmp.eq.s32.totalorder %v9729_v39, %v6671_v26  ;;  %v10394_v42 = vpop.permute.xlu1 %2714 }
 0x341   :  { %vm9999_vm0 = vmor %vm9833_vm13, %vm13691_vm7  ;;  %v4854_v30 = vsel %vm3172_vm11, 1.0, %v5392_v43  ;;  %vm13701_vm7 = vcmp.eq.s32.totalorder %v13662_v0, %v6699_v52  ;;  %vm366_vm13 = vcmp.eq.s32.totalorder %v13705_v6, %v6682_v22  ;;  %v13775_v0 = vmov 0 }
 0x342   :  { %vm2465_vm3 = vmor %vm9849_vm2, %vm13695_vm9  ;;  %4470 = vmatprep.mubr.f32.mxu0 %v4854_v30  ;;  %vm13700_vm2 = vcmp.eq.s32.totalorder %v9842_v47, %v6671_v26  ;;  %v13802_v30 = vld [vmem:[#allocation124_spill] sm:$0xff] }
 0x343   :  { %vm10020_vm10 = vmor %vm363_vm5, %vm13697_vm12  ;;  %vm13702_vm12 = vnez %v13665_v2  ;;  %v13777_v2 = vld [vmem:[#allocation39_spill] sm:$0xff] }
 0x344   :  { %v13699_v54 = vsel %vm10020_vm10, 4294967295, %v13698_v54  ;;  %vm3169_vm11 = vmor %vm2465_vm3, %vm13700_vm2  ;;  %vm13706_vm3 = vcmp.eq.s32.totalorder %v9729_v39, %v6699_v52  ;;  %vm13707_vm2 = vnez %v13669_v46  ;;  %v13739_v39 = vmov 0 }
 0x345   :  { %vm10037_vm5 = vmor %vm13702_vm12, %vm13701_vm7  ;;  %v4851_v59 = vsel %vm3169_vm11, 1.0, %v5392_v43  ;;  %vm13711_vm11 = vcmp.eq.s32.totalorder %v9842_v47, %v6699_v52  ;;  %v13871_v47 = vld [vmem:[#allocation83_spill] sm:$0xff] }
 0x346   :  { %v13704_v34 = vsel %vm10037_vm5, 4294967295, %v13703_v34  ;;  %vm2467_vm9 = vmor %vm13707_vm2, %vm13706_vm3  ;;  %vm13708_vm5 = vcmp.eq.s32.totalorder %v13694_v63, %v6682_v22  ;;  %4086 = vmatmul.mubr.f32.gmra.mrb[40].mxu1 %v4851_v59  ;;  %vm13712_vm2 = vcmp.eq.s32.totalorder %v13696_v11, %v6682_v22  ;;  %vm13716_vm3 = vcmp.eq.s32.totalorder %v13694_v63, %v6687_v21  ;;  %v10512_v59 = vpop.permute.xlu1 %2013 }
 0x347   :  { %vm10058_vm10 = vmor %vm366_vm13, %vm13708_vm5  ;;  %vm368_vm13 = vcmp.eq.s32.totalorder %v13705_v6, %v6687_v21  ;;  %vm13715_vm5 = vcmp.eq.s32.totalorder %v9970_v36, %v6682_v22 }
 0x348   :  { %vm3171_vm4 = vmor %vm2467_vm9, %vm13711_vm11  ;;  %vm813_vm9 = vcmp.eq.s32.totalorder %v13694_v63, %v6671_v26 }
 0x349   :  { %vm10074_vm12 = vmor %vm9910_vm15, %vm13712_vm2  ;;  %v4853_v5 = vsel %vm3171_vm4, 1.0, %v5392_v43  ;;  %vm13719_vm4 = vcmp.eq.s32.totalorder %v9950_v57, %v6682_v22  ;;  %vm13720_vm2 = vcmp.eq.s32.totalorder %v13696_v11, %v6687_v21 }
 0x34a   :  { %vm2470_vm11 = vmor %vm9924_vm14, %vm13715_vm5  ;;  %4471 = vmatmul.mubr.f32.gmra.mrb[40].mxu0 %v4853_v5 }
 0x34b   :  { %vm10095_vm7 = vmor %vm368_vm13, %vm13716_vm3  ;;  %vm365_vm3 = vcmp.eq.s32.totalorder %v13705_v6, %v6671_v26 }
 0x34c   :  { %vm3174_vm14 = vmor %vm2470_vm11, %vm13719_vm4  ;;  %vm13723_vm11 = vcmp.eq.s32.totalorder %v9970_v36, %v6687_v21 }
 0x34d   :  { %vm10110_vm15 = vmor %vm9946_vm1, %vm13720_vm2  ;;  %v4856_v27 = vsel %vm3174_vm14, 1.0, %v5392_v43  ;;  %vm13726_vm14 = vcmp.eq.s32.totalorder %v9950_v57, %v6687_v21 }
 0x34e   :  { %vm2472_vm1 = vmor %vm9962_vm8, %vm13723_vm11  ;;  %4090 = vmatprep.mubr.f32.mxu1 %v4856_v27  ;;  %vm13727_vm11 = vcmp.eq.s32.totalorder %v13696_v11, %v6671_v26  ;;  %vm13733_vm8 = vcmp.eq.s32.totalorder %v13694_v63, %v6699_v52  ;;  %v4374_v27 = vpop.f32.mrb[1].mxu0 }
 0x34f   :  { %vm10134_vm13 = vmor %vm365_vm3, %vm813_vm9  ;;  %vm367_vm9 = vcmp.eq.s32.totalorder %v13705_v6, %v6699_v52  ;;  %v4377_v10 = vpop.f32.mrb[2].mxu0 }
 0x350   :  { %vm3176_vm5 = vmor %vm2472_vm1, %vm13726_vm14  ;;  %vm13731_vm1 = vcmp.eq.s32.totalorder %v9970_v36, %v6671_v26 }
 0x351   :  { %vm10148_vm4 = vmor %vm9985_vm6, %vm13727_vm11  ;;  %v4858_v4 = vsel %vm3176_vm5, 1.0, %v5392_v43  ;;  %vm13736_vm5 = vcmp.eq.s32.totalorder %v9950_v57, %v6671_v26  ;;  %vm13738_vm11 = vnez %v13699_v54  ;;  %v13809_v54 = vmov 0 }
 0x352   :  { %vm2469_vm14 = vmor %vm9999_vm0, %vm13731_vm1  ;;  %4475 = vmatprep.mubr.f32.mxu0 %v4858_v4  ;;  %vm13737_vm1 = vcmp.eq.s32.totalorder %v13696_v11, %v6699_v52  ;;  %v13804_v11 = vmov 0  ;;  %v13840_v4 = vmov 0 }
 0x353   :  { %vm10169_vm2 = vmor %vm367_vm9, %vm13733_vm8  ;;  %vm370_vm8 = vcmp.eq.s32.totalorder %v13741_v20, %v6682_v22  ;;  %vm13744_vm9 = vcmp.eq.s32.totalorder %v13730_v61, %v6682_v22 }
 0x354   :  { %v13735_v49 = vsel %vm10169_vm2, 4294967295, %v13734_v49  ;;  %vm3173_vm3 = vmor %vm2469_vm14, %vm13736_vm5  ;;  %vm13742_vm14 = vcmp.eq.s32.totalorder %v9970_v36, %v6699_v52  ;;  %v13901_v36 = vmov 0 }
 0x355   :  { %vm10185_vm6 = vmor %vm13738_vm11, %vm13737_vm1  ;;  %v4855_v14 = vsel %vm3173_vm3, 1.0, %v5392_v43  ;;  %vm13743_vm11 = vnez %v13704_v34  ;;  %vm13747_vm3 = vcmp.eq.s32.totalorder %v9950_v57, %v6699_v52  ;;  %v10414_v57 = vpop.permute.xlu0 %2010 }
 0x356   :  { %v13740_v39 = vsel %vm10185_vm6, 4294967295, %v13739_v39  ;;  %vm2471_vm5 = vmor %vm13743_vm11, %vm13742_vm14  ;;  %4091 = vmatmul.mubr.f32.gmra.mrb[42].mxu1 %v4855_v14  ;;  %vm13748_vm11 = vcmp.eq.s32.totalorder %v13732_v23, %v6682_v22  ;;  %vm13752_vm14 = vcmp.eq.s32.totalorder %v13730_v61, %v6687_v21  ;;  %v13923_v14 = vld [vmem:[#allocation43_spill] sm:$0xff] }
 0x357   :  { %vm10209_vm6 = vmor %vm370_vm8, %vm13744_vm9  ;;  %vm372_vm8 = vcmp.eq.s32.totalorder %v13741_v20, %v6687_v21 }
 0x358   :  { %vm3175_vm2 = vmor %vm2471_vm5, %vm13747_vm3  ;;  %vm13751_vm5 = vcmp.eq.s32.totalorder %v10067_v32, %v6682_v22 }
 0x359   :  { %vm10223_vm0 = vmor %vm10058_vm10, %vm13748_vm11  ;;  %v4857_v56 = vsel %vm3175_vm2, 1.0, %v5392_v43  ;;  %vm2924_vm10 = vcmp.eq.s32.totalorder %v9860_v24, %v6687_v21  ;;  %vm13755_vm2 = vcmp.eq.s32.totalorder %v9860_v24, %v6682_v22 }
 0x35a   :  { %vm2474_vm3 = vmor %vm10074_vm12, %vm13751_vm5  ;;  %4476 = vmatmul.mubr.f32.gmra.mrb[42].mxu0 %v4857_v56  ;;  %vm13756_vm5 = vcmp.eq.s32.totalorder %v13732_v23, %v6687_v21  ;;  %vm13760_vm12 = vcmp.eq.s32.totalorder %v13730_v61, %v6671_v26  ;;  %v5352_v56 = vld [vmem:[%s12599_s0 + $0x1b0] sm:$0xff] }
 0x35b   :  { %vm10244_vm1 = vmor %vm372_vm8, %vm13752_vm14  ;;  %vm369_vm14 = vcmp.eq.s32.totalorder %v13741_v20, %v6671_v26 }
 0x35c   :  { %vm3178_vm9 = vmor %vm2474_vm3, %vm13755_vm2  ;;  %vm13759_vm3 = vcmp.eq.s32.totalorder %v10067_v32, %v6687_v21 }
 0x35d   :  { %vm10258_vm11 = vmor %vm10095_vm7, %vm13756_vm5  ;;  %v4860_v48 = vsel %vm3178_vm9, 1.0, %v5392_v43  ;;  %vm13769_vm5 = vcmp.eq.s32.totalorder %v13730_v61, %v6699_v52  ;;  %v13838_v61 = vld [vmem:[#allocation123_spill] sm:$0xff] }
 0x35e   :  { %vm2476_vm2 = vmor %vm10110_vm15, %vm13759_vm3  ;;  %4095 = vmatprep.mubr.f32.mxu1 %v4860_v48  ;;  %vm13763_vm3 = vcmp.eq.s32.totalorder %v13732_v23, %v6671_v26 }
 0x35f   :  { %vm10280_vm8 = vmor %vm369_vm14, %vm13760_vm12  ;;  %vm371_vm14 = vcmp.eq.s32.totalorder %v13741_v20, %v6699_v52 }
 0x360   :  { %vm3180_vm9 = vmor %vm2476_vm2, %vm2924_vm10  ;;  %vm13767_vm2 = vcmp.eq.s32.totalorder %v10067_v32, %v6671_v26 }
 0x361   :  { %vm10296_vm12 = vmor %vm10134_vm13, %vm13763_vm3  ;;  %v4862_v18 = vsel %vm3180_vm9, 1.0, %v5392_v43  ;;  %vm13772_vm9 = vcmp.eq.s32.totalorder %v9860_v24, %v6671_v26  ;;  %vm13774_vm3 = vnez %v13735_v49  ;;  %v10623_v49 = vpop.permute.xlu1 %2016 }
 0x362   :  { %vm2473_vm15 = vmor %vm10148_vm4, %vm13767_vm2  ;;  %4480 = vmatprep.mubr.f32.mxu0 %v4862_v18  ;;  %vm13773_vm2 = vcmp.eq.s32.totalorder %v13732_v23, %v6699_v52  ;;  %v10618_v23 = vpop.permute.xlu0 %2717 }
 0x363   :  { %vm10317_vm7 = vmor %vm371_vm14, %vm13769_vm5  ;;  %vm374_vm5 = vcmp.eq.s32.totalorder %v13777_v2, %v6682_v22  ;;  %vm824_vm14 = vcmp.eq.s32.totalorder %v13766_v13, %v6687_v21 }
 0x364   :  { %v13771_v53 = vsel %vm10317_vm7, 4294967295, %v13770_v53  ;;  %vm3177_vm10 = vmor %vm2473_vm15, %vm13772_vm9  ;;  %vm13778_vm15 = vcmp.eq.s32.totalorder %v10067_v32, %v6699_v52  ;;  %vm13779_vm9 = vnez %v13740_v39  ;;  %v5351_v32 = vld [vmem:[%s12599_s0 + $0x1a8] sm:$0xff]  ;;  %v13846_v39 = vld [vmem:[#allocation41_spill] sm:$0xff] }
 0x365   :  { %vm10331_vm13 = vmor %vm13774_vm3, %vm13773_vm2  ;;  %v4859_v46 = vsel %vm3177_vm10, 1.0, %v5392_v43  ;;  %vm13783_vm10 = vcmp.eq.s32.totalorder %v9860_v24, %v6699_v52  ;;  %vm13784_vm2 = vcmp.eq.s32.totalorder %v13768_v33, %v6682_v22  ;;  %vm821_vm3 = vcmp.eq.s32.totalorder %v13766_v13, %v6671_v26  ;;  %2097 = vperm.xlu1 %5254, %v5351_v32   ;;  %v10735_v40 = vpop.permute.xlu1 %2720 }
 0x366   :  { %v13776_v0 = vsel %vm10331_vm13, 4294967295, %v13775_v0  ;;  %vm2475_vm4 = vmor %vm13779_vm9, %vm13778_vm15  ;;  %vm13780_vm13 = vcmp.eq.s32.totalorder %v13766_v13, %v6682_v22  ;;  %4096 = vmatmul.mubr.f32.gmra.mrb[44].mxu1 %v4859_v46  ;;  %v5353_v46 = vld [vmem:[%s12599_s0 + $0x1b8] sm:$0xff] }
 0x367   :  { %vm10352_vm7 = vmor %vm374_vm5, %vm13780_vm13  ;;  %vm376_vm5 = vcmp.eq.s32.totalorder %v13777_v2, %v6687_v21 }
 0x368   :  { %vm3179_vm15 = vmor %vm2475_vm4, %vm13783_vm10  ;;  %vm13787_vm4 = vcmp.eq.s32.totalorder %v10176_v37, %v6682_v22 }
 0x369   :  { %vm10369_vm13 = vmor %vm10209_vm6, %vm13784_vm2  ;;  %v4861_v24 = vsel %vm3179_vm15, 1.0, %v5392_v43  ;;  %vm13790_vm15 = vcmp.eq.s32.totalorder %v10289_v29, %v6682_v22  ;;  %vm13791_vm2 = vcmp.eq.s32.totalorder %v13768_v33, %v6687_v21  ;;  %5255 = vset.pattern.permute.xlu1 %v12897_v1  ;;  %v2724_v44 = vpop.permute.xlu1 %2723 }
 0x36a   :  { %vm2478_vm10 = vmor %vm10223_vm0, %vm13787_vm4  ;;  %4481 = vmatmul.mubr.f32.gmra.mrb[44].mxu0 %v4861_v24  ;;  %vm2221_vm4 = vcmp.eq.s32.totalorder %v10176_v37, %v6671_v26  ;;  %2801 = vperm.xlu1 %5255, %v5351_v32  }
 0x36b   :  { %vm10390_vm9 = vmor %vm376_vm5, %vm824_vm14  ;;  %vm373_vm14 = vcmp.eq.s32.totalorder %v13777_v2, %v6671_v26 }
 0x36c   :  { %vm3182_vm0 = vmor %vm2478_vm10, %vm13790_vm15  ;;  %vm13794_vm10 = vcmp.eq.s32.totalorder %v10176_v37, %v6687_v21 }
 0x36d   :  { %vm10406_vm6 = vmor %vm10244_vm1, %vm13791_vm2  ;;  %v4864_v41 = vsel %vm3182_vm0, 1.0, %v5392_v43  ;;  %vm13797_vm0 = vcmp.eq.s32.totalorder %v10289_v29, %v6687_v21  ;;  %vm13798_vm2 = vcmp.eq.s32.totalorder %v13768_v33, %v6671_v26 }
 0x36e   :  { %vm2480_vm15 = vmor %vm10258_vm11, %vm13794_vm10  ;;  %4100 = vmatprep.mubr.f32.mxu1 %v4864_v41  ;;  %2804 = vperm.xlu1 %5255, %v5352_v56  }
 0x36f   :  { %vm10429_vm5 = vmor %vm373_vm14, %vm821_vm3  ;;  %vm375_vm3 = vcmp.eq.s32.totalorder %v13777_v2, %v6699_v52  ;;  %v13881_v2 = vld [vmem:[#allocation44_spill] sm:$0xff] }
 0x370   :  { %vm3184_vm11 = vmor %vm2480_vm15, %vm13797_vm0  ;;  %vm13803_vm0 = vcmp.eq.s32.totalorder %v13766_v13, %v6699_v52  ;;  %v10750_v13 = vpop.permute.xlu0 %2726 }
 0x371   :  { %vm10444_vm1 = vmor %vm10280_vm8, %vm13798_vm2  ;;  %v4866_v63 = vsel %vm3184_vm11, 1.0, %v5392_v43  ;;  %vm13806_vm11 = vcmp.eq.s32.totalorder %v10289_v29, %v6671_v26  ;;  %vm13808_vm2 = vnez %v13771_v53  ;;  %v13875_v53 = vmov 0 }
 0x372   :  { %vm2477_vm8 = vmor %vm10296_vm12, %vm2221_vm4  ;;  %4485 = vmatprep.mubr.f32.mxu0 %v4866_v63  ;;  %vm13807_vm4 = vcmp.eq.s32.totalorder %v13768_v33, %v6699_v52  ;;  %v13873_v33 = vld [vmem:[#allocation126_spill] sm:$0xff]  ;;  %5256 = vset.pattern.permute.xlu1 %v12899_v45  ;;  %v13907_v63 = vld [vmem:[#allocation125_spill] sm:$0xff] }
 0x373   :  { %vm10468_vm14 = vmor %vm375_vm3, %vm13803_vm0  ;;  %vm378_vm3 = vcmp.eq.s32.totalorder %v13811_v15, %v6682_v22  ;;  %2103 = vperm.xlu1 %5256, %v5353_v46   ;;  %v5359_v46 = vld [vmem:[%s12599_s0 + $0x1e8] sm:$0xff] }
 0x374   :  { %v13805_v11 = vsel %vm10468_vm14, 4294967295, %v13804_v11  ;;  %vm3181_vm10 = vmor %vm2477_vm8, %vm13806_vm11  ;;  %vm13812_vm8 = vcmp.eq.s32.totalorder %v10176_v37, %v6699_v52  ;;  %vm13813_vm11 = vnez %v13776_v0  ;;  %v13844_v37 = vmov 0 }
 0x375   :  { %vm10482_vm15 = vmor %vm13808_vm2, %vm13807_vm4  ;;  %v4863_v34 = vsel %vm3181_vm10, 1.0, %v5392_v43  ;;  %vm2930_vm2 = vcmp.eq.s32.totalorder %v10394_v42, %v6682_v22  ;;  %vm13817_vm10 = vcmp.eq.s32.totalorder %v10289_v29, %v6699_v52  ;;  %v13879_v0 = vmov 0 }
 0x376   :  { %v13810_v54 = vsel %vm10482_vm15, 4294967295, %v13809_v54  ;;  %vm2479_vm12 = vmor %vm13813_vm11, %vm13812_vm8  ;;  %vm13814_vm15 = vcmp.eq.s32.totalorder %v13801_v55, %v6682_v22  ;;  %4101 = vmatmul.mubr.f32.gmra.mrb[46].mxu1 %v4863_v34  ;;  %vm13818_vm11 = vcmp.eq.s32.totalorder %v13802_v30, %v6682_v22 }
 0x377   :  { %vm10503_vm14 = vmor %vm378_vm3, %vm13814_vm15  ;;  %vm380_vm15 = vcmp.eq.s32.totalorder %v13811_v15, %v6687_v21  ;;  %vm13821_vm3 = vcmp.eq.s32.totalorder %v10414_v57, %v6682_v22  ;;  %2106 = vperm.xlu1 %5256, %v5354_v31  }
 0x378   :  { %vm3183_vm0 = vmor %vm2479_vm12, %vm13817_vm10  ;;  %vm13822_vm12 = vcmp.eq.s32.totalorder %v13801_v55, %v6687_v21 }
 0x379   :  { %vm10519_vm4 = vmor %vm10352_vm7, %vm13818_vm11  ;;  %v4865_v28 = vsel %vm3183_vm0, 1.0, %v5392_v43 }
 0x37a   :  { %vm2482_vm7 = vmor %vm10369_vm13, %vm13821_vm3  ;;  %4486 = vmatmul.mubr.f32.gmra.mrb[46].mxu0 %v4865_v28  ;;  %vm13825_vm3 = vcmp.eq.s32.totalorder %v13802_v30, %v6687_v21  ;;  %vm13829_vm13 = vcmp.eq.s32.totalorder %v13801_v55, %v6671_v26  ;;  %v3987_v28 = vpop.f32.mrb[0].mxu1 }
 0x37b   :  { %vm10543_vm8 = vmor %vm380_vm15, %vm13822_vm12  ;;  %vm377_vm15 = vcmp.eq.s32.totalorder %v13811_v15, %v6671_v26  ;;  %5258 = vset.pattern.permute.xlu1 %v12897_v1  ;;  %v4373_v38 = vadd.f32 %v4372_v35, %v3987_v28  ;;  %v13930_v35 = vld [vmem:[#allocation87_spill] sm:$0xff] }
 0x37c   :  { %vm3186_vm0 = vmor %vm2482_vm7, %vm2930_vm2  ;;  %vm13828_vm2 = vcmp.eq.s32.totalorder %v10414_v57, %v6687_v21  ;;  %2810 = vperm.xlu1 %5258, %v5354_v31  }
 0x37d   :  { %vm10557_vm11 = vmor %vm10390_vm9, %vm13825_vm3  ;;  %v4868_v50 = vsel %vm3186_vm0, 1.0, %v5392_v43  ;;  %vm2929_vm9 = vcmp.eq.s32.totalorder %v10394_v42, %v6671_v26  ;;  %vm13832_vm0 = vcmp.eq.s32.totalorder %v10394_v42, %v6687_v21  ;;  %4691 = vst [vmem:[#allocation2] sm:$0xff] %v4373_v38  ;;  %v13932_v38 = vld [vmem:[#allocation48_spill] sm:$0xff] }
 0x37e   :  { %vm2484_vm7 = vmor %vm10406_vm6, %vm13828_vm2  ;;  %4105 = vmatprep.mubr.f32.mxu1 %v4868_v50  ;;  %vm13833_vm2 = vcmp.eq.s32.totalorder %v13802_v30, %v6671_v26  ;;  %vm13839_vm6 = vcmp.eq.s32.totalorder %v13801_v55, %v6699_v52  ;;  %v13904_v55 = vmov 0  ;;  %v3989_v50 = vpop.f32.mrb[1].mxu1 }
 0x37f   :  { %vm10578_vm10 = vmor %vm377_vm15, %vm13829_vm13  ;;  %vm379_vm13 = vcmp.eq.s32.totalorder %v13811_v15, %v6699_v52  ;;  %v3992_v56 = vpop.f32.mrb[2].mxu1  ;;  %v13931_v50 = vld [vmem:[#allocation129_spill] sm:$0xff] }
 0x380   :  { %vm3188_vm12 = vmor %vm2484_vm7, %vm13832_vm0  ;;  %vm13837_vm7 = vcmp.eq.s32.totalorder %v10414_v57, %v6671_v26  ;;  %2813 = vperm.xlu1 %5258, %v5355_v12   ;;  %v3994_v48 = vpop.f32.mrb[3].mxu1  ;;  %v5361_v12 = vld [vmem:[%s12599_s0 + $0x1f8] sm:$0xff] }
 0x381   :  { %vm10592_vm3 = vmor %vm10429_vm5, %vm13833_vm2  ;;  %v4870_v51 = vsel %vm3188_vm12, 1.0, %v5392_v43  ;;  %vm382_vm2 = vcmp.eq.s32.totalorder %v13846_v39, %v6682_v22  ;;  %vm13848_vm12 = vnez %v13810_v54  ;;  %v3997_v7 = vpop.f32.mrb[4].mxu1  ;;  %v13927_v54 = vld [vmem:[#allocation86_spill] sm:$0xff] }
 0x382   :  { %vm2481_vm0 = vmor %vm10444_vm1, %vm13837_vm7  ;;  %4490 = vmatprep.mubr.f32.mxu0 %v4870_v51  ;;  %vm13842_vm7 = vcmp.eq.s32.totalorder %v13802_v30, %v6699_v52  ;;  %v5356_v51 = vld [vmem:[%s12599_s0 + $0x1d0] sm:$0xff]  ;;  %v3999_v8 = vpop.f32.mrb[5].mxu1 }
 0x383   :  { %vm10614_vm15 = vmor %vm379_vm13, %vm13839_vm6  ;;  %vm13843_vm6 = vnez %v13805_v11  ;;  %v13938_v8 = vld [vmem:[#allocation50_spill] sm:$0xff] }
 0x384   :  { %v13841_v4 = vsel %vm10614_vm15, 4294967295, %v13840_v4  ;;  %vm3185_vm1 = vmor %vm2481_vm0, %vm2929_vm9  ;;  %vm13847_vm0 = vcmp.eq.s32.totalorder %v10414_v57, %v6699_v52  ;;  %v2020_v57 = vpop.permute.xlu0 %2019  ;;  %5259 = vset.pattern.permute.xlu1 %v13158_v62 }
 0x385   :  { %vm10632_vm13 = vmor %vm13843_vm6, %vm13842_vm7  ;;  %v4867_v20 = vsel %vm3185_vm1, 1.0, %v5392_v43  ;;  %vm13852_vm1 = vcmp.eq.s32.totalorder %v10394_v42, %v6699_v52  ;;  %v13897_v42 = vmov 0  ;;  %1408 = vperm.xlu1 %5259, %v5356_v51  }
 0x386   :  { %v13845_v37 = vsel %vm10632_vm13, 4294967295, %v13844_v37  ;;  %vm2483_vm5 = vmor %vm13848_vm12, %vm13847_vm0  ;;  %vm13849_vm13 = vcmp.eq.s32.totalorder %v13836_v17, %v6682_v22  ;;  %4106 = vmatmul.mubr.f32.gmra.mrb[48].mxu1 %v4867_v20  ;;  %vm13853_vm0 = vcmp.eq.s32.totalorder %v13838_v61, %v6682_v22  ;;  %vm13857_vm12 = vcmp.eq.s32.totalorder %v13836_v17, %v6687_v21  ;;  %v13921_v20 = vld [vmem:[#allocation84_spill] sm:$0xff] }
 0x387   :  { %vm10653_vm15 = vmor %vm382_vm2, %vm13849_vm13  ;;  %vm384_vm2 = vcmp.eq.s32.totalorder %v13846_v39, %v6687_v21  ;;  %vm829_vm13 = vcmp.eq.s32.totalorder %v13836_v17, %v6671_v26 }
 0x388   :  { %vm3187_vm9 = vmor %vm2483_vm5, %vm13852_vm1  ;;  %vm13856_vm5 = vcmp.eq.s32.totalorder %v10512_v59, %v6682_v22 }
 0x389   :  { %vm10667_vm6 = vmor %vm10503_vm14, %vm13853_vm0  ;;  %v4869_v58 = vsel %vm3187_vm9, 1.0, %v5392_v43  ;;  %vm13861_vm0 = vcmp.eq.s32.totalorder %v13838_v61, %v6687_v21  ;;  %5261 = vset.pattern.permute.xlu1 %v12897_v1 }
 0x38a   :  { %vm2486_vm1 = vmor %vm10519_vm4, %vm13856_vm5  ;;  %4491 = vmatmul.mubr.f32.gmra.mrb[48].mxu0 %v4869_v58  ;;  %vm13860_vm4 = vcmp.eq.s32.totalorder %v10618_v23, %v6682_v22  ;;  %2816 = vperm.xlu1 %5261, %v5356_v51   ;;  %v5357_v58 = vld [vmem:[%s12599_s0 + $0x1d8] sm:$0xff] }
 0x38b   :  { %vm10688_vm7 = vmor %vm384_vm2, %vm13857_vm12  ;;  %vm381_vm2 = vcmp.eq.s32.totalorder %v13846_v39, %v6671_v26 }
 0x38c   :  { %vm3190_vm9 = vmor %vm2486_vm1, %vm13860_vm4  ;;  %vm13864_vm1 = vcmp.eq.s32.totalorder %v10512_v59, %v6687_v21 }
 0x38d   :  { %vm10705_vm12 = vmor %vm10543_vm8, %vm13861_vm0  ;;  %v4872_v3 = vsel %vm3190_vm9, 1.0, %v5392_v43  ;;  %vm2933_vm8 = vcmp.eq.s32.totalorder %v10618_v23, %v6671_v26  ;;  %vm13867_vm9 = vcmp.eq.s32.totalorder %v10618_v23, %v6687_v21 }
 0x38e   :  { %vm2488_vm4 = vmor %vm10557_vm11, %vm13864_vm1  ;;  %4110 = vmatprep.mubr.f32.mxu1 %v4872_v3  ;;  %vm13868_vm1 = vcmp.eq.s32.totalorder %v13838_v61, %v6671_v26  ;;  %vm13874_vm11 = vcmp.eq.s32.totalorder %v13836_v17, %v6699_v52  ;;  %5262 = vset.pattern.permute.xlu1 %v12899_v45  ;;  %v4378_v3 = vadd.f32 %v4377_v10, %v3992_v56  ;;  %v13935_v56 = vld [vmem:[#allocation47_spill] sm:$0xff] }
 0x38f   :  { %vm10726_vm5 = vmor %vm381_vm2, %vm829_vm13  ;;  %vm383_vm13 = vcmp.eq.s32.totalorder %v13846_v39, %v6699_v52  ;;  %2115 = vperm.xlu1 %5262, %v5357_v58  }
 0x390   :  { %vm3192_vm14 = vmor %vm2488_vm4, %vm13867_vm9  ;;  %vm13872_vm4 = vcmp.eq.s32.totalorder %v10512_v59, %v6671_v26  ;;  %4692 = vst [vmem:[#allocation2 + $0x8] sm:$0xff] %v4378_v3 }
 0x391   :  { %vm10742_vm0 = vmor %vm10578_vm10, %vm13868_vm1  ;;  %v4874_v18 = vsel %vm3192_vm14, 1.0, %v5392_v43  ;;  %vm13878_vm1 = vnez %v13841_v4 }
 0x392   :  { %vm2485_vm9 = vmor %vm10592_vm3, %vm13872_vm4  ;;  %4495 = vmatprep.mubr.f32.mxu0 %v4874_v18  ;;  %vm13877_vm4 = vcmp.eq.s32.totalorder %v13838_v61, %v6699_v52  ;;  %v11045_v18 = vpop.permute.xlu0 %2028 }
 0x393   :  { %vm10765_vm2 = vmor %vm383_vm13, %vm13874_vm11  ;;  %vm386_vm11 = vcmp.eq.s32.totalorder %v13881_v2, %v6682_v22  ;;  %vm13884_vm13 = vcmp.eq.s32.totalorder %v13871_v47, %v6682_v22  ;;  %5263 = vset.pattern.permute.xlu1 %v12897_v1 }
 0x394   :  { %v13876_v53 = vsel %vm10765_vm2, 4294967295, %v13875_v53  ;;  %vm3189_vm3 = vmor %vm2485_vm9, %vm2933_vm8  ;;  %vm13882_vm8 = vcmp.eq.s32.totalorder %v10512_v59, %v6699_v52  ;;  %vm13883_vm9 = vnez %v13845_v37  ;;  %v2023_v59 = vpop.permute.xlu1 %2022  ;;  %2819 = vperm.xlu1 %5263, %v5357_v58   ;;  %v13933_v58 = vld [vmem:[#allocation88_spill] sm:$0xff] }
 0x395   :  { %vm10780_vm10 = vmor %vm13878_vm1, %vm13877_vm4  ;;  %v4871_v19 = vsel %vm3189_vm3, 1.0, %v5392_v43  ;;  %vm13887_vm3 = vcmp.eq.s32.totalorder %v10618_v23, %v6699_v52 }
 0x396   :  { %v13880_v0 = vsel %vm10780_vm10, 4294967295, %v13879_v0  ;;  %vm2487_vm1 = vmor %vm13883_vm9, %vm13882_vm8  ;;  %4111 = vmatmul.mubr.f32.gmra.mrb[50].mxu1 %v4871_v19  ;;  %vm13888_vm9 = vcmp.eq.s32.totalorder %v13873_v33, %v6682_v22  ;;  %vm13892_vm8 = vcmp.eq.s32.totalorder %v13871_v47, %v6687_v21  ;;  %v13926_v19 = vld [vmem:[#allocation46_spill] sm:$0xff]  ;;  %v2736_v34 = vpop.permute.xlu0 %2735 }
 0x397   :  { %vm10804_vm10 = vmor %vm386_vm11, %vm13884_vm13  ;;  %vm388_vm11 = vcmp.eq.s32.totalorder %v13881_v2, %v6687_v21 }
 0x398   :  { %vm3191_vm2 = vmor %vm2487_vm1, %vm13887_vm3  ;;  %vm13891_vm1 = vcmp.eq.s32.totalorder %v10623_v49, %v6682_v22  ;;  %v10971_v4 = vpop.permute.xlu1 %2025  ;;  %5264 = vset.pattern.permute.xlu1 %v12899_v45 }
 0x399   :  { %vm10818_vm14 = vmor %vm10653_vm15, %vm13888_vm9  ;;  %v4873_v24 = vsel %vm3191_vm2, 1.0, %v5392_v43  ;;  %vm2940_vm15 = vcmp.eq.s32.totalorder %v10735_v40, %v6687_v21  ;;  %vm13895_vm2 = vcmp.eq.s32.totalorder %v10735_v40, %v6682_v22 }
 0x39a   :  { %vm2490_vm3 = vmor %vm10667_vm6, %vm13891_vm1  ;;  %4496 = vmatmul.mubr.f32.gmra.mrb[50].mxu0 %v4873_v24  ;;  %vm13896_vm1 = vcmp.eq.s32.totalorder %v13873_v33, %v6687_v21 }
 0x39b   :  { %vm10839_vm4 = vmor %vm388_vm11, %vm13892_vm8  ;;  %vm385_vm8 = vcmp.eq.s32.totalorder %v13881_v2, %v6671_v26  ;;  %vm13899_vm11 = vcmp.eq.s32.totalorder %v10623_v49, %v6687_v21 }
 0x39c   :  { %vm3194_vm13 = vmor %vm2490_vm3, %vm13895_vm2  ;;  %vm2937_vm3 = vcmp.eq.s32.totalorder %v10735_v40, %v6671_v26  ;;  %vm1535_vm2 = vcmp.eq.s32.totalorder %v13873_v33, %v6699_v52  ;;  %v10993_v39 = vpop.permute.xlu1 %2729 }
 0x39d   :  { %vm10853_vm9 = vmor %vm10688_vm7, %vm13896_vm1  ;;  %v4876_v41 = vsel %vm3194_vm13, 1.0, %v5392_v43  ;;  %vm13900_vm1 = vcmp.eq.s32.totalorder %v13871_v47, %v6671_v26 }
 0x39e   :  { %v13898_v42 = vsel %vm10853_vm9, 4294967295, %v13897_v42  ;;  %vm2492_vm7 = vmor %vm10705_vm12, %vm13899_vm11  ;;  %4115 = vmatprep.mubr.f32.mxu1 %v4876_v41  ;;  %vm2235_vm12 = vcmp.eq.s32.totalorder %v10623_v49, %v6699_v52  ;;  %vm13903_vm11 = vcmp.eq.s32.totalorder %v13873_v33, %v6671_v26 }
 0x39f   :  { %vm10875_vm6 = vmor %vm385_vm8, %vm13900_vm1  ;;  %vm13906_vm8 = vcmp.eq.s32.totalorder %v10623_v49, %v6671_v26  ;;  %vm1538_vm1 = vcmp.eq.s32.totalorder %v13907_v63, %v6682_v22 }
 0x3a0   :  { %v13902_v36 = vsel %vm10875_vm6, 4294967295, %v13901_v36  ;;  %vm3196_vm13 = vmor %vm2492_vm7, %vm2940_vm15  ;;  %vm2939_vm7 = vcmp.eq.s32.totalorder %v10735_v40, %v6699_v52  ;;  %v4379_v40 = vpop.f32.mrb[3].mxu0 }
 0x3a1   :  { %vm10889_vm9 = vmor %vm10726_vm5, %vm13903_vm11  ;;  %v4878_v60 = vsel %vm3196_vm13, 1.0, %v5392_v43  ;;  %vm2238_vm5 = vcmp.eq.s32.totalorder %v2020_v57, %v6682_v22  ;;  %vm13908_vm11 = vnez %v13876_v53  ;;  %v11050_v53 = vpop.permute.xlu1 %2732  ;;  %v4382_v24 = vpop.f32.mrb[4].mxu0 }
 0x3a2   :  { %v13905_v55 = vsel %vm10889_vm9, 4294967295, %v13904_v55  ;;  %vm2489_vm15 = vmor %vm10742_vm0, %vm13906_vm8  ;;  %4500 = vmatprep.mubr.f32.mxu0 %v4878_v60  ;;  %vm13911_vm0 = vnez %v13880_v0  ;;  %vm2942_vm8 = vcmp.eq.s32.totalorder %v2724_v44, %v6682_v22  ;;  %v13924_v0 = vld [vmem:[#allocation85_spill] sm:$0xff]  ;;  %v4384_v31 = vpop.f32.mrb[5].mxu0 }
 0x3a3   :  { %vm3193_vm6 = vmor %vm2489_vm15, %vm2937_vm3  ;;  %vm1540_vm3 = vcmp.eq.s32.totalorder %v13907_v63, %v6687_v21 }
 0x3a4   :  { %vm10906_vm9 = vmor %vm13908_vm11, %vm1535_vm2  ;;  %v4875_v11 = vsel %vm3193_vm6, 1.0, %v5392_v43  ;;  %vm2240_vm2 = vcmp.eq.s32.totalorder %v2020_v57, %v6687_v21 }
 0x3a5   :  { %vm2491_vm13 = vmor %vm13911_vm0, %vm2235_vm12  ;;  %4116 = vmatmul.mubr.f32.gmra.mrb[52].mxu1 %v4875_v11  ;;  %vm2944_vm12 = vcmp.eq.s32.totalorder %v2724_v44, %v6687_v21  ;;  %vm1537_vm0 = vcmp.eq.s32.totalorder %v13907_v63, %v6671_v26  ;;  %v2032_v30 = vpop.permute.xlu1 %2031 }
 0x3a6   :  { %vm3195_vm15 = vmor %vm2491_vm13, %vm2939_vm7  ;;  %vm2237_vm13 = vcmp.eq.s32.totalorder %v2020_v57, %v6671_v26 }
 0x3a7   :  { %vm10920_vm11 = vmor %vm10804_vm10, %vm1538_vm1  ;;  %v4877_v15 = vsel %vm3195_vm15, 1.0, %v5392_v43  ;;  %vm13916_vm1 = vnez %v13898_v42  ;;  %v4383_v42 = vadd.f32 %v4382_v24, %v3997_v7  ;;  %v13936_v7 = vld [vmem:[#allocation89_spill] sm:$0xff]  ;;  %v13937_v24 = vld [vmem:[#allocation131_spill] sm:$0xff] }
 0x3a8   :  { %vm2494_vm6 = vmor %vm10818_vm14, %vm2238_vm5  ;;  %4501 = vmatmul.mubr.f32.gmra.mrb[52].mxu0 %v4877_v15  ;;  %vm2941_vm5 = vcmp.eq.s32.totalorder %v2724_v44, %v6671_v26  ;;  %v13928_v15 = vld [vmem:[#allocation130_spill] sm:$0xff] }
 0x3a9   :  { %vm3198_vm7 = vmor %vm2494_vm6, %vm2942_vm8  ;;  %4693 = vst [vmem:[#allocation2 + $0x10] sm:$0xff] %v4383_v42 }
 0x3aa   :  { %vm10933_vm10 = vmor %vm10839_vm4, %vm1540_vm3  ;;  %v4880_v6 = vsel %vm3198_vm7, 1.0, %v5392_v43  ;;  %vm2239_vm4 = vcmp.eq.s32.totalorder %v2020_v57, %v6699_v52  ;;  %vm13917_vm3 = vnez %v13902_v36  ;;  %vm2943_vm7 = vcmp.eq.s32.totalorder %v2724_v44, %v6699_v52  ;;  %v4002_v57 = vpop.f32.mrb[6].mxu1  ;;  %v4387_v36 = vpop.f32.mrb[6].mxu0 }
 0x3ab   :  { %vm2496_vm14 = vmor %vm13916_vm1, %vm2240_vm2  ;;  %4120 = vmatprep.mubr.f32.mxu1 %v4880_v6  ;;  %vm13920_vm2 = vnez %v13905_v55  ;;  %vm2242_vm1 = vcmp.eq.s32.totalorder %v2023_v59, %v6682_v22  ;;  %v4388_v44 = vadd.f32 %v4387_v36, %v4002_v57  ;;  %v4389_v55 = vpop.f32.mrb[7].mxu0  ;;  %v13929_v6 = vld [vmem:[#allocation45_spill] sm:$0xff] }
 0x3ac   :  { %vm3200_vm8 = vmor %vm2496_vm14, %vm2944_vm12  ;;  %vm2946_vm14 = vcmp.eq.s32.totalorder %v10750_v13, %v6682_v22  ;;  %v4392_v51 = vpop.f32.mrb[8].mxu0  ;;  %v13940_v55 = vld [vmem:[#allocation134_spill] sm:$0xff] }
 0x3ad   :  { %vm10947_vm15 = vmor %vm13917_vm3, %vm1537_vm0  ;;  %v4882_v5 = vsel %vm3200_vm8, 1.0, %v5392_v43  ;;  %vm2244_vm8 = vcmp.eq.s32.totalorder %v2023_v59, %v6687_v21  ;;  %vm2241_vm3 = vcmp.eq.s32.totalorder %v2023_v59, %v6671_v26  ;;  %4694 = vst [vmem:[#allocation2 + $0x18] sm:$0xff] %v4388_v44  ;;  %v13939_v44 = vld [vmem:[#allocation90_spill] sm:$0xff] }
 0x3ae   :  { %vm2493_vm6 = vmor %vm13920_vm2, %vm2237_vm13  ;;  %4505 = vmatprep.mubr.f32.mxu0 %v4882_v5 }
 0x3af   :  { %vm3197_vm12 = vmor %vm2493_vm6, %vm2941_vm5  ;;  %vm2948_vm5 = vcmp.eq.s32.totalorder %v10750_v13, %v6687_v21  ;;  %vm2945_vm6 = vcmp.eq.s32.totalorder %v10750_v13, %v6671_v26 }
 0x3b0   :  { %v4879_v17 = vsel %vm3197_vm12, 1.0, %v5392_v43  ;;  %vm2495_vm0 = vmor %vm10906_vm9, %vm2239_vm4 }
 0x3b1   :  { %4121 = vmatmul.mubr.f32.gmra.mrb[54].mxu1 %v4879_v17  ;;  %vm3199_vm13 = vmor %vm2495_vm0, %vm2943_vm7  ;;  %vm387_vm0 = vcmp.eq.s32.totalorder %v13881_v2, %v6699_v52  ;;  %v13925_v2 = vld [vmem:[#allocation127_spill] sm:$0xff] }
 0x3b2   :  { %v4881_v61 = vsel %vm3199_vm13, 1.0, %v5392_v43  ;;  %vm2498_vm9 = vmor %vm10920_vm11, %vm2242_vm1  ;;  %vm835_vm11 = vcmp.eq.s32.totalorder %v13871_v47, %v6699_v52  ;;  %vm1539_vm1 = vcmp.eq.s32.totalorder %v13907_v63, %v6699_v52  ;;  %v5360_v63 = vld [vmem:[%s12599_s0 + $0x1f0] sm:$0xff] }
 0x3b3   :  { %4506 = vmatmul.mubr.f32.gmra.mrb[54].mxu0 %v4881_v61  ;;  %vm3202_vm4 = vmor %vm2498_vm9, %vm2946_vm14  ;;  %vm2243_vm14 = vcmp.eq.s32.totalorder %v2023_v59, %v6699_v52 }
 0x3b4   :  { %v4884_v23 = vsel %vm3202_vm4, 1.0, %v5392_v43  ;;  %vm2500_vm2 = vmor %vm10933_vm10, %vm2244_vm8  ;;  %vm2947_vm8 = vcmp.eq.s32.totalorder %v10750_v13, %v6699_v52  ;;  %vm1542_vm4 = vcmp.eq.s32.totalorder %v13922_v9, %v6682_v22  ;;  %v5358_v13 = vld [vmem:[%s12599_s0 + $0x1e0] sm:$0xff]  ;;  %s5393_s0 = smov [#allocation2]  }
 0x3b5   :  { %4125 = vmatprep.mubr.f32.mxu1 %v4884_v23  ;;  %vm3204_vm7 = vmor %vm2500_vm2, %vm2948_vm5  ;;  %vm390_vm2 = vcmp.eq.s32.totalorder %v13923_v14, %v6682_v22  ;;  %2118 = vperm.xlu1 %5264, %v5358_v13   ;;  %v4394_v23 = vpop.f32.mrb[9].mxu0  ;;  %s4760_s15 = sshll.u32 %s5393_s0, 4  ;;  %s4761_s15 = int_to_ptr.vmem [resolvable:$true] %s4760_s15 }
 0x3b6   :  { %v4886_v49 = vsel %vm3204_vm7, 1.0, %v5392_v43  ;;  %vm2497_vm12 = vmor %vm10947_vm15, %vm2241_vm3  ;;  %vm838_vm15 = vcmp.eq.s32.totalorder %v13921_v20, %v6682_v22  ;;  %v4397_v48 = vpop.f32.mrb[10].mxu0  ;;  %s5362_s16 = scalar_lea.vmem %s4761_s15, 8192  ;;  %p5367_p1 = scmp.lt.s32.totalorder %s4761_s15, %s4761_s15 }
 0x3b7   :  { %4510 = vmatprep.mubr.f32.mxu0 %v4886_v49  ;;  %vm3201_vm10 = vmor %vm2497_vm12, %vm2945_vm6  ;;  %vm2246_vm6 = vcmp.eq.s32.totalorder %v10971_v4, %v6682_v22  ;;  %p5363_p0 = scmp.ne.s32.totalorder %s4761_s15, %s5362_s16  ;;  %p5368_p2 = scmp.lt.s32.totalorder %s5362_s16, %s5362_s16 }
 0x3b8   :  { %v4883_v37 = vsel %vm3201_vm10, 1.0, %v5392_v43  ;;  %vm1091_vm13 = vmor %vm387_vm0, %vm835_vm11  ;;  %vm2950_vm11 = vcmp.eq.s32.totalorder %v10993_v39, %v6682_v22  ;;  %vm1544_vm0 = vcmp.eq.s32.totalorder %v13922_v9, %v6687_v21 }
 0x3b9   :  { %4126 = vmatmul.mubr.f32.gmra.mrb[56].mxu1 %v4883_v37  ;;  %vm1795_vm9 = vmor %vm1091_vm13, %vm1539_vm1  ;;  %vm840_vm1 = vcmp.eq.s32.totalorder %v13921_v20, %v6687_v21  ;;  %vm392_vm13 = vcmp.eq.s32.totalorder %v13923_v14, %v6687_v21  ;;  %5266 = vset.pattern.permute.xlu1 %v13158_v62  ;;  %v11177_v37 = vpop.permute.xlu0 %2744  ;;  %p5369_p3 = por %p5368_p2, %p5367_p1 }
 0x3ba   :  { %vm2499_vm5 = vmor %vm1795_vm9, %vm2243_vm14  ;;  %1417 = vperm.xlu1 %5266, %v5359_v46  }
 0x3bb   :  { %vm3203_vm3 = vmor %vm2499_vm5, %vm2947_vm8  ;;  %vm2248_vm8 = vcmp.eq.s32.totalorder %v10971_v4, %v6687_v21  ;;  %p5370_p4 = pnand %p5369_p3, %p5363_p0 }
 0x3bc   :  { %v4885_v25 = vsel %vm3203_vm3, 1.0, %v5392_v43  ;;  %vm1094_vm7 = vmor %vm390_vm2, %vm838_vm15  ;;  %vm2952_vm15 = vcmp.eq.s32.totalorder %v10993_v39, %v6687_v21  ;;  %vm1541_vm2 = vcmp.eq.s32.totalorder %v13922_v9, %v6671_v26 }
 0x3bd   :  { %4511 = vmatmul.mubr.f32.gmra.mrb[56].mxu0 %v4885_v25  ;;  %vm1798_vm12 = vmor %vm1094_vm7, %vm1542_vm4  ;;  %vm837_vm4 = vcmp.eq.s32.totalorder %v13921_v20, %v6671_v26  ;;  %vm389_vm7 = vcmp.eq.s32.totalorder %v13923_v14, %v6671_v26  ;;  %v13934_v25 = vld [vmem:[#allocation132_spill] sm:$0xff] }
 0x3be   :  { %vm2502_vm10 = vmor %vm1798_vm12, %vm2246_vm6  ;;  %5267 = vset.pattern.permute.xlu1 %v12899_v45  ;;  %v4004_v45 = vpop.f32.mrb[7].mxu1 }
 0x3bf   :  { %vm3206_vm14 = vmor %vm2502_vm10, %vm2950_vm11  ;;  %vm2245_vm11 = vcmp.eq.s32.totalorder %v10971_v4, %v6671_v26  ;;  %2121 = vperm.xlu1 %5267, %v5359_v46   ;;  %v4007_v17 = vpop.f32.mrb[8].mxu1 }
 0x3c0   :  { %v4888_v29 = vsel %vm3206_vm14, 1.0, %v5392_v43  ;;  %vm1096_vm9 = vmor %vm392_vm13, %vm840_vm1  ;;  %vm2949_vm1 = vcmp.eq.s32.totalorder %v10993_v39, %v6671_v26  ;;  %vm1543_vm13 = vcmp.eq.s32.totalorder %v13922_v9, %v6699_v52  ;;  %v4393_v61 = vadd.f32 %v4392_v51, %v4007_v17 }
 0x3c1   :  { %4130 = vmatprep.mubr.f32.mxu1 %v4888_v29  ;;  %vm1800_vm5 = vmor %vm1096_vm9, %vm1544_vm0  ;;  %vm839_vm0 = vcmp.eq.s32.totalorder %v13921_v20, %v6699_v52  ;;  %vm391_vm9 = vcmp.eq.s32.totalorder %v13923_v14, %v6699_v52  ;;  %v11195_v20 = vpop.permute.xlu0 %2037 }
 0x3c2   :  { %vm2504_vm3 = vmor %vm1800_vm5, %vm2248_vm8  ;;  %4695 = vst [vmem:[#allocation2 + $0x20] sm:$0xff] %v4393_v61 }
 0x3c3   :  { %vm3208_vm6 = vmor %vm2504_vm3, %vm2952_vm15  ;;  %vm2247_vm15 = vcmp.eq.s32.totalorder %v10971_v4, %v6699_v52  ;;  %5268 = vset.pattern.permute.xlu1 %v13158_v62  ;;  %v4009_v4 = vpop.f32.mrb[9].mxu1 }
 0x3c4   :  { %v4890_v47 = vsel %vm3208_vm6, 1.0, %v5392_v43  ;;  %vm1093_vm12 = vmor %vm389_vm7, %vm837_vm4  ;;  %vm2951_vm4 = vcmp.eq.s32.totalorder %v10993_v39, %v6699_v52  ;;  %vm1546_vm7 = vcmp.eq.s32.totalorder %v13925_v2, %v6682_v22  ;;  %1420 = vperm.xlu1 %5268, %v5360_v63   ;;  %v4012_v3 = vpop.f32.mrb[10].mxu1 }
 0x3c5   :  { %4515 = vmatprep.mubr.f32.mxu0 %v4890_v47  ;;  %vm1797_vm10 = vmor %vm1093_vm12, %vm1541_vm2  ;;  %vm842_vm2 = vcmp.eq.s32.totalorder %v13924_v0, %v6682_v22  ;;  %vm394_vm12 = vcmp.eq.s32.totalorder %v13926_v19, %v6682_v22  ;;  %v4014_v40 = vpop.f32.mrb[11].mxu1  ;;  %v4398_v29 = vadd.f32 %v4397_v48, %v4012_v3  ;;  %v4399_v47 = vpop.f32.mrb[11].mxu0  ;;  %v13947_v3 = vld [vmem:[#allocation51_spill] sm:$0xff] }
 0x3c6   :  { %vm2501_vm14 = vmor %vm1797_vm10, %vm2245_vm11  ;;  %v4017_v13 = vpop.f32.mrb[12].mxu1 }
 0x3c7   :  { %vm3205_vm8 = vmor %vm2501_vm14, %vm2949_vm1  ;;  %vm2250_vm1 = vcmp.eq.s32.totalorder %v11045_v18, %v6682_v22  ;;  %4696 = vst [vmem:[#allocation2 + $0x28] sm:$0xff] %v4398_v29 }
 0x3c8   :  { %v4887_v33 = vsel %vm3205_vm8, 1.0, %v5392_v43  ;;  %vm1095_vm5 = vmor %vm391_vm9, %vm839_vm0  ;;  %vm2954_vm0 = vcmp.eq.s32.totalorder %v11050_v53, %v6682_v22  ;;  %vm1548_vm9 = vcmp.eq.s32.totalorder %v13925_v2, %v6687_v21  ;;  %5270 = vset.pattern.permute.xlu1 %v12897_v1 }
 0x3c9   :  { %4131 = vmatmul.mubr.f32.gmra.mrb[58].mxu1 %v4887_v33  ;;  %vm1799_vm3 = vmor %vm1095_vm5, %vm1543_vm13  ;;  %vm844_vm13 = vcmp.eq.s32.totalorder %v13924_v0, %v6687_v21  ;;  %vm396_vm5 = vcmp.eq.s32.totalorder %v13926_v19, %v6687_v21  ;;  %2828 = vperm.xlu1 %5270, %v5360_v63   ;;  %v4019_v33 = vpop.f32.mrb[13].mxu1 }
 0x3ca   :  { %vm2503_vm6 = vmor %vm1799_vm3, %vm2247_vm15  ;;  %v13948_v33 = vld [vmem:[#allocation93_spill] sm:$0xff] }
 0x3cb   :  { %vm3207_vm11 = vmor %vm2503_vm6, %vm2951_vm4  ;;  %vm2252_vm4 = vcmp.eq.s32.totalorder %v11045_v18, %v6687_v21 }
 0x3cc   :  { %v4889_v16 = vsel %vm3207_vm11, 1.0, %v5392_v43  ;;  %vm1098_vm10 = vmor %vm394_vm12, %vm842_vm2  ;;  %vm2956_vm2 = vcmp.eq.s32.totalorder %v11050_v53, %v6687_v21  ;;  %vm1545_vm12 = vcmp.eq.s32.totalorder %v13925_v2, %v6671_v26 }
 0x3cd   :  { %4516 = vmatmul.mubr.f32.gmra.mrb[58].mxu0 %v4889_v16  ;;  %vm1802_vm14 = vmor %vm1098_vm10, %vm1546_vm7  ;;  %vm841_vm7 = vcmp.eq.s32.totalorder %v13924_v0, %v6671_v26  ;;  %vm393_vm10 = vcmp.eq.s32.totalorder %v13926_v19, %v6671_v26  ;;  %5271 = vset.pattern.permute.xlu1 %v13158_v62  ;;  %v11139_v62 = vpop.permute.xlu1 %2034 }
 0x3ce   :  { %vm2506_vm8 = vmor %vm1802_vm14, %vm2250_vm1  ;;  %1423 = vperm.xlu1 %5271, %v5361_v12  }
 0x3cf   :  { %vm3210_vm15 = vmor %vm2506_vm8, %vm2954_vm0  ;;  %vm2249_vm0 = vcmp.eq.s32.totalorder %v11045_v18, %v6671_v26 }
 0x3d0   :  { %v4892_v41 = vsel %vm3210_vm15, 1.0, %v5392_v43  ;;  %vm1100_vm3 = vmor %vm396_vm5, %vm844_vm13  ;;  %vm2953_vm13 = vcmp.eq.s32.totalorder %v11050_v53, %v6671_v26  ;;  %vm1547_vm5 = vcmp.eq.s32.totalorder %v13925_v2, %v6699_v52 }
 0x3d1   :  { %4135 = vmatprep.mubr.f32.mxu1 %v4892_v41  ;;  %vm1804_vm6 = vmor %vm1100_vm3, %vm1548_vm9  ;;  %vm843_vm9 = vcmp.eq.s32.totalorder %v13924_v0, %v6699_v52  ;;  %vm395_vm3 = vcmp.eq.s32.totalorder %v13926_v19, %v6699_v52  ;;  %v2739_v5 = vpop.permute.xlu1 %2738 }
 0x3d2   :  { %vm2508_vm11 = vmor %vm1804_vm6, %vm2252_vm4  ;;  %5272 = vset.pattern.permute.xlu1 %v12897_v1 }
 0x3d3   :  { %vm3212_vm1 = vmor %vm2508_vm11, %vm2956_vm2  ;;  %vm2251_vm2 = vcmp.eq.s32.totalorder %v11045_v18, %v6699_v52  ;;  %2831 = vperm.xlu1 %5272, %v5361_v12   ;;  %v11325_v12 = vpop.permute.xlu0 %2046 }
 0x3d4   :  { %v4894_v60 = vsel %vm3212_vm1, 1.0, %v5392_v43  ;;  %vm1097_vm14 = vmor %vm393_vm10, %vm841_vm7  ;;  %vm2955_vm7 = vcmp.eq.s32.totalorder %v11050_v53, %v6699_v52  ;;  %vm1550_vm10 = vcmp.eq.s32.totalorder %v13928_v15, %v6682_v22  ;;  %v4402_v53 = vpop.f32.mrb[12].mxu0 }
 0x3d5   :  { %4520 = vmatprep.mubr.f32.mxu0 %v4894_v60  ;;  %vm1801_vm8 = vmor %vm1097_vm14, %vm1545_vm12  ;;  %vm846_vm12 = vcmp.eq.s32.totalorder %v13927_v54, %v6682_v22  ;;  %vm398_vm14 = vcmp.eq.s32.totalorder %v13929_v6, %v6682_v22  ;;  %v11199_v14 = vpop.permute.xlu1 %2741  ;;  %v4403_v0 = vadd.f32 %v4402_v53, %v4017_v13  ;;  %v4404_v2 = vpop.f32.mrb[13].mxu0  ;;  %v13941_v60 = vld [vmem:[#allocation49_spill] sm:$0xff]  ;;  %v13949_v53 = vld [vmem:[#allocation135_spill] sm:$0xff] }
 0x3d6   :  { %vm2505_vm15 = vmor %vm1801_vm8, %vm2249_vm0 }
 0x3d7   :  { %vm3209_vm4 = vmor %vm2505_vm15, %vm2953_vm13  ;;  %vm2254_vm13 = vcmp.eq.s32.totalorder %v2032_v30, %v6682_v22  ;;  %4697 = vst [vmem:[#allocation2 + $0x30] sm:$0xff] %v4403_v0  ;;  %v13950_v0 = vld [vmem:[#allocation54_spill] sm:$0xff] }
 0x3d8   :  { %v4891_v11 = vsel %vm3209_vm4, 1.0, %v5392_v43  ;;  %vm1099_vm6 = vmor %vm395_vm3, %vm843_vm9  ;;  %vm2958_vm9 = vcmp.eq.s32.totalorder %v2736_v34, %v6682_v22  ;;  %vm1552_vm3 = vcmp.eq.s32.totalorder %v13928_v15, %v6687_v21 }
 0x3d9   :  { %4136 = vmatmul.mubr.f32.gmra.mrb[60].mxu1 %v4891_v11  ;;  %vm1803_vm11 = vmor %vm1099_vm6, %vm1547_vm5  ;;  %vm848_vm5 = vcmp.eq.s32.totalorder %v13927_v54, %v6687_v21  ;;  %vm400_vm6 = vcmp.eq.s32.totalorder %v13929_v6, %v6687_v21  ;;  %v2041_v19 = vpop.permute.xlu1 %2040  ;;  %v4407_v11 = vpop.f32.mrb[14].mxu0 }
 0x3da   :  { %vm2507_vm1 = vmor %vm1803_vm11, %vm2251_vm2 }
 0x3db   :  { %vm3211_vm0 = vmor %vm2507_vm1, %vm2955_vm7  ;;  %vm2256_vm7 = vcmp.eq.s32.totalorder %v2032_v30, %v6687_v21 }
 0x3dc   :  { %v4893_v59 = vsel %vm3211_vm0, 1.0, %v5392_v43  ;;  %vm1102_vm8 = vmor %vm398_vm14, %vm846_vm12  ;;  %vm2960_vm12 = vcmp.eq.s32.totalorder %v2736_v34, %v6687_v21  ;;  %vm1549_vm14 = vcmp.eq.s32.totalorder %v13928_v15, %v6671_v26 }
 0x3dd   :  { %4521 = vmatmul.mubr.f32.gmra.mrb[60].mxu0 %v4893_v59  ;;  %vm1806_vm15 = vmor %vm1102_vm8, %vm1550_vm10  ;;  %vm845_vm10 = vcmp.eq.s32.totalorder %v13927_v54, %v6671_v26  ;;  %vm397_vm8 = vcmp.eq.s32.totalorder %v13929_v6, %v6671_v26  ;;  %v11269_v57 = vpop.permute.xlu1 %2043 }
 0x3de   :  { %vm2510_vm4 = vmor %vm1806_vm15, %vm2254_vm13 }
 0x3df   :  { %vm3214_vm2 = vmor %vm2510_vm4, %vm2958_vm9  ;;  %vm2253_vm9 = vcmp.eq.s32.totalorder %v2032_v30, %v6671_v26 }
 0x3e0   :  { %v4896_v32 = vsel %vm3214_vm2, 1.0, %v5392_v43  ;;  %vm1104_vm11 = vmor %vm400_vm6, %vm848_vm5  ;;  %vm2957_vm5 = vcmp.eq.s32.totalorder %v2736_v34, %v6671_v26  ;;  %vm1551_vm6 = vcmp.eq.s32.totalorder %v13928_v15, %v6699_v52 }
 0x3e1   :  { %4140 = vmatprep.mubr.f32.mxu1 %v4896_v32  ;;  %vm1808_vm1 = vmor %vm1104_vm11, %vm1552_vm3  ;;  %vm847_vm3 = vcmp.eq.s32.totalorder %v13927_v54, %v6699_v52  ;;  %vm399_vm11 = vcmp.eq.s32.totalorder %v13929_v6, %v6699_v52  ;;  %v2748_v36 = vpop.permute.xlu1 %2747 }
 0x3e2   :  { %vm2512_vm0 = vmor %vm1808_vm1, %vm2256_vm7 }
 0x3e3   :  { %vm3216_vm13 = vmor %vm2512_vm0, %vm2960_vm12  ;;  %vm2255_vm12 = vcmp.eq.s32.totalorder %v2032_v30, %v6699_v52  ;;  %v4022_v30 = vpop.f32.mrb[14].mxu1 }
 0x3e4   :  { %v4898_v28 = vsel %vm3216_vm13, 1.0, %v5392_v43  ;;  %vm1101_vm15 = vmor %vm397_vm8, %vm845_vm10  ;;  %vm2959_vm10 = vcmp.eq.s32.totalorder %v2736_v34, %v6699_v52  ;;  %vm1554_vm8 = vcmp.eq.s32.totalorder %v13931_v50, %v6682_v22  ;;  %v4408_v54 = vadd.f32 %v4407_v11, %v4022_v30  ;;  %v4024_v15 = vpop.f32.mrb[15].mxu1  ;;  %v4409_v34 = vpop.f32.mrb[15].mxu0 }
 0x3e5   :  { %4525 = vmatprep.mubr.f32.mxu0 %v4898_v28  ;;  %vm1805_vm4 = vmor %vm1101_vm15, %vm1549_vm14  ;;  %vm850_vm14 = vcmp.eq.s32.totalorder %v13930_v35, %v6682_v22  ;;  %vm402_vm15 = vcmp.eq.s32.totalorder %v13932_v38, %v6682_v22  ;;  %v13942_v28 = vld [vmem:[#allocation91_spill] sm:$0xff] }
 0x3e6   :  { %vm2509_vm2 = vmor %vm1805_vm4, %vm2253_vm9  ;;  %4698 = vst [vmem:[#allocation2 + $0x38] sm:$0xff] %v4408_v54 }
 0x3e7   :  { %vm3213_vm7 = vmor %vm2509_vm2, %vm2957_vm5  ;;  %vm2258_vm5 = vcmp.eq.s32.totalorder %v11139_v62, %v6682_v22 }
 0x3e8   :  { %v4895_v1 = vsel %vm3213_vm7, 1.0, %v5392_v43  ;;  %vm1103_vm1 = vmor %vm399_vm11, %vm847_vm3  ;;  %vm2962_vm3 = vcmp.eq.s32.totalorder %v2739_v5, %v6682_v22  ;;  %vm1556_vm11 = vcmp.eq.s32.totalorder %v13931_v50, %v6687_v21 }
 0x3e9   :  { %4141 = vmatmul.mubr.f32.gmra.mrb[62].mxu1 %v4895_v1  ;;  %vm1807_vm0 = vmor %vm1103_vm1, %vm1551_vm6  ;;  %vm852_vm6 = vcmp.eq.s32.totalorder %v13930_v35, %v6687_v21  ;;  %vm404_vm1 = vcmp.eq.s32.totalorder %v13932_v38, %v6687_v21  ;;  %v13943_v1 = vld [vmem:[#allocation133_spill] sm:$0xff] }
 0x3ea   :  { %vm2511_vm13 = vmor %vm1807_vm0, %vm2255_vm12 }
 0x3eb   :  { %vm3215_vm9 = vmor %vm2511_vm13, %vm2959_vm10  ;;  %vm2260_vm10 = vcmp.eq.s32.totalorder %v11139_v62, %v6687_v21 }
 0x3ec   :  { %v4897_v27 = vsel %vm3215_vm9, 1.0, %v5392_v43  ;;  %vm1106_vm4 = vmor %vm402_vm15, %vm850_vm14  ;;  %vm2964_vm14 = vcmp.eq.s32.totalorder %v2739_v5, %v6687_v21  ;;  %vm1553_vm15 = vcmp.eq.s32.totalorder %v13931_v50, %v6671_v26 }
 0x3ed   :  { %4526 = vmatmul.mubr.f32.gmra.mrb[62].mxu0 %v4897_v27  ;;  %vm1810_vm2 = vmor %vm1106_vm4, %vm1554_vm8  ;;  %vm849_vm8 = vcmp.eq.s32.totalorder %v13930_v35, %v6671_v26  ;;  %vm401_vm4 = vcmp.eq.s32.totalorder %v13932_v38, %v6671_v26 }
 0x3ee   :  { %vm2514_vm7 = vmor %vm1810_vm2, %vm2258_vm5 }
 0x3ef   :  { %vm3218_vm12 = vmor %vm2514_vm7, %vm2962_vm3  ;;  %vm2257_vm3 = vcmp.eq.s32.totalorder %v11139_v62, %v6671_v26 }
 0x3f0   :  { %v4900_v49 = vsel %vm3218_vm12, 1.0, %v5392_v43  ;;  %vm1108_vm0 = vmor %vm404_vm1, %vm852_vm6  ;;  %vm2961_vm6 = vcmp.eq.s32.totalorder %v2739_v5, %v6671_v26  ;;  %vm1555_vm1 = vcmp.eq.s32.totalorder %v13931_v50, %v6699_v52  ;;  %v4027_v50 = vpop.f32.mrb[16].mxu1 }
 0x3f1   :  { %4145 = vmatprep.mubr.f32.mxu1 %v4900_v49  ;;  %vm1812_vm13 = vmor %vm1108_vm0, %vm1556_vm11  ;;  %vm851_vm11 = vcmp.eq.s32.totalorder %v13930_v35, %v6699_v52  ;;  %vm403_vm0 = vcmp.eq.s32.totalorder %v13932_v38, %v6699_v52  ;;  %v4412_v38 = vpop.f32.mrb[16].mxu0  ;;  %v4029_v27 = vpop.f32.mrb[17].mxu1 }
 0x3f2   :  { %vm2516_vm9 = vmor %vm1812_vm13, %vm2260_vm10  ;;  %v4413_v17 = vadd.f32 %v4412_v38, %v4027_v50  ;;  %v4414_v51 = vpop.f32.mrb[17].mxu0  ;;  %v4032_v61 = vpop.f32.mrb[18].mxu1  ;;  %v13956_v50 = vld [vmem:[#allocation56_spill] sm:$0xff] }
 0x3f3   :  { %vm3220_vm5 = vmor %vm2516_vm9, %vm2964_vm14  ;;  %vm2259_vm14 = vcmp.eq.s32.totalorder %v11139_v62, %v6699_v52  ;;  %v11329_v62 = vpop.permute.xlu1 %2750  ;;  %v4034_v23 = vpop.f32.mrb[19].mxu1 }
 0x3f4   :  { %v4902_v39 = vsel %vm3220_vm5, 1.0, %v5392_v43  ;;  %vm1105_vm2 = vmor %vm401_vm4, %vm849_vm8  ;;  %vm2963_vm8 = vcmp.eq.s32.totalorder %v2739_v5, %v6699_v52  ;;  %vm1558_vm4 = vcmp.eq.s32.totalorder %v13934_v25, %v6682_v22  ;;  %v13944_v5 = vld [vmem:[#allocation52_spill] sm:$0xff]  ;;  %4699 = vst [vmem:[#allocation2 + $0x40] sm:$0xff] %v4413_v17  ;;  %v4417_v49 = vpop.f32.mrb[18].mxu0 }
 0x3f5   :  { %4530 = vmatprep.mubr.f32.mxu0 %v4902_v39  ;;  %vm1809_vm7 = vmor %vm1105_vm2, %vm1553_vm15  ;;  %vm854_vm15 = vcmp.eq.s32.totalorder %v13933_v58, %v6682_v22  ;;  %vm406_vm2 = vcmp.eq.s32.totalorder %v13935_v56, %v6682_v22  ;;  %v4419_v39 = vpop.f32.mrb[19].mxu0  ;;  %v13957_v23 = vld [vmem:[#allocation96_spill] sm:$0xff] }
 0x3f6   :  { %vm2513_vm12 = vmor %vm1809_vm7, %vm2257_vm3 }
 0x3f7   :  { %vm3217_vm10 = vmor %vm2513_vm12, %vm2961_vm6  ;;  %vm2262_vm6 = vcmp.eq.s32.totalorder %v11195_v20, %v6682_v22 }
 0x3f8   :  { %v4899_v9 = vsel %vm3217_vm10, 1.0, %v5392_v43  ;;  %vm1107_vm13 = vmor %vm403_vm0, %vm851_vm11  ;;  %vm2966_vm11 = vcmp.eq.s32.totalorder %v11199_v14, %v6682_v22  ;;  %vm1560_vm0 = vcmp.eq.s32.totalorder %v13934_v25, %v6687_v21 }
 0x3f9   :  { %4146 = vmatmul.mubr.f32.gmra.mrb[64].mxu1 %v4899_v9  ;;  %vm1811_vm9 = vmor %vm1107_vm13, %vm1555_vm1  ;;  %vm856_vm1 = vcmp.eq.s32.totalorder %v13933_v58, %v6687_v21  ;;  %vm408_vm13 = vcmp.eq.s32.totalorder %v13935_v56, %v6687_v21  ;;  %v11368_v9 = vpop.permute.xlu0 %2055 }
 0x3fa   :  { %vm2515_vm5 = vmor %vm1811_vm9, %vm2259_vm14 }
 0x3fb   :  { %vm3219_vm3 = vmor %vm2515_vm5, %vm2963_vm8  ;;  %vm2264_vm8 = vcmp.eq.s32.totalorder %v11195_v20, %v6687_v21 }
 0x3fc   :  { %v4901_v10 = vsel %vm3219_vm3, 1.0, %v5392_v43  ;;  %vm1110_vm7 = vmor %vm406_vm2, %vm854_vm15  ;;  %vm2968_vm15 = vcmp.eq.s32.totalorder %v11199_v14, %v6687_v21  ;;  %vm1557_vm2 = vcmp.eq.s32.totalorder %v13934_v25, %v6671_v26 }
 0x3fd   :  { %4531 = vmatmul.mubr.f32.gmra.mrb[64].mxu0 %v4901_v10  ;;  %vm1814_vm12 = vmor %vm1110_vm7, %vm1558_vm4  ;;  %vm853_vm4 = vcmp.eq.s32.totalorder %v13933_v58, %v6671_v26  ;;  %vm405_vm7 = vcmp.eq.s32.totalorder %v13935_v56, %v6671_v26  ;;  %v2754_v10 = vpop.permute.xlu0 %2753 }
 0x3fe   :  { %vm2518_vm10 = vmor %vm1814_vm12, %vm2262_vm6 }
 0x3ff   :  { %vm3222_vm14 = vmor %vm2518_vm10, %vm2966_vm11  ;;  %vm2261_vm11 = vcmp.eq.s32.totalorder %v11195_v20, %v6671_v26 }
 0x400   :  { %v4904_v18 = vsel %vm3222_vm14, 1.0, %v5392_v43  ;;  %vm1112_vm9 = vmor %vm408_vm13, %vm856_vm1  ;;  %vm2965_vm1 = vcmp.eq.s32.totalorder %v11199_v14, %v6671_v26  ;;  %vm1559_vm13 = vcmp.eq.s32.totalorder %v13934_v25, %v6699_v52  ;;  %v13945_v25 = vld [vmem:[#allocation92_spill] sm:$0xff] }
 0x401   :  { %4150 = vmatprep.mubr.f32.mxu1 %v4904_v18  ;;  %vm1816_vm5 = vmor %vm1112_vm9, %vm1560_vm0  ;;  %vm855_vm0 = vcmp.eq.s32.totalorder %v13933_v58, %v6699_v52  ;;  %vm407_vm9 = vcmp.eq.s32.totalorder %v13935_v56, %v6699_v52  ;;  %v13946_v56 = vld [vmem:[#allocation136_spill] sm:$0xff] }
 0x402   :  { %vm2520_vm3 = vmor %vm1816_vm5, %vm2264_vm8 }
 0x403   :  { %vm3224_vm6 = vmor %vm2520_vm3, %vm2968_vm15  ;;  %vm2263_vm15 = vcmp.eq.s32.totalorder %v11195_v20, %v6699_v52 }
 0x404   :  { %v4906_v46 = vsel %vm3224_vm6, 1.0, %v5392_v43  ;;  %vm1109_vm12 = vmor %vm405_vm7, %vm853_vm4  ;;  %vm2967_vm4 = vcmp.eq.s32.totalorder %v11199_v14, %v6699_v52  ;;  %vm1562_vm7 = vcmp.eq.s32.totalorder %v13937_v24, %v6682_v22  ;;  %v2050_v14 = vpop.permute.xlu1 %2049 }
 0x405   :  { %4535 = vmatprep.mubr.f32.mxu0 %v4906_v46  ;;  %vm1813_vm10 = vmor %vm1109_vm12, %vm1557_vm2  ;;  %vm858_vm2 = vcmp.eq.s32.totalorder %v13936_v7, %v6682_v22  ;;  %vm410_vm12 = vcmp.eq.s32.totalorder %v13938_v8, %v6682_v22  ;;  %v4037_v46 = vpop.f32.mrb[20].mxu1 }
 0x406   :  { %vm2517_vm14 = vmor %vm1813_vm10, %vm2261_vm11 }
 0x407   :  { %vm3221_vm8 = vmor %vm2517_vm14, %vm2965_vm1  ;;  %vm2266_vm1 = vcmp.eq.s32.totalorder %v2041_v19, %v6682_v22 }
 0x408   :  { %v4903_v16 = vsel %vm3221_vm8, 1.0, %v5392_v43  ;;  %vm1111_vm5 = vmor %vm407_vm9, %vm855_vm0  ;;  %vm2970_vm0 = vcmp.eq.s32.totalorder %v11177_v37, %v6682_v22  ;;  %vm1564_vm9 = vcmp.eq.s32.totalorder %v13937_v24, %v6687_v21  ;;  %v11399_v29 = vpop.permute.xlu1 %2052 }
 0x409   :  { %4151 = vmatmul.mubr.f32.gmra.mrb[66].mxu1 %v4903_v16  ;;  %vm1815_vm3 = vmor %vm1111_vm5, %vm1559_vm13  ;;  %vm860_vm13 = vcmp.eq.s32.totalorder %v13936_v7, %v6687_v21  ;;  %vm412_vm5 = vcmp.eq.s32.totalorder %v13938_v8, %v6687_v21 }
 0x40a   :  { %vm2519_vm6 = vmor %vm1815_vm3, %vm2263_vm15 }
 0x40b   :  { %vm3223_vm11 = vmor %vm2519_vm6, %vm2967_vm4  ;;  %vm2268_vm4 = vcmp.eq.s32.totalorder %v2041_v19, %v6687_v21 }
 0x40c   :  { %v4905_v42 = vsel %vm3223_vm11, 1.0, %v5392_v43  ;;  %vm1114_vm10 = vmor %vm410_vm12, %vm858_vm2  ;;  %vm2972_vm2 = vcmp.eq.s32.totalorder %v11177_v37, %v6687_v21  ;;  %vm1561_vm12 = vcmp.eq.s32.totalorder %v13937_v24, %v6671_v26  ;;  %v2757_v18 = vpop.permute.xlu1 %2756 }
 0x40d   :  { %4536 = vmatmul.mubr.f32.gmra.mrb[66].mxu0 %v4905_v42  ;;  %vm1818_vm14 = vmor %vm1114_vm10, %vm1562_vm7  ;;  %vm857_vm7 = vcmp.eq.s32.totalorder %v13936_v7, %v6671_v26  ;;  %vm409_vm10 = vcmp.eq.s32.totalorder %v13938_v8, %v6671_v26 }
 0x40e   :  { %vm2522_vm8 = vmor %vm1818_vm14, %vm2266_vm1 }
 0x40f   :  { %vm3226_vm15 = vmor %vm2522_vm8, %vm2970_vm0  ;;  %vm2265_vm0 = vcmp.eq.s32.totalorder %v2041_v19, %v6671_v26 }
 0x410   :  { %v4908_v31 = vsel %vm3226_vm15, 1.0, %v5392_v43  ;;  %vm1116_vm3 = vmor %vm412_vm5, %vm860_vm13  ;;  %vm2969_vm13 = vcmp.eq.s32.totalorder %v11177_v37, %v6671_v26  ;;  %vm1563_vm5 = vcmp.eq.s32.totalorder %v13937_v24, %v6699_v52 }
 0x411   :  { %4155 = vmatprep.mubr.f32.mxu1 %v4908_v31  ;;  %vm1820_vm6 = vmor %vm1116_vm3, %vm1564_vm9  ;;  %vm859_vm9 = vcmp.eq.s32.totalorder %v13936_v7, %v6699_v52  ;;  %vm411_vm3 = vcmp.eq.s32.totalorder %v13938_v8, %v6699_v52  ;;  %v4039_v7 = vpop.f32.mrb[21].mxu1 }
 0x412   :  { %vm2524_vm11 = vmor %vm1820_vm6, %vm2268_vm4 }
 0x413   :  { %vm3228_vm1 = vmor %vm2524_vm11, %vm2972_vm2  ;;  %vm2267_vm2 = vcmp.eq.s32.totalorder %v2041_v19, %v6699_v52  ;;  %v4422_v19 = vpop.f32.mrb[20].mxu0 }
 0x414   :  { %v4910_v41 = vsel %vm3228_vm1, 1.0, %v5392_v43  ;;  %vm1113_vm14 = vmor %vm409_vm10, %vm857_vm7  ;;  %vm2971_vm7 = vcmp.eq.s32.totalorder %v11177_v37, %v6699_v52  ;;  %vm1566_vm10 = vcmp.eq.s32.totalorder %v13940_v55, %v6682_v22  ;;  %v4418_v37 = vadd.f32 %v4417_v49, %v4032_v61  ;;  %v4424_v24 = vpop.f32.mrb[21].mxu0  ;;  %v13958_v49 = vld [vmem:[#allocation140_spill] sm:$0xff] }
 0x415   :  { %4540 = vmatprep.mubr.f32.mxu0 %v4910_v41  ;;  %vm1817_vm8 = vmor %vm1113_vm14, %vm1561_vm12  ;;  %vm862_vm12 = vcmp.eq.s32.totalorder %v13939_v44, %v6682_v22  ;;  %vm414_vm14 = vcmp.eq.s32.totalorder %v13941_v60, %v6682_v22  ;;  %v4423_v16 = vadd.f32 %v4422_v19, %v4037_v46  ;;  %v13951_v41 = vld [vmem:[#allocation94_spill] sm:$0xff] }
 0x416   :  { %vm2521_vm15 = vmor %vm1817_vm8, %vm2265_vm0  ;;  %4700 = vst [vmem:[#allocation2 + $0x48] sm:$0xff] %v4418_v37  ;;  %v13959_v37 = vld [vmem:[#allocation55_spill] sm:$0xff] }
 0x417   :  { %vm3225_vm4 = vmor %vm2521_vm15, %vm2969_vm13  ;;  %vm2270_vm13 = vcmp.eq.s32.totalorder %v11269_v57, %v6682_v22  ;;  %4701 = vst [vmem:[#allocation2 + $0x50] sm:$0xff] %v4423_v16 }
 0x418   :  { %v4907_v45 = vsel %vm3225_vm4, 1.0, %v5392_v43  ;;  %vm1115_vm6 = vmor %vm411_vm3, %vm859_vm9  ;;  %vm2974_vm9 = vcmp.eq.s32.totalorder %v2748_v36, %v6682_v22  ;;  %vm1568_vm3 = vcmp.eq.s32.totalorder %v13940_v55, %v6687_v21 }
 0x419   :  { %4156 = vmatmul.mubr.f32.gmra.mrb[68].mxu1 %v4907_v45  ;;  %vm1819_vm11 = vmor %vm1115_vm6, %vm1563_vm5  ;;  %vm864_vm5 = vcmp.eq.s32.totalorder %v13939_v44, %v6687_v21  ;;  %vm416_vm6 = vcmp.eq.s32.totalorder %v13941_v60, %v6687_v21  ;;  %v13952_v45 = vld [vmem:[#allocation138_spill] sm:$0xff] }
 0x41a   :  { %vm2523_vm1 = vmor %vm1819_vm11, %vm2267_vm2 }
 0x41b   :  { %vm3227_vm0 = vmor %vm2523_vm1, %vm2971_vm7  ;;  %vm2272_vm7 = vcmp.eq.s32.totalorder %v11269_v57, %v6687_v21 }
 0x41c   :  { %v4909_v63 = vsel %vm3227_vm0, 1.0, %v5392_v43  ;;  %vm1118_vm8 = vmor %vm414_vm14, %vm862_vm12  ;;  %vm2976_vm12 = vcmp.eq.s32.totalorder %v2748_v36, %v6687_v21  ;;  %vm1565_vm14 = vcmp.eq.s32.totalorder %v13940_v55, %v6671_v26 }
 0x41d   :  { %4541 = vmatmul.mubr.f32.gmra.mrb[68].mxu0 %v4909_v63  ;;  %vm1822_vm15 = vmor %vm1118_vm8, %vm1566_vm10  ;;  %vm861_vm10 = vcmp.eq.s32.totalorder %v13939_v44, %v6671_v26  ;;  %vm413_vm8 = vcmp.eq.s32.totalorder %v13941_v60, %v6671_v26 }
 0x41e   :  { %vm2526_vm4 = vmor %vm1822_vm15, %vm2270_vm13 }
 0x41f   :  { %vm3230_vm2 = vmor %vm2526_vm4, %vm2974_vm9  ;;  %vm2269_vm9 = vcmp.eq.s32.totalorder %v11269_v57, %v6671_v26 }
 0x420   :  { %v4912_v6 = vsel %vm3230_vm2, 1.0, %v5392_v43  ;;  %vm1120_vm11 = vmor %vm416_vm6, %vm864_vm5  ;;  %vm2973_vm5 = vcmp.eq.s32.totalorder %v2748_v36, %v6671_v26  ;;  %vm1567_vm6 = vcmp.eq.s32.totalorder %v13940_v55, %v6699_v52  ;;  %v4042_v55 = vpop.f32.mrb[22].mxu1 }
 0x421   :  { %4160 = vmatprep.mubr.f32.mxu1 %v4912_v6  ;;  %vm1824_vm1 = vmor %vm1120_vm11, %vm1568_vm3  ;;  %vm863_vm3 = vcmp.eq.s32.totalorder %v13939_v44, %v6699_v52  ;;  %vm415_vm11 = vcmp.eq.s32.totalorder %v13941_v60, %v6699_v52  ;;  %v4427_v60 = vpop.f32.mrb[22].mxu0  ;;  %v4044_v63 = vpop.f32.mrb[23].mxu1 }
 0x422   :  { %vm2528_vm0 = vmor %vm1824_vm1, %vm2272_vm7  ;;  %v4428_v30 = vadd.f32 %v4427_v60, %v4042_v55  ;;  %v4429_v11 = vpop.f32.mrb[23].mxu0  ;;  %v4047_v54 = vpop.f32.mrb[24].mxu1  ;;  %v13965_v55 = vld [vmem:[#allocation57_spill] sm:$0xff] }
 0x423   :  { %vm3232_vm13 = vmor %vm2528_vm0, %vm2976_vm12  ;;  %vm2271_vm12 = vcmp.eq.s32.totalorder %v11269_v57, %v6699_v52  ;;  %v11455_v57 = vpop.permute.xlu1 %2759  ;;  %v4049_v34 = vpop.f32.mrb[25].mxu1 }
 0x424   :  { %v4914_v59 = vsel %vm3232_vm13, 1.0, %v5392_v43  ;;  %vm1117_vm15 = vmor %vm413_vm8, %vm861_vm10  ;;  %vm2975_vm10 = vcmp.eq.s32.totalorder %v2748_v36, %v6699_v52  ;;  %vm1570_vm8 = vcmp.eq.s32.totalorder %v13943_v1, %v6682_v22  ;;  %v13953_v36 = vld [vmem:[#allocation53_spill] sm:$0xff]  ;;  %4702 = vst [vmem:[#allocation2 + $0x58] sm:$0xff] %v4428_v30  ;;  %v4432_v6 = vpop.f32.mrb[24].mxu0  ;;  %v13966_v34 = vld [vmem:[#allocation99_spill] sm:$0xff] }
 0x425   :  { %4545 = vmatprep.mubr.f32.mxu0 %v4914_v59  ;;  %vm1821_vm4 = vmor %vm1117_vm15, %vm1565_vm14  ;;  %vm866_vm14 = vcmp.eq.s32.totalorder %v13942_v28, %v6682_v22  ;;  %vm418_vm15 = vcmp.eq.s32.totalorder %v13944_v5, %v6682_v22  ;;  %v4433_v59 = vadd.f32 %v4432_v6, %v4047_v54  ;;  %v13967_v6 = vld [vmem:[#allocation141_spill] sm:$0xff] }
 0x426   :  { %vm2525_vm2 = vmor %vm1821_vm4, %vm2269_vm9 }
 0x427   :  { %vm3229_vm7 = vmor %vm2525_vm2, %vm2973_vm5  ;;  %vm2274_vm5 = vcmp.eq.s32.totalorder %v11325_v12, %v6682_v22  ;;  %4703 = vst [vmem:[#allocation2 + $0x60] sm:$0xff] %v4433_v59  ;;  %v13968_v59 = vld [vmem:[#allocation60_spill] sm:$0xff] }
 0x428   :  { %v4911_v32 = vsel %vm3229_vm7, 1.0, %v5392_v43  ;;  %vm1119_vm1 = vmor %vm415_vm11, %vm863_vm3  ;;  %vm2978_vm3 = vcmp.eq.s32.totalorder %v11329_v62, %v6682_v22  ;;  %vm1572_vm11 = vcmp.eq.s32.totalorder %v13943_v1, %v6687_v21 }
 0x429   :  { %4161 = vmatmul.mubr.f32.gmra.mrb[70].mxu1 %v4911_v32  ;;  %vm1823_vm0 = vmor %vm1119_vm1, %vm1567_vm6  ;;  %vm868_vm6 = vcmp.eq.s32.totalorder %v13942_v28, %v6687_v21  ;;  %vm420_vm1 = vcmp.eq.s32.totalorder %v13944_v5, %v6687_v21 }
 0x42a   :  { %vm2527_vm13 = vmor %vm1823_vm0, %vm2271_vm12 }
 0x42b   :  { %vm3231_vm9 = vmor %vm2527_vm13, %vm2975_vm10  ;;  %vm2276_vm10 = vcmp.eq.s32.totalorder %v11325_v12, %v6687_v21 }
 0x42c   :  { %v4913_v35 = vsel %vm3231_vm9, 1.0, %v5392_v43  ;;  %vm1122_vm4 = vmor %vm418_vm15, %vm866_vm14  ;;  %vm2980_vm14 = vcmp.eq.s32.totalorder %v11329_v62, %v6687_v21  ;;  %vm1569_vm15 = vcmp.eq.s32.totalorder %v13943_v1, %v6671_v26 }
 0x42d   :  { %4546 = vmatmul.mubr.f32.gmra.mrb[70].mxu0 %v4913_v35  ;;  %vm1826_vm2 = vmor %vm1122_vm4, %vm1570_vm8  ;;  %vm865_vm8 = vcmp.eq.s32.totalorder %v13942_v28, %v6671_v26  ;;  %vm417_vm4 = vcmp.eq.s32.totalorder %v13944_v5, %v6671_v26  ;;  %v2763_v35 = vpop.permute.xlu0 %2762 }
 0x42e   :  { %vm2530_vm7 = vmor %vm1826_vm2, %vm2274_vm5 }
 0x42f   :  { %vm3234_vm12 = vmor %vm2530_vm7, %vm2978_vm3  ;;  %vm2273_vm3 = vcmp.eq.s32.totalorder %v11325_v12, %v6671_v26 }
 0x430   :  { %v4916_v4 = vsel %vm3234_vm12, 1.0, %v5392_v43  ;;  %vm1124_vm0 = vmor %vm420_vm1, %vm868_vm6  ;;  %vm2977_vm6 = vcmp.eq.s32.totalorder %v11329_v62, %v6671_v26  ;;  %vm1571_vm1 = vcmp.eq.s32.totalorder %v13943_v1, %v6699_v52  ;;  %v13954_v1 = vld [vmem:[#allocation95_spill] sm:$0xff] }
 0x431   :  { %4165 = vmatprep.mubr.f32.mxu1 %v4916_v4  ;;  %vm1828_vm13 = vmor %vm1124_vm0, %vm1572_vm11  ;;  %vm867_vm11 = vcmp.eq.s32.totalorder %v13942_v28, %v6699_v52  ;;  %vm419_vm0 = vcmp.eq.s32.totalorder %v13944_v5, %v6699_v52  ;;  %v13955_v5 = vld [vmem:[#allocation137_spill] sm:$0xff] }
 0x432   :  { %vm2532_vm9 = vmor %vm1828_vm13, %vm2276_vm10 }
 0x433   :  { %vm3236_vm5 = vmor %vm2532_vm9, %vm2980_vm14  ;;  %vm2275_vm14 = vcmp.eq.s32.totalorder %v11325_v12, %v6699_v52  ;;  %v4434_v12 = vpop.f32.mrb[25].mxu0 }
 0x434   :  { %v4918_v20 = vsel %vm3236_vm5, 1.0, %v5392_v43  ;;  %vm1121_vm2 = vmor %vm417_vm4, %vm865_vm8  ;;  %vm2979_vm8 = vcmp.eq.s32.totalorder %v11329_v62, %v6699_v52  ;;  %vm1574_vm4 = vcmp.eq.s32.totalorder %v13946_v56, %v6682_v22  ;;  %v2059_v62 = vpop.permute.xlu1 %2058 }
 0x435   :  { %4550 = vmatprep.mubr.f32.mxu0 %v4918_v20  ;;  %vm1825_vm7 = vmor %vm1121_vm2, %vm1569_vm15  ;;  %vm870_vm15 = vcmp.eq.s32.totalorder %v13945_v25, %v6682_v22  ;;  %vm422_vm2 = vcmp.eq.s32.totalorder %v13947_v3, %v6682_v22  ;;  %v4052_v20 = vpop.f32.mrb[26].mxu1 }
 0x436   :  { %vm2529_vm12 = vmor %vm1825_vm7, %vm2273_vm3 }
 0x437   :  { %vm3233_vm10 = vmor %vm2529_vm12, %vm2977_vm6  ;;  %vm2278_vm6 = vcmp.eq.s32.totalorder %v2050_v14, %v6682_v22 }
 0x438   :  { %v4915_v58 = vsel %vm3233_vm10, 1.0, %v5392_v43  ;;  %vm1123_vm13 = vmor %vm419_vm0, %vm867_vm11  ;;  %vm2982_vm11 = vcmp.eq.s32.totalorder %v2754_v10, %v6682_v22  ;;  %vm1576_vm0 = vcmp.eq.s32.totalorder %v13946_v56, %v6687_v21  ;;  %v11523_v17 = vpop.permute.xlu1 %2061 }
 0x439   :  { %4166 = vmatmul.mubr.f32.gmra.mrb[72].mxu1 %v4915_v58  ;;  %vm1827_vm9 = vmor %vm1123_vm13, %vm1571_vm1  ;;  %vm872_vm1 = vcmp.eq.s32.totalorder %v13945_v25, %v6687_v21  ;;  %vm424_vm13 = vcmp.eq.s32.totalorder %v13947_v3, %v6687_v21  ;;  %v4054_v58 = vpop.f32.mrb[27].mxu1 }
 0x43a   :  { %vm2531_vm5 = vmor %vm1827_vm9, %vm2275_vm14 }
 0x43b   :  { %vm3235_vm3 = vmor %vm2531_vm5, %vm2979_vm8  ;;  %vm2280_vm8 = vcmp.eq.s32.totalorder %v2050_v14, %v6687_v21 }
 0x43c   :  { %v4917_v48 = vsel %vm3235_vm3, 1.0, %v5392_v43  ;;  %vm1126_vm7 = vmor %vm422_vm2, %vm870_vm15  ;;  %vm2984_vm15 = vcmp.eq.s32.totalorder %v2754_v10, %v6687_v21  ;;  %vm1573_vm2 = vcmp.eq.s32.totalorder %v13946_v56, %v6671_v26  ;;  %v2766_v4 = vpop.permute.xlu1 %2765 }
 0x43d   :  { %4551 = vmatmul.mubr.f32.gmra.mrb[72].mxu0 %v4917_v48  ;;  %vm1830_vm12 = vmor %vm1126_vm7, %vm1574_vm4  ;;  %vm869_vm4 = vcmp.eq.s32.totalorder %v13945_v25, %v6671_v26  ;;  %vm421_vm7 = vcmp.eq.s32.totalorder %v13947_v3, %v6671_v26 }
 0x43e   :  { %vm2534_vm10 = vmor %vm1830_vm12, %vm2278_vm6 }
 0x43f   :  { %vm3238_vm14 = vmor %vm2534_vm10, %vm2982_vm11  ;;  %vm2277_vm11 = vcmp.eq.s32.totalorder %v2050_v14, %v6671_v26 }
 0x440   :  { %v4920_v40 = vsel %vm3238_vm14, 1.0, %v5392_v43  ;;  %vm1128_vm9 = vmor %vm424_vm13, %vm872_vm1  ;;  %vm2981_vm1 = vcmp.eq.s32.totalorder %v2754_v10, %v6671_v26  ;;  %vm1575_vm13 = vcmp.eq.s32.totalorder %v13946_v56, %v6699_v52 }
 0x441   :  { %4170 = vmatprep.mubr.f32.mxu1 %v4920_v40  ;;  %vm1832_vm5 = vmor %vm1128_vm9, %vm1576_vm0  ;;  %vm871_vm0 = vcmp.eq.s32.totalorder %v13945_v25, %v6699_v52  ;;  %vm423_vm9 = vcmp.eq.s32.totalorder %v13947_v3, %v6699_v52 }
 0x442   :  { %vm2536_vm3 = vmor %vm1832_vm5, %vm2280_vm8 }
 0x443   :  { %vm3240_vm6 = vmor %vm2536_vm3, %vm2984_vm15  ;;  %vm2279_vm15 = vcmp.eq.s32.totalorder %v2050_v14, %v6699_v52 }
 0x444   :  { %v4922_v47 = vsel %vm3240_vm6, 1.0, %v5392_v43  ;;  %vm1125_vm12 = vmor %vm421_vm7, %vm869_vm4  ;;  %vm2983_vm4 = vcmp.eq.s32.totalorder %v2754_v10, %v6699_v52  ;;  %vm1578_vm7 = vcmp.eq.s32.totalorder %v13949_v53, %v6682_v22  ;;  %v11561_v10 = vpop.permute.xlu0 %2771 }
 0x445   :  { %4555 = vmatprep.mubr.f32.mxu0 %v4922_v47  ;;  %vm1829_vm10 = vmor %vm1125_vm12, %vm1573_vm2  ;;  %vm874_vm2 = vcmp.eq.s32.totalorder %v13948_v33, %v6682_v22  ;;  %vm426_vm12 = vcmp.eq.s32.totalorder %v13950_v0, %v6682_v22  ;;  %v13960_v47 = vld [vmem:[#allocation97_spill] sm:$0xff] }
 0x446   :  { %vm2533_vm14 = vmor %vm1829_vm10, %vm2277_vm11 }
 0x447   :  { %vm3237_vm8 = vmor %vm2533_vm14, %vm2981_vm1  ;;  %vm2282_vm1 = vcmp.eq.s32.totalorder %v11399_v29, %v6682_v22 }
 0x448   :  { %v4919_v13 = vsel %vm3237_vm8, 1.0, %v5392_v43  ;;  %vm1127_vm5 = vmor %vm423_vm9, %vm871_vm0  ;;  %vm2986_vm0 = vcmp.eq.s32.totalorder %v2757_v18, %v6682_v22  ;;  %vm1580_vm9 = vcmp.eq.s32.totalorder %v13949_v53, %v6687_v21  ;;  %v11579_v48 = vpop.permute.xlu0 %2064 }
 0x449   :  { %4171 = vmatmul.mubr.f32.gmra.mrb[74].mxu1 %v4919_v13  ;;  %vm1831_vm3 = vmor %vm1127_vm5, %vm1575_vm13  ;;  %vm876_vm13 = vcmp.eq.s32.totalorder %v13948_v33, %v6687_v21  ;;  %vm428_vm5 = vcmp.eq.s32.totalorder %v13950_v0, %v6687_v21  ;;  %v13961_v13 = vld [vmem:[#allocation139_spill] sm:$0xff] }
 0x44a   :  { %vm2535_vm6 = vmor %vm1831_vm3, %vm2279_vm15 }
 0x44b   :  { %vm3239_vm11 = vmor %vm2535_vm6, %vm2983_vm4  ;;  %vm2284_vm4 = vcmp.eq.s32.totalorder %v11399_v29, %v6687_v21 }
 0x44c   :  { %v4921_v2 = vsel %vm3239_vm11, 1.0, %v5392_v43  ;;  %vm1130_vm10 = vmor %vm426_vm12, %vm874_vm2  ;;  %vm2988_vm2 = vcmp.eq.s32.totalorder %v2757_v18, %v6687_v21  ;;  %vm1577_vm12 = vcmp.eq.s32.totalorder %v13949_v53, %v6671_v26 }
 0x44d   :  { %4556 = vmatmul.mubr.f32.gmra.mrb[74].mxu0 %v4921_v2  ;;  %vm1834_vm14 = vmor %vm1130_vm10, %vm1578_vm7  ;;  %vm873_vm7 = vcmp.eq.s32.totalorder %v13948_v33, %v6671_v26  ;;  %vm425_vm10 = vcmp.eq.s32.totalorder %v13950_v0, %v6671_v26 }
 0x44e   :  { %vm2538_vm8 = vmor %vm1834_vm14, %vm2282_vm1 }
 0x44f   :  { %vm3242_vm15 = vmor %vm2538_vm8, %vm2986_vm0  ;;  %vm2281_vm0 = vcmp.eq.s32.totalorder %v11399_v29, %v6671_v26 }
 0x450   :  { %v4924_v8 = vsel %vm3242_vm15, 1.0, %v5392_v43  ;;  %vm1132_vm3 = vmor %vm428_vm5, %vm876_vm13  ;;  %vm2985_vm13 = vcmp.eq.s32.totalorder %v2757_v18, %v6671_v26  ;;  %vm1579_vm5 = vcmp.eq.s32.totalorder %v13949_v53, %v6699_v52  ;;  %v4057_v53 = vpop.f32.mrb[28].mxu1 }
 0x451   :  { %4175 = vmatprep.mubr.f32.mxu1 %v4924_v8  ;;  %vm1836_vm6 = vmor %vm1132_vm3, %vm1580_vm9  ;;  %vm875_vm9 = vcmp.eq.s32.totalorder %v13948_v33, %v6699_v52  ;;  %vm427_vm3 = vcmp.eq.s32.totalorder %v13950_v0, %v6699_v52  ;;  %v4059_v2 = vpop.f32.mrb[29].mxu1 }
 0x452   :  { %vm2540_vm11 = vmor %vm1836_vm6, %vm2284_vm4  ;;  %v4062_v16 = vpop.f32.mrb[30].mxu1 }
 0x453   :  { %vm3244_vm1 = vmor %vm2540_vm11, %vm2988_vm2  ;;  %vm2283_vm2 = vcmp.eq.s32.totalorder %v11399_v29, %v6699_v52  ;;  %v11583_v29 = vpop.permute.xlu1 %2768  ;;  %v4064_v24 = vpop.f32.mrb[31].mxu1 }
 0x454   :  { %v4926_v42 = vsel %vm3244_vm1, 1.0, %v5392_v43  ;;  %vm1129_vm14 = vmor %vm425_vm10, %vm873_vm7  ;;  %vm2987_vm7 = vcmp.eq.s32.totalorder %v2757_v18, %v6699_v52  ;;  %vm1582_vm10 = vcmp.eq.s32.totalorder %v13952_v45, %v6682_v22  ;;  %v13962_v18 = vld [vmem:[#allocation58_spill] sm:$0xff] }
 0x455   :  { %4560 = vmatprep.mubr.f32.mxu0 %v4926_v42  ;;  %vm1833_vm8 = vmor %vm1129_vm14, %vm1577_vm12  ;;  %vm878_vm12 = vcmp.eq.s32.totalorder %v13951_v41, %v6682_v22  ;;  %vm430_vm14 = vcmp.eq.s32.totalorder %v13953_v36, %v6682_v22  ;;  %v13975_v24 = vld [vmem:[#allocation102_spill] sm:$0xff] }
 0x456   :  { %vm2537_vm15 = vmor %vm1833_vm8, %vm2281_vm0 }
 0x457   :  { %vm3241_vm4 = vmor %vm2537_vm15, %vm2985_vm13  ;;  %vm2286_vm13 = vcmp.eq.s32.totalorder %v11368_v9, %v6682_v22 }
 0x458   :  { %v4923_v31 = vsel %vm3241_vm4, 1.0, %v5392_v43  ;;  %vm1131_vm6 = vmor %vm427_vm3, %vm875_vm9  ;;  %vm2990_vm9 = vcmp.eq.s32.totalorder %v11455_v57, %v6682_v22  ;;  %vm1584_vm3 = vcmp.eq.s32.totalorder %v13952_v45, %v6687_v21 }
 0x459   :  { %4176 = vmatmul.mubr.f32.gmra.mrb[76].mxu1 %v4923_v31  ;;  %vm1835_vm11 = vmor %vm1131_vm6, %vm1579_vm5  ;;  %vm880_vm5 = vcmp.eq.s32.totalorder %v13951_v41, %v6687_v21  ;;  %vm432_vm6 = vcmp.eq.s32.totalorder %v13953_v36, %v6687_v21 }
 0x45a   :  { %vm2539_vm1 = vmor %vm1835_vm11, %vm2283_vm2 }
 0x45b   :  { %vm3243_vm0 = vmor %vm2539_vm1, %vm2987_vm7  ;;  %vm2288_vm7 = vcmp.eq.s32.totalorder %v11368_v9, %v6687_v21 }
 0x45c   :  { %v4925_v44 = vsel %vm3243_vm0, 1.0, %v5392_v43  ;;  %vm1134_vm8 = vmor %vm430_vm14, %vm878_vm12  ;;  %vm2992_vm12 = vcmp.eq.s32.totalorder %v11455_v57, %v6687_v21  ;;  %vm1581_vm14 = vcmp.eq.s32.totalorder %v13952_v45, %v6671_v26 }
 0x45d   :  { %4561 = vmatmul.mubr.f32.gmra.mrb[76].mxu0 %v4925_v44  ;;  %vm1838_vm15 = vmor %vm1134_vm8, %vm1582_vm10  ;;  %vm877_vm10 = vcmp.eq.s32.totalorder %v13951_v41, %v6671_v26  ;;  %vm429_vm8 = vcmp.eq.s32.totalorder %v13953_v36, %v6671_v26  ;;  %v13964_v44 = vld [vmem:[#allocation142_spill] sm:$0xff] }
 0x45e   :  { %vm2542_vm4 = vmor %vm1838_vm15, %vm2286_vm13 }
 0x45f   :  { %vm3246_vm2 = vmor %vm2542_vm4, %vm2990_vm9  ;;  %vm2285_vm9 = vcmp.eq.s32.totalorder %v11368_v9, %v6671_v26 }
 0x460   :  { %v4928_v15 = vsel %vm3246_vm2, 1.0, %v5392_v43  ;;  %vm1136_vm11 = vmor %vm432_vm6, %vm880_vm5  ;;  %vm2989_vm5 = vcmp.eq.s32.totalorder %v11455_v57, %v6671_v26  ;;  %vm1583_vm6 = vcmp.eq.s32.totalorder %v13952_v45, %v6699_v52 }
 0x461   :  { %4180 = vmatprep.mubr.f32.mxu1 %v4928_v15  ;;  %vm1840_vm1 = vmor %vm1136_vm11, %vm1584_vm3  ;;  %vm879_vm3 = vcmp.eq.s32.totalorder %v13951_v41, %v6699_v52  ;;  %vm431_vm11 = vcmp.eq.s32.totalorder %v13953_v36, %v6699_v52  ;;  %v2068_v41 = vpop.permute.xlu1 %2067  ;;  %v13963_v36 = vld [vmem:[#allocation98_spill] sm:$0xff] }
 0x462   :  { %vm2544_vm0 = vmor %vm1840_vm1, %vm2288_vm7 }
 0x463   :  { %vm3248_vm13 = vmor %vm2544_vm0, %vm2992_vm12  ;;  %vm2287_vm12 = vcmp.eq.s32.totalorder %v11368_v9, %v6699_v52  ;;  %v4437_v9 = vpop.f32.mrb[26].mxu0 }
 0x464   :  { %v4930_v32 = vsel %vm3248_vm13, 1.0, %v5392_v43  ;;  %vm1133_vm15 = vmor %vm429_vm8, %vm877_vm10  ;;  %vm2991_vm10 = vcmp.eq.s32.totalorder %v11455_v57, %v6699_v52  ;;  %vm1586_vm8 = vcmp.eq.s32.totalorder %v13955_v5, %v6682_v22  ;;  %v4438_v14 = vadd.f32 %v4437_v9, %v4052_v20  ;;  %v4439_v25 = vpop.f32.mrb[27].mxu0 }
 0x465   :  { %4565 = vmatprep.mubr.f32.mxu0 %v4930_v32  ;;  %vm1837_vm4 = vmor %vm1133_vm15, %vm1581_vm14  ;;  %vm882_vm14 = vcmp.eq.s32.totalorder %v13954_v1, %v6682_v22  ;;  %vm434_vm15 = vcmp.eq.s32.totalorder %v13956_v50, %v6682_v22  ;;  %v4442_v0 = vpop.f32.mrb[28].mxu0  ;;  %v11653_v30 = vpop.permute.xlu1 %2070 }
 0x466   :  { %vm2541_vm2 = vmor %vm1837_vm4, %vm2285_vm9  ;;  %4704 = vst [vmem:[#allocation2 + $0x68] sm:$0xff] %v4438_v14  ;;  %v4443_v46 = vadd.f32 %v4442_v0, %v4057_v53  ;;  %v4444_v19 = vpop.f32.mrb[29].mxu0  ;;  %v4067_v32 = vpop.f32.mrb[32].mxu1  ;;  %v13974_v53 = vld [vmem:[#allocation62_spill] sm:$0xff] }
 0x467   :  { %vm3245_vm7 = vmor %vm2541_vm2, %vm2989_vm5  ;;  %vm2290_vm5 = vcmp.eq.s32.totalorder %v2059_v62, %v6682_v22  ;;  %v4447_v8 = vpop.f32.mrb[30].mxu0 }
 0x468   :  { %v4927_v28 = vsel %vm3245_vm7, 1.0, %v5392_v43  ;;  %vm1135_vm1 = vmor %vm431_vm11, %vm879_vm3  ;;  %vm2994_vm3 = vcmp.eq.s32.totalorder %v2763_v35, %v6682_v22  ;;  %vm1588_vm11 = vcmp.eq.s32.totalorder %v13955_v5, %v6687_v21  ;;  %4705 = vst [vmem:[#allocation2 + $0x70] sm:$0xff] %v4443_v46  ;;  %v4448_v42 = vadd.f32 %v4447_v8, %v4062_v16  ;;  %v4449_v31 = vpop.f32.mrb[31].mxu0  ;;  %v13976_v8 = vld [vmem:[#allocation146_spill] sm:$0xff] }
 0x469   :  { %4181 = vmatmul.mubr.f32.gmra.mrb[78].mxu1 %v4927_v28  ;;  %vm1839_vm0 = vmor %vm1135_vm1, %vm1583_vm6  ;;  %vm884_vm6 = vcmp.eq.s32.totalorder %v13954_v1, %v6687_v21  ;;  %vm436_vm1 = vcmp.eq.s32.totalorder %v13956_v50, %v6687_v21  ;;  %v2775_v15 = vpop.permute.xlu1 %2774 }
 0x46a   :  { %vm2543_vm13 = vmor %vm1839_vm0, %vm2287_vm12  ;;  %4706 = vst [vmem:[#allocation2 + $0x78] sm:$0xff] %v4448_v42  ;;  %v13977_v42 = vld [vmem:[#allocation61_spill] sm:$0xff] }
 0x46b   :  { %vm3247_vm9 = vmor %vm2543_vm13, %vm2991_vm10  ;;  %vm2292_vm10 = vcmp.eq.s32.totalorder %v2059_v62, %v6687_v21 }
 0x46c   :  { %v4929_v38 = vsel %vm3247_vm9, 1.0, %v5392_v43  ;;  %vm1138_vm4 = vmor %vm434_vm15, %vm882_vm14  ;;  %vm2996_vm14 = vcmp.eq.s32.totalorder %v2763_v35, %v6687_v21  ;;  %vm1585_vm15 = vcmp.eq.s32.totalorder %v13955_v5, %v6671_v26 }
 0x46d   :  { %4566 = vmatmul.mubr.f32.gmra.mrb[78].mxu0 %v4929_v38  ;;  %vm1842_vm2 = vmor %vm1138_vm4, %vm1586_vm8  ;;  %vm881_vm8 = vcmp.eq.s32.totalorder %v13954_v1, %v6671_v26  ;;  %vm433_vm4 = vcmp.eq.s32.totalorder %v13956_v50, %v6671_v26  ;;  %v11709_v38 = vpop.permute.xlu0 %2073 }
 0x46e   :  { %vm2546_vm7 = vmor %vm1842_vm2, %vm2290_vm5 }
 0x46f   :  { %vm3250_vm12 = vmor %vm2546_vm7, %vm2994_vm3  ;;  %vm2289_vm3 = vcmp.eq.s32.totalorder %v2059_v62, %v6671_v26 }
 0x470   :  { %v4932_v27 = vsel %vm3250_vm12, 1.0, %v5392_v43  ;;  %vm1140_vm0 = vmor %vm436_vm1, %vm884_vm6  ;;  %vm2993_vm6 = vcmp.eq.s32.totalorder %v2763_v35, %v6671_v26  ;;  %vm1587_vm1 = vcmp.eq.s32.totalorder %v13955_v5, %v6699_v52 }
 0x471   :  { %4185 = vmatprep.mubr.f32.mxu1 %v4932_v27  ;;  %vm1844_vm13 = vmor %vm1140_vm0, %vm1588_vm11  ;;  %vm883_vm11 = vcmp.eq.s32.totalorder %v13954_v1, %v6699_v52  ;;  %vm435_vm0 = vcmp.eq.s32.totalorder %v13956_v50, %v6699_v52  ;;  %v4069_v1 = vpop.f32.mrb[33].mxu1 }
 0x472   :  { %vm2548_vm9 = vmor %vm1844_vm13, %vm2292_vm10 }
 0x473   :  { %vm3252_vm5 = vmor %vm2548_vm9, %vm2996_vm14  ;;  %vm2291_vm14 = vcmp.eq.s32.totalorder %v2059_v62, %v6699_v52  ;;  %v4452_v62 = vpop.f32.mrb[32].mxu0 }
 0x474   :  { %v4934_v51 = vsel %vm3252_vm5, 1.0, %v5392_v43  ;;  %vm1137_vm2 = vmor %vm433_vm4, %vm881_vm8  ;;  %vm2995_vm8 = vcmp.eq.s32.totalorder %v2763_v35, %v6699_v52  ;;  %vm1590_vm4 = vcmp.eq.s32.totalorder %v13958_v49, %v6682_v22  ;;  %v4453_v28 = vadd.f32 %v4452_v62, %v4067_v32  ;;  %v4454_v5 = vpop.f32.mrb[33].mxu0 }
 0x475   :  { %4570 = vmatprep.mubr.f32.mxu0 %v4934_v51  ;;  %vm1841_vm7 = vmor %vm1137_vm2, %vm1585_vm15  ;;  %vm886_vm15 = vcmp.eq.s32.totalorder %v13957_v23, %v6682_v22  ;;  %vm438_vm2 = vcmp.eq.s32.totalorder %v13959_v37, %v6682_v22  ;;  %v13969_v51 = vld [vmem:[#allocation100_spill] sm:$0xff] }
 0x476   :  { %vm2545_vm12 = vmor %vm1841_vm7, %vm2289_vm3  ;;  %4707 = vst [vmem:[#allocation2 + $0x80] sm:$0xff] %v4453_v28 }
 0x477   :  { %vm3249_vm10 = vmor %vm2545_vm12, %vm2993_vm6  ;;  %vm2294_vm6 = vcmp.eq.s32.totalorder %v11523_v17, %v6682_v22 }
 0x478   :  { %v4931_v61 = vsel %vm3249_vm10, 1.0, %v5392_v43  ;;  %vm1139_vm13 = vmor %vm435_vm0, %vm883_vm11  ;;  %vm2998_vm11 = vcmp.eq.s32.totalorder %v2766_v4, %v6682_v22  ;;  %vm1592_vm0 = vcmp.eq.s32.totalorder %v13958_v49, %v6687_v21 }
 0x479   :  { %4186 = vmatmul.mubr.f32.gmra.mrb[80].mxu1 %v4931_v61  ;;  %vm1843_vm9 = vmor %vm1139_vm13, %vm1587_vm1  ;;  %vm888_vm1 = vcmp.eq.s32.totalorder %v13957_v23, %v6687_v21  ;;  %vm440_vm13 = vcmp.eq.s32.totalorder %v13959_v37, %v6687_v21  ;;  %v13970_v61 = vld [vmem:[#allocation144_spill] sm:$0xff] }
 0x47a   :  { %vm2547_vm5 = vmor %vm1843_vm9, %vm2291_vm14 }
 0x47b   :  { %vm3251_vm3 = vmor %vm2547_vm5, %vm2995_vm8  ;;  %vm2296_vm8 = vcmp.eq.s32.totalorder %v11523_v17, %v6687_v21 }
 0x47c   :  { %v4933_v39 = vsel %vm3251_vm3, 1.0, %v5392_v43  ;;  %vm1142_vm7 = vmor %vm438_vm2, %vm886_vm15  ;;  %vm3000_vm15 = vcmp.eq.s32.totalorder %v2766_v4, %v6687_v21  ;;  %vm1589_vm2 = vcmp.eq.s32.totalorder %v13958_v49, %v6671_v26 }
 0x47d   :  { %4571 = vmatmul.mubr.f32.gmra.mrb[80].mxu0 %v4933_v39  ;;  %vm1846_vm12 = vmor %vm1142_vm7, %vm1590_vm4  ;;  %vm885_vm4 = vcmp.eq.s32.totalorder %v13957_v23, %v6671_v26  ;;  %vm437_vm7 = vcmp.eq.s32.totalorder %v13959_v37, %v6671_v26 }
 0x47e   :  { %vm2550_vm10 = vmor %vm1846_vm12, %vm2294_vm6 }
 0x47f   :  { %vm3254_vm14 = vmor %vm2550_vm10, %vm2998_vm11  ;;  %vm2293_vm11 = vcmp.eq.s32.totalorder %v11523_v17, %v6671_v26 }
 0x480   :  { %v4936_v56 = vsel %vm3254_vm14, 1.0, %v5392_v43  ;;  %vm1144_vm9 = vmor %vm440_vm13, %vm888_vm1  ;;  %vm2997_vm1 = vcmp.eq.s32.totalorder %v2766_v4, %v6671_v26  ;;  %vm1591_vm13 = vcmp.eq.s32.totalorder %v13958_v49, %v6699_v52  ;;  %v4072_v49 = vpop.f32.mrb[34].mxu1 }
 0x481   :  { %4190 = vmatprep.mubr.f32.mxu1 %v4936_v56  ;;  %vm1848_vm5 = vmor %vm1144_vm9, %vm1592_vm0  ;;  %vm887_vm0 = vcmp.eq.s32.totalorder %v13957_v23, %v6699_v52  ;;  %vm439_vm9 = vcmp.eq.s32.totalorder %v13959_v37, %v6699_v52  ;;  %v4457_v37 = vpop.f32.mrb[34].mxu0  ;;  %v4074_v39 = vpop.f32.mrb[35].mxu1 }
 0x482   :  { %vm2552_vm3 = vmor %vm1848_vm5, %vm2296_vm8  ;;  %v4458_v20 = vadd.f32 %v4457_v37, %v4072_v49  ;;  %v4459_v9 = vpop.f32.mrb[35].mxu0  ;;  %v4077_v14 = vpop.f32.mrb[36].mxu1  ;;  %v13983_v49 = vld [vmem:[#allocation63_spill] sm:$0xff] }
 0x483   :  { %vm3256_vm6 = vmor %vm2552_vm3, %vm3000_vm15  ;;  %vm2295_vm15 = vcmp.eq.s32.totalorder %v11523_v17, %v6699_v52  ;;  %v11713_v17 = vpop.permute.xlu1 %2777  ;;  %v4079_v25 = vpop.f32.mrb[37].mxu1 }
 0x484   :  { %v4938_v3 = vsel %vm3256_vm6, 1.0, %v5392_v43  ;;  %vm1141_vm12 = vmor %vm437_vm7, %vm885_vm4  ;;  %vm2999_vm4 = vcmp.eq.s32.totalorder %v2766_v4, %v6699_v52  ;;  %vm1594_vm7 = vcmp.eq.s32.totalorder %v13961_v13, %v6682_v22  ;;  %v13971_v4 = vld [vmem:[#allocation59_spill] sm:$0xff]  ;;  %4708 = vst [vmem:[#allocation2 + $0x88] sm:$0xff] %v4458_v20  ;;  %v4462_v56 = vpop.f32.mrb[36].mxu0  ;;  %v13984_v25 = vld [vmem:[#allocation105_spill] sm:$0xff] }
 0x485   :  { %4575 = vmatprep.mubr.f32.mxu0 %v4938_v3  ;;  %vm1845_vm10 = vmor %vm1141_vm12, %vm1589_vm2  ;;  %vm890_vm2 = vcmp.eq.s32.totalorder %v13960_v47, %v6682_v22  ;;  %vm442_vm12 = vcmp.eq.s32.totalorder %v13962_v18, %v6682_v22  ;;  %v4464_v3 = vpop.f32.mrb[37].mxu0 }
 0x486   :  { %vm2549_vm14 = vmor %vm1845_vm10, %vm2293_vm11 }
 0x487   :  { %vm3253_vm8 = vmor %vm2549_vm14, %vm2997_vm1  ;;  %vm2298_vm1 = vcmp.eq.s32.totalorder %v11579_v48, %v6682_v22 }
 0x488   :  { %v4935_v40 = vsel %vm3253_vm8, 1.0, %v5392_v43  ;;  %vm1143_vm5 = vmor %vm439_vm9, %vm887_vm0  ;;  %vm3002_vm0 = vcmp.eq.s32.totalorder %v11583_v29, %v6682_v22  ;;  %vm1596_vm9 = vcmp.eq.s32.totalorder %v13961_v13, %v6687_v21 }
 0x489   :  { %4191 = vmatmul.mubr.f32.gmra.mrb[82].mxu1 %v4935_v40  ;;  %vm1847_vm3 = vmor %vm1143_vm5, %vm1591_vm13  ;;  %vm892_vm13 = vcmp.eq.s32.totalorder %v13960_v47, %v6687_v21  ;;  %vm444_vm5 = vcmp.eq.s32.totalorder %v13962_v18, %v6687_v21  ;;  %v11752_v40 = vpop.permute.xlu0 %2082 }
 0x48a   :  { %vm2551_vm6 = vmor %vm1847_vm3, %vm2295_vm15 }
 0x48b   :  { %vm3255_vm11 = vmor %vm2551_vm6, %vm2999_vm4  ;;  %vm2300_vm4 = vcmp.eq.s32.totalorder %v11579_v48, %v6687_v21 }
 0x48c   :  { %v4937_v33 = vsel %vm3255_vm11, 1.0, %v5392_v43  ;;  %vm1146_vm10 = vmor %vm442_vm12, %vm890_vm2  ;;  %vm3004_vm2 = vcmp.eq.s32.totalorder %v11583_v29, %v6687_v21  ;;  %vm1593_vm12 = vcmp.eq.s32.totalorder %v13961_v13, %v6671_v26 }
 0x48d   :  { %4576 = vmatmul.mubr.f32.gmra.mrb[82].mxu0 %v4937_v33  ;;  %vm1850_vm14 = vmor %vm1146_vm10, %vm1594_vm7  ;;  %vm889_vm7 = vcmp.eq.s32.totalorder %v13960_v47, %v6671_v26  ;;  %vm441_vm10 = vcmp.eq.s32.totalorder %v13962_v18, %v6671_v26  ;;  %v2781_v33 = vpop.permute.xlu0 %2780 }
 0x48e   :  { %vm2554_vm8 = vmor %vm1850_vm14, %vm2298_vm1 }
 0x48f   :  { %vm3258_vm15 = vmor %vm2554_vm8, %vm3002_vm0  ;;  %vm2297_vm0 = vcmp.eq.s32.totalorder %v11579_v48, %v6671_v26 }
 0x490   :  { %v4940_v7 = vsel %vm3258_vm15, 1.0, %v5392_v43  ;;  %vm1148_vm3 = vmor %vm444_vm5, %vm892_vm13  ;;  %vm3001_vm13 = vcmp.eq.s32.totalorder %v11583_v29, %v6671_v26  ;;  %vm1595_vm5 = vcmp.eq.s32.totalorder %v13961_v13, %v6699_v52  ;;  %v13972_v13 = vld [vmem:[#allocation101_spill] sm:$0xff] }
 0x491   :  { %4195 = vmatprep.mubr.f32.mxu1 %v4940_v7  ;;  %vm1852_vm6 = vmor %vm1148_vm3, %vm1596_vm9  ;;  %vm891_vm9 = vcmp.eq.s32.totalorder %v13960_v47, %v6699_v52  ;;  %vm443_vm3 = vcmp.eq.s32.totalorder %v13962_v18, %v6699_v52  ;;  %v13973_v18 = vld [vmem:[#allocation143_spill] sm:$0xff] }
 0x492   :  { %vm2556_vm11 = vmor %vm1852_vm6, %vm2300_vm4 }
 0x493   :  { %vm3260_vm1 = vmor %vm2556_vm11, %vm3004_vm2  ;;  %vm2299_vm2 = vcmp.eq.s32.totalorder %v11579_v48, %v6699_v52 }
 0x494   :  { %v4942_v57 = vsel %vm3260_vm1, 1.0, %v5392_v43  ;;  %vm1145_vm14 = vmor %vm441_vm10, %vm889_vm7  ;;  %vm3003_vm7 = vcmp.eq.s32.totalorder %v11583_v29, %v6699_v52  ;;  %vm1598_vm10 = vcmp.eq.s32.totalorder %v13964_v44, %v6682_v22  ;;  %v2077_v29 = vpop.permute.xlu1 %2076 }
 0x495   :  { %4580 = vmatprep.mubr.f32.mxu0 %v4942_v57  ;;  %vm1849_vm8 = vmor %vm1145_vm14, %vm1593_vm12  ;;  %vm894_vm12 = vcmp.eq.s32.totalorder %v13963_v36, %v6682_v22  ;;  %vm446_vm14 = vcmp.eq.s32.totalorder %v13965_v55, %v6682_v22  ;;  %v4082_v57 = vpop.f32.mrb[38].mxu1 }
 0x496   :  { %vm2553_vm15 = vmor %vm1849_vm8, %vm2297_vm0 }
 0x497   :  { %vm3257_vm4 = vmor %vm2553_vm15, %vm3001_vm13  ;;  %vm2302_vm13 = vcmp.eq.s32.totalorder %v2068_v41, %v6682_v22 }
 0x498   :  { %v4939_v45 = vsel %vm3257_vm4, 1.0, %v5392_v43  ;;  %vm1147_vm6 = vmor %vm443_vm3, %vm891_vm9  ;;  %vm3006_vm9 = vcmp.eq.s32.totalorder %v11561_v10, %v6682_v22  ;;  %vm1600_vm3 = vcmp.eq.s32.totalorder %v13964_v44, %v6687_v21  ;;  %v11783_v46 = vpop.permute.xlu1 %2079 }
 0x499   :  { %4196 = vmatmul.mubr.f32.gmra.mrb[84].mxu1 %v4939_v45  ;;  %vm1851_vm11 = vmor %vm1147_vm6, %vm1595_vm5  ;;  %vm896_vm5 = vcmp.eq.s32.totalorder %v13963_v36, %v6687_v21  ;;  %vm448_vm6 = vcmp.eq.s32.totalorder %v13965_v55, %v6687_v21 }
 0x49a   :  { %vm2555_vm1 = vmor %vm1851_vm11, %vm2299_vm2 }
 0x49b   :  { %vm3259_vm0 = vmor %vm2555_vm1, %vm3003_vm7  ;;  %vm2304_vm7 = vcmp.eq.s32.totalorder %v2068_v41, %v6687_v21 }
 0x49c   :  { %v4941_v60 = vsel %vm3259_vm0, 1.0, %v5392_v43  ;;  %vm1150_vm8 = vmor %vm446_vm14, %vm894_vm12  ;;  %vm3008_vm12 = vcmp.eq.s32.totalorder %v11561_v10, %v6687_v21  ;;  %vm1597_vm14 = vcmp.eq.s32.totalorder %v13964_v44, %v6671_v26  ;;  %v2784_v7 = vpop.permute.xlu1 %2783 }
 0x49d   :  { %4581 = vmatmul.mubr.f32.gmra.mrb[84].mxu0 %v4941_v60  ;;  %vm1854_vm15 = vmor %vm1150_vm8, %vm1598_vm10  ;;  %vm893_vm10 = vcmp.eq.s32.totalorder %v13963_v36, %v6671_v26  ;;  %vm445_vm8 = vcmp.eq.s32.totalorder %v13965_v55, %v6671_v26 }
 0x49e   :  { %vm2558_vm4 = vmor %vm1854_vm15, %vm2302_vm13 }
 0x49f   :  { %vm3262_vm2 = vmor %vm2558_vm4, %vm3006_vm9  ;;  %vm2301_vm9 = vcmp.eq.s32.totalorder %v2068_v41, %v6671_v26 }
 0x4a0   :  { %v4944_v63 = vsel %vm3262_vm2, 1.0, %v5392_v43  ;;  %vm1152_vm11 = vmor %vm448_vm6, %vm896_vm5  ;;  %vm3005_vm5 = vcmp.eq.s32.totalorder %v11561_v10, %v6671_v26  ;;  %vm1599_vm6 = vcmp.eq.s32.totalorder %v13964_v44, %v6699_v52 }
 0x4a1   :  { %4200 = vmatprep.mubr.f32.mxu1 %v4944_v63  ;;  %vm1856_vm1 = vmor %vm1152_vm11, %vm1600_vm3  ;;  %vm895_vm3 = vcmp.eq.s32.totalorder %v13963_v36, %v6699_v52  ;;  %vm447_vm11 = vcmp.eq.s32.totalorder %v13965_v55, %v6699_v52  ;;  %v4084_v36 = vpop.f32.mrb[39].mxu1 }
 0x4a2   :  { %vm2560_vm0 = vmor %vm1856_vm1, %vm2304_vm7 }
 0x4a3   :  { %vm3264_vm13 = vmor %vm2560_vm0, %vm3008_vm12  ;;  %vm2303_vm12 = vcmp.eq.s32.totalorder %v2068_v41, %v6699_v52  ;;  %v4467_v41 = vpop.f32.mrb[38].mxu0 }
 0x4a4   :  { %v4946_v11 = vsel %vm3264_vm13, 1.0, %v5392_v43  ;;  %vm1149_vm15 = vmor %vm445_vm8, %vm893_vm10  ;;  %vm3007_vm10 = vcmp.eq.s32.totalorder %v11561_v10, %v6699_v52  ;;  %vm1602_vm8 = vcmp.eq.s32.totalorder %v13967_v6, %v6682_v22  ;;  %v4463_v10 = vadd.f32 %v4462_v56, %v4077_v14  ;;  %v4469_v44 = vpop.f32.mrb[39].mxu0  ;;  %v13985_v56 = vld [vmem:[#allocation147_spill] sm:$0xff] }
 0x4a5   :  { %4585 = vmatprep.mubr.f32.mxu0 %v4946_v11  ;;  %vm1853_vm4 = vmor %vm1149_vm15, %vm1597_vm14  ;;  %vm898_vm14 = vcmp.eq.s32.totalorder %v13966_v34, %v6682_v22  ;;  %vm450_vm15 = vcmp.eq.s32.totalorder %v13968_v59, %v6682_v22  ;;  %v4468_v45 = vadd.f32 %v4467_v41, %v4082_v57  ;;  %v13978_v11 = vld [vmem:[#allocation103_spill] sm:$0xff]  ;;  %v13988_v57 = vld [vmem:[#allocation150_spill] sm:$0xff] }
 0x4a6   :  { %vm2557_vm2 = vmor %vm1853_vm4, %vm2301_vm9  ;;  %4709 = vst [vmem:[#allocation2 + $0x90] sm:$0xff] %v4463_v10  ;;  %v13986_v10 = vld [vmem:[#allocation66_spill] sm:$0xff]  ;;  %v13989_v41 = vld [vmem:[#allocation65_spill] sm:$0xff] }
 0x4a7   :  { %vm3261_vm7 = vmor %vm2557_vm2, %vm3005_vm5  ;;  %vm2306_vm5 = vcmp.eq.s32.totalorder %v11653_v30, %v6682_v22  ;;  %4710 = vst [vmem:[#allocation2 + $0x98] sm:$0xff] %v4468_v45 }
 0x4a8   :  { %v4943_v54 = vsel %vm3261_vm7, 1.0, %v5392_v43  ;;  %vm1151_vm1 = vmor %vm447_vm11, %vm895_vm3  ;;  %vm3010_vm3 = vcmp.eq.s32.totalorder %v2775_v15, %v6682_v22  ;;  %vm1604_vm11 = vcmp.eq.s32.totalorder %v13967_v6, %v6687_v21 }
 0x4a9   :  { %4201 = vmatmul.mubr.f32.gmra.mrb[86].mxu1 %v4943_v54  ;;  %vm1855_vm0 = vmor %vm1151_vm1, %vm1599_vm6  ;;  %vm900_vm6 = vcmp.eq.s32.totalorder %v13966_v34, %v6687_v21  ;;  %vm452_vm1 = vcmp.eq.s32.totalorder %v13968_v59, %v6687_v21  ;;  %v13979_v54 = vld [vmem:[#allocation145_spill] sm:$0xff] }
 0x4aa   :  { %vm2559_vm13 = vmor %vm1855_vm0, %vm2303_vm12 }
 0x4ab   :  { %vm3263_vm9 = vmor %vm2559_vm13, %vm3007_vm10  ;;  %vm2308_vm10 = vcmp.eq.s32.totalorder %v11653_v30, %v6687_v21 }
 0x4ac   :  { %v4945_v12 = vsel %vm3263_vm9, 1.0, %v5392_v43  ;;  %vm1154_vm4 = vmor %vm450_vm15, %vm898_vm14  ;;  %vm3012_vm14 = vcmp.eq.s32.totalorder %v2775_v15, %v6687_v21  ;;  %vm1601_vm15 = vcmp.eq.s32.totalorder %v13967_v6, %v6671_v26 }
 0x4ad   :  { %4586 = vmatmul.mubr.f32.gmra.mrb[86].mxu0 %v4945_v12  ;;  %vm1858_vm2 = vmor %vm1154_vm4, %vm1602_vm8  ;;  %vm897_vm8 = vcmp.eq.s32.totalorder %v13966_v34, %v6671_v26  ;;  %vm449_vm4 = vcmp.eq.s32.totalorder %v13968_v59, %v6671_v26 }
 0x4ae   :  { %vm2562_vm7 = vmor %vm1858_vm2, %vm2306_vm5 }
 0x4af   :  { %vm3266_vm12 = vmor %vm2562_vm7, %vm3010_vm3  ;;  %vm2305_vm3 = vcmp.eq.s32.totalorder %v11653_v30, %v6671_v26 }
 0x4b0   :  { %v4948_v35 = vsel %vm3266_vm12, 1.0, %v5392_v43  ;;  %vm1156_vm0 = vmor %vm452_vm1, %vm900_vm6  ;;  %vm3009_vm6 = vcmp.eq.s32.totalorder %v2775_v15, %v6671_v26  ;;  %vm1603_vm1 = vcmp.eq.s32.totalorder %v13967_v6, %v6699_v52  ;;  %v4087_v6 = vpop.f32.mrb[40].mxu1 }
 0x4b1   :  { %4205 = vmatprep.mubr.f32.mxu1 %v4948_v35  ;;  %vm1860_vm13 = vmor %vm1156_vm0, %vm1604_vm11  ;;  %vm899_vm11 = vcmp.eq.s32.totalorder %v13966_v34, %v6699_v52  ;;  %vm451_vm0 = vcmp.eq.s32.totalorder %v13968_v59, %v6699_v52  ;;  %v4472_v59 = vpop.f32.mrb[40].mxu0  ;;  %v4089_v12 = vpop.f32.mrb[41].mxu1 }
 0x4b2   :  { %vm2564_vm9 = vmor %vm1860_vm13, %vm2308_vm10  ;;  %v4473_v32 = vadd.f32 %v4472_v59, %v4087_v6  ;;  %v4474_v62 = vpop.f32.mrb[41].mxu0  ;;  %v4092_v28 = vpop.f32.mrb[42].mxu1 }
 0x4b3   :  { %vm3268_vm5 = vmor %vm2564_vm9, %vm3012_vm14  ;;  %vm2307_vm14 = vcmp.eq.s32.totalorder %v11653_v30, %v6699_v52  ;;  %v11839_v30 = vpop.permute.xlu1 %2786  ;;  %v4094_v5 = vpop.f32.mrb[43].mxu1  ;;  %v13990_v62 = vld [vmem:[#allocation107_spill] sm:$0xff] }
 0x4b4   :  { %v4950_v50 = vsel %vm3268_vm5, 1.0, %v5392_v43  ;;  %vm1153_vm2 = vmor %vm449_vm4, %vm897_vm8  ;;  %vm3011_vm8 = vcmp.eq.s32.totalorder %v2775_v15, %v6699_v52  ;;  %vm1606_vm4 = vcmp.eq.s32.totalorder %v13970_v61, %v6682_v22  ;;  %v13980_v15 = vld [vmem:[#allocation64_spill] sm:$0xff]  ;;  %4711 = vst [vmem:[#allocation2 + $0xa0] sm:$0xff] %v4473_v32  ;;  %v4477_v35 = vpop.f32.mrb[42].mxu0 }
 0x4b5   :  { %4590 = vmatprep.mubr.f32.mxu0 %v4950_v50  ;;  %vm1857_vm7 = vmor %vm1153_vm2, %vm1601_vm15  ;;  %vm902_vm15 = vcmp.eq.s32.totalorder %v13969_v51, %v6682_v22  ;;  %vm454_vm2 = vcmp.eq.s32.totalorder %v13971_v4, %v6682_v22  ;;  %v4478_v50 = vadd.f32 %v4477_v35, %v4092_v28  ;;  %v13991_v28 = vld [vmem:[#allocation149_spill] sm:$0xff] }
 0x4b6   :  { %vm2561_vm12 = vmor %vm1857_vm7, %vm2305_vm3 }
 0x4b7   :  { %vm3265_vm10 = vmor %vm2561_vm12, %vm3009_vm6  ;;  %vm2310_vm6 = vcmp.eq.s32.totalorder %v11709_v38, %v6682_v22  ;;  %4712 = vst [vmem:[#allocation2 + $0xa8] sm:$0xff] %v4478_v50 }
 0x4b8   :  { %v4947_v27 = vsel %vm3265_vm10, 1.0, %v5392_v43  ;;  %vm1155_vm13 = vmor %vm451_vm0, %vm899_vm11  ;;  %vm3014_vm11 = vcmp.eq.s32.totalorder %v11713_v17, %v6682_v22  ;;  %vm1608_vm0 = vcmp.eq.s32.totalorder %v13970_v61, %v6687_v21 }
 0x4b9   :  { %4206 = vmatmul.mubr.f32.gmra.mrb[88].mxu1 %v4947_v27  ;;  %vm1859_vm9 = vmor %vm1155_vm13, %vm1603_vm1  ;;  %vm904_vm1 = vcmp.eq.s32.totalorder %v13969_v51, %v6687_v21  ;;  %vm456_vm13 = vcmp.eq.s32.totalorder %v13971_v4, %v6687_v21 }
 0x4ba   :  { %vm2563_vm5 = vmor %vm1859_vm9, %vm2307_vm14 }
 0x4bb   :  { %vm3267_vm3 = vmor %vm2563_vm5, %vm3011_vm8  ;;  %vm2312_vm8 = vcmp.eq.s32.totalorder %v11709_v38, %v6687_v21 }
 0x4bc   :  { %v4949_v23 = vsel %vm3267_vm3, 1.0, %v5392_v43  ;;  %vm1158_vm7 = vmor %vm454_vm2, %vm902_vm15  ;;  %vm3016_vm15 = vcmp.eq.s32.totalorder %v11713_v17, %v6687_v21  ;;  %vm1605_vm2 = vcmp.eq.s32.totalorder %v13970_v61, %v6671_v26 }
 0x4bd   :  { %4591 = vmatmul.mubr.f32.gmra.mrb[88].mxu0 %v4949_v23  ;;  %vm1862_vm12 = vmor %vm1158_vm7, %vm1606_vm4  ;;  %vm901_vm4 = vcmp.eq.s32.totalorder %v13969_v51, %v6671_v26  ;;  %vm453_vm7 = vcmp.eq.s32.totalorder %v13971_v4, %v6671_v26  ;;  %v2790_v23 = vpop.permute.xlu0 %2789 }
 0x4be   :  { %vm2566_vm10 = vmor %vm1862_vm12, %vm2310_vm6 }
 0x4bf   :  { %vm3270_vm14 = vmor %vm2566_vm10, %vm3014_vm11  ;;  %vm2309_vm11 = vcmp.eq.s32.totalorder %v11709_v38, %v6671_v26 }
 0x4c0   :  { %v4952_v58 = vsel %vm3270_vm14, 1.0, %v5392_v43  ;;  %vm1160_vm9 = vmor %vm456_vm13, %vm904_vm1  ;;  %vm3013_vm1 = vcmp.eq.s32.totalorder %v11713_v17, %v6671_v26  ;;  %vm1607_vm13 = vcmp.eq.s32.totalorder %v13970_v61, %v6699_v52  ;;  %v13981_v61 = vld [vmem:[#allocation104_spill] sm:$0xff] }
 0x4c1   :  { %4210 = vmatprep.mubr.f32.mxu1 %v4952_v58  ;;  %vm1864_vm5 = vmor %vm1160_vm9, %vm1608_vm0  ;;  %vm903_vm0 = vcmp.eq.s32.totalorder %v13969_v51, %v6699_v52  ;;  %vm455_vm9 = vcmp.eq.s32.totalorder %v13971_v4, %v6699_v52  ;;  %v13982_v4 = vld [vmem:[#allocation148_spill] sm:$0xff]  ;;  %v11933_v3 = vpop.permute.xlu0 %2798 }
 0x4c2   :  { %vm2568_vm3 = vmor %vm1864_vm5, %vm2312_vm8 }
 0x4c3   :  { %vm3272_vm6 = vmor %vm2568_vm3, %vm3016_vm15  ;;  %vm2311_vm15 = vcmp.eq.s32.totalorder %v11709_v38, %v6699_v52  ;;  %v4479_v38 = vpop.f32.mrb[43].mxu0 }
 0x4c4   :  { %v4954_v48 = vsel %vm3272_vm6, 1.0, %v5392_v43  ;;  %vm1157_vm12 = vmor %vm453_vm7, %vm901_vm4  ;;  %vm3015_vm4 = vcmp.eq.s32.totalorder %v11713_v17, %v6699_v52  ;;  %vm1610_vm7 = vcmp.eq.s32.totalorder %v13973_v18, %v6682_v22  ;;  %v2086_v17 = vpop.permute.xlu1 %2085 }
 0x4c5   :  { %4595 = vmatprep.mubr.f32.mxu0 %v4954_v48  ;;  %vm1861_vm10 = vmor %vm1157_vm12, %vm1605_vm2  ;;  %vm906_vm2 = vcmp.eq.s32.totalorder %v13972_v13, %v6682_v22  ;;  %vm458_vm12 = vcmp.eq.s32.totalorder %v13974_v53, %v6682_v22 }
 0x4c6   :  { %vm2565_vm14 = vmor %vm1861_vm10, %vm2309_vm11 }
 0x4c7   :  { %vm3269_vm8 = vmor %vm2565_vm14, %vm3013_vm1  ;;  %vm2314_vm1 = vcmp.eq.s32.totalorder %v2077_v29, %v6682_v22 }
 0x4c8   :  { %v4951_v47 = vsel %vm3269_vm8, 1.0, %v5392_v43  ;;  %vm1159_vm5 = vmor %vm455_vm9, %vm903_vm0  ;;  %vm3018_vm0 = vcmp.eq.s32.totalorder %v2781_v33, %v6682_v22  ;;  %vm1612_vm9 = vcmp.eq.s32.totalorder %v13973_v18, %v6687_v21  ;;  %v11907_v20 = vpop.permute.xlu1 %2088 }
 0x4c9   :  { %4211 = vmatmul.mubr.f32.gmra.mrb[90].mxu1 %v4951_v47  ;;  %vm1863_vm3 = vmor %vm1159_vm5, %vm1607_vm13  ;;  %vm908_vm13 = vcmp.eq.s32.totalorder %v13972_v13, %v6687_v21  ;;  %vm460_vm5 = vcmp.eq.s32.totalorder %v13974_v53, %v6687_v21 }
 0x4ca   :  { %vm2567_vm6 = vmor %vm1863_vm3, %vm2311_vm15 }
 0x4cb   :  { %vm3271_vm11 = vmor %vm2567_vm6, %vm3015_vm4  ;;  %vm2316_vm4 = vcmp.eq.s32.totalorder %v2077_v29, %v6687_v21 }
 0x4cc   :  { %v4953_v0 = vsel %vm3271_vm11, 1.0, %v5392_v43  ;;  %vm1162_vm10 = vmor %vm458_vm12, %vm906_vm2  ;;  %vm3020_vm2 = vcmp.eq.s32.totalorder %v2781_v33, %v6687_v21  ;;  %vm1609_vm12 = vcmp.eq.s32.totalorder %v13973_v18, %v6671_v26  ;;  %v11923_v58 = vpop.permute.xlu1 %2792 }
 0x4cd   :  { %4596 = vmatmul.mubr.f32.gmra.mrb[90].mxu0 %v4953_v0  ;;  %vm1866_vm14 = vmor %vm1162_vm10, %vm1610_vm7  ;;  %vm905_vm7 = vcmp.eq.s32.totalorder %v13972_v13, %v6671_v26  ;;  %vm457_vm10 = vcmp.eq.s32.totalorder %v13974_v53, %v6671_v26 }
 0x4ce   :  { %vm2570_vm8 = vmor %vm1866_vm14, %vm2314_vm1 }
 0x4cf   :  { %vm3274_vm15 = vmor %vm2570_vm8, %vm3018_vm0  ;;  %vm2313_vm0 = vcmp.eq.s32.totalorder %v2077_v29, %v6671_v26 }
 0x4d0   :  { %v4956_v2 = vsel %vm3274_vm15, 1.0, %v5392_v43  ;;  %vm1164_vm3 = vmor %vm460_vm5, %vm908_vm13  ;;  %vm3017_vm13 = vcmp.eq.s32.totalorder %v2781_v33, %v6671_v26  ;;  %vm1611_vm5 = vcmp.eq.s32.totalorder %v13973_v18, %v6699_v52 }
 0x4d1   :  { %4215 = vmatprep.mubr.f32.mxu1 %v4956_v2  ;;  %vm1868_vm6 = vmor %vm1164_vm3, %vm1612_vm9  ;;  %vm907_vm9 = vcmp.eq.s32.totalorder %v13972_v13, %v6699_v52  ;;  %vm459_vm3 = vcmp.eq.s32.totalorder %v13974_v53, %v6699_v52 }
 0x4d2   :  { %vm2572_vm11 = vmor %vm1868_vm6, %vm2316_vm4 }
 0x4d3   :  { %vm3276_vm1 = vmor %vm2572_vm11, %vm3020_vm2  ;;  %vm2315_vm2 = vcmp.eq.s32.totalorder %v2077_v29, %v6699_v52  ;;  %v4482_v29 = vpop.f32.mrb[44].mxu0 }
 0x4d4   :  { %v4958_v19 = vsel %vm3276_vm1, 1.0, %v5392_v43  ;;  %vm1161_vm14 = vmor %vm457_vm10, %vm905_vm7  ;;  %vm3019_vm7 = vcmp.eq.s32.totalorder %v2781_v33, %v6699_v52  ;;  %vm1614_vm10 = vcmp.eq.s32.totalorder %v13976_v8, %v6682_v22  ;;  %v4484_v18 = vpop.f32.mrb[45].mxu0 }
 0x4d5   :  { %4600 = vmatprep.mubr.f32.mxu0 %v4958_v19  ;;  %vm1865_vm8 = vmor %vm1161_vm14, %vm1609_vm12  ;;  %vm910_vm12 = vcmp.eq.s32.totalorder %v13975_v24, %v6682_v22  ;;  %vm462_vm14 = vcmp.eq.s32.totalorder %v13977_v42, %v6682_v22  ;;  %v4487_v2 = vpop.f32.mrb[46].mxu0  ;;  %v13997_v18 = vld [vmem:[#allocation16_spill] sm:$0xff] }
 0x4d6   :  { %vm2569_vm15 = vmor %vm1865_vm8, %vm2313_vm0 }
 0x4d7   :  { %vm3273_vm4 = vmor %vm2569_vm15, %vm3017_vm13  ;;  %vm2318_vm13 = vcmp.eq.s32.totalorder %v11783_v46, %v6682_v22 }
 0x4d8   :  { %v4955_v16 = vsel %vm3273_vm4, 1.0, %v5392_v43  ;;  %vm1163_vm6 = vmor %vm459_vm3, %vm907_vm9  ;;  %vm3022_vm9 = vcmp.eq.s32.totalorder %v2784_v7, %v6682_v22  ;;  %vm1616_vm3 = vcmp.eq.s32.totalorder %v13976_v8, %v6687_v21 }
 0x4d9   :  { %4216 = vmatmul.mubr.f32.gmra.mrb[92].mxu1 %v4955_v16  ;;  %vm1867_vm11 = vmor %vm1163_vm6, %vm1611_vm5  ;;  %vm912_vm5 = vcmp.eq.s32.totalorder %v13975_v24, %v6687_v21  ;;  %vm464_vm6 = vcmp.eq.s32.totalorder %v13977_v42, %v6687_v21  ;;  %v4489_v16 = vpop.f32.mrb[47].mxu0 }
 0x4da   :  { %vm2571_vm1 = vmor %vm1867_vm11, %vm2315_vm2  ;;  %v4492_v44 = vpop.f32.mrb[48].mxu0 }
 0x4db   :  { %vm3275_vm0 = vmor %vm2571_vm1, %vm3019_vm7  ;;  %vm2320_vm7 = vcmp.eq.s32.totalorder %v11783_v46, %v6687_v21 }
 0x4dc   :  { %v4957_v31 = vsel %vm3275_vm0, 1.0, %v5392_v43  ;;  %vm1166_vm8 = vmor %vm462_vm14, %vm910_vm12  ;;  %vm3024_vm12 = vcmp.eq.s32.totalorder %v2784_v7, %v6687_v21  ;;  %vm1613_vm14 = vcmp.eq.s32.totalorder %v13976_v8, %v6671_v26 }
 0x4dd   :  { %4601 = vmatmul.mubr.f32.gmra.mrb[92].mxu0 %v4957_v31  ;;  %vm1870_vm15 = vmor %vm1166_vm8, %vm1614_vm10  ;;  %vm909_vm10 = vcmp.eq.s32.totalorder %v13975_v24, %v6671_v26  ;;  %vm461_vm8 = vcmp.eq.s32.totalorder %v13977_v42, %v6671_v26  ;;  %v13987_v31 = vld [vmem:[#allocation106_spill] sm:$0xff] }
 0x4de   :  { %vm2574_vm4 = vmor %vm1870_vm15, %vm2318_vm13 }
 0x4df   :  { %vm3278_vm2 = vmor %vm2574_vm4, %vm3022_vm9  ;;  %vm2317_vm9 = vcmp.eq.s32.totalorder %v11783_v46, %v6671_v26 }
 0x4e0   :  { %v4960_v55 = vsel %vm3278_vm2, 1.0, %v5392_v43  ;;  %vm1168_vm11 = vmor %vm464_vm6, %vm912_vm5  ;;  %vm3021_vm5 = vcmp.eq.s32.totalorder %v2784_v7, %v6671_v26  ;;  %vm1615_vm6 = vcmp.eq.s32.totalorder %v13976_v8, %v6699_v52 }
 0x4e1   :  { %4220 = vmatprep.mubr.f32.mxu1 %v4960_v55  ;;  %vm1872_vm1 = vmor %vm1168_vm11, %vm1616_vm3  ;;  %vm911_vm3 = vcmp.eq.s32.totalorder %v13975_v24, %v6699_v52  ;;  %vm463_vm11 = vcmp.eq.s32.totalorder %v13977_v42, %v6699_v52  ;;  %v11975_v42 = vpop.permute.xlu1 %2795 }
 0x4e2   :  { %vm2576_vm0 = vmor %vm1872_vm1, %vm2320_vm7 }
 0x4e3   :  { %vm3280_vm13 = vmor %vm2576_vm0, %vm3024_vm12  ;;  %vm2319_vm12 = vcmp.eq.s32.totalorder %v11783_v46, %v6699_v52  ;;  %v11951_v46 = vpop.permute.xlu0 %2807 }
 0x4e4   :  { %v4962_v60 = vsel %vm3280_vm13, 1.0, %v5392_v43  ;;  %vm1165_vm15 = vmor %vm461_vm8, %vm909_vm10  ;;  %vm3023_vm10 = vcmp.eq.s32.totalorder %v2784_v7, %v6699_v52  ;;  %vm1618_vm8 = vcmp.eq.s32.totalorder %v13979_v54, %v6682_v22 }
 0x4e5   :  { %4605 = vmatprep.mubr.f32.mxu0 %v4962_v60  ;;  %vm1869_vm4 = vmor %vm1165_vm15, %vm1613_vm14  ;;  %vm914_vm14 = vcmp.eq.s32.totalorder %v13978_v11, %v6682_v22  ;;  %vm466_vm15 = vcmp.eq.s32.totalorder %v13980_v15, %v6682_v22  ;;  %v2095_v12 = vpop.permute.xlu1 %2094 }
 0x4e6   :  { %vm2573_vm2 = vmor %vm1869_vm4, %vm2317_vm9 }
 0x4e7   :  { %vm3277_vm7 = vmor %vm2573_vm2, %vm3021_vm5  ;;  %vm2322_vm5 = vcmp.eq.s32.totalorder %v11752_v40, %v6682_v22  ;;  %v11970_v24 = vpop.permute.xlu0 %2091 }
 0x4e8   :  { %v4959_v63 = vsel %vm3277_vm7, 1.0, %v5392_v43  ;;  %vm1167_vm1 = vmor %vm463_vm11, %vm911_vm3  ;;  %vm3026_vm3 = vcmp.eq.s32.totalorder %v11839_v30, %v6682_v22  ;;  %vm1620_vm11 = vcmp.eq.s32.totalorder %v13979_v54, %v6687_v21 }
 0x4e9   :  { %4221 = vmatmul.mubr.f32.gmra.mrb[94].mxu1 %v4959_v63  ;;  %vm1871_vm0 = vmor %vm1167_vm1, %vm1615_vm6  ;;  %vm916_vm6 = vcmp.eq.s32.totalorder %v13978_v11, %v6687_v21  ;;  %vm468_vm1 = vcmp.eq.s32.totalorder %v13980_v15, %v6687_v21  ;;  %v4494_v63 = vpop.f32.mrb[49].mxu0  ;;  %v12045_v50 = vpop.permute.xlu1 %2097 }
 0x4ea   :  { %vm2575_vm13 = vmor %vm1871_vm0, %vm2319_vm12 }
 0x4eb   :  { %vm3279_vm9 = vmor %vm2575_vm13, %vm3023_vm10  ;;  %vm2324_vm10 = vcmp.eq.s32.totalorder %v11752_v40, %v6687_v21 }
 0x4ec   :  { %v4961_v34 = vsel %vm3279_vm9, 1.0, %v5392_v43  ;;  %vm1170_vm4 = vmor %vm466_vm15, %vm914_vm14  ;;  %vm3028_vm14 = vcmp.eq.s32.totalorder %v11839_v30, %v6687_v21  ;;  %vm1617_vm15 = vcmp.eq.s32.totalorder %v13979_v54, %v6671_v26 }
 0x4ed   :  { %4606 = vmatmul.mubr.f32.gmra.mrb[94].mxu0 %v4961_v34  ;;  %vm1874_vm2 = vmor %vm1170_vm4, %vm1618_vm8  ;;  %vm913_vm8 = vcmp.eq.s32.totalorder %v13978_v11, %v6671_v26  ;;  %vm465_vm4 = vcmp.eq.s32.totalorder %v13980_v15, %v6671_v26 }
 0x4ee   :  { %vm2578_vm7 = vmor %vm1874_vm2, %vm2322_vm5 }
 0x4ef   :  { %vm3282_vm12 = vmor %vm2578_vm7, %vm3026_vm3  ;;  %vm2321_vm3 = vcmp.eq.s32.totalorder %v11752_v40, %v6671_v26 }
 0x4f0   :  { %v4964_v1 = vsel %vm3282_vm12, 1.0, %v5392_v43  ;;  %vm1172_vm0 = vmor %vm468_vm1, %vm916_vm6  ;;  %vm3025_vm6 = vcmp.eq.s32.totalorder %v11839_v30, %v6671_v26  ;;  %vm1619_vm1 = vcmp.eq.s32.totalorder %v13979_v54, %v6699_v52 }
 0x4f1   :  { %4225 = vmatprep.mubr.f32.mxu1 %v4964_v1  ;;  %vm1876_vm13 = vmor %vm1172_vm0, %vm1620_vm11  ;;  %vm915_vm11 = vcmp.eq.s32.totalorder %v13978_v11, %v6699_v52  ;;  %vm467_vm0 = vcmp.eq.s32.totalorder %v13980_v15, %v6699_v52  ;;  %v4497_v15 = vpop.f32.mrb[50].mxu0  ;;  %v13992_v1 = vld [vmem:[#allocation68_spill] sm:$0xff] }
 0x4f2   :  { %vm2580_vm9 = vmor %vm1876_vm13, %vm2324_vm10  ;;  %v4499_v6 = vpop.f32.mrb[51].mxu0 }
 0x4f3   :  { %vm3284_vm5 = vmor %vm2580_vm9, %vm3028_vm14  ;;  %vm2323_vm14 = vcmp.eq.s32.totalorder %v11752_v40, %v6699_v52  ;;  %v4097_v40 = vpop.f32.mrb[44].mxu1 }
 0x4f4   :  { %v4966_v27 = vsel %vm3284_vm5, 1.0, %v5392_v43  ;;  %vm1169_vm2 = vmor %vm465_vm4, %vm913_vm8  ;;  %vm3027_vm8 = vcmp.eq.s32.totalorder %v11839_v30, %v6699_v52  ;;  %vm1622_vm4 = vcmp.eq.s32.totalorder %v13982_v4, %v6682_v22  ;;  %v4483_v47 = vadd.f32 %v4482_v29, %v4097_v40  ;;  %v4099_v13 = vpop.f32.mrb[45].mxu1  ;;  %v2101_v40 = vpop.permute.xlu0 %2100 }
 0x4f5   :  { %4610 = vmatprep.mubr.f32.mxu0 %v4966_v27  ;;  %vm1873_vm7 = vmor %vm1169_vm2, %vm1617_vm15  ;;  %vm918_vm15 = vcmp.eq.s32.totalorder %v13981_v61, %v6682_v22  ;;  %vm470_vm2 = vcmp.eq.s32.totalorder %v13983_v49, %v6682_v22  ;;  %v4102_v33 = vpop.f32.mrb[46].mxu1  ;;  %v13996_v13 = vld [vmem:[#allocation5_spill] sm:$0xff] }
 0x4f6   :  { %vm2577_vm12 = vmor %vm1873_vm7, %vm2321_vm3  ;;  %4713 = vst [vmem:[#allocation2 + $0xb0] sm:$0xff] %v4483_v47  ;;  %v4104_v0 = vpop.f32.mrb[47].mxu1  ;;  %v4488_v19 = vadd.f32 %v4487_v2, %v4102_v33  ;;  %v13998_v33 = vld [vmem:[#allocation70_spill] sm:$0xff] }
 0x4f7   :  { %vm3281_vm10 = vmor %vm2577_vm12, %vm3025_vm6  ;;  %vm2326_vm6 = vcmp.eq.s32.totalorder %v2086_v17, %v6682_v22  ;;  %v4107_v36 = vpop.f32.mrb[48].mxu1 }
 0x4f8   :  { %v4963_v51 = vsel %vm3281_vm10, 1.0, %v5392_v43  ;;  %vm1171_vm13 = vmor %vm467_vm0, %vm915_vm11  ;;  %vm3030_vm11 = vcmp.eq.s32.totalorder %v2790_v23, %v6682_v22  ;;  %vm1624_vm0 = vcmp.eq.s32.totalorder %v13982_v4, %v6687_v21  ;;  %4714 = vst [vmem:[#allocation2 + $0xb8] sm:$0xff] %v4488_v19  ;;  %v4493_v55 = vadd.f32 %v4492_v44, %v4107_v36  ;;  %v4109_v60 = vpop.f32.mrb[49].mxu1 }
 0x4f9   :  { %4226 = vmatmul.mubr.f32.gmra.mrb[96].mxu1 %v4963_v51  ;;  %vm1875_vm9 = vmor %vm1171_vm13, %vm1619_vm1  ;;  %vm920_vm1 = vcmp.eq.s32.totalorder %v13981_v61, %v6687_v21  ;;  %vm472_vm13 = vcmp.eq.s32.totalorder %v13983_v49, %v6687_v21  ;;  %v4112_v30 = vpop.f32.mrb[50].mxu1  ;;  %v13993_v51 = vld [vmem:[#allocation108_spill] sm:$0xff] }
 0x4fa   :  { %vm2579_vm5 = vmor %vm1875_vm9, %vm2323_vm14  ;;  %4715 = vst [vmem:[#allocation2 + $0xc0] sm:$0xff] %v4493_v55  ;;  %v4114_v54 = vpop.f32.mrb[51].mxu1  ;;  %v4498_v34 = vadd.f32 %v4497_v15, %v4112_v30  ;;  %v14000_v55 = vld [vmem:[#allocation18_spill] sm:$0xff]  ;;  %v12153_v30 = vpop.permute.xlu0 %2109 }
 0x4fb   :  { %vm3283_vm3 = vmor %vm2579_vm5, %vm3027_vm8  ;;  %vm2328_vm8 = vcmp.eq.s32.totalorder %v2086_v17, %v6687_v21 }
 0x4fc   :  { %v4965_v37 = vsel %vm3283_vm3, 1.0, %v5392_v43  ;;  %vm1174_vm7 = vmor %vm470_vm2, %vm918_vm15  ;;  %vm3032_vm15 = vcmp.eq.s32.totalorder %v2790_v23, %v6687_v21  ;;  %vm1621_vm2 = vcmp.eq.s32.totalorder %v13982_v4, %v6671_v26  ;;  %4716 = vst [vmem:[#allocation2 + $0xc8] sm:$0xff] %v4498_v34 }
 0x4fd   :  { %4611 = vmatmul.mubr.f32.gmra.mrb[96].mxu0 %v4965_v37  ;;  %vm1878_vm12 = vmor %vm1174_vm7, %vm1622_vm4  ;;  %vm917_vm4 = vcmp.eq.s32.totalorder %v13981_v61, %v6671_v26  ;;  %vm469_vm7 = vcmp.eq.s32.totalorder %v13983_v49, %v6671_v26  ;;  %v4502_v37 = vpop.f32.mrb[52].mxu0 }
 0x4fe   :  { %vm2582_vm10 = vmor %vm1878_vm12, %vm2326_vm6 }
 0x4ff   :  { %vm3286_vm14 = vmor %vm2582_vm10, %vm3030_vm11  ;;  %vm2325_vm11 = vcmp.eq.s32.totalorder %v2086_v17, %v6671_v26 }
 0x500   :  { %v4968_v39 = vsel %vm3286_vm14, 1.0, %v5392_v43  ;;  %vm1176_vm9 = vmor %vm472_vm13, %vm920_vm1  ;;  %vm3029_vm1 = vcmp.eq.s32.totalorder %v2790_v23, %v6671_v26  ;;  %vm1623_vm13 = vcmp.eq.s32.totalorder %v13982_v4, %v6699_v52  ;;  %v13995_v4 = vld [vmem:[#allocation67_spill] sm:$0xff] }
 0x501   :  { %4230 = vmatprep.mubr.f32.mxu1 %v4968_v39  ;;  %vm1880_vm5 = vmor %vm1176_vm9, %vm1624_vm0  ;;  %vm919_vm0 = vcmp.eq.s32.totalorder %v13981_v61, %v6699_v52  ;;  %vm471_vm9 = vcmp.eq.s32.totalorder %v13983_v49, %v6699_v52  ;;  %v13994_v61 = vld [vmem:[#allocation151_spill] sm:$0xff]  ;;  %v4117_v49 = vpop.f32.mrb[52].mxu1 }
 0x502   :  { %vm2584_vm3 = vmor %vm1880_vm5, %vm2328_vm8  ;;  %v4503_v39 = vadd.f32 %v4502_v37, %v4117_v49 }
 0x503   :  { %vm3288_vm6 = vmor %vm2584_vm3, %vm3032_vm15  ;;  %vm2327_vm15 = vcmp.eq.s32.totalorder %v2086_v17, %v6699_v52  ;;  %v2802_v17 = vpop.permute.xlu1 %2801 }
 0x504   :  { %v4970_v9 = vsel %vm3288_vm6, 1.0, %v5392_v43  ;;  %vm1173_vm12 = vmor %vm469_vm7, %vm917_vm4  ;;  %vm3031_vm4 = vcmp.eq.s32.totalorder %v2790_v23, %v6699_v52  ;;  %vm1626_vm7 = vcmp.eq.s32.totalorder %v13985_v56, %v6682_v22  ;;  %4717 = vst [vmem:[#allocation2 + $0xd0] sm:$0xff] %v4503_v39 }
 0x505   :  { %4615 = vmatprep.mubr.f32.mxu0 %v4970_v9  ;;  %vm1877_vm10 = vmor %vm1173_vm12, %vm1621_vm2  ;;  %vm922_vm2 = vcmp.eq.s32.totalorder %v13984_v25, %v6682_v22  ;;  %vm474_vm12 = vcmp.eq.s32.totalorder %v13986_v10, %v6682_v22  ;;  %v4504_v9 = vpop.f32.mrb[53].mxu0 }
 0x506   :  { %vm2581_vm14 = vmor %vm1877_vm10, %vm2325_vm11 }
 0x507   :  { %vm3285_vm8 = vmor %vm2581_vm14, %vm3029_vm1  ;;  %vm2330_vm1 = vcmp.eq.s32.totalorder %v11907_v20, %v6682_v22  ;;  %v12103_v47 = vpop.permute.xlu1 %2804 }
 0x508   :  { %v4967_v14 = vsel %vm3285_vm8, 1.0, %v5392_v43  ;;  %vm1175_vm5 = vmor %vm471_vm9, %vm919_vm0  ;;  %vm3034_vm0 = vcmp.eq.s32.totalorder %v11923_v58, %v6682_v22  ;;  %vm1628_vm9 = vcmp.eq.s32.totalorder %v13985_v56, %v6687_v21 }
 0x509   :  { %4231 = vmatmul.mubr.f32.gmra.mrb[98].mxu1 %v4967_v14  ;;  %vm1879_vm3 = vmor %vm1175_vm5, %vm1623_vm13  ;;  %vm924_vm13 = vcmp.eq.s32.totalorder %v13984_v25, %v6687_v21  ;;  %vm476_vm5 = vcmp.eq.s32.totalorder %v13986_v10, %v6687_v21 }
 0x50a   :  { %vm2583_vm6 = vmor %vm1879_vm3, %vm2327_vm15 }
 0x50b   :  { %vm3287_vm11 = vmor %vm2583_vm6, %vm3031_vm4  ;;  %vm2332_vm4 = vcmp.eq.s32.totalorder %v11907_v20, %v6687_v21 }
 0x50c   :  { %v4969_v48 = vsel %vm3287_vm11, 1.0, %v5392_v43  ;;  %vm1178_vm10 = vmor %vm474_vm12, %vm922_vm2  ;;  %vm3036_vm2 = vcmp.eq.s32.totalorder %v11923_v58, %v6687_v21  ;;  %vm1625_vm12 = vcmp.eq.s32.totalorder %v13985_v56, %v6671_v26 }
 0x50d   :  { %4616 = vmatmul.mubr.f32.gmra.mrb[98].mxu0 %v4969_v48  ;;  %vm1882_vm14 = vmor %vm1178_vm10, %vm1626_vm7  ;;  %vm921_vm7 = vcmp.eq.s32.totalorder %v13984_v25, %v6671_v26  ;;  %vm473_vm10 = vcmp.eq.s32.totalorder %v13986_v10, %v6671_v26 }
 0x50e   :  { %vm2586_vm8 = vmor %vm1882_vm14, %vm2330_vm1 }
 0x50f   :  { %vm3290_vm15 = vmor %vm2586_vm8, %vm3034_vm0  ;;  %vm2329_vm0 = vcmp.eq.s32.totalorder %v11907_v20, %v6671_v26 }
 0x510   :  { %v4972_v53 = vsel %vm3290_vm15, 1.0, %v5392_v43  ;;  %vm1180_vm3 = vmor %vm476_vm5, %vm924_vm13  ;;  %vm3033_vm13 = vcmp.eq.s32.totalorder %v11923_v58, %v6671_v26  ;;  %vm1627_vm5 = vcmp.eq.s32.totalorder %v13985_v56, %v6699_v52 }
 0x511   :  { %4235 = vmatprep.mubr.f32.mxu1 %v4972_v53  ;;  %vm1884_vm6 = vmor %vm1180_vm3, %vm1628_vm9  ;;  %vm923_vm9 = vcmp.eq.s32.totalorder %v13984_v25, %v6699_v52  ;;  %vm475_vm3 = vcmp.eq.s32.totalorder %v13986_v10, %v6699_v52  ;;  %v4507_v25 = vpop.f32.mrb[54].mxu0 }
 0x512   :  { %vm2588_vm11 = vmor %vm1884_vm6, %vm2332_vm4 }
 0x513   :  { %vm3292_vm1 = vmor %vm2588_vm11, %vm3036_vm2  ;;  %vm2331_vm2 = vcmp.eq.s32.totalorder %v11907_v20, %v6699_v52  ;;  %v4119_v20 = vpop.f32.mrb[53].mxu1 }
 0x514   :  { %v4974_v7 = vsel %vm3292_vm1, 1.0, %v5392_v43  ;;  %vm1177_vm14 = vmor %vm473_vm10, %vm921_vm7  ;;  %vm3035_vm7 = vcmp.eq.s32.totalorder %v11923_v58, %v6699_v52  ;;  %vm1630_vm10 = vcmp.eq.s32.totalorder %v13988_v57, %v6682_v22  ;;  %v4122_v14 = vpop.f32.mrb[54].mxu1 }
 0x515   :  { %4620 = vmatprep.mubr.f32.mxu0 %v4974_v7  ;;  %vm1881_vm8 = vmor %vm1177_vm14, %vm1625_vm12  ;;  %vm926_vm12 = vcmp.eq.s32.totalorder %v13987_v31, %v6682_v22  ;;  %vm478_vm14 = vcmp.eq.s32.totalorder %v13989_v41, %v6682_v22  ;;  %v4508_v56 = vadd.f32 %v4507_v25, %v4122_v14  ;;  %v4124_v10 = vpop.f32.mrb[55].mxu1 }
 0x516   :  { %vm2585_vm15 = vmor %vm1881_vm8, %vm2329_vm0  ;;  %v4127_v0 = vpop.f32.mrb[56].mxu1 }
 0x517   :  { %vm3289_vm4 = vmor %vm2585_vm15, %vm3033_vm13  ;;  %vm2334_vm13 = vcmp.eq.s32.totalorder %v11970_v24, %v6682_v22  ;;  %4718 = vst [vmem:[#allocation2 + $0xd8] sm:$0xff] %v4508_v56  ;;  %v4129_v19 = vpop.f32.mrb[57].mxu1 }
 0x518   :  { %v4971_v8 = vsel %vm3289_vm4, 1.0, %v5392_v43  ;;  %vm1179_vm6 = vmor %vm475_vm3, %vm923_vm9  ;;  %vm3038_vm9 = vcmp.eq.s32.totalorder %v11975_v42, %v6682_v22  ;;  %vm1632_vm3 = vcmp.eq.s32.totalorder %v13988_v57, %v6687_v21 }
 0x519   :  { %4236 = vmatmul.mubr.f32.gmra.mrb[100].mxu1 %v4971_v8  ;;  %vm1883_vm11 = vmor %vm1179_vm6, %vm1627_vm5  ;;  %vm928_vm5 = vcmp.eq.s32.totalorder %v13987_v31, %v6687_v21  ;;  %vm480_vm6 = vcmp.eq.s32.totalorder %v13989_v41, %v6687_v21 }
 0x51a   :  { %vm2587_vm1 = vmor %vm1883_vm11, %vm2331_vm2 }
 0x51b   :  { %vm3291_vm0 = vmor %vm2587_vm1, %vm3035_vm7  ;;  %vm2336_vm7 = vcmp.eq.s32.totalorder %v11970_v24, %v6687_v21 }
 0x51c   :  { %v4973_v45 = vsel %vm3291_vm0, 1.0, %v5392_v43  ;;  %vm1182_vm8 = vmor %vm478_vm14, %vm926_vm12  ;;  %vm3040_vm12 = vcmp.eq.s32.totalorder %v11975_v42, %v6687_v21  ;;  %vm1629_vm14 = vcmp.eq.s32.totalorder %v13988_v57, %v6671_v26 }
 0x51d   :  { %4621 = vmatmul.mubr.f32.gmra.mrb[100].mxu0 %v4973_v45  ;;  %vm1886_vm15 = vmor %vm1182_vm8, %vm1630_vm10  ;;  %vm925_vm10 = vcmp.eq.s32.totalorder %v13987_v31, %v6671_v26  ;;  %vm477_vm8 = vcmp.eq.s32.totalorder %v13989_v41, %v6671_v26  ;;  %v13999_v45 = vld [vmem:[#allocation8_spill] sm:$0xff] }
 0x51e   :  { %vm2590_vm4 = vmor %vm1886_vm15, %vm2334_vm13 }
 0x51f   :  { %vm3294_vm2 = vmor %vm2590_vm4, %vm3038_vm9  ;;  %vm2333_vm9 = vcmp.eq.s32.totalorder %v11970_v24, %v6671_v26 }
 0x520   :  { %v4976_v11 = vsel %vm3294_vm2, 1.0, %v5392_v43  ;;  %vm1184_vm11 = vmor %vm480_vm6, %vm928_vm5  ;;  %vm3037_vm5 = vcmp.eq.s32.totalorder %v11975_v42, %v6671_v26  ;;  %vm1631_vm6 = vcmp.eq.s32.totalorder %v13988_v57, %v6699_v52 }
 0x521   :  { %4240 = vmatprep.mubr.f32.mxu1 %v4976_v11  ;;  %vm1888_vm1 = vmor %vm1184_vm11, %vm1632_vm3  ;;  %vm927_vm3 = vcmp.eq.s32.totalorder %v13987_v31, %v6699_v52  ;;  %vm479_vm11 = vcmp.eq.s32.totalorder %v13989_v41, %v6699_v52  ;;  %v4132_v31 = vpop.f32.mrb[58].mxu1  ;;  %v14001_v11 = vld [vmem:[#allocation69_spill] sm:$0xff] }
 0x522   :  { %vm2592_vm0 = vmor %vm1888_vm1, %vm2336_vm7  ;;  %v4134_v57 = vpop.f32.mrb[59].mxu1 }
 0x523   :  { %vm3296_vm13 = vmor %vm2592_vm0, %vm3040_vm12  ;;  %vm2335_vm12 = vcmp.eq.s32.totalorder %v11970_v24, %v6699_v52  ;;  %v4137_v15 = vpop.f32.mrb[60].mxu1 }
 0x524   :  { %v4978_v59 = vsel %vm3296_vm13, 1.0, %v5392_v43  ;;  %vm1181_vm15 = vmor %vm477_vm8, %vm925_vm10  ;;  %vm3039_vm10 = vcmp.eq.s32.totalorder %v11975_v42, %v6699_v52  ;;  %vm1634_vm8 = vcmp.eq.s32.totalorder %v13991_v28, %v6682_v22  ;;  %v12133_v42 = vpop.permute.xlu1 %2103 }
 0x525   :  { %4625 = vmatprep.mubr.f32.mxu0 %v4978_v59  ;;  %vm1885_vm4 = vmor %vm1181_vm15, %vm1629_vm14  ;;  %vm930_vm14 = vcmp.eq.s32.totalorder %v13990_v62, %v6682_v22  ;;  %vm482_vm15 = vcmp.eq.s32.totalorder %v13992_v1, %v6682_v22  ;;  %v4139_v59 = vpop.f32.mrb[61].mxu1 }
 0x526   :  { %vm2589_vm2 = vmor %vm1885_vm4, %vm2333_vm9 }
 0x527   :  { %vm3293_vm7 = vmor %vm2589_vm2, %vm3037_vm5  ;;  %vm2338_vm5 = vcmp.eq.s32.totalorder %v2095_v12, %v6682_v22 }
 0x528   :  { %v4975_v32 = vsel %vm3293_vm7, 1.0, %v5392_v43  ;;  %vm1183_vm1 = vmor %vm479_vm11, %vm927_vm3  ;;  %vm3042_vm3 = vcmp.eq.s32.totalorder %v11933_v3, %v6682_v22  ;;  %vm1636_vm11 = vcmp.eq.s32.totalorder %v13991_v28, %v6687_v21  ;;  %v12149_v44 = vpop.permute.xlu1 %2106 }
 0x529   :  { %4241 = vmatmul.mubr.f32.gmra.mrb[102].mxu1 %v4975_v32  ;;  %vm1887_vm0 = vmor %vm1183_vm1, %vm1631_vm6  ;;  %vm932_vm6 = vcmp.eq.s32.totalorder %v13990_v62, %v6687_v21  ;;  %vm484_vm1 = vcmp.eq.s32.totalorder %v13992_v1, %v6687_v21 }
 0x52a   :  { %vm2591_vm13 = vmor %vm1887_vm0, %vm2335_vm12 }
 0x52b   :  { %vm3295_vm9 = vmor %vm2591_vm13, %vm3039_vm10  ;;  %vm2340_vm10 = vcmp.eq.s32.totalorder %v2095_v12, %v6687_v21 }
 0x52c   :  { %v4977_v5 = vsel %vm3295_vm9, 1.0, %v5392_v43  ;;  %vm1186_vm4 = vmor %vm482_vm15, %vm930_vm14  ;;  %vm3044_vm14 = vcmp.eq.s32.totalorder %v11933_v3, %v6687_v21  ;;  %vm1633_vm15 = vcmp.eq.s32.totalorder %v13991_v28, %v6671_v26 }
 0x52d   :  { %4626 = vmatmul.mubr.f32.gmra.mrb[102].mxu0 %v4977_v5  ;;  %vm1890_vm2 = vmor %vm1186_vm4, %vm1634_vm8  ;;  %vm929_vm8 = vcmp.eq.s32.totalorder %v13990_v62, %v6671_v26  ;;  %vm481_vm4 = vcmp.eq.s32.totalorder %v13992_v1, %v6671_v26  ;;  %v4142_v5 = vpop.f32.mrb[62].mxu1 }
 0x52e   :  { %vm2594_vm7 = vmor %vm1890_vm2, %vm2338_vm5 }
 0x52f   :  { %vm3298_vm12 = vmor %vm2594_vm7, %vm3042_vm3  ;;  %vm2337_vm3 = vcmp.eq.s32.totalorder %v2095_v12, %v6671_v26 }
 0x530   :  { %v4980_v35 = vsel %vm3298_vm12, 1.0, %v5392_v43  ;;  %vm1188_vm0 = vmor %vm484_vm1, %vm932_vm6  ;;  %vm3041_vm6 = vcmp.eq.s32.totalorder %v11933_v3, %v6671_v26  ;;  %vm1635_vm1 = vcmp.eq.s32.totalorder %v13991_v28, %v6699_v52  ;;  %v12175_v28 = vpop.permute.xlu0 %2112 }
 0x531   :  { %4245 = vmatprep.mubr.f32.mxu1 %v4980_v35  ;;  %vm1892_vm13 = vmor %vm1188_vm0, %vm1636_vm11  ;;  %vm931_vm11 = vcmp.eq.s32.totalorder %v13990_v62, %v6699_v52  ;;  %vm483_vm0 = vcmp.eq.s32.totalorder %v13992_v1, %v6699_v52  ;;  %v12173_v62 = vpop.permute.xlu1 %2810 }
 0x532   :  { %vm2596_vm9 = vmor %vm1892_vm13, %vm2340_vm10 }
 0x533   :  { %vm3300_vm5 = vmor %vm2596_vm9, %vm3044_vm14  ;;  %vm2339_vm14 = vcmp.eq.s32.totalorder %v2095_v12, %v6699_v52 }
 0x534   :  { %v4982_v38 = vsel %vm3300_vm5, 1.0, %v5392_v43  ;;  %vm1185_vm2 = vmor %vm481_vm4, %vm929_vm8  ;;  %vm3043_vm8 = vcmp.eq.s32.totalorder %v11933_v3, %v6699_v52  ;;  %vm1638_vm4 = vcmp.eq.s32.totalorder %v13994_v61, %v6682_v22  ;;  %v4509_v3 = vpop.f32.mrb[55].mxu0 }
 0x535   :  { %4630 = vmatprep.mubr.f32.mxu0 %v4982_v38  ;;  %vm1889_vm7 = vmor %vm1185_vm2, %vm1633_vm15  ;;  %vm934_vm15 = vcmp.eq.s32.totalorder %v13993_v51, %v6682_v22  ;;  %vm486_vm2 = vcmp.eq.s32.totalorder %v13995_v4, %v6682_v22  ;;  %v4512_v2 = vpop.f32.mrb[56].mxu0  ;;  %v12192_v35 = vpop.permute.xlu1 %2813 }
 0x536   :  { %vm2593_vm12 = vmor %vm1889_vm7, %vm2337_vm3  ;;  %v4513_v16 = vadd.f32 %v4512_v2, %v4127_v0  ;;  %v4514_v7 = vpop.f32.mrb[57].mxu0  ;;  %v12194_v38 = vpop.permute.xlu0 %1402 }
 0x537   :  { %vm3297_vm10 = vmor %vm2593_vm12, %vm3041_vm6  ;;  %vm2342_vm6 = vcmp.eq.s32.totalorder %v12045_v50, %v6682_v22  ;;  %v4517_v36 = vpop.f32.mrb[58].mxu0 }
 0x538   :  { %v4979_v27 = vsel %vm3297_vm10, 1.0, %v5392_v43  ;;  %vm1187_vm13 = vmor %vm483_vm0, %vm931_vm11  ;;  %vm3046_vm11 = vcmp.eq.s32.totalorder %v2802_v17, %v6682_v22  ;;  %vm1640_vm0 = vcmp.eq.s32.totalorder %v13994_v61, %v6687_v21  ;;  %4719 = vst [vmem:[#allocation2 + $0xe0] sm:$0xff] %v4513_v16  ;;  %v4518_v60 = vadd.f32 %v4517_v36, %v4132_v31  ;;  %v4519_v63 = vpop.f32.mrb[59].mxu0 }
 0x539   :  { %4246 = vmatmul.mubr.f32.gmra.mrb[104].mxu1 %v4979_v27  ;;  %vm1891_vm9 = vmor %vm1187_vm13, %vm1635_vm1  ;;  %vm936_vm1 = vcmp.eq.s32.totalorder %v13993_v51, %v6687_v21  ;;  %vm488_vm13 = vcmp.eq.s32.totalorder %v13995_v4, %v6687_v21  ;;  %v4522_v34 = vpop.f32.mrb[60].mxu0  ;;  %v12214_v49 = vpop.permute.xlu1 %1408  ;;  %v14004_v63 = vld [vmem:[#allocation109_spill] sm:$0xff] }
 0x53a   :  { %vm2595_vm5 = vmor %vm1891_vm9, %vm2339_vm14  ;;  %4720 = vst [vmem:[#allocation2 + $0xe8] sm:$0xff] %v4518_v60  ;;  %v4523_v6 = vadd.f32 %v4522_v34, %v4137_v15  ;;  %v4524_v12 = vpop.f32.mrb[61].mxu0  ;;  %v14005_v15 = vld [vmem:[#allocation152_spill] sm:$0xff] }
 0x53b   :  { %vm3299_vm3 = vmor %vm2595_vm5, %vm3043_vm8  ;;  %vm2344_vm8 = vcmp.eq.s32.totalorder %v12045_v50, %v6687_v21  ;;  %v14006_v12 = vld [vmem:[#allocation71_spill] sm:$0xff] }
 0x53c   :  { %v4981_v23 = vsel %vm3299_vm3, 1.0, %v5392_v43  ;;  %vm1190_vm7 = vmor %vm486_vm2, %vm934_vm15  ;;  %vm3048_vm15 = vcmp.eq.s32.totalorder %v2802_v17, %v6687_v21  ;;  %vm1637_vm2 = vcmp.eq.s32.totalorder %v13994_v61, %v6671_v26  ;;  %4721 = vst [vmem:[#allocation2 + $0xf0] sm:$0xff] %v4523_v6 }
 0x53d   :  { %4631 = vmatmul.mubr.f32.gmra.mrb[104].mxu0 %v4981_v23  ;;  %vm1894_vm12 = vmor %vm1190_vm7, %vm1638_vm4  ;;  %vm933_vm4 = vcmp.eq.s32.totalorder %v13993_v51, %v6671_v26  ;;  %vm485_vm7 = vcmp.eq.s32.totalorder %v13995_v4, %v6671_v26  ;;  %v14003_v23 = vld [vmem:[#allocation72_spill] sm:$0xff] }
 0x53e   :  { %vm2598_vm10 = vmor %vm1894_vm12, %vm2342_vm6 }
 0x53f   :  { %vm3302_vm14 = vmor %vm2598_vm10, %vm3046_vm11  ;;  %vm2341_vm11 = vcmp.eq.s32.totalorder %v12045_v50, %v6671_v26 }
 0x540   :  { %v4984_v58 = vsel %vm3302_vm14, 1.0, %v5392_v43  ;;  %vm1192_vm9 = vmor %vm488_vm13, %vm936_vm1  ;;  %vm3045_vm1 = vcmp.eq.s32.totalorder %v2802_v17, %v6671_v26  ;;  %vm1639_vm13 = vcmp.eq.s32.totalorder %v13994_v61, %v6699_v52 }
 0x541   :  { %4250 = vmatprep.mubr.f32.mxu1 %v4984_v58  ;;  %vm1896_vm5 = vmor %vm1192_vm9, %vm1640_vm0  ;;  %vm935_vm0 = vcmp.eq.s32.totalorder %v13993_v51, %v6699_v52  ;;  %vm487_vm9 = vcmp.eq.s32.totalorder %v13995_v4, %v6699_v52  ;;  %v4527_v51 = vpop.f32.mrb[62].mxu0 }
 0x542   :  { %vm2600_vm3 = vmor %vm1896_vm5, %vm2344_vm8  ;;  %v4528_v61 = vadd.f32 %v4527_v51, %v4142_v5  ;;  %v4529_v4 = vpop.f32.mrb[63].mxu0 }
 0x543   :  { %vm3304_vm6 = vmor %vm2600_vm3, %vm3048_vm15  ;;  %vm2343_vm15 = vcmp.eq.s32.totalorder %v12045_v50, %v6699_v52  ;;  %v4144_v50 = vpop.f32.mrb[63].mxu1  ;;  %v4532_v39 = vpop.f32.mrb[64].mxu0 }
 0x544   :  { %v4986_v48 = vsel %vm3304_vm6, 1.0, %v5392_v43  ;;  %vm1189_vm12 = vmor %vm485_vm7, %vm933_vm4  ;;  %vm3047_vm4 = vcmp.eq.s32.totalorder %v2802_v17, %v6699_v52  ;;  %vm1642_vm7 = vcmp.eq.s32.totalorder %v13997_v18, %v6682_v22  ;;  %v14002_v17 = vld [vmem:[#allocation6_spill] sm:$0xff]  ;;  %4722 = vst [vmem:[#allocation2 + $0xf8] sm:$0xff] %v4528_v61  ;;  %v4147_v37 = vpop.f32.mrb[64].mxu1  ;;  %v4534_v14 = vpop.f32.mrb[65].mxu0 }
 0x545   :  { %4635 = vmatprep.mubr.f32.mxu0 %v4986_v48  ;;  %vm1893_vm10 = vmor %vm1189_vm12, %vm1637_vm2  ;;  %vm938_vm2 = vcmp.eq.s32.totalorder %v13996_v13, %v6682_v22  ;;  %vm490_vm12 = vcmp.eq.s32.totalorder %v13998_v33, %v6682_v22  ;;  %v4533_v20 = vadd.f32 %v4532_v39, %v4147_v37  ;;  %v4149_v9 = vpop.f32.mrb[65].mxu1  ;;  %v4537_v25 = vpop.f32.mrb[66].mxu0 }
 0x546   :  { %vm2597_vm14 = vmor %vm1893_vm10, %vm2341_vm11  ;;  %v4152_v58 = vpop.f32.mrb[66].mxu1  ;;  %v4539_v48 = vpop.f32.mrb[67].mxu0 }
 0x547   :  { %vm3301_vm8 = vmor %vm2597_vm14, %vm3045_vm1  ;;  %vm2346_vm1 = vcmp.eq.s32.totalorder %v2101_v40, %v6682_v22  ;;  %4723 = vst [vmem:[#allocation2 + $0x100] sm:$0xff] %v4533_v20  ;;  %v4538_v10 = vadd.f32 %v4537_v25, %v4152_v58  ;;  %v4154_v3 = vpop.f32.mrb[67].mxu1 }
 0x548   :  { %v4983_v29 = vsel %vm3301_vm8, 1.0, %v5392_v43  ;;  %vm1191_vm5 = vmor %vm487_vm9, %vm935_vm0  ;;  %vm3050_vm0 = vcmp.eq.s32.totalorder %v12103_v47, %v6682_v22  ;;  %vm1644_vm9 = vcmp.eq.s32.totalorder %v13997_v18, %v6687_v21 }
 0x549   :  { %4251 = vmatmul.mubr.f32.gmra.mrb[106].mxu1 %v4983_v29  ;;  %vm1895_vm3 = vmor %vm1191_vm5, %vm1639_vm13  ;;  %vm940_vm13 = vcmp.eq.s32.totalorder %v13996_v13, %v6687_v21  ;;  %vm492_vm5 = vcmp.eq.s32.totalorder %v13998_v33, %v6687_v21  ;;  %v4542_v29 = vpop.f32.mrb[68].mxu0  ;;  %4724 = vst [vmem:[#allocation2 + $0x108] sm:$0xff] %v4538_v10 }
 0x54a   :  { %vm2599_vm6 = vmor %vm1895_vm3, %vm2343_vm15 }
 0x54b   :  { %vm3303_vm11 = vmor %vm2599_vm6, %vm3047_vm4  ;;  %vm2348_vm4 = vcmp.eq.s32.totalorder %v2101_v40, %v6687_v21 }
 0x54c   :  { %v4985_v53 = vsel %vm3303_vm11, 1.0, %v5392_v43  ;;  %vm1194_vm10 = vmor %vm490_vm12, %vm938_vm2  ;;  %vm3052_vm2 = vcmp.eq.s32.totalorder %v12103_v47, %v6687_v21  ;;  %vm1641_vm12 = vcmp.eq.s32.totalorder %v13997_v18, %v6671_v26 }
 0x54d   :  { %4636 = vmatmul.mubr.f32.gmra.mrb[106].mxu0 %v4985_v53  ;;  %vm1898_vm14 = vmor %vm1194_vm10, %vm1642_vm7  ;;  %vm937_vm7 = vcmp.eq.s32.totalorder %v13996_v13, %v6671_v26  ;;  %vm489_vm10 = vcmp.eq.s32.totalorder %v13998_v33, %v6671_v26 }
 0x54e   :  { %vm2602_vm8 = vmor %vm1898_vm14, %vm2346_vm1 }
 0x54f   :  { %vm3306_vm15 = vmor %vm2602_vm8, %vm3050_vm0  ;;  %vm2345_vm0 = vcmp.eq.s32.totalorder %v2101_v40, %v6671_v26 }
 0x550   :  { %v4988_v24 = vsel %vm3306_vm15, 1.0, %v5392_v43  ;;  %vm1196_vm3 = vmor %vm492_vm5, %vm940_vm13  ;;  %vm3049_vm13 = vcmp.eq.s32.totalorder %v12103_v47, %v6671_v26  ;;  %vm1643_vm5 = vcmp.eq.s32.totalorder %v13997_v18, %v6699_v52  ;;  %v4544_v18 = vpop.f32.mrb[69].mxu0 }
 0x551   :  { %4255 = vmatprep.mubr.f32.mxu1 %v4988_v24  ;;  %vm1900_vm6 = vmor %vm1196_vm3, %vm1644_vm9  ;;  %vm939_vm9 = vcmp.eq.s32.totalorder %v13996_v13, %v6699_v52  ;;  %vm491_vm3 = vcmp.eq.s32.totalorder %v13998_v33, %v6699_v52  ;;  %v4547_v53 = vpop.f32.mrb[70].mxu0  ;;  %v2817_v18 = vpop.permute.xlu1 %2816 }
 0x552   :  { %vm2604_vm11 = vmor %vm1900_vm6, %vm2348_vm4  ;;  %v4549_v16 = vpop.f32.mrb[71].mxu0 }
 0x553   :  { %vm3308_vm1 = vmor %vm2604_vm11, %vm3052_vm2  ;;  %vm2347_vm2 = vcmp.eq.s32.totalorder %v2101_v40, %v6699_v52  ;;  %v4157_v40 = vpop.f32.mrb[68].mxu1  ;;  %v4552_v24 = vpop.f32.mrb[72].mxu0 }
 0x554   :  { %v4990_v8 = vsel %vm3308_vm1, 1.0, %v5392_v43  ;;  %vm1193_vm14 = vmor %vm489_vm10, %vm937_vm7  ;;  %vm3051_vm7 = vcmp.eq.s32.totalorder %v12103_v47, %v6699_v52  ;;  %vm1646_vm10 = vcmp.eq.s32.totalorder %v14000_v55, %v6682_v22  ;;  %v4543_v47 = vadd.f32 %v4542_v29, %v4157_v40  ;;  %v4159_v13 = vpop.f32.mrb[69].mxu1  ;;  %v4554_v31 = vpop.f32.mrb[73].mxu0 }
 0x555   :  { %4640 = vmatprep.mubr.f32.mxu0 %v4990_v8  ;;  %vm1897_vm8 = vmor %vm1193_vm14, %vm1641_vm12  ;;  %vm942_vm12 = vcmp.eq.s32.totalorder %v13999_v45, %v6682_v22  ;;  %vm494_vm14 = vcmp.eq.s32.totalorder %v14001_v11, %v6682_v22  ;;  %v4162_v33 = vpop.f32.mrb[70].mxu1 }
 0x556   :  { %vm2601_vm15 = vmor %vm1897_vm8, %vm2345_vm0  ;;  %4725 = vst [vmem:[#allocation2 + $0x110] sm:$0xff] %v4543_v47  ;;  %v4548_v2 = vadd.f32 %v4547_v53, %v4162_v33  ;;  %v4164_v19 = vpop.f32.mrb[71].mxu1  ;;  %v14007_v33 = vld [vmem:[#allocation7_spill] sm:$0xff]  ;;  %v14008_v53 = vld [vmem:[#allocation73_spill] sm:$0xff] }
 0x557   :  { %vm3305_vm4 = vmor %vm2601_vm15, %vm3049_vm13  ;;  %vm2350_vm13 = vcmp.eq.s32.totalorder %v12133_v42, %v6682_v22  ;;  %v4167_v7 = vpop.f32.mrb[72].mxu1 }
 0x558   :  { %v4987_v41 = vsel %vm3305_vm4, 1.0, %v5392_v43  ;;  %vm1195_vm6 = vmor %vm491_vm3, %vm939_vm9  ;;  %vm3054_vm9 = vcmp.eq.s32.totalorder %v11951_v46, %v6682_v22  ;;  %vm1648_vm3 = vcmp.eq.s32.totalorder %v14000_v55, %v6687_v21  ;;  %4726 = vst [vmem:[#allocation2 + $0x118] sm:$0xff] %v4548_v2  ;;  %v4553_v8 = vadd.f32 %v4552_v24, %v4167_v7  ;;  %v12380_v24 = vpop.permute.xlu1 %2115 }
 0x559   :  { %4256 = vmatmul.mubr.f32.gmra.mrb[108].mxu1 %v4987_v41  ;;  %vm1899_vm11 = vmor %vm1195_vm6, %vm1643_vm5  ;;  %vm944_vm5 = vcmp.eq.s32.totalorder %v13999_v45, %v6687_v21  ;;  %vm496_vm6 = vcmp.eq.s32.totalorder %v14001_v11, %v6687_v21  ;;  %v4557_v41 = vpop.f32.mrb[74].mxu0 }
 0x55a   :  { %vm2603_vm1 = vmor %vm1899_vm11, %vm2347_vm2  ;;  %4727 = vst [vmem:[#allocation2 + $0x120] sm:$0xff] %v4553_v8  ;;  %v4559_v60 = vpop.f32.mrb[75].mxu0 }
 0x55b   :  { %vm3307_vm0 = vmor %vm2603_vm1, %vm3051_vm7  ;;  %vm2352_vm7 = vcmp.eq.s32.totalorder %v12133_v42, %v6687_v21 }
 0x55c   :  { %v4989_v54 = vsel %vm3307_vm0, 1.0, %v5392_v43  ;;  %vm1198_vm8 = vmor %vm494_vm14, %vm942_vm12  ;;  %vm3056_vm12 = vcmp.eq.s32.totalorder %v11951_v46, %v6687_v21  ;;  %vm1645_vm14 = vcmp.eq.s32.totalorder %v14000_v55, %v6671_v26 }
 0x55d   :  { %4641 = vmatmul.mubr.f32.gmra.mrb[108].mxu0 %v4989_v54  ;;  %vm1902_vm15 = vmor %vm1198_vm8, %vm1646_vm10  ;;  %vm941_vm10 = vcmp.eq.s32.totalorder %v13999_v45, %v6671_v26  ;;  %vm493_vm8 = vcmp.eq.s32.totalorder %v14001_v11, %v6671_v26  ;;  %v4562_v54 = vpop.f32.mrb[76].mxu0 }
 0x55e   :  { %vm2606_vm4 = vmor %vm1902_vm15, %vm2350_vm13  ;;  %v4564_v59 = vpop.f32.mrb[77].mxu0 }
 0x55f   :  { %vm3310_vm2 = vmor %vm2606_vm4, %vm3054_vm9  ;;  %vm2349_vm9 = vcmp.eq.s32.totalorder %v12133_v42, %v6671_v26 }
 0x560   :  { %v4992_v32 = vsel %vm3310_vm2, 1.0, %v5392_v43  ;;  %vm1200_vm11 = vmor %vm496_vm6, %vm944_vm5  ;;  %vm3053_vm5 = vcmp.eq.s32.totalorder %v11951_v46, %v6671_v26  ;;  %vm1647_vm6 = vcmp.eq.s32.totalorder %v14000_v55, %v6699_v52 }
 0x561   :  { %4260 = vmatprep.mubr.f32.mxu1 %v4992_v32  ;;  %vm1904_vm1 = vmor %vm1200_vm11, %vm1648_vm3  ;;  %vm943_vm3 = vcmp.eq.s32.totalorder %v13999_v45, %v6699_v52  ;;  %vm495_vm11 = vcmp.eq.s32.totalorder %v14001_v11, %v6699_v52 }
 0x562   :  { %vm2608_vm0 = vmor %vm1904_vm1, %vm2352_vm7 }
 0x563   :  { %vm3312_vm13 = vmor %vm2608_vm0, %vm3056_vm12  ;;  %vm2351_vm12 = vcmp.eq.s32.totalorder %v12133_v42, %v6699_v52  ;;  %v4169_v42 = vpop.f32.mrb[73].mxu1 }
 0x564   :  { %v4994_v1 = vsel %vm3312_vm13, 1.0, %v5392_v43  ;;  %vm1197_vm15 = vmor %vm493_vm8, %vm941_vm10  ;;  %vm3055_vm10 = vcmp.eq.s32.totalorder %v11951_v46, %v6699_v52  ;;  %vm1650_vm8 = vcmp.eq.s32.totalorder %v12194_v38, %v6682_v22  ;;  %v4172_v57 = vpop.f32.mrb[74].mxu1  ;;  %v1412_v42 = vpop.permute.xlu0 %1411 }
 0x565   :  { %4645 = vmatprep.mubr.f32.mxu0 %v4994_v1  ;;  %vm1901_vm4 = vmor %vm1197_vm15, %vm1645_vm14  ;;  %vm946_vm14 = vcmp.eq.s32.totalorder %v14002_v17, %v6682_v22  ;;  %vm498_vm15 = vcmp.eq.s32.totalorder %v14003_v23, %v6682_v22  ;;  %v4558_v36 = vadd.f32 %v4557_v41, %v4172_v57  ;;  %v4174_v55 = vpop.f32.mrb[75].mxu1  ;;  %v2820_v57 = vpop.permute.xlu1 %2819  ;;  %v14009_v41 = vld [vmem:[#allocation110_spill] sm:$0xff] }
 0x566   :  { %vm2605_vm2 = vmor %vm1901_vm4, %vm2349_vm9  ;;  %v4177_v11 = vpop.f32.mrb[76].mxu1 }
 0x567   :  { %vm3309_vm7 = vmor %vm2605_vm2, %vm3053_vm5  ;;  %vm2354_vm5 = vcmp.eq.s32.totalorder %v12149_v44, %v6682_v22  ;;  %4728 = vst [vmem:[#allocation2 + $0x128] sm:$0xff] %v4558_v36  ;;  %v4563_v34 = vadd.f32 %v4562_v54, %v4177_v11  ;;  %v4179_v6 = vpop.f32.mrb[77].mxu1 }
 0x568   :  { %v4991_v27 = vsel %vm3309_vm7, 1.0, %v5392_v43  ;;  %vm1199_vm1 = vmor %vm495_vm11, %vm943_vm3  ;;  %vm3058_vm3 = vcmp.eq.s32.totalorder %v12173_v62, %v6682_v22  ;;  %vm1652_vm11 = vcmp.eq.s32.totalorder %v12194_v38, %v6687_v21  ;;  %v4182_v32 = vpop.f32.mrb[78].mxu1 }
 0x569   :  { %4261 = vmatmul.mubr.f32.gmra.mrb[110].mxu1 %v4991_v27  ;;  %vm1903_vm0 = vmor %vm1199_vm1, %vm1647_vm6  ;;  %vm948_vm6 = vcmp.eq.s32.totalorder %v14002_v17, %v6687_v21  ;;  %vm500_vm1 = vcmp.eq.s32.totalorder %v14003_v23, %v6687_v21  ;;  %4729 = vst [vmem:[#allocation2 + $0x130] sm:$0xff] %v4563_v34  ;;  %v4184_v5 = vpop.f32.mrb[79].mxu1  ;;  %v2119_v34 = vpop.permute.xlu1 %2118 }
 0x56a   :  { %vm2607_vm13 = vmor %vm1903_vm0, %vm2351_vm12 }
 0x56b   :  { %vm3311_vm9 = vmor %vm2607_vm13, %vm3055_vm10  ;;  %vm2356_vm10 = vcmp.eq.s32.totalorder %v12149_v44, %v6687_v21 }
 0x56c   :  { %v4993_v46 = vsel %vm3311_vm9, 1.0, %v5392_v43  ;;  %vm1202_vm4 = vmor %vm498_vm15, %vm946_vm14  ;;  %vm3060_vm14 = vcmp.eq.s32.totalorder %v12173_v62, %v6687_v21  ;;  %vm1649_vm15 = vcmp.eq.s32.totalorder %v12194_v38, %v6671_v26 }
 0x56d   :  { %4646 = vmatmul.mubr.f32.gmra.mrb[110].mxu0 %v4993_v46  ;;  %vm1906_vm2 = vmor %vm1202_vm4, %vm1650_vm8  ;;  %vm945_vm8 = vcmp.eq.s32.totalorder %v14002_v17, %v6671_v26  ;;  %vm497_vm4 = vcmp.eq.s32.totalorder %v14003_v23, %v6671_v26 }
 0x56e   :  { %vm2610_vm7 = vmor %vm1906_vm2, %vm2354_vm5 }
 0x56f   :  { %vm3314_vm12 = vmor %vm2610_vm7, %vm3058_vm3  ;;  %vm2353_vm3 = vcmp.eq.s32.totalorder %v12149_v44, %v6671_v26 }
 0x570   :  { %v4996_v56 = vsel %vm3314_vm12, 1.0, %v5392_v43  ;;  %vm1204_vm0 = vmor %vm500_vm1, %vm948_vm6  ;;  %vm3057_vm6 = vcmp.eq.s32.totalorder %v12173_v62, %v6671_v26  ;;  %vm1651_vm1 = vcmp.eq.s32.totalorder %v12194_v38, %v6699_v52  ;;  %v4187_v38 = vpop.f32.mrb[80].mxu1 }
 0x571   :  { %4265 = vmatprep.mubr.f32.mxu1 %v4996_v56  ;;  %vm1908_vm13 = vmor %vm1204_vm0, %vm1652_vm11  ;;  %vm947_vm11 = vcmp.eq.s32.totalorder %v14002_v17, %v6699_v52  ;;  %vm499_vm0 = vcmp.eq.s32.totalorder %v14003_v23, %v6699_v52  ;;  %v4189_v51 = vpop.f32.mrb[81].mxu1 }
 0x572   :  { %vm2612_vm9 = vmor %vm1908_vm13, %vm2356_vm10  ;;  %v4192_v4 = vpop.f32.mrb[82].mxu1 }
 0x573   :  { %vm3316_vm5 = vmor %vm2612_vm9, %vm3060_vm14  ;;  %vm2355_vm14 = vcmp.eq.s32.totalorder %v12149_v44, %v6699_v52  ;;  %v4567_v44 = vpop.f32.mrb[78].mxu0  ;;  %v4194_v39 = vpop.f32.mrb[83].mxu1 }
 0x574   :  { %v4998_v0 = vsel %vm3316_vm5, 1.0, %v5392_v43  ;;  %vm1201_vm2 = vmor %vm497_vm4, %vm945_vm8  ;;  %vm3059_vm8 = vcmp.eq.s32.totalorder %v12173_v62, %v6699_v52  ;;  %vm1654_vm4 = vcmp.eq.s32.totalorder %v14005_v15, %v6682_v22  ;;  %v4568_v62 = vadd.f32 %v4567_v44, %v4182_v32  ;;  %v4569_v50 = vpop.f32.mrb[79].mxu0  ;;  %v4197_v9 = vpop.f32.mrb[84].mxu1  ;;  %v14012_v32 = vld [vmem:[#allocation10_spill] sm:$0xff] }
 0x575   :  { %4650 = vmatprep.mubr.f32.mxu0 %v4998_v0  ;;  %vm1905_vm7 = vmor %vm1201_vm2, %vm1649_vm15  ;;  %vm950_vm15 = vcmp.eq.s32.totalorder %v14004_v63, %v6682_v22  ;;  %vm502_vm2 = vcmp.eq.s32.totalorder %v14006_v12, %v6682_v22  ;;  %v4572_v27 = vpop.f32.mrb[80].mxu0  ;;  %v4199_v25 = vpop.f32.mrb[85].mxu1 }
 0x576   :  { %vm2609_vm12 = vmor %vm1905_vm7, %vm2353_vm3  ;;  %4730 = vst [vmem:[#allocation2 + $0x138] sm:$0xff] %v4568_v62  ;;  %v4573_v17 = vadd.f32 %v4572_v27, %v4187_v38  ;;  %v4574_v61 = vpop.f32.mrb[81].mxu0 }
 0x577   :  { %vm3313_vm10 = vmor %vm2609_vm12, %vm3057_vm6  ;;  %vm2358_vm6 = vcmp.eq.s32.totalorder %v12153_v30, %v6682_v22  ;;  %v4577_v23 = vpop.f32.mrb[82].mxu0 }
 0x578   :  { %v4995_v45 = vsel %vm3313_vm10, 1.0, %v5392_v43  ;;  %vm1203_vm13 = vmor %vm499_vm0, %vm947_vm11  ;;  %vm3062_vm11 = vcmp.eq.s32.totalorder %v12192_v35, %v6682_v22  ;;  %vm1656_vm0 = vcmp.eq.s32.totalorder %v14005_v15, %v6687_v21  ;;  %4731 = vst [vmem:[#allocation2 + $0x140] sm:$0xff] %v4573_v17  ;;  %v4578_v37 = vadd.f32 %v4577_v23, %v4192_v4  ;;  %v4579_v20 = vpop.f32.mrb[83].mxu0  ;;  %v12456_v17 = vpop.permute.xlu1 %1417 }
 0x579   :  { %4266 = vmatmul.mubr.f32.gmra.mrb[112].mxu1 %v4995_v45  ;;  %vm1907_vm9 = vmor %vm1203_vm13, %vm1651_vm1  ;;  %vm952_vm1 = vcmp.eq.s32.totalorder %v14004_v63, %v6687_v21  ;;  %vm504_vm13 = vcmp.eq.s32.totalorder %v14006_v12, %v6687_v21  ;;  %v4582_v14 = vpop.f32.mrb[84].mxu0 }
 0x57a   :  { %vm2611_vm5 = vmor %vm1907_vm9, %vm2355_vm14  ;;  %4732 = vst [vmem:[#allocation2 + $0x148] sm:$0xff] %v4578_v37  ;;  %v4583_v58 = vadd.f32 %v4582_v14, %v4197_v9  ;;  %v4584_v56 = vpop.f32.mrb[85].mxu0  ;;  %v14014_v37 = vld [vmem:[#allocation11_spill] sm:$0xff] }
 0x57b   :  { %vm3315_vm3 = vmor %vm2611_vm5, %vm3059_vm8  ;;  %vm2360_vm8 = vcmp.eq.s32.totalorder %v12153_v30, %v6687_v21 }
 0x57c   :  { %v4997_v1 = vsel %vm3315_vm3, 1.0, %v5392_v43  ;;  %vm1206_vm7 = vmor %vm502_vm2, %vm950_vm15  ;;  %vm3064_vm15 = vcmp.eq.s32.totalorder %v12192_v35, %v6687_v21  ;;  %vm1653_vm2 = vcmp.eq.s32.totalorder %v14005_v15, %v6671_v26  ;;  %v4202_v10 = vpop.f32.mrb[86].mxu1  ;;  %4733 = vst [vmem:[#allocation2 + $0x150] sm:$0xff] %v4583_v58  ;;  %v2122_v4 = vpop.permute.xlu1 %2121 }
 0x57d   :  { %4651 = vmatmul.mubr.f32.gmra.mrb[112].mxu0 %v4997_v1  ;;  %vm1910_vm12 = vmor %vm1206_vm7, %vm1654_vm4  ;;  %vm949_vm4 = vcmp.eq.s32.totalorder %v14004_v63, %v6671_v26  ;;  %vm501_vm7 = vcmp.eq.s32.totalorder %v14006_v12, %v6671_v26  ;;  %v4204_v29 = vpop.f32.mrb[87].mxu1 }
 0x57e   :  { %vm2614_vm10 = vmor %vm1910_vm12, %vm2358_vm6 }
 0x57f   :  { %vm3318_vm14 = vmor %vm2614_vm10, %vm3062_vm11  ;;  %vm2357_vm11 = vcmp.eq.s32.totalorder %v12153_v30, %v6671_v26 }
 0x580   :  { %v5000_v46 = vsel %vm3318_vm14, 1.0, %v5392_v43  ;;  %vm1208_vm9 = vmor %vm504_vm13, %vm952_vm1  ;;  %v4587_v3 = vpop.f32.mrb[86].mxu0  ;;  %vm3061_vm1 = vcmp.eq.s32.totalorder %v12192_v35, %v6671_v26  ;;  %vm1655_vm13 = vcmp.eq.s32.totalorder %v14005_v15, %v6699_v52  ;;  %v12425_v15 = vpop.permute.xlu0 %1414 }
 0x581   :  { %4270 = vmatprep.mubr.f32.mxu1 %v5000_v46  ;;  %vm1912_vm5 = vmor %vm1208_vm9, %vm1656_vm0  ;;  %v4588_v40 = vadd.f32 %v4587_v3, %v4202_v10  ;;  %v4589_v47 = vpop.f32.mrb[87].mxu0  ;;  %vm951_vm0 = vcmp.eq.s32.totalorder %v14004_v63, %v6699_v52  ;;  %vm503_vm9 = vcmp.eq.s32.totalorder %v14006_v12, %v6699_v52  ;;  %v14011_v12 = vld [vmem:[#allocation111_spill] sm:$0xff]  ;;  %v14013_v46 = vld [vmem:[#allocation112_spill] sm:$0xff]  ;;  %v12496_v10 = vpop.permute.xlu1 %1420 }
 0x582   :  { %vm2616_vm3 = vmor %vm1912_vm5, %vm2360_vm8  ;;  %v14015_v47 = vld [vmem:[#allocation113_spill] sm:$0xff] }
 0x583   :  { %vm3320_vm6 = vmor %vm2616_vm3, %vm3064_vm15  ;;  %4734 = vst [vmem:[#allocation2 + $0x158] sm:$0xff] %v4588_v40  ;;  %vm2359_vm15 = vcmp.eq.s32.totalorder %v12153_v30, %v6699_v52 }
 0x584   :  { %v5002_v48 = vsel %vm3320_vm6, 1.0, %v5392_v43  ;;  %vm1205_vm12 = vmor %vm501_vm7, %vm949_vm4  ;;  %vm3063_vm4 = vcmp.eq.s32.totalorder %v12192_v35, %v6699_v52  ;;  %vm1658_vm7 = vcmp.eq.s32.totalorder %v12214_v49, %v6682_v22  ;;  %v2823_v59 = vpop.permute.xlu0 %2822 }
 0x585   :  { %4655 = vmatprep.mubr.f32.mxu0 %v5002_v48  ;;  %vm1909_vm10 = vmor %vm1205_vm12, %vm1653_vm2  ;;  %vm954_vm2 = vcmp.eq.s32.totalorder %v14007_v33, %v6682_v22  ;;  %vm506_vm12 = vcmp.eq.s32.totalorder %v14008_v53, %v6682_v22  ;;  %v2829_v29 = vpop.permute.xlu1 %2828 }
 0x586   :  { %vm2613_vm14 = vmor %vm1909_vm10, %vm2357_vm11 }
 0x587   :  { %vm3317_vm8 = vmor %vm2613_vm14, %vm3061_vm1  ;;  %vm2362_vm1 = vcmp.eq.s32.totalorder %v12175_v28, %v6682_v22 }
 0x588   :  { %v4999_v13 = vsel %vm3317_vm8, 1.0, %v5392_v43  ;;  %vm1207_vm5 = vmor %vm503_vm9, %vm951_vm0  ;;  %vm3066_vm0 = vcmp.eq.s32.totalorder %v2817_v18, %v6682_v22  ;;  %vm1660_vm9 = vcmp.eq.s32.totalorder %v12214_v49, %v6687_v21  ;;  %v2826_v23 = vpop.permute.xlu0 %2825 }
 0x589   :  { %4271 = vmatmul.mubr.f32.gmra.mrb[114].mxu1 %v4999_v13  ;;  %vm1911_vm3 = vmor %vm1207_vm5, %vm1655_vm13  ;;  %vm956_vm13 = vcmp.eq.s32.totalorder %v14007_v33, %v6687_v21  ;;  %vm508_vm5 = vcmp.eq.s32.totalorder %v14008_v53, %v6687_v21  ;;  %v14016_v13 = vld [vmem:[#allocation12_spill] sm:$0xff] }
 0x58a   :  { %vm2615_vm6 = vmor %vm1911_vm3, %vm2359_vm15 }
 0x58b   :  { %vm3319_vm11 = vmor %vm2615_vm6, %vm3063_vm4  ;;  %vm2364_vm4 = vcmp.eq.s32.totalorder %v12175_v28, %v6687_v21 }
 0x58c   :  { %v5001_v30 = vsel %vm3319_vm11, 1.0, %v5392_v43  ;;  %vm1210_vm10 = vmor %vm506_vm12, %vm954_vm2  ;;  %v4207_v35 = vpop.f32.mrb[88].mxu1  ;;  %vm3068_vm2 = vcmp.eq.s32.totalorder %v2817_v18, %v6687_v21  ;;  %vm1657_vm12 = vcmp.eq.s32.totalorder %v12214_v49, %v6671_v26  ;;  %v2125_v40 = vpop.permute.xlu0 %2124 }
 0x58d   :  { %4656 = vmatmul.mubr.f32.gmra.mrb[114].mxu0 %v5001_v30  ;;  %vm1914_vm14 = vmor %vm1210_vm10, %vm1658_vm7  ;;  %v4209_v0 = vpop.f32.mrb[89].mxu1  ;;  %vm953_vm7 = vcmp.eq.s32.totalorder %v14007_v33, %v6671_v26  ;;  %vm505_vm10 = vcmp.eq.s32.totalorder %v14008_v53, %v6671_v26 }
 0x58e   :  { %vm2618_vm8 = vmor %vm1914_vm14, %vm2362_vm1 }
 0x58f   :  { %vm3322_vm15 = vmor %vm2618_vm8, %vm3066_vm0  ;;  %vm2361_vm0 = vcmp.eq.s32.totalorder %v12175_v28, %v6671_v26 }
 0x590   :  { %v5004_v2 = vsel %vm3322_vm15, 1.0, %v5392_v43  ;;  %vm1212_vm3 = vmor %vm508_vm5, %vm956_vm13  ;;  %v4592_v19 = vpop.f32.mrb[88].mxu0  ;;  %vm3065_vm13 = vcmp.eq.s32.totalorder %v2817_v18, %v6671_v26  ;;  %vm1659_vm5 = vcmp.eq.s32.totalorder %v12214_v49, %v6699_v52  ;;  %v14010_v49 = vld [vmem:[#allocation9_spill] sm:$0xff] }
 0x591   :  { %4275 = vmatprep.mubr.f32.mxu1 %v5004_v2  ;;  %vm1916_vm6 = vmor %vm1212_vm3, %vm1660_vm9  ;;  %v4593_v16 = vadd.f32 %v4592_v19, %v4207_v35  ;;  %v4594_v7 = vpop.f32.mrb[89].mxu0  ;;  %vm955_vm9 = vcmp.eq.s32.totalorder %v14007_v33, %v6699_v52  ;;  %vm507_vm3 = vcmp.eq.s32.totalorder %v14008_v53, %v6699_v52  ;;  %v12534_v19 = vpop.permute.xlu1 %1423 }
 0x592   :  { %vm2620_vm11 = vmor %vm1916_vm6, %vm2364_vm4 }
 0x593   :  { %vm3324_vm1 = vmor %vm2620_vm11, %vm3068_vm2  ;;  %4735 = vst [vmem:[#allocation2 + $0x160] sm:$0xff] %v4593_v16  ;;  %vm2363_vm2 = vcmp.eq.s32.totalorder %v12175_v28, %v6699_v52 }
 0x594   :  { %v5006_v8 = vsel %vm3324_vm1, 1.0, %v5392_v43  ;;  %vm1209_vm14 = vmor %vm505_vm10, %vm953_vm7  ;;  %vm3067_vm7 = vcmp.eq.s32.totalorder %v2817_v18, %v6699_v52  ;;  %vm1662_vm10 = vcmp.eq.s32.totalorder %v1412_v42, %v6682_v22 }
 0x595   :  { %4660 = vmatprep.mubr.f32.mxu0 %v5006_v8  ;;  %vm1913_vm8 = vmor %vm1209_vm14, %vm1657_vm12  ;;  %vm958_vm12 = vcmp.eq.s32.totalorder %v14009_v41, %v6682_v22  ;;  %vm510_vm14 = vcmp.eq.s32.totalorder %v14010_v49, %v6682_v22  ;;  %v2832_v8 = vpop.permute.xlu1 %2831 }
 0x596   :  { %vm2617_vm15 = vmor %vm1913_vm8, %vm2361_vm0 }
 0x597   :  { %vm3321_vm4 = vmor %vm2617_vm15, %vm3065_vm13  ;;  %vm2366_vm13 = vcmp.eq.s32.totalorder %v12380_v24, %v6682_v22 }
 0x598   :  { %v5003_v31 = vsel %vm3321_vm4, 1.0, %v5392_v43  ;;  %vm1211_vm6 = vmor %vm507_vm3, %vm955_vm9  ;;  %vm3070_vm9 = vcmp.eq.s32.totalorder %v2820_v57, %v6682_v22  ;;  %vm1664_vm3 = vcmp.eq.s32.totalorder %v1412_v42, %v6687_v21 }
 0x599   :  { %4276 = vmatmul.mubr.f32.gmra.mrb[116].mxu1 %v5003_v31  ;;  %vm1915_vm11 = vmor %vm1211_vm6, %vm1659_vm5  ;;  %vm960_vm5 = vcmp.eq.s32.totalorder %v14009_v41, %v6687_v21  ;;  %vm512_vm6 = vcmp.eq.s32.totalorder %v14010_v49, %v6687_v21  ;;  %v14018_v31 = vld [vmem:[#allocation13_spill] sm:$0xff] }
 0x59a   :  { %vm2619_vm1 = vmor %vm1915_vm11, %vm2363_vm2 }
 0x59b   :  { %vm3323_vm0 = vmor %vm2619_vm1, %vm3067_vm7  ;;  %vm2368_vm7 = vcmp.eq.s32.totalorder %v12380_v24, %v6687_v21 }
 0x59c   :  { %v5005_v28 = vsel %vm3323_vm0, 1.0, %v5392_v43  ;;  %vm1214_vm8 = vmor %vm510_vm14, %vm958_vm12  ;;  %v4212_v45 = vpop.f32.mrb[90].mxu1  ;;  %vm3072_vm12 = vcmp.eq.s32.totalorder %v2820_v57, %v6687_v21  ;;  %vm1661_vm14 = vcmp.eq.s32.totalorder %v1412_v42, %v6671_v26 }
 0x59d   :  { %4661 = vmatmul.mubr.f32.gmra.mrb[116].mxu0 %v5005_v28  ;;  %vm1918_vm15 = vmor %vm1214_vm8, %vm1662_vm10  ;;  %v4214_v36 = vpop.f32.mrb[91].mxu1  ;;  %vm957_vm10 = vcmp.eq.s32.totalorder %v14009_v41, %v6671_v26  ;;  %vm509_vm8 = vcmp.eq.s32.totalorder %v14010_v49, %v6671_v26 }
 0x59e   :  { %vm2622_vm4 = vmor %vm1918_vm15, %vm2366_vm13 }
 0x59f   :  { %vm3326_vm2 = vmor %vm2622_vm4, %vm3070_vm9  ;;  %vm2365_vm9 = vcmp.eq.s32.totalorder %v12380_v24, %v6671_v26 }
 0x5a0   :  { %v5008_v55 = vsel %vm3326_vm2, 1.0, %v5392_v43  ;;  %vm1216_vm11 = vmor %vm512_vm6, %vm960_vm5  ;;  %v4597_v60 = vpop.f32.mrb[90].mxu0  ;;  %vm3069_vm5 = vcmp.eq.s32.totalorder %v2820_v57, %v6671_v26  ;;  %vm1663_vm6 = vcmp.eq.s32.totalorder %v1412_v42, %v6699_v52  ;;  %v14017_v42 = vld [vmem:[#allocation114_spill] sm:$0xff] }
 0x5a1   :  { %4280 = vmatprep.mubr.f32.mxu1 %v5008_v55  ;;  %vm1920_vm1 = vmor %vm1216_vm11, %vm1664_vm3  ;;  %v4598_v63 = vadd.f32 %v4597_v60, %v4212_v45  ;;  %v4599_v11 = vpop.f32.mrb[91].mxu0  ;;  %vm959_vm3 = vcmp.eq.s32.totalorder %v14009_v41, %v6699_v52  ;;  %vm511_vm11 = vcmp.eq.s32.totalorder %v14010_v49, %v6699_v52 }
 0x5a2   :  { %vm2624_vm0 = vmor %vm1920_vm1, %vm2368_vm7 }
 0x5a3   :  { %vm3328_vm13 = vmor %vm2624_vm0, %vm3072_vm12  ;;  %4736 = vst [vmem:[#allocation2 + $0x168] sm:$0xff] %v4598_v63  ;;  %vm2367_vm12 = vcmp.eq.s32.totalorder %v12380_v24, %v6699_v52  ;;  %v2128_v24 = vpop.permute.xlu0 %2127 }
 0x5a4   :  { %v5010_v54 = vsel %vm3328_vm13, 1.0, %v5392_v43  ;;  %vm1213_vm15 = vmor %vm509_vm8, %vm957_vm10  ;;  %vm3071_vm10 = vcmp.eq.s32.totalorder %v2820_v57, %v6699_v52  ;;  %vm1666_vm8 = vcmp.eq.s32.totalorder %v12425_v15, %v6682_v22 }
 0x5a5   :  { %4665 = vmatprep.mubr.f32.mxu0 %v5010_v54  ;;  %vm1917_vm4 = vmor %vm1213_vm15, %vm1661_vm14  ;;  %vm962_vm14 = vcmp.eq.s32.totalorder %v14011_v12, %v6682_v22  ;;  %vm514_vm15 = vcmp.eq.s32.totalorder %v14012_v32, %v6682_v22 }
 0x5a6   :  { %vm2621_vm2 = vmor %vm1917_vm4, %vm2365_vm9 }
 0x5a7   :  { %vm3325_vm7 = vmor %vm2621_vm2, %vm3069_vm5  ;;  %vm2370_vm5 = vcmp.eq.s32.totalorder %v2119_v34, %v6682_v22 }
 0x5a8   :  { %v5007_v6 = vsel %vm3325_vm7, 1.0, %v5392_v43  ;;  %vm1215_vm1 = vmor %vm511_vm11, %vm959_vm3  ;;  %vm3074_vm3 = vcmp.eq.s32.totalorder %v2823_v59, %v6682_v22  ;;  %vm1668_vm11 = vcmp.eq.s32.totalorder %v12425_v15, %v6687_v21 }
 0x5a9   :  { %4281 = vmatmul.mubr.f32.gmra.mrb[118].mxu1 %v5007_v6  ;;  %vm1919_vm0 = vmor %vm1215_vm1, %vm1663_vm6  ;;  %vm964_vm6 = vcmp.eq.s32.totalorder %v14011_v12, %v6687_v21  ;;  %vm516_vm1 = vcmp.eq.s32.totalorder %v14012_v32, %v6687_v21 }
 0x5aa   :  { %vm2623_vm13 = vmor %vm1919_vm0, %vm2367_vm12 }
 0x5ab   :  { %vm3327_vm9 = vmor %vm2623_vm13, %vm3071_vm10  ;;  %vm2372_vm10 = vcmp.eq.s32.totalorder %v2119_v34, %v6687_v21 }
 0x5ac   :  { %v5009_v44 = vsel %vm3327_vm9, 1.0, %v5392_v43  ;;  %vm1218_vm4 = vmor %vm514_vm15, %vm962_vm14  ;;  %v4217_v1 = vpop.f32.mrb[92].mxu1  ;;  %vm3076_vm14 = vcmp.eq.s32.totalorder %v2823_v59, %v6687_v21  ;;  %vm1665_vm15 = vcmp.eq.s32.totalorder %v12425_v15, %v6671_v26 }
 0x5ad   :  { %4666 = vmatmul.mubr.f32.gmra.mrb[118].mxu0 %v5009_v44  ;;  %vm1922_vm2 = vmor %vm1218_vm4, %vm1666_vm8  ;;  %v4219_v62 = vpop.f32.mrb[93].mxu1  ;;  %vm961_vm8 = vcmp.eq.s32.totalorder %v14011_v12, %v6671_v26  ;;  %vm513_vm4 = vcmp.eq.s32.totalorder %v14012_v32, %v6671_v26 }
 0x5ae   :  { %vm2626_vm7 = vmor %vm1922_vm2, %vm2370_vm5 }
 0x5af   :  { %vm3330_vm12 = vmor %vm2626_vm7, %vm3074_vm3  ;;  %vm2369_vm3 = vcmp.eq.s32.totalorder %v2119_v34, %v6671_v26 }
 0x5b0   :  { %v5012_v5 = vsel %vm3330_vm12, 1.0, %v5392_v43  ;;  %vm1220_vm0 = vmor %vm516_vm1, %vm964_vm6  ;;  %v4602_v50 = vpop.f32.mrb[92].mxu0  ;;  %vm3073_vm6 = vcmp.eq.s32.totalorder %v2823_v59, %v6671_v26  ;;  %vm1667_vm1 = vcmp.eq.s32.totalorder %v12425_v15, %v6699_v52 }
 0x5b1   :  { %4285 = vmatprep.mubr.f32.mxu1 %v5012_v5  ;;  %vm1924_vm13 = vmor %vm1220_vm0, %vm1668_vm11  ;;  %v4603_v38 = vadd.f32 %v4602_v50, %v4217_v1  ;;  %v4604_v27 = vpop.f32.mrb[93].mxu0  ;;  %vm963_vm11 = vcmp.eq.s32.totalorder %v14011_v12, %v6699_v52  ;;  %vm515_vm0 = vcmp.eq.s32.totalorder %v14012_v32, %v6699_v52 }
 0x5b2   :  { %vm2628_vm9 = vmor %vm1924_vm13, %vm2372_vm10 }
 0x5b3   :  { %vm3332_vm5 = vmor %vm2628_vm9, %vm3076_vm14  ;;  %4737 = vst [vmem:[#allocation2 + $0x170] sm:$0xff] %v4603_v38  ;;  %vm2371_vm14 = vcmp.eq.s32.totalorder %v2119_v34, %v6699_v52 }
 0x5b4   :  { %v5014_v51 = vsel %vm3332_vm5, 1.0, %v5392_v43  ;;  %vm1217_vm2 = vmor %vm513_vm4, %vm961_vm8  ;;  %vm3075_vm8 = vcmp.eq.s32.totalorder %v2823_v59, %v6699_v52  ;;  %vm1670_vm4 = vcmp.eq.s32.totalorder %v12456_v17, %v6682_v22 }
 0x5b5   :  { %4670 = vmatprep.mubr.f32.mxu0 %v5014_v51  ;;  %vm1921_vm7 = vmor %vm1217_vm2, %vm1665_vm15  ;;  %vm966_vm15 = vcmp.eq.s32.totalorder %v14013_v46, %v6682_v22  ;;  %vm518_vm2 = vcmp.eq.s32.totalorder %v14014_v37, %v6682_v22 }
 0x5b6   :  { %vm2625_vm12 = vmor %vm1921_vm7, %vm2369_vm3 }
 0x5b7   :  { %vm3329_vm10 = vmor %vm2625_vm12, %vm3073_vm6  ;;  %vm2374_vm6 = vcmp.eq.s32.totalorder %v2122_v4, %v6682_v22 }
 0x5b8   :  { %v5011_v61 = vsel %vm3329_vm10, 1.0, %v5392_v43  ;;  %vm1219_vm13 = vmor %vm515_vm0, %vm963_vm11  ;;  %vm3078_vm11 = vcmp.eq.s32.totalorder %v2826_v23, %v6682_v22  ;;  %vm1672_vm0 = vcmp.eq.s32.totalorder %v12456_v17, %v6687_v21 }
 0x5b9   :  { %4286 = vmatmul.mubr.f32.gmra.mrb[120].mxu1 %v5011_v61  ;;  %vm1923_vm9 = vmor %vm1219_vm13, %vm1667_vm1  ;;  %vm968_vm1 = vcmp.eq.s32.totalorder %v14013_v46, %v6687_v21  ;;  %vm520_vm13 = vcmp.eq.s32.totalorder %v14014_v37, %v6687_v21 }
 0x5ba   :  { %vm2627_vm5 = vmor %vm1923_vm9, %vm2371_vm14 }
 0x5bb   :  { %vm3331_vm3 = vmor %vm2627_vm5, %vm3075_vm8  ;;  %vm2376_vm8 = vcmp.eq.s32.totalorder %v2122_v4, %v6687_v21 }
 0x5bc   :  { %v5013_v39 = vsel %vm3331_vm3, 1.0, %v5392_v43  ;;  %vm1222_vm7 = vmor %vm518_vm2, %vm966_vm15  ;;  %v4222_v20 = vpop.f32.mrb[94].mxu1  ;;  %vm3080_vm15 = vcmp.eq.s32.totalorder %v2826_v23, %v6687_v21  ;;  %vm1669_vm2 = vcmp.eq.s32.totalorder %v12456_v17, %v6671_v26 }
 0x5bd   :  { %4671 = vmatmul.mubr.f32.gmra.mrb[120].mxu0 %v5013_v39  ;;  %vm1926_vm12 = vmor %vm1222_vm7, %vm1670_vm4  ;;  %v4224_v9 = vpop.f32.mrb[95].mxu1  ;;  %vm965_vm4 = vcmp.eq.s32.totalorder %v14013_v46, %v6671_v26  ;;  %vm517_vm7 = vcmp.eq.s32.totalorder %v14014_v37, %v6671_v26 }
 0x5be   :  { %vm2630_vm10 = vmor %vm1926_vm12, %vm2374_vm6 }
 0x5bf   :  { %vm3334_vm14 = vmor %vm2630_vm10, %vm3078_vm11  ;;  %vm2373_vm11 = vcmp.eq.s32.totalorder %v2122_v4, %v6671_v26 }
 0x5c0   :  { %v5016_v14 = vsel %vm3334_vm14, 1.0, %v5392_v43  ;;  %vm1224_vm9 = vmor %vm520_vm13, %vm968_vm1  ;;  %v4607_v58 = vpop.f32.mrb[94].mxu0  ;;  %vm3077_vm1 = vcmp.eq.s32.totalorder %v2826_v23, %v6671_v26  ;;  %vm1671_vm13 = vcmp.eq.s32.totalorder %v12456_v17, %v6699_v52 }
 0x5c1   :  { %4290 = vmatprep.mubr.f32.mxu1 %v5016_v14  ;;  %vm1928_vm5 = vmor %vm1224_vm9, %vm1672_vm0  ;;  %v4608_v25 = vadd.f32 %v4607_v58, %v4222_v20  ;;  %v4609_v56 = vpop.f32.mrb[95].mxu0  ;;  %vm967_vm0 = vcmp.eq.s32.totalorder %v14013_v46, %v6699_v52  ;;  %vm519_vm9 = vcmp.eq.s32.totalorder %v14014_v37, %v6699_v52 }
 0x5c2   :  { %vm2632_vm3 = vmor %vm1928_vm5, %vm2376_vm8 }
 0x5c3   :  { %vm3336_vm6 = vmor %vm2632_vm3, %vm3080_vm15  ;;  %4738 = vst [vmem:[#allocation2 + $0x178] sm:$0xff] %v4608_v25  ;;  %vm2375_vm15 = vcmp.eq.s32.totalorder %v2122_v4, %v6699_v52 }
 0x5c4   :  { %v5018_v3 = vsel %vm3336_vm6, 1.0, %v5392_v43  ;;  %vm1221_vm12 = vmor %vm517_vm7, %vm965_vm4  ;;  %vm3079_vm4 = vcmp.eq.s32.totalorder %v2826_v23, %v6699_v52  ;;  %vm1674_vm7 = vcmp.eq.s32.totalorder %v12496_v10, %v6682_v22 }
 0x5c5   :  { %4675 = vmatprep.mubr.f32.mxu0 %v5018_v3  ;;  %vm1925_vm10 = vmor %vm1221_vm12, %vm1669_vm2  ;;  %vm970_vm2 = vcmp.eq.s32.totalorder %v14015_v47, %v6682_v22  ;;  %vm522_vm12 = vcmp.eq.s32.totalorder %v14016_v13, %v6682_v22 }
 0x5c6   :  { %vm2629_vm14 = vmor %vm1925_vm10, %vm2373_vm11 }
 0x5c7   :  { %vm3333_vm8 = vmor %vm2629_vm14, %vm3077_vm1  ;;  %vm2378_vm1 = vcmp.eq.s32.totalorder %v2125_v40, %v6682_v22 }
 0x5c8   :  { %v5015_v48 = vsel %vm3333_vm8, 1.0, %v5392_v43  ;;  %vm1223_vm5 = vmor %vm519_vm9, %vm967_vm0  ;;  %vm3082_vm0 = vcmp.eq.s32.totalorder %v2829_v29, %v6682_v22  ;;  %vm1676_vm9 = vcmp.eq.s32.totalorder %v12496_v10, %v6687_v21 }
 0x5c9   :  { %4291 = vmatmul.mubr.f32.gmra.mrb[122].mxu1 %v5015_v48  ;;  %vm1927_vm3 = vmor %vm1223_vm5, %vm1671_vm13  ;;  %vm972_vm13 = vcmp.eq.s32.totalorder %v14015_v47, %v6687_v21  ;;  %vm524_vm5 = vcmp.eq.s32.totalorder %v14016_v13, %v6687_v21 }
 0x5ca   :  { %vm2631_vm6 = vmor %vm1927_vm3, %vm2375_vm15 }
 0x5cb   :  { %vm3335_vm11 = vmor %vm2631_vm6, %vm3079_vm4  ;;  %vm2380_vm4 = vcmp.eq.s32.totalorder %v2125_v40, %v6687_v21 }
 0x5cc   :  { %v5017_v18 = vsel %vm3335_vm11, 1.0, %v5392_v43  ;;  %vm1226_vm10 = vmor %vm522_vm12, %vm970_vm2  ;;  %v4227_v33 = vpop.f32.mrb[96].mxu1  ;;  %vm3084_vm2 = vcmp.eq.s32.totalorder %v2829_v29, %v6687_v21  ;;  %vm1673_vm12 = vcmp.eq.s32.totalorder %v12496_v10, %v6671_v26 }
 0x5cd   :  { %4676 = vmatmul.mubr.f32.gmra.mrb[122].mxu0 %v5017_v18  ;;  %vm1930_vm14 = vmor %vm1226_vm10, %vm1674_vm7  ;;  %v4229_v53 = vpop.f32.mrb[97].mxu1  ;;  %vm969_vm7 = vcmp.eq.s32.totalorder %v14015_v47, %v6671_v26  ;;  %vm521_vm10 = vcmp.eq.s32.totalorder %v14016_v13, %v6671_v26 }
 0x5ce   :  { %vm2634_vm8 = vmor %vm1930_vm14, %vm2378_vm1 }
 0x5cf   :  { %vm3338_vm15 = vmor %vm2634_vm8, %vm3082_vm0  ;;  %vm2377_vm0 = vcmp.eq.s32.totalorder %v2125_v40, %v6671_v26 }
 0x5d0   :  { %v5020_v30 = vsel %vm3338_vm15, 1.0, %v5392_v43  ;;  %vm1228_vm3 = vmor %vm524_vm5, %vm972_vm13  ;;  %v4612_v35 = vpop.f32.mrb[96].mxu0  ;;  %vm3081_vm13 = vcmp.eq.s32.totalorder %v2829_v29, %v6671_v26  ;;  %vm1675_vm5 = vcmp.eq.s32.totalorder %v12496_v10, %v6699_v52 }
 0x5d1   :  { %4295 = vmatprep.mubr.f32.mxu1 %v5020_v30  ;;  %vm1932_vm6 = vmor %vm1228_vm3, %vm1676_vm9  ;;  %v4613_v0 = vadd.f32 %v4612_v35, %v4227_v33  ;;  %v4614_v2 = vpop.f32.mrb[97].mxu0  ;;  %vm971_vm9 = vcmp.eq.s32.totalorder %v14015_v47, %v6699_v52  ;;  %vm523_vm3 = vcmp.eq.s32.totalorder %v14016_v13, %v6699_v52 }
 0x5d2   :  { %vm2636_vm11 = vmor %vm1932_vm6, %vm2380_vm4 }
 0x5d3   :  { %vm3340_vm1 = vmor %vm2636_vm11, %vm3084_vm2  ;;  %4739 = vst [vmem:[#allocation2 + $0x180] sm:$0xff] %v4613_v0  ;;  %vm2379_vm2 = vcmp.eq.s32.totalorder %v2125_v40, %v6699_v52 }
 0x5d4   :  { %v5022_v16 = vsel %vm3340_vm1, 1.0, %v5392_v43  ;;  %vm1225_vm14 = vmor %vm521_vm10, %vm969_vm7  ;;  %vm3083_vm7 = vcmp.eq.s32.totalorder %v2829_v29, %v6699_v52  ;;  %vm1678_vm10 = vcmp.eq.s32.totalorder %v12534_v19, %v6682_v22 }
 0x5d5   :  { %4680 = vmatprep.mubr.f32.mxu0 %v5022_v16  ;;  %vm1929_vm8 = vmor %vm1225_vm14, %vm1673_vm12  ;;  %vm974_vm12 = vcmp.eq.s32.totalorder %v14017_v42, %v6682_v22  ;;  %vm2382_vm14 = vcmp.eq.s32.totalorder %v2128_v24, %v6682_v22 }
 0x5d6   :  { %vm2633_vm15 = vmor %vm1929_vm8, %vm2377_vm0  ;;  %vm3086_vm8 = vcmp.eq.s32.totalorder %v2832_v8, %v6682_v22 }
 0x5d7   :  { %vm3337_vm4 = vmor %vm2633_vm15, %vm3081_vm13  ;;  %vm526_vm13 = vcmp.eq.s32.totalorder %v14018_v31, %v6682_v22 }
 0x5d8   :  { %v5019_v7 = vsel %vm3337_vm4, 1.0, %v5392_v43  ;;  %vm1227_vm6 = vmor %vm523_vm3, %vm971_vm9  ;;  %vm1680_vm3 = vcmp.eq.s32.totalorder %v12534_v19, %v6687_v21 }
 0x5d9   :  { %4296 = vmatmul.mubr.f32.gmra.mrb[124].mxu1 %v5019_v7  ;;  %vm1931_vm11 = vmor %vm1227_vm6, %vm1675_vm5  ;;  %vm976_vm5 = vcmp.eq.s32.totalorder %v14017_v42, %v6687_v21 }
 0x5da   :  { %vm2635_vm1 = vmor %vm1931_vm11, %vm2379_vm2  ;;  %vm2384_vm2 = vcmp.eq.s32.totalorder %v2128_v24, %v6687_v21  ;;  %vm3088_vm11 = vcmp.eq.s32.totalorder %v2832_v8, %v6687_v21 }
 0x5db   :  { %vm3339_vm0 = vmor %vm2635_vm1, %vm3083_vm7  ;;  %vm528_vm7 = vcmp.eq.s32.totalorder %v14018_v31, %v6687_v21 }
 0x5dc   :  { %v5021_v57 = vsel %vm3339_vm0, 1.0, %v5392_v43  ;;  %vm1230_vm9 = vmor %vm526_vm13, %vm974_vm12  ;;  %v4232_v41 = vpop.f32.mrb[98].mxu1  ;;  %vm2381_vm13 = vcmp.eq.s32.totalorder %v2128_v24, %v6671_v26 }
 0x5dd   :  { %4681 = vmatmul.mubr.f32.gmra.mrb[124].mxu0 %v5021_v57  ;;  %vm1934_vm15 = vmor %vm1230_vm9, %vm1678_vm10  ;;  %v4234_v49 = vpop.f32.mrb[99].mxu1  ;;  %vm973_vm10 = vcmp.eq.s32.totalorder %v14017_v42, %v6671_v26  ;;  %vm525_vm9 = vcmp.eq.s32.totalorder %v14018_v31, %v6671_v26 }
 0x5de   :  { %vm2638_vm4 = vmor %vm1934_vm15, %vm2382_vm14  ;;  %vm1677_vm14 = vcmp.eq.s32.totalorder %v12534_v19, %v6671_v26  ;;  %vm3085_vm15 = vcmp.eq.s32.totalorder %v2832_v8, %v6671_v26 }
 0x5df   :  { %vm3342_vm6 = vmor %vm2638_vm4, %vm3086_vm8 }
 0x5e0   :  { %v5024_v22 = vsel %vm3342_vm6, 1.0, %v5392_v43  ;;  %vm1232_vm12 = vmor %vm528_vm7, %vm976_vm5  ;;  %v4617_v28 = vpop.f32.mrb[98].mxu0  ;;  %vm1679_vm6 = vcmp.eq.s32.totalorder %v12534_v19, %v6699_v52  ;;  %vm2383_vm7 = vcmp.eq.s32.totalorder %v2128_v24, %v6699_v52 }
 0x5e1   :  { %4300 = vmatprep.mubr.f32.mxu1 %v5024_v22  ;;  %vm1936_vm1 = vmor %vm1232_vm12, %vm1680_vm3  ;;  %v4618_v45 = vadd.f32 %v4617_v28, %v4232_v41  ;;  %v4619_v36 = vpop.f32.mrb[99].mxu0  ;;  %vm975_vm3 = vcmp.eq.s32.totalorder %v14017_v42, %v6699_v52  ;;  %vm527_vm12 = vcmp.eq.s32.totalorder %v14018_v31, %v6699_v52 }
 0x5e2   :  { %vm2640_vm0 = vmor %vm1936_vm1, %vm2384_vm2  ;;  %vm3087_vm1 = vcmp.eq.s32.totalorder %v2832_v8, %v6699_v52 }
 0x5e3   :  { %vm3344_vm8 = vmor %vm2640_vm0, %vm3088_vm11  ;;  %4740 = vst [vmem:[#allocation2 + $0x188] sm:$0xff] %v4618_v45 }
 0x5e4   :  { %v5026_v21 = vsel %vm3344_vm8, 1.0, %v5392_v43  ;;  %vm1229_vm5 = vmor %vm525_vm9, %vm973_vm10 }
 0x5e5   :  { %4685 = vmatprep.mubr.f32.mxu0 %v5026_v21  ;;  %vm1933_vm4 = vmor %vm1229_vm5, %vm1677_vm14 }
 0x5e6   :  { %vm2637_vm2 = vmor %vm1933_vm4, %vm2381_vm13 }
 0x5e7   :  { %vm3341_vm11 = vmor %vm2637_vm2, %vm3085_vm15 }
 0x5e8   :  { %v5023_v26 = vsel %vm3341_vm11, 1.0, %v5392_v43  ;;  %vm1231_vm10 = vmor %vm527_vm12, %vm975_vm3 }
 0x5e9   :  { %4301 = vmatmul.mubr.f32.gmra.mrb[126].mxu1 %v5023_v26  ;;  %vm1935_vm0 = vmor %vm1231_vm10, %vm1679_vm6 }
 0x5ea   :  { %vm2639_vm14 = vmor %vm1935_vm0, %vm2383_vm7 }
 0x5eb   :  { %vm3343_vm8 = vmor %vm2639_vm14, %vm3087_vm1 }
 0x5ec   :  { %v5025_v55 = vsel %vm3343_vm8, 1.0, %v5392_v43  ;;  %v4237_v60 = vpop.f32.mrb[100].mxu1 }
 0x5ed   :  { %4686 = vmatmul.mubr.f32.gmra.mrb[126].mxu0 %v5025_v55  ;;  %v4239_v63 = vpop.f32.mrb[101].mxu1 }
 0x5f0   :  { %v4622_v11 = vpop.f32.mrb[100].mxu0 }
 0x5f1   :  { %v4623_v54 = vadd.f32 %v4622_v11, %v4237_v60  ;;  %v4624_v15 = vpop.f32.mrb[101].mxu0 }
 0x5f3   :  { %4741 = vst [vmem:[#allocation2 + $0x190] sm:$0xff] %v4623_v54 }
 0x5fc   :  { %v4242_v34 = vpop.f32.mrb[102].mxu1 }
 0x5fd   :  { %v4244_v6 = vpop.f32.mrb[103].mxu1 }
 0x600   :  { %v4627_v59 = vpop.f32.mrb[102].mxu0 }
 0x601   :  { %v4628_v52 = vadd.f32 %v4627_v59, %v4242_v34  ;;  %v4629_v12 = vpop.f32.mrb[103].mxu0 }
 0x603   :  { %4742 = vst [vmem:[#allocation2 + $0x198] sm:$0xff] %v4628_v52 }
 0x60c   :  { %v4247_v32 = vpop.f32.mrb[104].mxu1 }
 0x60d   :  { %v4249_v44 = vpop.f32.mrb[105].mxu1 }
 0x610   :  { %v4632_v1 = vpop.f32.mrb[104].mxu0 }
 0x611   :  { %v4633_v62 = vadd.f32 %v4632_v1, %v4247_v32  ;;  %v4634_v5 = vpop.f32.mrb[105].mxu0 }
 0x613   :  { %4743 = vst [vmem:[#allocation2 + $0x1a0] sm:$0xff] %v4633_v62 }
 0x61c   :  { %v4252_v43 = vpop.f32.mrb[106].mxu1 }
 0x61d   :  { %v4254_v50 = vpop.f32.mrb[107].mxu1 }
 0x620   :  { %v4637_v38 = vpop.f32.mrb[106].mxu0 }
 0x621   :  { %v4638_v27 = vadd.f32 %v4637_v38, %v4252_v43  ;;  %v4639_v17 = vpop.f32.mrb[107].mxu0 }
 0x623   :  { %4744 = vst [vmem:[#allocation2 + $0x1a8] sm:$0xff] %v4638_v27 }
 0x62c   :  { %v4257_v51 = vpop.f32.mrb[108].mxu1 }
 0x62d   :  { %v4259_v61 = vpop.f32.mrb[109].mxu1 }
 0x630   :  { %v4642_v4 = vpop.f32.mrb[108].mxu0 }
 0x631   :  { %v4643_v23 = vadd.f32 %v4642_v4, %v4257_v51  ;;  %v4644_v46 = vpop.f32.mrb[109].mxu0 }
 0x633   :  { %4745 = vst [vmem:[#allocation2 + $0x1b0] sm:$0xff] %v4643_v23 }
 0x63c   :  { %v4262_v37 = vpop.f32.mrb[110].mxu1 }
 0x63d   :  { %v4264_v39 = vpop.f32.mrb[111].mxu1 }
 0x640   :  { %v4647_v20 = vpop.f32.mrb[110].mxu0 }
 0x641   :  { %v4648_v9 = vadd.f32 %v4647_v20, %v4262_v37  ;;  %v4649_v14 = vpop.f32.mrb[111].mxu0 }
 0x643   :  { %4746 = vst [vmem:[#allocation2 + $0x1b8] sm:$0xff] %v4648_v9 }
 0x64c   :  { %v4267_v58 = vpop.f32.mrb[112].mxu1 }
 0x64d   :  { %v4269_v25 = vpop.f32.mrb[113].mxu1 }
 0x650   :  { %v4652_v56 = vpop.f32.mrb[112].mxu0 }
 0x651   :  { %v4653_v10 = vadd.f32 %v4652_v56, %v4267_v58  ;;  %v4654_v3 = vpop.f32.mrb[113].mxu0 }
 0x653   :  { %4747 = vst [vmem:[#allocation2 + $0x1c0] sm:$0xff] %v4653_v10 }
 0x65c   :  { %v4272_v48 = vpop.f32.mrb[114].mxu1 }
 0x65d   :  { %v4274_v40 = vpop.f32.mrb[115].mxu1 }
 0x660   :  { %v4657_v29 = vpop.f32.mrb[114].mxu0 }
 0x661   :  { %v4658_v47 = vadd.f32 %v4657_v29, %v4272_v48  ;;  %v4659_v13 = vpop.f32.mrb[115].mxu0 }
 0x663   :  { %4748 = vst [vmem:[#allocation2 + $0x1c8] sm:$0xff] %v4658_v47 }
 0x66c   :  { %v4277_v18 = vpop.f32.mrb[116].mxu1 }
 0x66d   :  { %v4279_v33 = vpop.f32.mrb[117].mxu1 }
 0x670   :  { %v4662_v53 = vpop.f32.mrb[116].mxu0 }
 0x671   :  { %v4663_v30 = vadd.f32 %v4662_v53, %v4277_v18  ;;  %v4664_v35 = vpop.f32.mrb[117].mxu0 }
 0x673   :  { %4749 = vst [vmem:[#allocation2 + $0x1d0] sm:$0xff] %v4663_v30 }
 0x67c   :  { %v4282_v0 = vpop.f32.mrb[118].mxu1 }
 0x67d   :  { %v4284_v2 = vpop.f32.mrb[119].mxu1 }
 0x680   :  { %v4667_v19 = vpop.f32.mrb[118].mxu0 }
 0x681   :  { %v4668_v16 = vadd.f32 %v4667_v19, %v4282_v0  ;;  %v4669_v7 = vpop.f32.mrb[119].mxu0 }
 0x683   :  { %4750 = vst [vmem:[#allocation2 + $0x1d8] sm:$0xff] %v4668_v16 }
 0x68c   :  { %v4287_v24 = vpop.f32.mrb[120].mxu1 }
 0x68d   :  { %v4289_v8 = vpop.f32.mrb[121].mxu1 }
 0x690   :  { %v4672_v42 = vpop.f32.mrb[120].mxu0 }
 0x691   :  { %v4673_v31 = vadd.f32 %v4672_v42, %v4287_v24  ;;  %v4674_v57 = vpop.f32.mrb[121].mxu0 }
 0x693   :  { %4751 = vst [vmem:[#allocation2 + $0x1e0] sm:$0xff] %v4673_v31 }
 0x69c   :  { %v4292_v41 = vpop.f32.mrb[122].mxu1 }
 0x69d   :  { %v4294_v49 = vpop.f32.mrb[123].mxu1 }
 0x6a0   :  { %v4677_v22 = vpop.f32.mrb[122].mxu0 }
 0x6a1   :  { %v4678_v28 = vadd.f32 %v4677_v22, %v4292_v41  ;;  %v4679_v45 = vpop.f32.mrb[123].mxu0 }
 0x6a3   :  { %4752 = vst [vmem:[#allocation2 + $0x1e8] sm:$0xff] %v4678_v28 }
 0x6ac   :  { %v4297_v36 = vpop.f32.mrb[124].mxu1 }
 0x6ad   :  { %v4299_v21 = vpop.f32.mrb[125].mxu1 }
 0x6b0   :  { %v4682_v26 = vpop.f32.mrb[124].mxu0 }
 0x6b1   :  { %v4683_v55 = vadd.f32 %v4682_v26, %v4297_v36  ;;  %v4684_v60 = vpop.f32.mrb[125].mxu0 }
 0x6b3   :  { %4753 = vst [vmem:[#allocation2 + $0x1f0] sm:$0xff] %v4683_v55 }
 0x6bc   :  { %v4302_v63 = vpop.f32.mrb[126].mxu1 }
 0x6bd   :  { %v4304_v11 = vpop.f32.mrb[127].mxu1 }
 0x6c0   :  { %v4687_v54 = vpop.f32.mrb[126].mxu0 }
 0x6c1   :  { %v4688_v15 = vadd.f32 %v4687_v54, %v4302_v63  ;;  %v4689_v34 = vpop.f32.mrb[127].mxu0 }
 0x6c3   :  { %4754 = vst [vmem:[#allocation2 + $0x1f8] sm:$0xff] %v4688_v15 }
 0x6c4   :  { %5373 = shalt.err (!%p5370_p4)
}
 0x6c5   :  { %s5374_s19 = scalar_lea.hbm %s12601_s2, 8192 }
 0x6c6   :  { %p5375_p5 = scmp.ne.s32.totalorder %s12601_s2, %s5374_s19  ;;  %p5378_p6 = scmp.lt.u32.totalorder %s5374_s19, %s12601_s2 }
 0x6c8   :  { %p5380_p7 = pnand %p5378_p6, %p5375_p5 }
 0x6ca   :  { %5383 = shalt.err (!%p5380_p7)
}
 0x6cb   :  { %s5394_s23 = smov 128   ;;  %s5395_s24 = smov 8  }
 0x6cc   :  { %4766 = dma.vmem_to_hbm [thread:$0]  %s4761_s15, 8192, %s12601_s2, [#allocation3], %s5394_s23, %s5394_s23, %s5395_s24  }
 0x6cd   :  { %5384 = dma.done.wait [#allocation3], 8192  }
 0x6ce   :  { %5385 = vsyncadd [#allocation3], 4294959104 }
 0x6cf   :  { %4770 = vsyncpa [#allocation3], 1 }

</bundles_post_ra>
